<compile_context>
chip_gen: v7x
topology: tpu7x:2x2x1
jax: 0.10.0
libtpu: 0.0.40
codegen_flags: <defaults>
</compile_context>

<pallas_src>
import math

import jax
import jax.numpy as jnp
from jax.experimental import pallas as pl
from jax.experimental.pallas import tpu as pltpu


def _round_up(x, m):
    return (x + m - 1) // m * m


def _pad_gate_cols(w, H, Hpad):
    """(..., 3H) -> (..., 3Hpad) with gate k placed at [k*Hpad : k*Hpad+H]."""
    parts = []
    for k in range(3):
        g = w[..., k * H:(k + 1) * H]
        pad_width = [(0, 0)] * (w.ndim - 1) + [(0, Hpad - H)]
        parts.append(jnp.pad(g, pad_width))
    return jnp.concatenate(parts, axis=-1)


def _layer_vmem_bytes(Tc, ND, B, Hpad, stream_itemsize):
    """Estimated VMEM for one layer call (double-buffered gi/out + weights)."""
    Bp = _round_up(B, 16)                       # sublane/packing padding
    gi = ND * 2 * Tc * Bp * 3 * Hpad * stream_itemsize
    out = ND * 2 * Tc * Bp * Hpad * stream_itemsize
    whh = 2 * ND * Hpad * 3 * Hpad * 4
    bhn = 2 * ND * 8 * Hpad * 4
    h = ND * Bp * Hpad * 4
    return gi + out + whh + bhn + h


def _vmem_budget_bytes():
    """Generation-aware VMEM budget (v7x has 64 MiB vs 128 MiB on v5e/v6e)."""
    cap = 128 * 1024 * 1024
    try:
        cap = int(pltpu.get_tpu_info().vmem_capacity_bytes)
    except Exception:
        pass
    # ~40% headroom for compiler scratch / semaphores / misc.
    return max(8 * 1024 * 1024, min(int(cap * 0.6), 72 * 1024 * 1024))


def _make_bigru_kernel(ND, B, Hpad, Tc, T, Tpad):
    """Recurrent kernel: grid axis 0 = time chunks (sequential).

    Refs (in order): gi_refs[ND] (Tc,B,3Hpad), whh (ND,Hpad,3Hpad),
    bhn (ND,1,Hpad), out_refs[ND] (Tc,B,Hpad), h scratch (ND,B,Hpad) f32.
    Direction 1 consumes its gi stream and writes its output through
    reversed-chunk BlockSpecs, reading/writing in-chunk index Tc-1-s, so both
    HBM streams stay in forward time order (no host-side flips).
    """

    def kernel(*refs):
        gi_refs = refs[:ND]
        whh_ref = refs[ND]
        bhn_ref = refs[ND + 1]
        out_refs = refs[ND + 2:2 * ND + 2]
        h_ref = refs[2 * ND + 2]

        c = pl.program_id(0)

        @pl.when(c == 0)
        def _init():
            h_ref[...] = jnp.zeros_like(h_ref)

        # Hoisted once per grid step (constant across the Tc inner steps);
        # bhn arrives as (ND,1,Hpad) and is broadcast in-kernel.
        bhn = [jnp.broadcast_to(bhn_ref[d], (B, Hpad)) for d in range(ND)]

        def step(s, carry):
            for d in range(ND):
                t_idx = s if d == 0 else Tc - 1 - s
                h = h_ref[d]                                    # (B, Hpad) f32
                gi = gi_refs[d][t_idx].astype(jnp.float32)      # (B, 3Hpad)

                # Small recurrent matmul only; explicit 2-D dot per direction.
                gh = jnp.dot(h, whh_ref[d],
                             preferred_element_type=jnp.float32)

                # PyTorch gate order r, z, n; b_hr/b_hz are folded into gi.
                r = jax.nn.sigmoid(gi[:, :Hpad] + gh[:, :Hpad])
                z = jax.nn.sigmoid(gi[:, Hpad:2 * Hpad] + gh[:, Hpad:2 * Hpad])
                n = jnp.tanh(gi[:, 2 * Hpad:] + r * (gh[:, 2 * Hpad:] + bhn[d]))
                h_new = (1.0 - z) * n + z * h

                if Tpad != T:
                    # Freeze the recurrence on padded sweep steps; the masked
                    # value is computed in registers and written to BOTH
                    # destinations (no scratch read-back on the critical path).
                    g = c * Tc + s
                    keep = (g < T) if d == 0 else (g >= Tpad - T)
                    h_new = jnp.where(keep, h_new, h)

                h_ref[d] = h_new
                out_refs[d][t_idx] = h_new.astype(out_refs[d].dtype)
            return carry

        # Moderate unroll (<=8): the steps are serially dependent, so unroll
        # only removes loop overhead; full unroll risks vreg spills.
        jax.lax.fori_loop(0, Tc, step, 0, unroll=min(Tc, 8))

    return kernel


def _bigru_layer(gi_list, whh_all, bhn_all, *, T, Tpad, Tc, num_chunks,
                 out_dtype):
    """Run one (bi)GRU layer over precomputed, forward-time-ordered gi streams."""
    ND = len(gi_list)
    _, B, G3 = gi_list[0].shape
    Hpad = G3 // 3
    kernel = _make_bigru_kernel(ND, B, Hpad, Tc, T, Tpad)

    gi_specs = [pl.BlockSpec((Tc, B, 3 * Hpad), lambda c: (c, 0, 0))]
    out_specs = [pl.BlockSpec((Tc, B, Hpad), lambda c: (c, 0, 0))]
    if ND == 2:
        gi_specs.append(
            pl.BlockSpec((Tc, B, 3 * Hpad),
                         lambda c: (num_chunks - 1 - c, 0, 0)))
        out_specs.append(
            pl.BlockSpec((Tc, B, Hpad),
                         lambda c: (num_chunks - 1 - c, 0, 0)))

    need = _layer_vmem_bytes(Tc, ND, B, Hpad, jnp.dtype(out_dtype).itemsize)
    vmem_limit = max(32 * 1024 * 1024, int(need * 1.25) + (2 << 20))

    result = pl.pallas_call(
        kernel,
        out_shape=tuple(
            jax.ShapeDtypeStruct((Tpad, B, Hpad), out_dtype) for _ in range(ND)),
        grid_spec=pltpu.PrefetchScalarGridSpec(
            num_scalar_prefetch=0,
            grid=(num_chunks,),
            in_specs=gi_specs + [
                pl.BlockSpec((ND, Hpad, 3 * Hpad), lambda c: (0, 0, 0)),
                pl.BlockSpec((ND, 1, Hpad), lambda c: (0, 0, 0)),
            ],
            out_specs=out_specs,
            scratch_shapes=[pltpu.VMEM((ND, B, Hpad), jnp.float32)],
        ),
        compiler_params=pltpu.CompilerParams(
            dimension_semantics=("arbitrary",),      # sequential recurrence
            vmem_limit_bytes=vmem_limit,
        ),
    )(*gi_list, whh_all, bhn_all)
    return result if isinstance(result, (list, tuple)) else (result,)


def init_gru_params(key, input_size, hidden_size, num_layers, bidirectional):
    """Deterministic PyTorch-style init: U(-1/sqrt(H), 1/sqrt(H))."""
    num_directions = 2 if bidirectional else 1
    bound = 1.0 / math.sqrt(hidden_size)
    params = []
    for layer in range(num_layers):
        layer_input = input_size if layer == 0 else hidden_size * num_directions
        dir_params = []
        for _ in range(num_directions):
            key, k1, k2, k3, k4 = jax.random.split(key, 5)
            w_ih = jax.random.uniform(k1, (3 * hidden_size, layer_input),
                                      jnp.float32, -bound, bound)
            w_hh = jax.random.uniform(k2, (3 * hidden_size, hidden_size),
                                      jnp.float32, -bound, bound)
            b_ih = jax.random.uniform(k3, (3 * hidden_size,), jnp.float32,
                                      -bound, bound)
            b_hh = jax.random.uniform(k4, (3 * hidden_size,), jnp.float32,
                                      -bound, bound)
            dir_params.append((w_ih, w_hh, b_ih, b_hh))
        params.append(dir_params)
    return params, key


def gru_forward(x_btd, params, hidden_size, *, time_chunk=128,
                compute_dtype=jnp.bfloat16):
    """Multi-layer (bi)GRU. Input (B, T, D) batch-first, output (B, T, H*dirs)."""
    B, T, _ = x_btd.shape
    H = hidden_size
    Hpad = _round_up(H, 128)
    ND = len(params[0])
    compute_dtype = jnp.dtype(compute_dtype)
    stream_isz = compute_dtype.itemsize

    # Budget Tc so double-buffered gi/out blocks + weights fit the per-chip
    # VMEM budget (v7x is the tightest at 64 MiB physical).
    budget = _vmem_budget_bytes()
    Tc = max(1, min(time_chunk, T))
    while Tc > 8 and _layer_vmem_bytes(Tc, ND, B, Hpad, stream_isz) > budget:
        Tc = max(8, Tc // 2)
    num_chunks = -(-T // Tc)
    Tpad = num_chunks * Tc

    # bf16 operands + f32 accumulation for the throughput-bound projections;
    # the f32 validation path keeps HIGHEST for exact numerics.
    mm_precision = (jax.lax.Precision.HIGHEST
                    if compute_dtype == jnp.dtype(jnp.float32)
                    else jax.lax.Precision.DEFAULT)

    prev = None   # tuple of per-direction (Tpad, B, Hpad) outputs, fwd time order

    for layer_idx, dir_params in enumerate(params):
        gi_list, whh_dirs, bhn_dirs = [], [], []
        for (w_ih, w_hh, b_ih, b_hh) in dir_params:
            wihT = _pad_gate_cols(jnp.transpose(w_ih), H, Hpad)     # (Din, 3Hpad)
            # Fold b_hh for the r/z gates into the hoisted projection bias.
            gi_bias = _pad_gate_cols(
                (b_ih + jnp.concatenate(
                    [b_hh[:2 * H], jnp.zeros((H,), b_hh.dtype)]))[None, :],
                H, Hpad)                                            # (1, 3Hpad)
            whhT = jnp.pad(_pad_gate_cols(jnp.transpose(w_hh), H, Hpad),
                           ((0, Hpad - H), (0, 0)))                 # (Hpad, 3Hpad)
            bhn = jnp.pad(b_hh[2 * H:], (0, Hpad - H))              # (Hpad,)

            if layer_idx == 0:
                # Hoisted input projection over all timesteps; the einsum folds
                # the batch-first -> time-major transpose into the matmul.
                gi = jnp.einsum('btd,dg->tbg',
                                x_btd.astype(compute_dtype),
                                wihT.astype(compute_dtype),
                                precision=mm_precision,
                                preferred_element_type=jnp.float32) + gi_bias
                gi = jnp.pad(gi, ((0, Tpad - T), (0, 0), (0, 0)))
            else:
                # Previous layer's per-direction outputs are already in forward
                # time order; concatenate along lanes -> a single K=ND*Hpad
                # projection matmul per direction (fills the MXU depth).
                feats = prev[0] if ND == 1 else jnp.concatenate(prev, axis=-1)
                w_rows = [jnp.pad(wihT[k * H:(k + 1) * H],
                                  ((0, Hpad - H), (0, 0))) for k in range(ND)]
                w_cat = jnp.concatenate(w_rows, axis=0)             # (ND*Hpad, 3Hpad)
                gi = jnp.einsum('tbh,hg->tbg',
                                feats.astype(compute_dtype),
                                w_cat.astype(compute_dtype),
                                precision=mm_precision,
                                preferred_element_type=jnp.float32) + gi_bias

            gi_list.append(gi.astype(compute_dtype))   # (Tpad, B, 3Hpad) stream
            whh_dirs.append(whhT)
            bhn_dirs.append(bhn)

        whh_all = jnp.stack(whh_dirs, axis=0)                  # (ND, Hpad, 3Hpad) f32
        bhn_all = jnp.stack(bhn_dirs, axis=0)[:, None, :]      # (ND, 1, Hpad) f32

        prev = _bigru_layer(gi_list, whh_all, bhn_all,
                            T=T, Tpad=Tpad, Tc=Tc, num_chunks=num_chunks,
                            out_dtype=compute_dtype)

    y_parts = [prev[d][:T, :, :H] for d in range(ND)]          # each (T, B, H)
    y = y_parts[0] if ND == 1 else jnp.concatenate(y_parts, axis=-1)
    return jnp.transpose(y, (1, 0, 2)).astype(x_btd.dtype)     # (B, T, ND*H)


class SentenceEncoding:
    """JAX/Pallas counterpart of model/r_net.py::SentenceEncoding (eval mode)."""

    def __init__(self, input_size, hidden_size, num_layers, bidirectional,
                 dropout, key, time_chunk=128, compute_dtype=jnp.bfloat16):
        del dropout  # eval-mode forward: inter-layer dropout is identity
        self.hidden_size = hidden_size
        self.time_chunk = time_chunk
        self.compute_dtype = compute_dtype
        self.q_params, key = init_gru_params(
            key, input_size, hidden_size, num_layers, bidirectional)
        self.p_params, key = init_gru_params(
            key, input_size, hidden_size, num_layers, bidirectional)

    def __call__(self, question_embedding, passage_embedding):
        q = gru_forward(question_embedding, self.q_params, self.hidden_size,
                        time_chunk=self.time_chunk,
                        compute_dtype=self.compute_dtype)
        p = gru_forward(passage_embedding, self.p_params, self.hidden_size,
                        time_chunk=self.time_chunk,
                        compute_dtype=self.compute_dtype)
        return q, p


# ----------------------------- pure-JAX reference ---------------------------

def _gru_ref_dir(x_tbd, w_ih, w_hh, b_ih, b_hh, reverse):
    H = w_hh.shape[1]
    B = x_tbd.shape[1]
    xs = jnp.flip(x_tbd, axis=0) if reverse else x_tbd
    h0 = jnp.zeros((B, H), jnp.float32)
    HIGHEST = jax.lax.Precision.HIGHEST

    def step(h, x_t):
        gi = jnp.dot(x_t, w_ih.T, precision=HIGHEST) + b_ih
        gh = jnp.dot(h, w_hh.T, precision=HIGHEST) + b_hh
        r = jax.nn.sigmoid(gi[:, :H] + gh[:, :H])
        z = jax.nn.sigmoid(gi[:, H:2 * H] + gh[:, H:2 * H])
        n = jnp.tanh(gi[:, 2 * H:] + r * gh[:, 2 * H:])
        h_new = (1.0 - z) * n + z * h
        return h_new, h_new

    _, ys = jax.lax.scan(step, h0, xs)
    return jnp.flip(ys, axis=0) if reverse else ys


def gru_ref(x_btd, params):
    x = jnp.transpose(x_btd, (1, 0, 2))
    for dir_params in params:
        outs = [_gru_ref_dir(x, *p, reverse=(d == 1))
                for d, p in enumerate(dir_params)]
        x = jnp.concatenate(outs, axis=-1) if len(outs) > 1 else outs[0]
    return jnp.transpose(x, (1, 0, 2))


if __name__ == "__main__":
    batch = 2
    q_len = 8
    p_len = 12
    input_size = 32
    hidden_size = 16
    num_layers = 2
    bidirectional = True

    key = jax.random.PRNGKey(0)
    key, kq, kp, kparams = jax.random.split(key, 4)
    question_embedding = jax.random.normal(kq, (batch, q_len, input_size),
                                           jnp.float32)
    passage_embedding = jax.random.normal(kp, (batch, p_len, input_size),
                                          jnp.float32)

    # time_chunk=8 exercises both the single-chunk (q_len=8) and the
    # padded/multi-chunk/reversed-index-map (p_len=12 -> Tpad=16) code paths.
    model = SentenceEncoding(input_size, hidden_size, num_layers,
                             bidirectional, dropout=0.0, key=kparams,
                             time_chunk=8, compute_dtype=jnp.bfloat16)

    fwd = jax.jit(model.__call__)
    q_out, p_out = fwd(question_embedding, passage_embedding)
    q_out = jax.block_until_ready(q_out)
    p_out = jax.block_until_ready(p_out)

    nd = 2 if bidirectional else 1
    assert q_out.shape == (batch, q_len, hidden_size * nd), q_out.shape
    assert p_out.shape == (batch, p_len, hidden_size * nd), p_out.shape
    assert bool(jnp.all(jnp.isfinite(q_out))) and bool(jnp.all(jnp.isfinite(p_out)))

    # Exact-semantics check: the f32 compute path vs a pure-JAX lax.scan GRU.
    f32_fwd = jax.jit(lambda x, p: gru_forward(
        x, p, hidden_size, time_chunk=8, compute_dtype=jnp.float32))
    q32 = jax.block_until_ready(f32_fwd(question_embedding, model.q_params))
    p32 = jax.block_until_ready(f32_fwd(passage_embedding, model.p_params))
    q_ref = gru_ref(question_embedding, model.q_params)
    p_ref = gru_ref(passage_embedding, model.p_params)
    err_q32 = float(jnp.max(jnp.abs(q32 - q_ref)))
    err_p32 = float(jnp.max(jnp.abs(p32 - p_ref)))
    assert err_q32 < 1e-3, f"f32 question mismatch: max abs err {err_q32}"
    assert err_p32 < 1e-3, f"f32 passage mismatch: max abs err {err_p32}"

    # Loose check for the default bf16 streaming path (precision-only delta;
    # exact semantics are guaranteed by the f32 check above).
    err_qb = float(jnp.max(jnp.abs(q_out - q_ref)))
    err_pb = float(jnp.max(jnp.abs(p_out - p_ref)))
    assert err_qb < 2e-1, f"bf16 question mismatch: max abs err {err_qb}"
    assert err_pb < 2e-1, f"bf16 passage mismatch: max abs err {err_pb}"

    print("KERNEL_OK")
</pallas_src>

<mosaic_0001>
module attributes {stable_mosaic.version = 11 : i64} {
  func.func @kernel(%arg0: i32, %arg1: memref<8x2x384xbf16, #tpu.memory_space<vmem>>, %arg2: memref<8x2x384xbf16, #tpu.memory_space<vmem>>, %arg3: memref<2x128x384xf32, #tpu.memory_space<vmem>>, %arg4: memref<2x1x128xf32, #tpu.memory_space<vmem>>, %arg5: memref<8x2x128xbf16, #tpu.memory_space<vmem>>, %arg6: memref<8x2x128xbf16, #tpu.memory_space<vmem>>, %arg7: memref<2x2x128xf32, #tpu.memory_space<vmem>>) attributes {dimension_semantics = [#tpu.dimension_semantics<arbitrary>], iteration_bounds = array<i64: 2>, scalar_prefetch = 0 : i64, scratch_operands = 1 : i64, tpu.core_type = #tpu.core_type<tc>, window_params = [{transform_indices = @transform_0, window_bounds = array<i64: 8, 2, 384>}, {transform_indices = @transform_1, window_bounds = array<i64: 8, 2, 384>}, {pipeline_mode = #tpu.pipeline_mode<synchronous>, transform_indices = @transform_2, window_bounds = array<i64: 2, 128, 384>}, {pipeline_mode = #tpu.pipeline_mode<synchronous>, transform_indices = @transform_3, window_bounds = array<i64: 2, 1, 128>}, {transform_indices = @transform_4, window_bounds = array<i64: 8, 2, 128>}, {transform_indices = @transform_5, window_bounds = array<i64: 8, 2, 128>}]} {
    %c0_i32 = arith.constant 0 : i32
    %0 = arith.cmpi eq, %arg0, %c0_i32 : i32
    %1 = arith.extui %0 : i1 to i32
    %c0_i32_0 = arith.constant 0 : i32
    %2 = arith.cmpi ne, %1, %c0_i32_0 : i32
    scf.if %2 {
      %cst_316 = arith.constant 0.000000e+00 : f32
      %787 = vector.broadcast %cst_316 : f32 to vector<2x2x128xf32>
      %c0_317 = arith.constant 0 : index
      %c0_318 = arith.constant 0 : index
      %c0_319 = arith.constant 0 : index
      %788 = vector.load %arg7[%c0_317, %c0_318, %c0_319] : memref<2x2x128xf32, #tpu.memory_space<vmem>>, vector<2x2x128xf32>
      tpu.vector_store %arg7[%c0_317, %c0_318, %c0_319], %787 {strides = array<i32>} : memref<2x2x128xf32, #tpu.memory_space<vmem>>, vector<2x2x128xf32>,
    } else {
    }
    %c0 = arith.constant 0 : index
    %c0_1 = arith.constant 0 : index
    %c0_2 = arith.constant 0 : index
    %3 = vector.load %arg4[%c0, %c0_1, %c0_2] : memref<2x1x128xf32, #tpu.memory_space<vmem>>, vector<1x1x128xf32>
    %4 = vector.shape_cast %3 : vector<1x1x128xf32> to vector<1x128xf32>
    %5 = vector.shape_cast %4 : vector<1x128xf32> to vector<1x128xf32>
    %6 = vector.broadcast %5 : vector<1x128xf32> to vector<2x128xf32>
    %c1 = arith.constant 1 : index
    %c0_3 = arith.constant 0 : index
    %c0_4 = arith.constant 0 : index
    %7 = vector.load %arg4[%c1, %c0_3, %c0_4] : memref<2x1x128xf32, #tpu.memory_space<vmem>>, vector<1x1x128xf32>
    %8 = vector.shape_cast %7 : vector<1x1x128xf32> to vector<1x128xf32>
    %9 = vector.shape_cast %8 : vector<1x128xf32> to vector<1x128xf32>
    %10 = vector.broadcast %9 : vector<1x128xf32> to vector<2x128xf32>
    %c0_i32_5 = arith.constant 0 : i32
    %c0_6 = arith.constant 0 : index
    %c0_7 = arith.constant 0 : index
    %c0_8 = arith.constant 0 : index
    %11 = vector.load %arg7[%c0_6, %c0_7, %c0_8] : memref<2x2x128xf32, #tpu.memory_space<vmem>>, vector<1x2x128xf32>
    %12 = vector.shape_cast %11 : vector<1x2x128xf32> to vector<2x128xf32>
    %13 = arith.index_cast %c0_i32_5 : i32 to index
    %c0_9 = arith.constant 0 : index
    %c0_10 = arith.constant 0 : index
    %14 = vector.load %arg1[%13, %c0_9, %c0_10] : memref<8x2x384xbf16, #tpu.memory_space<vmem>>, vector<1x2x384xbf16>
    %15 = vector.shape_cast %14 : vector<1x2x384xbf16> to vector<2x384xbf16>
    %16 = arith.extf %15 : vector<2x384xbf16> to vector<2x384xf32>
    %c0_11 = arith.constant 0 : index
    %c0_12 = arith.constant 0 : index
    %c0_13 = arith.constant 0 : index
    %17 = vector.load %arg3[%c0_11, %c0_12, %c0_13] : memref<2x128x384xf32, #tpu.memory_space<vmem>>, vector<1x128x384xf32>
    %18 = vector.shape_cast %17 : vector<1x128x384xf32> to vector<128x384xf32>
    %cst = arith.constant dense<0.000000e+00> : vector<2x384xf32>
    %19 = tpu.matmul %12, %18, %cst {dimension_numbers = #tpu.dot_dimension_numbers<[1], [0], [0], [1], [0, 0, 1, 1], [], []>} : vector<2x128xf32>, vector<128x384xf32>, vector<2x384xf32> -> vector<2x384xf32>
    %20 = vector.extract_strided_slice %16 {offsets = [0, 0], sizes = [2, 128], strides = [1, 1]} : vector<2x384xf32> to vector<2x128xf32>
    %21 = vector.extract_strided_slice %19 {offsets = [0, 0], sizes = [2, 128], strides = [1, 1]} : vector<2x384xf32> to vector<2x128xf32>
    %22 = arith.addf %20, %21 : vector<2x128xf32>
    %23 = arith.negf %22 : vector<2x128xf32>
    %24 = math.exp %23 : vector<2x128xf32>
    %cst_14 = arith.constant 1.000000e+00 : f32
    %25 = vector.broadcast %cst_14 : f32 to vector<2x128xf32>
    %26 = arith.addf %25, %24 : vector<2x128xf32>
    %27 = arith.divf %25, %26 : vector<2x128xf32>
    %28 = vector.extract_strided_slice %16 {offsets = [0, 128], sizes = [2, 128], strides = [1, 1]} : vector<2x384xf32> to vector<2x128xf32>
    %29 = vector.extract_strided_slice %19 {offsets = [0, 128], sizes = [2, 128], strides = [1, 1]} : vector<2x384xf32> to vector<2x128xf32>
    %30 = arith.addf %28, %29 : vector<2x128xf32>
    %31 = arith.negf %30 : vector<2x128xf32>
    %32 = math.exp %31 : vector<2x128xf32>
    %cst_15 = arith.constant 1.000000e+00 : f32
    %33 = vector.broadcast %cst_15 : f32 to vector<2x128xf32>
    %34 = arith.addf %33, %32 : vector<2x128xf32>
    %35 = arith.divf %33, %34 : vector<2x128xf32>
    %36 = vector.extract_strided_slice %16 {offsets = [0, 256], sizes = [2, 128], strides = [1, 1]} : vector<2x384xf32> to vector<2x128xf32>
    %37 = vector.extract_strided_slice %19 {offsets = [0, 256], sizes = [2, 128], strides = [1, 1]} : vector<2x384xf32> to vector<2x128xf32>
    %38 = arith.addf %37, %6 : vector<2x128xf32>
    %39 = arith.mulf %27, %38 : vector<2x128xf32>
    %40 = arith.addf %36, %39 : vector<2x128xf32>
    %41 = math.tanh %40 : vector<2x128xf32>
    %cst_16 = arith.constant 1.000000e+00 : f32
    %42 = vector.broadcast %cst_16 : f32 to vector<2x128xf32>
    %43 = arith.subf %42, %35 : vector<2x128xf32>
    %44 = arith.mulf %43, %41 : vector<2x128xf32>
    %45 = arith.mulf %35, %12 : vector<2x128xf32>
    %46 = arith.addf %44, %45 : vector<2x128xf32>
    %c8_i32 = arith.constant 8 : i32
    %47 = arith.muli %arg0, %c8_i32 : i32
    %48 = arith.addi %47, %c0_i32_5 : i32
    %c12_i32 = arith.constant 12 : i32
    %49 = arith.cmpi slt, %48, %c12_i32 : i32
    %50 = arith.select %49, %46, %12 : vector<2x128xf32>
    %c0_17 = arith.constant 0 : index
    %c0_18 = arith.constant 0 : index
    %c0_19 = arith.constant 0 : index
    %51 = vector.load %arg7[%c0_17, %c0_18, %c0_19] : memref<2x2x128xf32, #tpu.memory_space<vmem>>, vector<1x2x128xf32>
    %52 = vector.shape_cast %51 : vector<1x2x128xf32> to vector<2x128xf32>
    %53 = vector.shape_cast %50 : vector<2x128xf32> to vector<1x2x128xf32>
    tpu.vector_store %arg7[%c0_17, %c0_18, %c0_19], %53 {strides = array<i32>} : memref<2x2x128xf32, #tpu.memory_space<vmem>>, vector<1x2x128xf32>,
    %54 = arith.truncf %50 : vector<2x128xf32> to vector<2x128xbf16>
    %55 = arith.index_cast %c0_i32_5 : i32 to index
    %c0_20 = arith.constant 0 : index
    %c0_21 = arith.constant 0 : index
    %56 = vector.load %arg5[%55, %c0_20, %c0_21] : memref<8x2x128xbf16, #tpu.memory_space<vmem>>, vector<1x2x128xbf16>
    %57 = vector.shape_cast %56 : vector<1x2x128xbf16> to vector<2x128xbf16>
    %58 = vector.shape_cast %54 : vector<2x128xbf16> to vector<1x2x128xbf16>
    tpu.vector_store %arg5[%55, %c0_20, %c0_21], %58 {strides = array<i32>} : memref<8x2x128xbf16, #tpu.memory_space<vmem>>, vector<1x2x128xbf16>,
    %c7_i32 = arith.constant 7 : i32
    %59 = arith.subi %c7_i32, %c0_i32_5 : i32
    %c1_22 = arith.constant 1 : index
    %c0_23 = arith.constant 0 : index
    %c0_24 = arith.constant 0 : index
    %60 = vector.load %arg7[%c1_22, %c0_23, %c0_24] : memref<2x2x128xf32, #tpu.memory_space<vmem>>, vector<1x2x128xf32>
    %61 = vector.shape_cast %60 : vector<1x2x128xf32> to vector<2x128xf32>
    %62 = arith.index_cast %59 : i32 to index
    %c0_25 = arith.constant 0 : index
    %c0_26 = arith.constant 0 : index
    %63 = vector.load %arg2[%62, %c0_25, %c0_26] : memref<8x2x384xbf16, #tpu.memory_space<vmem>>, vector<1x2x384xbf16>
    %64 = vector.shape_cast %63 : vector<1x2x384xbf16> to vector<2x384xbf16>
    %65 = arith.extf %64 : vector<2x384xbf16> to vector<2x384xf32>
    %c1_27 = arith.constant 1 : index
    %c0_28 = arith.constant 0 : index
    %c0_29 = arith.constant 0 : index
    %66 = vector.load %arg3[%c1_27, %c0_28, %c0_29] : memref<2x128x384xf32, #tpu.memory_space<vmem>>, vector<1x128x384xf32>
    %67 = vector.shape_cast %66 : vector<1x128x384xf32> to vector<128x384xf32>
    %cst_30 = arith.constant dense<0.000000e+00> : vector<2x384xf32>
    %68 = tpu.matmul %61, %67, %cst_30 {dimension_numbers = #tpu.dot_dimension_numbers<[1], [0], [0], [1], [0, 0, 1, 1], [], []>} : vector<2x128xf32>, vector<128x384xf32>, vector<2x384xf32> -> vector<2x384xf32>
    %69 = vector.extract_strided_slice %65 {offsets = [0, 0], sizes = [2, 128], strides = [1, 1]} : vector<2x384xf32> to vector<2x128xf32>
    %70 = vector.extract_strided_slice %68 {offsets = [0, 0], sizes = [2, 128], strides = [1, 1]} : vector<2x384xf32> to vector<2x128xf32>
    %71 = arith.addf %69, %70 : vector<2x128xf32>
    %72 = arith.negf %71 : vector<2x128xf32>
    %73 = math.exp %72 : vector<2x128xf32>
    %cst_31 = arith.constant 1.000000e+00 : f32
    %74 = vector.broadcast %cst_31 : f32 to vector<2x128xf32>
    %75 = arith.addf %74, %73 : vector<2x128xf32>
    %76 = arith.divf %74, %75 : vector<2x128xf32>
    %77 = vector.extract_strided_slice %65 {offsets = [0, 128], sizes = [2, 128], strides = [1, 1]} : vector<2x384xf32> to vector<2x128xf32>
    %78 = vector.extract_strided_slice %68 {offsets = [0, 128], sizes = [2, 128], strides = [1, 1]} : vector<2x384xf32> to vector<2x128xf32>
    %79 = arith.addf %77, %78 : vector<2x128xf32>
    %80 = arith.negf %79 : vector<2x128xf32>
    %81 = math.exp %80 : vector<2x128xf32>
    %cst_32 = arith.constant 1.000000e+00 : f32
    %82 = vector.broadcast %cst_32 : f32 to vector<2x128xf32>
    %83 = arith.addf %82, %81 : vector<2x128xf32>
    %84 = arith.divf %82, %83 : vector<2x128xf32>
    %85 = vector.extract_strided_slice %65 {offsets = [0, 256], sizes = [2, 128], strides = [1, 1]} : vector<2x384xf32> to vector<2x128xf32>
    %86 = vector.extract_strided_slice %68 {offsets = [0, 256], sizes = [2, 128], strides = [1, 1]} : vector<2x384xf32> to vector<2x128xf32>
    %87 = arith.addf %86, %10 : vector<2x128xf32>
    %88 = arith.mulf %76, %87 : vector<2x128xf32>
    %89 = arith.addf %85, %88 : vector<2x128xf32>
    %90 = math.tanh %89 : vector<2x128xf32>
    %cst_33 = arith.constant 1.000000e+00 : f32
    %91 = vector.broadcast %cst_33 : f32 to vector<2x128xf32>
    %92 = arith.subf %91, %84 : vector<2x128xf32>
    %93 = arith.mulf %92, %90 : vector<2x128xf32>
    %94 = arith.mulf %84, %61 : vector<2x128xf32>
    %95 = arith.addf %93, %94 : vector<2x128xf32>
    %c8_i32_34 = arith.constant 8 : i32
    %96 = arith.muli %arg0, %c8_i32_34 : i32
    %97 = arith.addi %96, %c0_i32_5 : i32
    %c4_i32 = arith.constant 4 : i32
    %98 = arith.cmpi sge, %97, %c4_i32 : i32
    %99 = arith.select %98, %95, %61 : vector<2x128xf32>
    %c1_35 = arith.constant 1 : index
    %c0_36 = arith.constant 0 : index
    %c0_37 = arith.constant 0 : index
    %100 = vector.load %arg7[%c1_35, %c0_36, %c0_37] : memref<2x2x128xf32, #tpu.memory_space<vmem>>, vector<1x2x128xf32>
    %101 = vector.shape_cast %100 : vector<1x2x128xf32> to vector<2x128xf32>
    %102 = vector.shape_cast %99 : vector<2x128xf32> to vector<1x2x128xf32>
    tpu.vector_store %arg7[%c1_35, %c0_36, %c0_37], %102 {strides = array<i32>} : memref<2x2x128xf32, #tpu.memory_space<vmem>>, vector<1x2x128xf32>,
    %103 = arith.truncf %99 : vector<2x128xf32> to vector<2x128xbf16>
    %104 = arith.index_cast %59 : i32 to index
    %c0_38 = arith.constant 0 : index
    %c0_39 = arith.constant 0 : index
    %105 = vector.load %arg6[%104, %c0_38, %c0_39] : memref<8x2x128xbf16, #tpu.memory_space<vmem>>, vector<1x2x128xbf16>
    %106 = vector.shape_cast %105 : vector<1x2x128xbf16> to vector<2x128xbf16>
    %107 = vector.shape_cast %103 : vector<2x128xbf16> to vector<1x2x128xbf16>
    tpu.vector_store %arg6[%104, %c0_38, %c0_39], %107 {strides = array<i32>} : memref<8x2x128xbf16, #tpu.memory_space<vmem>>, vector<1x2x128xbf16>,
    %c1_i32 = arith.constant 1 : i32
    %c0_40 = arith.constant 0 : index
    %c0_41 = arith.constant 0 : index
    %c0_42 = arith.constant 0 : index
    %108 = vector.load %arg7[%c0_40, %c0_41, %c0_42] : memref<2x2x128xf32, #tpu.memory_space<vmem>>, vector<1x2x128xf32>
    %109 = vector.shape_cast %108 : vector<1x2x128xf32> to vector<2x128xf32>
    %110 = arith.index_cast %c1_i32 : i32 to index
    %c0_43 = arith.constant 0 : index
    %c0_44 = arith.constant 0 : index
    %111 = vector.load %arg1[%110, %c0_43, %c0_44] : memref<8x2x384xbf16, #tpu.memory_space<vmem>>, vector<1x2x384xbf16>
    %112 = vector.shape_cast %111 : vector<1x2x384xbf16> to vector<2x384xbf16>
    %113 = arith.extf %112 : vector<2x384xbf16> to vector<2x384xf32>
    %c0_45 = arith.constant 0 : index
    %c0_46 = arith.constant 0 : index
    %c0_47 = arith.constant 0 : index
    %114 = vector.load %arg3[%c0_45, %c0_46, %c0_47] : memref<2x128x384xf32, #tpu.memory_space<vmem>>, vector<1x128x384xf32>
    %115 = vector.shape_cast %114 : vector<1x128x384xf32> to vector<128x384xf32>
    %cst_48 = arith.constant dense<0.000000e+00> : vector<2x384xf32>
    %116 = tpu.matmul %109, %115, %cst_48 {dimension_numbers = #tpu.dot_dimension_numbers<[1], [0], [0], [1], [0, 0, 1, 1], [], []>} : vector<2x128xf32>, vector<128x384xf32>, vector<2x384xf32> -> vector<2x384xf32>
    %117 = vector.extract_strided_slice %113 {offsets = [0, 0], sizes = [2, 128], strides = [1, 1]} : vector<2x384xf32> to vector<2x128xf32>
    %118 = vector.extract_strided_slice %116 {offsets = [0, 0], sizes = [2, 128], strides = [1, 1]} : vector<2x384xf32> to vector<2x128xf32>
    %119 = arith.addf %117, %118 : vector<2x128xf32>
    %120 = arith.negf %119 : vector<2x128xf32>
    %121 = math.exp %120 : vector<2x128xf32>
    %cst_49 = arith.constant 1.000000e+00 : f32
    %122 = vector.broadcast %cst_49 : f32 to vector<2x128xf32>
    %123 = arith.addf %122, %121 : vector<2x128xf32>
    %124 = arith.divf %122, %123 : vector<2x128xf32>
    %125 = vector.extract_strided_slice %113 {offsets = [0, 128], sizes = [2, 128], strides = [1, 1]} : vector<2x384xf32> to vector<2x128xf32>
    %126 = vector.extract_strided_slice %116 {offsets = [0, 128], sizes = [2, 128], strides = [1, 1]} : vector<2x384xf32> to vector<2x128xf32>
    %127 = arith.addf %125, %126 : vector<2x128xf32>
    %128 = arith.negf %127 : vector<2x128xf32>
    %129 = math.exp %128 : vector<2x128xf32>
    %cst_50 = arith.constant 1.000000e+00 : f32
    %130 = vector.broadcast %cst_50 : f32 to vector<2x128xf32>
    %131 = arith.addf %130, %129 : vector<2x128xf32>
    %132 = arith.divf %130, %131 : vector<2x128xf32>
    %133 = vector.extract_strided_slice %113 {offsets = [0, 256], sizes = [2, 128], strides = [1, 1]} : vector<2x384xf32> to vector<2x128xf32>
    %134 = vector.extract_strided_slice %116 {offsets = [0, 256], sizes = [2, 128], strides = [1, 1]} : vector<2x384xf32> to vector<2x128xf32>
    %135 = arith.addf %134, %6 : vector<2x128xf32>
    %136 = arith.mulf %124, %135 : vector<2x128xf32>
    %137 = arith.addf %133, %136 : vector<2x128xf32>
    %138 = math.tanh %137 : vector<2x128xf32>
    %cst_51 = arith.constant 1.000000e+00 : f32
    %139 = vector.broadcast %cst_51 : f32 to vector<2x128xf32>
    %140 = arith.subf %139, %132 : vector<2x128xf32>
    %141 = arith.mulf %140, %138 : vector<2x128xf32>
    %142 = arith.mulf %132, %109 : vector<2x128xf32>
    %143 = arith.addf %141, %142 : vector<2x128xf32>
    %c8_i32_52 = arith.constant 8 : i32
    %144 = arith.muli %arg0, %c8_i32_52 : i32
    %145 = arith.addi %144, %c1_i32 : i32
    %c12_i32_53 = arith.constant 12 : i32
    %146 = arith.cmpi slt, %145, %c12_i32_53 : i32
    %147 = arith.select %146, %143, %109 : vector<2x128xf32>
    %c0_54 = arith.constant 0 : index
    %c0_55 = arith.constant 0 : index
    %c0_56 = arith.constant 0 : index
    %148 = vector.load %arg7[%c0_54, %c0_55, %c0_56] : memref<2x2x128xf32, #tpu.memory_space<vmem>>, vector<1x2x128xf32>
    %149 = vector.shape_cast %148 : vector<1x2x128xf32> to vector<2x128xf32>
    %150 = vector.shape_cast %147 : vector<2x128xf32> to vector<1x2x128xf32>
    tpu.vector_store %arg7[%c0_54, %c0_55, %c0_56], %150 {strides = array<i32>} : memref<2x2x128xf32, #tpu.memory_space<vmem>>, vector<1x2x128xf32>,
    %151 = arith.truncf %147 : vector<2x128xf32> to vector<2x128xbf16>
    %152 = arith.index_cast %c1_i32 : i32 to index
    %c0_57 = arith.constant 0 : index
    %c0_58 = arith.constant 0 : index
    %153 = vector.load %arg5[%152, %c0_57, %c0_58] : memref<8x2x128xbf16, #tpu.memory_space<vmem>>, vector<1x2x128xbf16>
    %154 = vector.shape_cast %153 : vector<1x2x128xbf16> to vector<2x128xbf16>
    %155 = vector.shape_cast %151 : vector<2x128xbf16> to vector<1x2x128xbf16>
    tpu.vector_store %arg5[%152, %c0_57, %c0_58], %155 {strides = array<i32>} : memref<8x2x128xbf16, #tpu.memory_space<vmem>>, vector<1x2x128xbf16>,
    %c7_i32_59 = arith.constant 7 : i32
    %156 = arith.subi %c7_i32_59, %c1_i32 : i32
    %c1_60 = arith.constant 1 : index
    %c0_61 = arith.constant 0 : index
    %c0_62 = arith.constant 0 : index
    %157 = vector.load %arg7[%c1_60, %c0_61, %c0_62] : memref<2x2x128xf32, #tpu.memory_space<vmem>>, vector<1x2x128xf32>
    %158 = vector.shape_cast %157 : vector<1x2x128xf32> to vector<2x128xf32>
    %159 = arith.index_cast %156 : i32 to index
    %c0_63 = arith.constant 0 : index
    %c0_64 = arith.constant 0 : index
    %160 = vector.load %arg2[%159, %c0_63, %c0_64] : memref<8x2x384xbf16, #tpu.memory_space<vmem>>, vector<1x2x384xbf16>
    %161 = vector.shape_cast %160 : vector<1x2x384xbf16> to vector<2x384xbf16>
    %162 = arith.extf %161 : vector<2x384xbf16> to vector<2x384xf32>
    %c1_65 = arith.constant 1 : index
    %c0_66 = arith.constant 0 : index
    %c0_67 = arith.constant 0 : index
    %163 = vector.load %arg3[%c1_65, %c0_66, %c0_67] : memref<2x128x384xf32, #tpu.memory_space<vmem>>, vector<1x128x384xf32>
    %164 = vector.shape_cast %163 : vector<1x128x384xf32> to vector<128x384xf32>
    %cst_68 = arith.constant dense<0.000000e+00> : vector<2x384xf32>
    %165 = tpu.matmul %158, %164, %cst_68 {dimension_numbers = #tpu.dot_dimension_numbers<[1], [0], [0], [1], [0, 0, 1, 1], [], []>} : vector<2x128xf32>, vector<128x384xf32>, vector<2x384xf32> -> vector<2x384xf32>
    %166 = vector.extract_strided_slice %162 {offsets = [0, 0], sizes = [2, 128], strides = [1, 1]} : vector<2x384xf32> to vector<2x128xf32>
    %167 = vector.extract_strided_slice %165 {offsets = [0, 0], sizes = [2, 128], strides = [1, 1]} : vector<2x384xf32> to vector<2x128xf32>
    %168 = arith.addf %166, %167 : vector<2x128xf32>
    %169 = arith.negf %168 : vector<2x128xf32>
    %170 = math.exp %169 : vector<2x128xf32>
    %cst_69 = arith.constant 1.000000e+00 : f32
    %171 = vector.broadcast %cst_69 : f32 to vector<2x128xf32>
    %172 = arith.addf %171, %170 : vector<2x128xf32>
    %173 = arith.divf %171, %172 : vector<2x128xf32>
    %174 = vector.extract_strided_slice %162 {offsets = [0, 128], sizes = [2, 128], strides = [1, 1]} : vector<2x384xf32> to vector<2x128xf32>
    %175 = vector.extract_strided_slice %165 {offsets = [0, 128], sizes = [2, 128], strides = [1, 1]} : vector<2x384xf32> to vector<2x128xf32>
    %176 = arith.addf %174, %175 : vector<2x128xf32>
    %177 = arith.negf %176 : vector<2x128xf32>
    %178 = math.exp %177 : vector<2x128xf32>
    %cst_70 = arith.constant 1.000000e+00 : f32
    %179 = vector.broadcast %cst_70 : f32 to vector<2x128xf32>
    %180 = arith.addf %179, %178 : vector<2x128xf32>
    %181 = arith.divf %179, %180 : vector<2x128xf32>
    %182 = vector.extract_strided_slice %162 {offsets = [0, 256], sizes = [2, 128], strides = [1, 1]} : vector<2x384xf32> to vector<2x128xf32>
    %183 = vector.extract_strided_slice %165 {offsets = [0, 256], sizes = [2, 128], strides = [1, 1]} : vector<2x384xf32> to vector<2x128xf32>
    %184 = arith.addf %183, %10 : vector<2x128xf32>
    %185 = arith.mulf %173, %184 : vector<2x128xf32>
    %186 = arith.addf %182, %185 : vector<2x128xf32>
    %187 = math.tanh %186 : vector<2x128xf32>
    %cst_71 = arith.constant 1.000000e+00 : f32
    %188 = vector.broadcast %cst_71 : f32 to vector<2x128xf32>
    %189 = arith.subf %188, %181 : vector<2x128xf32>
    %190 = arith.mulf %189, %187 : vector<2x128xf32>
    %191 = arith.mulf %181, %158 : vector<2x128xf32>
    %192 = arith.addf %190, %191 : vector<2x128xf32>
    %c8_i32_72 = arith.constant 8 : i32
    %193 = arith.muli %arg0, %c8_i32_72 : i32
    %194 = arith.addi %193, %c1_i32 : i32
    %c4_i32_73 = arith.constant 4 : i32
    %195 = arith.cmpi sge, %194, %c4_i32_73 : i32
    %196 = arith.select %195, %192, %158 : vector<2x128xf32>
    %c1_74 = arith.constant 1 : index
    %c0_75 = arith.constant 0 : index
    %c0_76 = arith.constant 0 : index
    %197 = vector.load %arg7[%c1_74, %c0_75, %c0_76] : memref<2x2x128xf32, #tpu.memory_space<vmem>>, vector<1x2x128xf32>
    %198 = vector.shape_cast %197 : vector<1x2x128xf32> to vector<2x128xf32>
    %199 = vector.shape_cast %196 : vector<2x128xf32> to vector<1x2x128xf32>
    tpu.vector_store %arg7[%c1_74, %c0_75, %c0_76], %199 {strides = array<i32>} : memref<2x2x128xf32, #tpu.memory_space<vmem>>, vector<1x2x128xf32>,
    %200 = arith.truncf %196 : vector<2x128xf32> to vector<2x128xbf16>
    %201 = arith.index_cast %156 : i32 to index
    %c0_77 = arith.constant 0 : index
    %c0_78 = arith.constant 0 : index
    %202 = vector.load %arg6[%201, %c0_77, %c0_78] : memref<8x2x128xbf16, #tpu.memory_space<vmem>>, vector<1x2x128xbf16>
    %203 = vector.shape_cast %202 : vector<1x2x128xbf16> to vector<2x128xbf16>
    %204 = vector.shape_cast %200 : vector<2x128xbf16> to vector<1x2x128xbf16>
    tpu.vector_store %arg6[%201, %c0_77, %c0_78], %204 {strides = array<i32>} : memref<8x2x128xbf16, #tpu.memory_space<vmem>>, vector<1x2x128xbf16>,
    %c2_i32 = arith.constant 2 : i32
    %c0_79 = arith.constant 0 : index
    %c0_80 = arith.constant 0 : index
    %c0_81 = arith.constant 0 : index
    %205 = vector.load %arg7[%c0_79, %c0_80, %c0_81] : memref<2x2x128xf32, #tpu.memory_space<vmem>>, vector<1x2x128xf32>
    %206 = vector.shape_cast %205 : vector<1x2x128xf32> to vector<2x128xf32>
    %207 = arith.index_cast %c2_i32 : i32 to index
    %c0_82 = arith.constant 0 : index
    %c0_83 = arith.constant 0 : index
    %208 = vector.load %arg1[%207, %c0_82, %c0_83] : memref<8x2x384xbf16, #tpu.memory_space<vmem>>, vector<1x2x384xbf16>
    %209 = vector.shape_cast %208 : vector<1x2x384xbf16> to vector<2x384xbf16>
    %210 = arith.extf %209 : vector<2x384xbf16> to vector<2x384xf32>
    %c0_84 = arith.constant 0 : index
    %c0_85 = arith.constant 0 : index
    %c0_86 = arith.constant 0 : index
    %211 = vector.load %arg3[%c0_84, %c0_85, %c0_86] : memref<2x128x384xf32, #tpu.memory_space<vmem>>, vector<1x128x384xf32>
    %212 = vector.shape_cast %211 : vector<1x128x384xf32> to vector<128x384xf32>
    %cst_87 = arith.constant dense<0.000000e+00> : vector<2x384xf32>
    %213 = tpu.matmul %206, %212, %cst_87 {dimension_numbers = #tpu.dot_dimension_numbers<[1], [0], [0], [1], [0, 0, 1, 1], [], []>} : vector<2x128xf32>, vector<128x384xf32>, vector<2x384xf32> -> vector<2x384xf32>
    %214 = vector.extract_strided_slice %210 {offsets = [0, 0], sizes = [2, 128], strides = [1, 1]} : vector<2x384xf32> to vector<2x128xf32>
    %215 = vector.extract_strided_slice %213 {offsets = [0, 0], sizes = [2, 128], strides = [1, 1]} : vector<2x384xf32> to vector<2x128xf32>
    %216 = arith.addf %214, %215 : vector<2x128xf32>
    %217 = arith.negf %216 : vector<2x128xf32>
    %218 = math.exp %217 : vector<2x128xf32>
    %cst_88 = arith.constant 1.000000e+00 : f32
    %219 = vector.broadcast %cst_88 : f32 to vector<2x128xf32>
    %220 = arith.addf %219, %218 : vector<2x128xf32>
    %221 = arith.divf %219, %220 : vector<2x128xf32>
    %222 = vector.extract_strided_slice %210 {offsets = [0, 128], sizes = [2, 128], strides = [1, 1]} : vector<2x384xf32> to vector<2x128xf32>
    %223 = vector.extract_strided_slice %213 {offsets = [0, 128], sizes = [2, 128], strides = [1, 1]} : vector<2x384xf32> to vector<2x128xf32>
    %224 = arith.addf %222, %223 : vector<2x128xf32>
    %225 = arith.negf %224 : vector<2x128xf32>
    %226 = math.exp %225 : vector<2x128xf32>
    %cst_89 = arith.constant 1.000000e+00 : f32
    %227 = vector.broadcast %cst_89 : f32 to vector<2x128xf32>
    %228 = arith.addf %227, %226 : vector<2x128xf32>
    %229 = arith.divf %227, %228 : vector<2x128xf32>
    %230 = vector.extract_strided_slice %210 {offsets = [0, 256], sizes = [2, 128], strides = [1, 1]} : vector<2x384xf32> to vector<2x128xf32>
    %231 = vector.extract_strided_slice %213 {offsets = [0, 256], sizes = [2, 128], strides = [1, 1]} : vector<2x384xf32> to vector<2x128xf32>
    %232 = arith.addf %231, %6 : vector<2x128xf32>
    %233 = arith.mulf %221, %232 : vector<2x128xf32>
    %234 = arith.addf %230, %233 : vector<2x128xf32>
    %235 = math.tanh %234 : vector<2x128xf32>
    %cst_90 = arith.constant 1.000000e+00 : f32
    %236 = vector.broadcast %cst_90 : f32 to vector<2x128xf32>
    %237 = arith.subf %236, %229 : vector<2x128xf32>
    %238 = arith.mulf %237, %235 : vector<2x128xf32>
    %239 = arith.mulf %229, %206 : vector<2x128xf32>
    %240 = arith.addf %238, %239 : vector<2x128xf32>
    %c8_i32_91 = arith.constant 8 : i32
    %241 = arith.muli %arg0, %c8_i32_91 : i32
    %242 = arith.addi %241, %c2_i32 : i32
    %c12_i32_92 = arith.constant 12 : i32
    %243 = arith.cmpi slt, %242, %c12_i32_92 : i32
    %244 = arith.select %243, %240, %206 : vector<2x128xf32>
    %c0_93 = arith.constant 0 : index
    %c0_94 = arith.constant 0 : index
    %c0_95 = arith.constant 0 : index
    %245 = vector.load %arg7[%c0_93, %c0_94, %c0_95] : memref<2x2x128xf32, #tpu.memory_space<vmem>>, vector<1x2x128xf32>
    %246 = vector.shape_cast %245 : vector<1x2x128xf32> to vector<2x128xf32>
    %247 = vector.shape_cast %244 : vector<2x128xf32> to vector<1x2x128xf32>
    tpu.vector_store %arg7[%c0_93, %c0_94, %c0_95], %247 {strides = array<i32>} : memref<2x2x128xf32, #tpu.memory_space<vmem>>, vector<1x2x128xf32>,
    %248 = arith.truncf %244 : vector<2x128xf32> to vector<2x128xbf16>
    %249 = arith.index_cast %c2_i32 : i32 to index
    %c0_96 = arith.constant 0 : index
    %c0_97 = arith.constant 0 : index
    %250 = vector.load %arg5[%249, %c0_96, %c0_97] : memref<8x2x128xbf16, #tpu.memory_space<vmem>>, vector<1x2x128xbf16>
    %251 = vector.shape_cast %250 : vector<1x2x128xbf16> to vector<2x128xbf16>
    %252 = vector.shape_cast %248 : vector<2x128xbf16> to vector<1x2x128xbf16>
    tpu.vector_store %arg5[%249, %c0_96, %c0_97], %252 {strides = array<i32>} : memref<8x2x128xbf16, #tpu.memory_space<vmem>>, vector<1x2x128xbf16>,
    %c7_i32_98 = arith.constant 7 : i32
    %253 = arith.subi %c7_i32_98, %c2_i32 : i32
    %c1_99 = arith.constant 1 : index
    %c0_100 = arith.constant 0 : index
    %c0_101 = arith.constant 0 : index
    %254 = vector.load %arg7[%c1_99, %c0_100, %c0_101] : memref<2x2x128xf32, #tpu.memory_space<vmem>>, vector<1x2x128xf32>
    %255 = vector.shape_cast %254 : vector<1x2x128xf32> to vector<2x128xf32>
    %256 = arith.index_cast %253 : i32 to index
    %c0_102 = arith.constant 0 : index
    %c0_103 = arith.constant 0 : index
    %257 = vector.load %arg2[%256, %c0_102, %c0_103] : memref<8x2x384xbf16, #tpu.memory_space<vmem>>, vector<1x2x384xbf16>
    %258 = vector.shape_cast %257 : vector<1x2x384xbf16> to vector<2x384xbf16>
    %259 = arith.extf %258 : vector<2x384xbf16> to vector<2x384xf32>
    %c1_104 = arith.constant 1 : index
    %c0_105 = arith.constant 0 : index
    %c0_106 = arith.constant 0 : index
    %260 = vector.load %arg3[%c1_104, %c0_105, %c0_106] : memref<2x128x384xf32, #tpu.memory_space<vmem>>, vector<1x128x384xf32>
    %261 = vector.shape_cast %260 : vector<1x128x384xf32> to vector<128x384xf32>
    %cst_107 = arith.constant dense<0.000000e+00> : vector<2x384xf32>
    %262 = tpu.matmul %255, %261, %cst_107 {dimension_numbers = #tpu.dot_dimension_numbers<[1], [0], [0], [1], [0, 0, 1, 1], [], []>} : vector<2x128xf32>, vector<128x384xf32>, vector<2x384xf32> -> vector<2x384xf32>
    %263 = vector.extract_strided_slice %259 {offsets = [0, 0], sizes = [2, 128], strides = [1, 1]} : vector<2x384xf32> to vector<2x128xf32>
    %264 = vector.extract_strided_slice %262 {offsets = [0, 0], sizes = [2, 128], strides = [1, 1]} : vector<2x384xf32> to vector<2x128xf32>
    %265 = arith.addf %263, %264 : vector<2x128xf32>
    %266 = arith.negf %265 : vector<2x128xf32>
    %267 = math.exp %266 : vector<2x128xf32>
    %cst_108 = arith.constant 1.000000e+00 : f32
    %268 = vector.broadcast %cst_108 : f32 to vector<2x128xf32>
    %269 = arith.addf %268, %267 : vector<2x128xf32>
    %270 = arith.divf %268, %269 : vector<2x128xf32>
    %271 = vector.extract_strided_slice %259 {offsets = [0, 128], sizes = [2, 128], strides = [1, 1]} : vector<2x384xf32> to vector<2x128xf32>
    %272 = vector.extract_strided_slice %262 {offsets = [0, 128], sizes = [2, 128], strides = [1, 1]} : vector<2x384xf32> to vector<2x128xf32>
    %273 = arith.addf %271, %272 : vector<2x128xf32>
    %274 = arith.negf %273 : vector<2x128xf32>
    %275 = math.exp %274 : vector<2x128xf32>
    %cst_109 = arith.constant 1.000000e+00 : f32
    %276 = vector.broadcast %cst_109 : f32 to vector<2x128xf32>
    %277 = arith.addf %276, %275 : vector<2x128xf32>
    %278 = arith.divf %276, %277 : vector<2x128xf32>
    %279 = vector.extract_strided_slice %259 {offsets = [0, 256], sizes = [2, 128], strides = [1, 1]} : vector<2x384xf32> to vector<2x128xf32>
    %280 = vector.extract_strided_slice %262 {offsets = [0, 256], sizes = [2, 128], strides = [1, 1]} : vector<2x384xf32> to vector<2x128xf32>
    %281 = arith.addf %280, %10 : vector<2x128xf32>
    %282 = arith.mulf %270, %281 : vector<2x128xf32>
    %283 = arith.addf %279, %282 : vector<2x128xf32>
    %284 = math.tanh %283 : vector<2x128xf32>
    %cst_110 = arith.constant 1.000000e+00 : f32
    %285 = vector.broadcast %cst_110 : f32 to vector<2x128xf32>
    %286 = arith.subf %285, %278 : vector<2x128xf32>
    %287 = arith.mulf %286, %284 : vector<2x128xf32>
    %288 = arith.mulf %278, %255 : vector<2x128xf32>
    %289 = arith.addf %287, %288 : vector<2x128xf32>
    %c8_i32_111 = arith.constant 8 : i32
    %290 = arith.muli %arg0, %c8_i32_111 : i32
    %291 = arith.addi %290, %c2_i32 : i32
    %c4_i32_112 = arith.constant 4 : i32
    %292 = arith.cmpi sge, %291, %c4_i32_112 : i32
    %293 = arith.select %292, %289, %255 : vector<2x128xf32>
    %c1_113 = arith.constant 1 : index
    %c0_114 = arith.constant 0 : index
    %c0_115 = arith.constant 0 : index
    %294 = vector.load %arg7[%c1_113, %c0_114, %c0_115] : memref<2x2x128xf32, #tpu.memory_space<vmem>>, vector<1x2x128xf32>
    %295 = vector.shape_cast %294 : vector<1x2x128xf32> to vector<2x128xf32>
    %296 = vector.shape_cast %293 : vector<2x128xf32> to vector<1x2x128xf32>
    tpu.vector_store %arg7[%c1_113, %c0_114, %c0_115], %296 {strides = array<i32>} : memref<2x2x128xf32, #tpu.memory_space<vmem>>, vector<1x2x128xf32>,
    %297 = arith.truncf %293 : vector<2x128xf32> to vector<2x128xbf16>
    %298 = arith.index_cast %253 : i32 to index
    %c0_116 = arith.constant 0 : index
    %c0_117 = arith.constant 0 : index
    %299 = vector.load %arg6[%298, %c0_116, %c0_117] : memref<8x2x128xbf16, #tpu.memory_space<vmem>>, vector<1x2x128xbf16>
    %300 = vector.shape_cast %299 : vector<1x2x128xbf16> to vector<2x128xbf16>
    %301 = vector.shape_cast %297 : vector<2x128xbf16> to vector<1x2x128xbf16>
    tpu.vector_store %arg6[%298, %c0_116, %c0_117], %301 {strides = array<i32>} : memref<8x2x128xbf16, #tpu.memory_space<vmem>>, vector<1x2x128xbf16>,
    %c3_i32 = arith.constant 3 : i32
    %c0_118 = arith.constant 0 : index
    %c0_119 = arith.constant 0 : index
    %c0_120 = arith.constant 0 : index
    %302 = vector.load %arg7[%c0_118, %c0_119, %c0_120] : memref<2x2x128xf32, #tpu.memory_space<vmem>>, vector<1x2x128xf32>
    %303 = vector.shape_cast %302 : vector<1x2x128xf32> to vector<2x128xf32>
    %304 = arith.index_cast %c3_i32 : i32 to index
    %c0_121 = arith.constant 0 : index
    %c0_122 = arith.constant 0 : index
    %305 = vector.load %arg1[%304, %c0_121, %c0_122] : memref<8x2x384xbf16, #tpu.memory_space<vmem>>, vector<1x2x384xbf16>
    %306 = vector.shape_cast %305 : vector<1x2x384xbf16> to vector<2x384xbf16>
    %307 = arith.extf %306 : vector<2x384xbf16> to vector<2x384xf32>
    %c0_123 = arith.constant 0 : index
    %c0_124 = arith.constant 0 : index
    %c0_125 = arith.constant 0 : index
    %308 = vector.load %arg3[%c0_123, %c0_124, %c0_125] : memref<2x128x384xf32, #tpu.memory_space<vmem>>, vector<1x128x384xf32>
    %309 = vector.shape_cast %308 : vector<1x128x384xf32> to vector<128x384xf32>
    %cst_126 = arith.constant dense<0.000000e+00> : vector<2x384xf32>
    %310 = tpu.matmul %303, %309, %cst_126 {dimension_numbers = #tpu.dot_dimension_numbers<[1], [0], [0], [1], [0, 0, 1, 1], [], []>} : vector<2x128xf32>, vector<128x384xf32>, vector<2x384xf32> -> vector<2x384xf32>
    %311 = vector.extract_strided_slice %307 {offsets = [0, 0], sizes = [2, 128], strides = [1, 1]} : vector<2x384xf32> to vector<2x128xf32>
    %312 = vector.extract_strided_slice %310 {offsets = [0, 0], sizes = [2, 128], strides = [1, 1]} : vector<2x384xf32> to vector<2x128xf32>
    %313 = arith.addf %311, %312 : vector<2x128xf32>
    %314 = arith.negf %313 : vector<2x128xf32>
    %315 = math.exp %314 : vector<2x128xf32>
    %cst_127 = arith.constant 1.000000e+00 : f32
    %316 = vector.broadcast %cst_127 : f32 to vector<2x128xf32>
    %317 = arith.addf %316, %315 : vector<2x128xf32>
    %318 = arith.divf %316, %317 : vector<2x128xf32>
    %319 = vector.extract_strided_slice %307 {offsets = [0, 128], sizes = [2, 128], strides = [1, 1]} : vector<2x384xf32> to vector<2x128xf32>
    %320 = vector.extract_strided_slice %310 {offsets = [0, 128], sizes = [2, 128], strides = [1, 1]} : vector<2x384xf32> to vector<2x128xf32>
    %321 = arith.addf %319, %320 : vector<2x128xf32>
    %322 = arith.negf %321 : vector<2x128xf32>
    %323 = math.exp %322 : vector<2x128xf32>
    %cst_128 = arith.constant 1.000000e+00 : f32
    %324 = vector.broadcast %cst_128 : f32 to vector<2x128xf32>
    %325 = arith.addf %324, %323 : vector<2x128xf32>
    %326 = arith.divf %324, %325 : vector<2x128xf32>
    %327 = vector.extract_strided_slice %307 {offsets = [0, 256], sizes = [2, 128], strides = [1, 1]} : vector<2x384xf32> to vector<2x128xf32>
    %328 = vector.extract_strided_slice %310 {offsets = [0, 256], sizes = [2, 128], strides = [1, 1]} : vector<2x384xf32> to vector<2x128xf32>
    %329 = arith.addf %328, %6 : vector<2x128xf32>
    %330 = arith.mulf %318, %329 : vector<2x128xf32>
    %331 = arith.addf %327, %330 : vector<2x128xf32>
    %332 = math.tanh %331 : vector<2x128xf32>
    %cst_129 = arith.constant 1.000000e+00 : f32
    %333 = vector.broadcast %cst_129 : f32 to vector<2x128xf32>
    %334 = arith.subf %333, %326 : vector<2x128xf32>
    %335 = arith.mulf %334, %332 : vector<2x128xf32>
    %336 = arith.mulf %326, %303 : vector<2x128xf32>
    %337 = arith.addf %335, %336 : vector<2x128xf32>
    %c8_i32_130 = arith.constant 8 : i32
    %338 = arith.muli %arg0, %c8_i32_130 : i32
    %339 = arith.addi %338, %c3_i32 : i32
    %c12_i32_131 = arith.constant 12 : i32
    %340 = arith.cmpi slt, %339, %c12_i32_131 : i32
    %341 = arith.select %340, %337, %303 : vector<2x128xf32>
    %c0_132 = arith.constant 0 : index
    %c0_133 = arith.constant 0 : index
    %c0_134 = arith.constant 0 : index
    %342 = vector.load %arg7[%c0_132, %c0_133, %c0_134] : memref<2x2x128xf32, #tpu.memory_space<vmem>>, vector<1x2x128xf32>
    %343 = vector.shape_cast %342 : vector<1x2x128xf32> to vector<2x128xf32>
    %344 = vector.shape_cast %341 : vector<2x128xf32> to vector<1x2x128xf32>
    tpu.vector_store %arg7[%c0_132, %c0_133, %c0_134], %344 {strides = array<i32>} : memref<2x2x128xf32, #tpu.memory_space<vmem>>, vector<1x2x128xf32>,
    %345 = arith.truncf %341 : vector<2x128xf32> to vector<2x128xbf16>
    %346 = arith.index_cast %c3_i32 : i32 to index
    %c0_135 = arith.constant 0 : index
    %c0_136 = arith.constant 0 : index
    %347 = vector.load %arg5[%346, %c0_135, %c0_136] : memref<8x2x128xbf16, #tpu.memory_space<vmem>>, vector<1x2x128xbf16>
    %348 = vector.shape_cast %347 : vector<1x2x128xbf16> to vector<2x128xbf16>
    %349 = vector.shape_cast %345 : vector<2x128xbf16> to vector<1x2x128xbf16>
    tpu.vector_store %arg5[%346, %c0_135, %c0_136], %349 {strides = array<i32>} : memref<8x2x128xbf16, #tpu.memory_space<vmem>>, vector<1x2x128xbf16>,
    %c7_i32_137 = arith.constant 7 : i32
    %350 = arith.subi %c7_i32_137, %c3_i32 : i32
    %c1_138 = arith.constant 1 : index
    %c0_139 = arith.constant 0 : index
    %c0_140 = arith.constant 0 : index
    %351 = vector.load %arg7[%c1_138, %c0_139, %c0_140] : memref<2x2x128xf32, #tpu.memory_space<vmem>>, vector<1x2x128xf32>
    %352 = vector.shape_cast %351 : vector<1x2x128xf32> to vector<2x128xf32>
    %353 = arith.index_cast %350 : i32 to index
    %c0_141 = arith.constant 0 : index
    %c0_142 = arith.constant 0 : index
    %354 = vector.load %arg2[%353, %c0_141, %c0_142] : memref<8x2x384xbf16, #tpu.memory_space<vmem>>, vector<1x2x384xbf16>
    %355 = vector.shape_cast %354 : vector<1x2x384xbf16> to vector<2x384xbf16>
    %356 = arith.extf %355 : vector<2x384xbf16> to vector<2x384xf32>
    %c1_143 = arith.constant 1 : index
    %c0_144 = arith.constant 0 : index
    %c0_145 = arith.constant 0 : index
    %357 = vector.load %arg3[%c1_143, %c0_144, %c0_145] : memref<2x128x384xf32, #tpu.memory_space<vmem>>, vector<1x128x384xf32>
    %358 = vector.shape_cast %357 : vector<1x128x384xf32> to vector<128x384xf32>
    %cst_146 = arith.constant dense<0.000000e+00> : vector<2x384xf32>
    %359 = tpu.matmul %352, %358, %cst_146 {dimension_numbers = #tpu.dot_dimension_numbers<[1], [0], [0], [1], [0, 0, 1, 1], [], []>} : vector<2x128xf32>, vector<128x384xf32>, vector<2x384xf32> -> vector<2x384xf32>
    %360 = vector.extract_strided_slice %356 {offsets = [0, 0], sizes = [2, 128], strides = [1, 1]} : vector<2x384xf32> to vector<2x128xf32>
    %361 = vector.extract_strided_slice %359 {offsets = [0, 0], sizes = [2, 128], strides = [1, 1]} : vector<2x384xf32> to vector<2x128xf32>
    %362 = arith.addf %360, %361 : vector<2x128xf32>
    %363 = arith.negf %362 : vector<2x128xf32>
    %364 = math.exp %363 : vector<2x128xf32>
    %cst_147 = arith.constant 1.000000e+00 : f32
    %365 = vector.broadcast %cst_147 : f32 to vector<2x128xf32>
    %366 = arith.addf %365, %364 : vector<2x128xf32>
    %367 = arith.divf %365, %366 : vector<2x128xf32>
    %368 = vector.extract_strided_slice %356 {offsets = [0, 128], sizes = [2, 128], strides = [1, 1]} : vector<2x384xf32> to vector<2x128xf32>
    %369 = vector.extract_strided_slice %359 {offsets = [0, 128], sizes = [2, 128], strides = [1, 1]} : vector<2x384xf32> to vector<2x128xf32>
    %370 = arith.addf %368, %369 : vector<2x128xf32>
    %371 = arith.negf %370 : vector<2x128xf32>
    %372 = math.exp %371 : vector<2x128xf32>
    %cst_148 = arith.constant 1.000000e+00 : f32
    %373 = vector.broadcast %cst_148 : f32 to vector<2x128xf32>
    %374 = arith.addf %373, %372 : vector<2x128xf32>
    %375 = arith.divf %373, %374 : vector<2x128xf32>
    %376 = vector.extract_strided_slice %356 {offsets = [0, 256], sizes = [2, 128], strides = [1, 1]} : vector<2x384xf32> to vector<2x128xf32>
    %377 = vector.extract_strided_slice %359 {offsets = [0, 256], sizes = [2, 128], strides = [1, 1]} : vector<2x384xf32> to vector<2x128xf32>
    %378 = arith.addf %377, %10 : vector<2x128xf32>
    %379 = arith.mulf %367, %378 : vector<2x128xf32>
    %380 = arith.addf %376, %379 : vector<2x128xf32>
    %381 = math.tanh %380 : vector<2x128xf32>
    %cst_149 = arith.constant 1.000000e+00 : f32
    %382 = vector.broadcast %cst_149 : f32 to vector<2x128xf32>
    %383 = arith.subf %382, %375 : vector<2x128xf32>
    %384 = arith.mulf %383, %381 : vector<2x128xf32>
    %385 = arith.mulf %375, %352 : vector<2x128xf32>
    %386 = arith.addf %384, %385 : vector<2x128xf32>
    %c8_i32_150 = arith.constant 8 : i32
    %387 = arith.muli %arg0, %c8_i32_150 : i32
    %388 = arith.addi %387, %c3_i32 : i32
    %c4_i32_151 = arith.constant 4 : i32
    %389 = arith.cmpi sge, %388, %c4_i32_151 : i32
    %390 = arith.select %389, %386, %352 : vector<2x128xf32>
    %c1_152 = arith.constant 1 : index
    %c0_153 = arith.constant 0 : index
    %c0_154 = arith.constant 0 : index
    %391 = vector.load %arg7[%c1_152, %c0_153, %c0_154] : memref<2x2x128xf32, #tpu.memory_space<vmem>>, vector<1x2x128xf32>
    %392 = vector.shape_cast %391 : vector<1x2x128xf32> to vector<2x128xf32>
    %393 = vector.shape_cast %390 : vector<2x128xf32> to vector<1x2x128xf32>
    tpu.vector_store %arg7[%c1_152, %c0_153, %c0_154], %393 {strides = array<i32>} : memref<2x2x128xf32, #tpu.memory_space<vmem>>, vector<1x2x128xf32>,
    %394 = arith.truncf %390 : vector<2x128xf32> to vector<2x128xbf16>
    %395 = arith.index_cast %350 : i32 to index
    %c0_155 = arith.constant 0 : index
    %c0_156 = arith.constant 0 : index
    %396 = vector.load %arg6[%395, %c0_155, %c0_156] : memref<8x2x128xbf16, #tpu.memory_space<vmem>>, vector<1x2x128xbf16>
    %397 = vector.shape_cast %396 : vector<1x2x128xbf16> to vector<2x128xbf16>
    %398 = vector.shape_cast %394 : vector<2x128xbf16> to vector<1x2x128xbf16>
    tpu.vector_store %arg6[%395, %c0_155, %c0_156], %398 {strides = array<i32>} : memref<8x2x128xbf16, #tpu.memory_space<vmem>>, vector<1x2x128xbf16>,
    %c4_i32_157 = arith.constant 4 : i32
    %c0_158 = arith.constant 0 : index
    %c0_159 = arith.constant 0 : index
    %c0_160 = arith.constant 0 : index
    %399 = vector.load %arg7[%c0_158, %c0_159, %c0_160] : memref<2x2x128xf32, #tpu.memory_space<vmem>>, vector<1x2x128xf32>
    %400 = vector.shape_cast %399 : vector<1x2x128xf32> to vector<2x128xf32>
    %401 = arith.index_cast %c4_i32_157 : i32 to index
    %c0_161 = arith.constant 0 : index
    %c0_162 = arith.constant 0 : index
    %402 = vector.load %arg1[%401, %c0_161, %c0_162] : memref<8x2x384xbf16, #tpu.memory_space<vmem>>, vector<1x2x384xbf16>
    %403 = vector.shape_cast %402 : vector<1x2x384xbf16> to vector<2x384xbf16>
    %404 = arith.extf %403 : vector<2x384xbf16> to vector<2x384xf32>
    %c0_163 = arith.constant 0 : index
    %c0_164 = arith.constant 0 : index
    %c0_165 = arith.constant 0 : index
    %405 = vector.load %arg3[%c0_163, %c0_164, %c0_165] : memref<2x128x384xf32, #tpu.memory_space<vmem>>, vector<1x128x384xf32>
    %406 = vector.shape_cast %405 : vector<1x128x384xf32> to vector<128x384xf32>
    %cst_166 = arith.constant dense<0.000000e+00> : vector<2x384xf32>
    %407 = tpu.matmul %400, %406, %cst_166 {dimension_numbers = #tpu.dot_dimension_numbers<[1], [0], [0], [1], [0, 0, 1, 1], [], []>} : vector<2x128xf32>, vector<128x384xf32>, vector<2x384xf32> -> vector<2x384xf32>
    %408 = vector.extract_strided_slice %404 {offsets = [0, 0], sizes = [2, 128], strides = [1, 1]} : vector<2x384xf32> to vector<2x128xf32>
    %409 = vector.extract_strided_slice %407 {offsets = [0, 0], sizes = [2, 128], strides = [1, 1]} : vector<2x384xf32> to vector<2x128xf32>
    %410 = arith.addf %408, %409 : vector<2x128xf32>
    %411 = arith.negf %410 : vector<2x128xf32>
    %412 = math.exp %411 : vector<2x128xf32>
    %cst_167 = arith.constant 1.000000e+00 : f32
    %413 = vector.broadcast %cst_167 : f32 to vector<2x128xf32>
    %414 = arith.addf %413, %412 : vector<2x128xf32>
    %415 = arith.divf %413, %414 : vector<2x128xf32>
    %416 = vector.extract_strided_slice %404 {offsets = [0, 128], sizes = [2, 128], strides = [1, 1]} : vector<2x384xf32> to vector<2x128xf32>
    %417 = vector.extract_strided_slice %407 {offsets = [0, 128], sizes = [2, 128], strides = [1, 1]} : vector<2x384xf32> to vector<2x128xf32>
    %418 = arith.addf %416, %417 : vector<2x128xf32>
    %419 = arith.negf %418 : vector<2x128xf32>
    %420 = math.exp %419 : vector<2x128xf32>
    %cst_168 = arith.constant 1.000000e+00 : f32
    %421 = vector.broadcast %cst_168 : f32 to vector<2x128xf32>
    %422 = arith.addf %421, %420 : vector<2x128xf32>
    %423 = arith.divf %421, %422 : vector<2x128xf32>
    %424 = vector.extract_strided_slice %404 {offsets = [0, 256], sizes = [2, 128], strides = [1, 1]} : vector<2x384xf32> to vector<2x128xf32>
    %425 = vector.extract_strided_slice %407 {offsets = [0, 256], sizes = [2, 128], strides = [1, 1]} : vector<2x384xf32> to vector<2x128xf32>
    %426 = arith.addf %425, %6 : vector<2x128xf32>
    %427 = arith.mulf %415, %426 : vector<2x128xf32>
    %428 = arith.addf %424, %427 : vector<2x128xf32>
    %429 = math.tanh %428 : vector<2x128xf32>
    %cst_169 = arith.constant 1.000000e+00 : f32
    %430 = vector.broadcast %cst_169 : f32 to vector<2x128xf32>
    %431 = arith.subf %430, %423 : vector<2x128xf32>
    %432 = arith.mulf %431, %429 : vector<2x128xf32>
    %433 = arith.mulf %423, %400 : vector<2x128xf32>
    %434 = arith.addf %432, %433 : vector<2x128xf32>
    %c8_i32_170 = arith.constant 8 : i32
    %435 = arith.muli %arg0, %c8_i32_170 : i32
    %436 = arith.addi %435, %c4_i32_157 : i32
    %c12_i32_171 = arith.constant 12 : i32
    %437 = arith.cmpi slt, %436, %c12_i32_171 : i32
    %438 = arith.select %437, %434, %400 : vector<2x128xf32>
    %c0_172 = arith.constant 0 : index
    %c0_173 = arith.constant 0 : index
    %c0_174 = arith.constant 0 : index
    %439 = vector.load %arg7[%c0_172, %c0_173, %c0_174] : memref<2x2x128xf32, #tpu.memory_space<vmem>>, vector<1x2x128xf32>
    %440 = vector.shape_cast %439 : vector<1x2x128xf32> to vector<2x128xf32>
    %441 = vector.shape_cast %438 : vector<2x128xf32> to vector<1x2x128xf32>
    tpu.vector_store %arg7[%c0_172, %c0_173, %c0_174], %441 {strides = array<i32>} : memref<2x2x128xf32, #tpu.memory_space<vmem>>, vector<1x2x128xf32>,
    %442 = arith.truncf %438 : vector<2x128xf32> to vector<2x128xbf16>
    %443 = arith.index_cast %c4_i32_157 : i32 to index
    %c0_175 = arith.constant 0 : index
    %c0_176 = arith.constant 0 : index
    %444 = vector.load %arg5[%443, %c0_175, %c0_176] : memref<8x2x128xbf16, #tpu.memory_space<vmem>>, vector<1x2x128xbf16>
    %445 = vector.shape_cast %444 : vector<1x2x128xbf16> to vector<2x128xbf16>
    %446 = vector.shape_cast %442 : vector<2x128xbf16> to vector<1x2x128xbf16>
    tpu.vector_store %arg5[%443, %c0_175, %c0_176], %446 {strides = array<i32>} : memref<8x2x128xbf16, #tpu.memory_space<vmem>>, vector<1x2x128xbf16>,
    %c7_i32_177 = arith.constant 7 : i32
    %447 = arith.subi %c7_i32_177, %c4_i32_157 : i32
    %c1_178 = arith.constant 1 : index
    %c0_179 = arith.constant 0 : index
    %c0_180 = arith.constant 0 : index
    %448 = vector.load %arg7[%c1_178, %c0_179, %c0_180] : memref<2x2x128xf32, #tpu.memory_space<vmem>>, vector<1x2x128xf32>
    %449 = vector.shape_cast %448 : vector<1x2x128xf32> to vector<2x128xf32>
    %450 = arith.index_cast %447 : i32 to index
    %c0_181 = arith.constant 0 : index
    %c0_182 = arith.constant 0 : index
    %451 = vector.load %arg2[%450, %c0_181, %c0_182] : memref<8x2x384xbf16, #tpu.memory_space<vmem>>, vector<1x2x384xbf16>
    %452 = vector.shape_cast %451 : vector<1x2x384xbf16> to vector<2x384xbf16>
    %453 = arith.extf %452 : vector<2x384xbf16> to vector<2x384xf32>
    %c1_183 = arith.constant 1 : index
    %c0_184 = arith.constant 0 : index
    %c0_185 = arith.constant 0 : index
    %454 = vector.load %arg3[%c1_183, %c0_184, %c0_185] : memref<2x128x384xf32, #tpu.memory_space<vmem>>, vector<1x128x384xf32>
    %455 = vector.shape_cast %454 : vector<1x128x384xf32> to vector<128x384xf32>
    %cst_186 = arith.constant dense<0.000000e+00> : vector<2x384xf32>
    %456 = tpu.matmul %449, %455, %cst_186 {dimension_numbers = #tpu.dot_dimension_numbers<[1], [0], [0], [1], [0, 0, 1, 1], [], []>} : vector<2x128xf32>, vector<128x384xf32>, vector<2x384xf32> -> vector<2x384xf32>
    %457 = vector.extract_strided_slice %453 {offsets = [0, 0], sizes = [2, 128], strides = [1, 1]} : vector<2x384xf32> to vector<2x128xf32>
    %458 = vector.extract_strided_slice %456 {offsets = [0, 0], sizes = [2, 128], strides = [1, 1]} : vector<2x384xf32> to vector<2x128xf32>
    %459 = arith.addf %457, %458 : vector<2x128xf32>
    %460 = arith.negf %459 : vector<2x128xf32>
    %461 = math.exp %460 : vector<2x128xf32>
    %cst_187 = arith.constant 1.000000e+00 : f32
    %462 = vector.broadcast %cst_187 : f32 to vector<2x128xf32>
    %463 = arith.addf %462, %461 : vector<2x128xf32>
    %464 = arith.divf %462, %463 : vector<2x128xf32>
    %465 = vector.extract_strided_slice %453 {offsets = [0, 128], sizes = [2, 128], strides = [1, 1]} : vector<2x384xf32> to vector<2x128xf32>
    %466 = vector.extract_strided_slice %456 {offsets = [0, 128], sizes = [2, 128], strides = [1, 1]} : vector<2x384xf32> to vector<2x128xf32>
    %467 = arith.addf %465, %466 : vector<2x128xf32>
    %468 = arith.negf %467 : vector<2x128xf32>
    %469 = math.exp %468 : vector<2x128xf32>
    %cst_188 = arith.constant 1.000000e+00 : f32
    %470 = vector.broadcast %cst_188 : f32 to vector<2x128xf32>
    %471 = arith.addf %470, %469 : vector<2x128xf32>
    %472 = arith.divf %470, %471 : vector<2x128xf32>
    %473 = vector.extract_strided_slice %453 {offsets = [0, 256], sizes = [2, 128], strides = [1, 1]} : vector<2x384xf32> to vector<2x128xf32>
    %474 = vector.extract_strided_slice %456 {offsets = [0, 256], sizes = [2, 128], strides = [1, 1]} : vector<2x384xf32> to vector<2x128xf32>
    %475 = arith.addf %474, %10 : vector<2x128xf32>
    %476 = arith.mulf %464, %475 : vector<2x128xf32>
    %477 = arith.addf %473, %476 : vector<2x128xf32>
    %478 = math.tanh %477 : vector<2x128xf32>
    %cst_189 = arith.constant 1.000000e+00 : f32
    %479 = vector.broadcast %cst_189 : f32 to vector<2x128xf32>
    %480 = arith.subf %479, %472 : vector<2x128xf32>
    %481 = arith.mulf %480, %478 : vector<2x128xf32>
    %482 = arith.mulf %472, %449 : vector<2x128xf32>
    %483 = arith.addf %481, %482 : vector<2x128xf32>
    %c8_i32_190 = arith.constant 8 : i32
    %484 = arith.muli %arg0, %c8_i32_190 : i32
    %485 = arith.addi %484, %c4_i32_157 : i32
    %c4_i32_191 = arith.constant 4 : i32
    %486 = arith.cmpi sge, %485, %c4_i32_191 : i32
    %487 = arith.select %486, %483, %449 : vector<2x128xf32>
    %c1_192 = arith.constant 1 : index
    %c0_193 = arith.constant 0 : index
    %c0_194 = arith.constant 0 : index
    %488 = vector.load %arg7[%c1_192, %c0_193, %c0_194] : memref<2x2x128xf32, #tpu.memory_space<vmem>>, vector<1x2x128xf32>
    %489 = vector.shape_cast %488 : vector<1x2x128xf32> to vector<2x128xf32>
    %490 = vector.shape_cast %487 : vector<2x128xf32> to vector<1x2x128xf32>
    tpu.vector_store %arg7[%c1_192, %c0_193, %c0_194], %490 {strides = array<i32>} : memref<2x2x128xf32, #tpu.memory_space<vmem>>, vector<1x2x128xf32>,
    %491 = arith.truncf %487 : vector<2x128xf32> to vector<2x128xbf16>
    %492 = arith.index_cast %447 : i32 to index
    %c0_195 = arith.constant 0 : index
    %c0_196 = arith.constant 0 : index
    %493 = vector.load %arg6[%492, %c0_195, %c0_196] : memref<8x2x128xbf16, #tpu.memory_space<vmem>>, vector<1x2x128xbf16>
    %494 = vector.shape_cast %493 : vector<1x2x128xbf16> to vector<2x128xbf16>
    %495 = vector.shape_cast %491 : vector<2x128xbf16> to vector<1x2x128xbf16>
    tpu.vector_store %arg6[%492, %c0_195, %c0_196], %495 {strides = array<i32>} : memref<8x2x128xbf16, #tpu.memory_space<vmem>>, vector<1x2x128xbf16>,
    %c5_i32 = arith.constant 5 : i32
    %c0_197 = arith.constant 0 : index
    %c0_198 = arith.constant 0 : index
    %c0_199 = arith.constant 0 : index
    %496 = vector.load %arg7[%c0_197, %c0_198, %c0_199] : memref<2x2x128xf32, #tpu.memory_space<vmem>>, vector<1x2x128xf32>
    %497 = vector.shape_cast %496 : vector<1x2x128xf32> to vector<2x128xf32>
    %498 = arith.index_cast %c5_i32 : i32 to index
    %c0_200 = arith.constant 0 : index
    %c0_201 = arith.constant 0 : index
    %499 = vector.load %arg1[%498, %c0_200, %c0_201] : memref<8x2x384xbf16, #tpu.memory_space<vmem>>, vector<1x2x384xbf16>
    %500 = vector.shape_cast %499 : vector<1x2x384xbf16> to vector<2x384xbf16>
    %501 = arith.extf %500 : vector<2x384xbf16> to vector<2x384xf32>
    %c0_202 = arith.constant 0 : index
    %c0_203 = arith.constant 0 : index
    %c0_204 = arith.constant 0 : index
    %502 = vector.load %arg3[%c0_202, %c0_203, %c0_204] : memref<2x128x384xf32, #tpu.memory_space<vmem>>, vector<1x128x384xf32>
    %503 = vector.shape_cast %502 : vector<1x128x384xf32> to vector<128x384xf32>
    %cst_205 = arith.constant dense<0.000000e+00> : vector<2x384xf32>
    %504 = tpu.matmul %497, %503, %cst_205 {dimension_numbers = #tpu.dot_dimension_numbers<[1], [0], [0], [1], [0, 0, 1, 1], [], []>} : vector<2x128xf32>, vector<128x384xf32>, vector<2x384xf32> -> vector<2x384xf32>
    %505 = vector.extract_strided_slice %501 {offsets = [0, 0], sizes = [2, 128], strides = [1, 1]} : vector<2x384xf32> to vector<2x128xf32>
    %506 = vector.extract_strided_slice %504 {offsets = [0, 0], sizes = [2, 128], strides = [1, 1]} : vector<2x384xf32> to vector<2x128xf32>
    %507 = arith.addf %505, %506 : vector<2x128xf32>
    %508 = arith.negf %507 : vector<2x128xf32>
    %509 = math.exp %508 : vector<2x128xf32>
    %cst_206 = arith.constant 1.000000e+00 : f32
    %510 = vector.broadcast %cst_206 : f32 to vector<2x128xf32>
    %511 = arith.addf %510, %509 : vector<2x128xf32>
    %512 = arith.divf %510, %511 : vector<2x128xf32>
    %513 = vector.extract_strided_slice %501 {offsets = [0, 128], sizes = [2, 128], strides = [1, 1]} : vector<2x384xf32> to vector<2x128xf32>
    %514 = vector.extract_strided_slice %504 {offsets = [0, 128], sizes = [2, 128], strides = [1, 1]} : vector<2x384xf32> to vector<2x128xf32>
    %515 = arith.addf %513, %514 : vector<2x128xf32>
    %516 = arith.negf %515 : vector<2x128xf32>
    %517 = math.exp %516 : vector<2x128xf32>
    %cst_207 = arith.constant 1.000000e+00 : f32
    %518 = vector.broadcast %cst_207 : f32 to vector<2x128xf32>
    %519 = arith.addf %518, %517 : vector<2x128xf32>
    %520 = arith.divf %518, %519 : vector<2x128xf32>
    %521 = vector.extract_strided_slice %501 {offsets = [0, 256], sizes = [2, 128], strides = [1, 1]} : vector<2x384xf32> to vector<2x128xf32>
    %522 = vector.extract_strided_slice %504 {offsets = [0, 256], sizes = [2, 128], strides = [1, 1]} : vector<2x384xf32> to vector<2x128xf32>
    %523 = arith.addf %522, %6 : vector<2x128xf32>
    %524 = arith.mulf %512, %523 : vector<2x128xf32>
    %525 = arith.addf %521, %524 : vector<2x128xf32>
    %526 = math.tanh %525 : vector<2x128xf32>
    %cst_208 = arith.constant 1.000000e+00 : f32
    %527 = vector.broadcast %cst_208 : f32 to vector<2x128xf32>
    %528 = arith.subf %527, %520 : vector<2x128xf32>
    %529 = arith.mulf %528, %526 : vector<2x128xf32>
    %530 = arith.mulf %520, %497 : vector<2x128xf32>
    %531 = arith.addf %529, %530 : vector<2x128xf32>
    %c8_i32_209 = arith.constant 8 : i32
    %532 = arith.muli %arg0, %c8_i32_209 : i32
    %533 = arith.addi %532, %c5_i32 : i32
    %c12_i32_210 = arith.constant 12 : i32
    %534 = arith.cmpi slt, %533, %c12_i32_210 : i32
    %535 = arith.select %534, %531, %497 : vector<2x128xf32>
    %c0_211 = arith.constant 0 : index
    %c0_212 = arith.constant 0 : index
    %c0_213 = arith.constant 0 : index
    %536 = vector.load %arg7[%c0_211, %c0_212, %c0_213] : memref<2x2x128xf32, #tpu.memory_space<vmem>>, vector<1x2x128xf32>
    %537 = vector.shape_cast %536 : vector<1x2x128xf32> to vector<2x128xf32>
    %538 = vector.shape_cast %535 : vector<2x128xf32> to vector<1x2x128xf32>
    tpu.vector_store %arg7[%c0_211, %c0_212, %c0_213], %538 {strides = array<i32>} : memref<2x2x128xf32, #tpu.memory_space<vmem>>, vector<1x2x128xf32>,
    %539 = arith.truncf %535 : vector<2x128xf32> to vector<2x128xbf16>
    %540 = arith.index_cast %c5_i32 : i32 to index
    %c0_214 = arith.constant 0 : index
    %c0_215 = arith.constant 0 : index
    %541 = vector.load %arg5[%540, %c0_214, %c0_215] : memref<8x2x128xbf16, #tpu.memory_space<vmem>>, vector<1x2x128xbf16>
    %542 = vector.shape_cast %541 : vector<1x2x128xbf16> to vector<2x128xbf16>
    %543 = vector.shape_cast %539 : vector<2x128xbf16> to vector<1x2x128xbf16>
    tpu.vector_store %arg5[%540, %c0_214, %c0_215], %543 {strides = array<i32>} : memref<8x2x128xbf16, #tpu.memory_space<vmem>>, vector<1x2x128xbf16>,
    %c7_i32_216 = arith.constant 7 : i32
    %544 = arith.subi %c7_i32_216, %c5_i32 : i32
    %c1_217 = arith.constant 1 : index
    %c0_218 = arith.constant 0 : index
    %c0_219 = arith.constant 0 : index
    %545 = vector.load %arg7[%c1_217, %c0_218, %c0_219] : memref<2x2x128xf32, #tpu.memory_space<vmem>>, vector<1x2x128xf32>
    %546 = vector.shape_cast %545 : vector<1x2x128xf32> to vector<2x128xf32>
    %547 = arith.index_cast %544 : i32 to index
    %c0_220 = arith.constant 0 : index
    %c0_221 = arith.constant 0 : index
    %548 = vector.load %arg2[%547, %c0_220, %c0_221] : memref<8x2x384xbf16, #tpu.memory_space<vmem>>, vector<1x2x384xbf16>
    %549 = vector.shape_cast %548 : vector<1x2x384xbf16> to vector<2x384xbf16>
    %550 = arith.extf %549 : vector<2x384xbf16> to vector<2x384xf32>
    %c1_222 = arith.constant 1 : index
    %c0_223 = arith.constant 0 : index
    %c0_224 = arith.constant 0 : index
    %551 = vector.load %arg3[%c1_222, %c0_223, %c0_224] : memref<2x128x384xf32, #tpu.memory_space<vmem>>, vector<1x128x384xf32>
    %552 = vector.shape_cast %551 : vector<1x128x384xf32> to vector<128x384xf32>
    %cst_225 = arith.constant dense<0.000000e+00> : vector<2x384xf32>
    %553 = tpu.matmul %546, %552, %cst_225 {dimension_numbers = #tpu.dot_dimension_numbers<[1], [0], [0], [1], [0, 0, 1, 1], [], []>} : vector<2x128xf32>, vector<128x384xf32>, vector<2x384xf32> -> vector<2x384xf32>
    %554 = vector.extract_strided_slice %550 {offsets = [0, 0], sizes = [2, 128], strides = [1, 1]} : vector<2x384xf32> to vector<2x128xf32>
    %555 = vector.extract_strided_slice %553 {offsets = [0, 0], sizes = [2, 128], strides = [1, 1]} : vector<2x384xf32> to vector<2x128xf32>
    %556 = arith.addf %554, %555 : vector<2x128xf32>
    %557 = arith.negf %556 : vector<2x128xf32>
    %558 = math.exp %557 : vector<2x128xf32>
    %cst_226 = arith.constant 1.000000e+00 : f32
    %559 = vector.broadcast %cst_226 : f32 to vector<2x128xf32>
    %560 = arith.addf %559, %558 : vector<2x128xf32>
    %561 = arith.divf %559, %560 : vector<2x128xf32>
    %562 = vector.extract_strided_slice %550 {offsets = [0, 128], sizes = [2, 128], strides = [1, 1]} : vector<2x384xf32> to vector<2x128xf32>
    %563 = vector.extract_strided_slice %553 {offsets = [0, 128], sizes = [2, 128], strides = [1, 1]} : vector<2x384xf32> to vector<2x128xf32>
    %564 = arith.addf %562, %563 : vector<2x128xf32>
    %565 = arith.negf %564 : vector<2x128xf32>
    %566 = math.exp %565 : vector<2x128xf32>
    %cst_227 = arith.constant 1.000000e+00 : f32
    %567 = vector.broadcast %cst_227 : f32 to vector<2x128xf32>
    %568 = arith.addf %567, %566 : vector<2x128xf32>
    %569 = arith.divf %567, %568 : vector<2x128xf32>
    %570 = vector.extract_strided_slice %550 {offsets = [0, 256], sizes = [2, 128], strides = [1, 1]} : vector<2x384xf32> to vector<2x128xf32>
    %571 = vector.extract_strided_slice %553 {offsets = [0, 256], sizes = [2, 128], strides = [1, 1]} : vector<2x384xf32> to vector<2x128xf32>
    %572 = arith.addf %571, %10 : vector<2x128xf32>
    %573 = arith.mulf %561, %572 : vector<2x128xf32>
    %574 = arith.addf %570, %573 : vector<2x128xf32>
    %575 = math.tanh %574 : vector<2x128xf32>
    %cst_228 = arith.constant 1.000000e+00 : f32
    %576 = vector.broadcast %cst_228 : f32 to vector<2x128xf32>
    %577 = arith.subf %576, %569 : vector<2x128xf32>
    %578 = arith.mulf %577, %575 : vector<2x128xf32>
    %579 = arith.mulf %569, %546 : vector<2x128xf32>
    %580 = arith.addf %578, %579 : vector<2x128xf32>
    %c8_i32_229 = arith.constant 8 : i32
    %581 = arith.muli %arg0, %c8_i32_229 : i32
    %582 = arith.addi %581, %c5_i32 : i32
    %c4_i32_230 = arith.constant 4 : i32
    %583 = arith.cmpi sge, %582, %c4_i32_230 : i32
    %584 = arith.select %583, %580, %546 : vector<2x128xf32>
    %c1_231 = arith.constant 1 : index
    %c0_232 = arith.constant 0 : index
    %c0_233 = arith.constant 0 : index
    %585 = vector.load %arg7[%c1_231, %c0_232, %c0_233] : memref<2x2x128xf32, #tpu.memory_space<vmem>>, vector<1x2x128xf32>
    %586 = vector.shape_cast %585 : vector<1x2x128xf32> to vector<2x128xf32>
    %587 = vector.shape_cast %584 : vector<2x128xf32> to vector<1x2x128xf32>
    tpu.vector_store %arg7[%c1_231, %c0_232, %c0_233], %587 {strides = array<i32>} : memref<2x2x128xf32, #tpu.memory_space<vmem>>, vector<1x2x128xf32>,
    %588 = arith.truncf %584 : vector<2x128xf32> to vector<2x128xbf16>
    %589 = arith.index_cast %544 : i32 to index
    %c0_234 = arith.constant 0 : index
    %c0_235 = arith.constant 0 : index
    %590 = vector.load %arg6[%589, %c0_234, %c0_235] : memref<8x2x128xbf16, #tpu.memory_space<vmem>>, vector<1x2x128xbf16>
    %591 = vector.shape_cast %590 : vector<1x2x128xbf16> to vector<2x128xbf16>
    %592 = vector.shape_cast %588 : vector<2x128xbf16> to vector<1x2x128xbf16>
    tpu.vector_store %arg6[%589, %c0_234, %c0_235], %592 {strides = array<i32>} : memref<8x2x128xbf16, #tpu.memory_space<vmem>>, vector<1x2x128xbf16>,
    %c6_i32 = arith.constant 6 : i32
    %c0_236 = arith.constant 0 : index
    %c0_237 = arith.constant 0 : index
    %c0_238 = arith.constant 0 : index
    %593 = vector.load %arg7[%c0_236, %c0_237, %c0_238] : memref<2x2x128xf32, #tpu.memory_space<vmem>>, vector<1x2x128xf32>
    %594 = vector.shape_cast %593 : vector<1x2x128xf32> to vector<2x128xf32>
    %595 = arith.index_cast %c6_i32 : i32 to index
    %c0_239 = arith.constant 0 : index
    %c0_240 = arith.constant 0 : index
    %596 = vector.load %arg1[%595, %c0_239, %c0_240] : memref<8x2x384xbf16, #tpu.memory_space<vmem>>, vector<1x2x384xbf16>
    %597 = vector.shape_cast %596 : vector<1x2x384xbf16> to vector<2x384xbf16>
    %598 = arith.extf %597 : vector<2x384xbf16> to vector<2x384xf32>
    %c0_241 = arith.constant 0 : index
    %c0_242 = arith.constant 0 : index
    %c0_243 = arith.constant 0 : index
    %599 = vector.load %arg3[%c0_241, %c0_242, %c0_243] : memref<2x128x384xf32, #tpu.memory_space<vmem>>, vector<1x128x384xf32>
    %600 = vector.shape_cast %599 : vector<1x128x384xf32> to vector<128x384xf32>
    %cst_244 = arith.constant dense<0.000000e+00> : vector<2x384xf32>
    %601 = tpu.matmul %594, %600, %cst_244 {dimension_numbers = #tpu.dot_dimension_numbers<[1], [0], [0], [1], [0, 0, 1, 1], [], []>} : vector<2x128xf32>, vector<128x384xf32>, vector<2x384xf32> -> vector<2x384xf32>
    %602 = vector.extract_strided_slice %598 {offsets = [0, 0], sizes = [2, 128], strides = [1, 1]} : vector<2x384xf32> to vector<2x128xf32>
    %603 = vector.extract_strided_slice %601 {offsets = [0, 0], sizes = [2, 128], strides = [1, 1]} : vector<2x384xf32> to vector<2x128xf32>
    %604 = arith.addf %602, %603 : vector<2x128xf32>
    %605 = arith.negf %604 : vector<2x128xf32>
    %606 = math.exp %605 : vector<2x128xf32>
    %cst_245 = arith.constant 1.000000e+00 : f32
    %607 = vector.broadcast %cst_245 : f32 to vector<2x128xf32>
    %608 = arith.addf %607, %606 : vector<2x128xf32>
    %609 = arith.divf %607, %608 : vector<2x128xf32>
    %610 = vector.extract_strided_slice %598 {offsets = [0, 128], sizes = [2, 128], strides = [1, 1]} : vector<2x384xf32> to vector<2x128xf32>
    %611 = vector.extract_strided_slice %601 {offsets = [0, 128], sizes = [2, 128], strides = [1, 1]} : vector<2x384xf32> to vector<2x128xf32>
    %612 = arith.addf %610, %611 : vector<2x128xf32>
    %613 = arith.negf %612 : vector<2x128xf32>
    %614 = math.exp %613 : vector<2x128xf32>
    %cst_246 = arith.constant 1.000000e+00 : f32
    %615 = vector.broadcast %cst_246 : f32 to vector<2x128xf32>
    %616 = arith.addf %615, %614 : vector<2x128xf32>
    %617 = arith.divf %615, %616 : vector<2x128xf32>
    %618 = vector.extract_strided_slice %598 {offsets = [0, 256], sizes = [2, 128], strides = [1, 1]} : vector<2x384xf32> to vector<2x128xf32>
    %619 = vector.extract_strided_slice %601 {offsets = [0, 256], sizes = [2, 128], strides = [1, 1]} : vector<2x384xf32> to vector<2x128xf32>
    %620 = arith.addf %619, %6 : vector<2x128xf32>
    %621 = arith.mulf %609, %620 : vector<2x128xf32>
    %622 = arith.addf %618, %621 : vector<2x128xf32>
    %623 = math.tanh %622 : vector<2x128xf32>
    %cst_247 = arith.constant 1.000000e+00 : f32
    %624 = vector.broadcast %cst_247 : f32 to vector<2x128xf32>
    %625 = arith.subf %624, %617 : vector<2x128xf32>
    %626 = arith.mulf %625, %623 : vector<2x128xf32>
    %627 = arith.mulf %617, %594 : vector<2x128xf32>
    %628 = arith.addf %626, %627 : vector<2x128xf32>
    %c8_i32_248 = arith.constant 8 : i32
    %629 = arith.muli %arg0, %c8_i32_248 : i32
    %630 = arith.addi %629, %c6_i32 : i32
    %c12_i32_249 = arith.constant 12 : i32
    %631 = arith.cmpi slt, %630, %c12_i32_249 : i32
    %632 = arith.select %631, %628, %594 : vector<2x128xf32>
    %c0_250 = arith.constant 0 : index
    %c0_251 = arith.constant 0 : index
    %c0_252 = arith.constant 0 : index
    %633 = vector.load %arg7[%c0_250, %c0_251, %c0_252] : memref<2x2x128xf32, #tpu.memory_space<vmem>>, vector<1x2x128xf32>
    %634 = vector.shape_cast %633 : vector<1x2x128xf32> to vector<2x128xf32>
    %635 = vector.shape_cast %632 : vector<2x128xf32> to vector<1x2x128xf32>
    tpu.vector_store %arg7[%c0_250, %c0_251, %c0_252], %635 {strides = array<i32>} : memref<2x2x128xf32, #tpu.memory_space<vmem>>, vector<1x2x128xf32>,
    %636 = arith.truncf %632 : vector<2x128xf32> to vector<2x128xbf16>
    %637 = arith.index_cast %c6_i32 : i32 to index
    %c0_253 = arith.constant 0 : index
    %c0_254 = arith.constant 0 : index
    %638 = vector.load %arg5[%637, %c0_253, %c0_254] : memref<8x2x128xbf16, #tpu.memory_space<vmem>>, vector<1x2x128xbf16>
    %639 = vector.shape_cast %638 : vector<1x2x128xbf16> to vector<2x128xbf16>
    %640 = vector.shape_cast %636 : vector<2x128xbf16> to vector<1x2x128xbf16>
    tpu.vector_store %arg5[%637, %c0_253, %c0_254], %640 {strides = array<i32>} : memref<8x2x128xbf16, #tpu.memory_space<vmem>>, vector<1x2x128xbf16>,
    %c7_i32_255 = arith.constant 7 : i32
    %641 = arith.subi %c7_i32_255, %c6_i32 : i32
    %c1_256 = arith.constant 1 : index
    %c0_257 = arith.constant 0 : index
    %c0_258 = arith.constant 0 : index
    %642 = vector.load %arg7[%c1_256, %c0_257, %c0_258] : memref<2x2x128xf32, #tpu.memory_space<vmem>>, vector<1x2x128xf32>
    %643 = vector.shape_cast %642 : vector<1x2x128xf32> to vector<2x128xf32>
    %644 = arith.index_cast %641 : i32 to index
    %c0_259 = arith.constant 0 : index
    %c0_260 = arith.constant 0 : index
    %645 = vector.load %arg2[%644, %c0_259, %c0_260] : memref<8x2x384xbf16, #tpu.memory_space<vmem>>, vector<1x2x384xbf16>
    %646 = vector.shape_cast %645 : vector<1x2x384xbf16> to vector<2x384xbf16>
    %647 = arith.extf %646 : vector<2x384xbf16> to vector<2x384xf32>
    %c1_261 = arith.constant 1 : index
    %c0_262 = arith.constant 0 : index
    %c0_263 = arith.constant 0 : index
    %648 = vector.load %arg3[%c1_261, %c0_262, %c0_263] : memref<2x128x384xf32, #tpu.memory_space<vmem>>, vector<1x128x384xf32>
    %649 = vector.shape_cast %648 : vector<1x128x384xf32> to vector<128x384xf32>
    %cst_264 = arith.constant dense<0.000000e+00> : vector<2x384xf32>
    %650 = tpu.matmul %643, %649, %cst_264 {dimension_numbers = #tpu.dot_dimension_numbers<[1], [0], [0], [1], [0, 0, 1, 1], [], []>} : vector<2x128xf32>, vector<128x384xf32>, vector<2x384xf32> -> vector<2x384xf32>
    %651 = vector.extract_strided_slice %647 {offsets = [0, 0], sizes = [2, 128], strides = [1, 1]} : vector<2x384xf32> to vector<2x128xf32>
    %652 = vector.extract_strided_slice %650 {offsets = [0, 0], sizes = [2, 128], strides = [1, 1]} : vector<2x384xf32> to vector<2x128xf32>
    %653 = arith.addf %651, %652 : vector<2x128xf32>
    %654 = arith.negf %653 : vector<2x128xf32>
    %655 = math.exp %654 : vector<2x128xf32>
    %cst_265 = arith.constant 1.000000e+00 : f32
    %656 = vector.broadcast %cst_265 : f32 to vector<2x128xf32>
    %657 = arith.addf %656, %655 : vector<2x128xf32>
    %658 = arith.divf %656, %657 : vector<2x128xf32>
    %659 = vector.extract_strided_slice %647 {offsets = [0, 128], sizes = [2, 128], strides = [1, 1]} : vector<2x384xf32> to vector<2x128xf32>
    %660 = vector.extract_strided_slice %650 {offsets = [0, 128], sizes = [2, 128], strides = [1, 1]} : vector<2x384xf32> to vector<2x128xf32>
    %661 = arith.addf %659, %660 : vector<2x128xf32>
    %662 = arith.negf %661 : vector<2x128xf32>
    %663 = math.exp %662 : vector<2x128xf32>
    %cst_266 = arith.constant 1.000000e+00 : f32
    %664 = vector.broadcast %cst_266 : f32 to vector<2x128xf32>
    %665 = arith.addf %664, %663 : vector<2x128xf32>
    %666 = arith.divf %664, %665 : vector<2x128xf32>
    %667 = vector.extract_strided_slice %647 {offsets = [0, 256], sizes = [2, 128], strides = [1, 1]} : vector<2x384xf32> to vector<2x128xf32>
    %668 = vector.extract_strided_slice %650 {offsets = [0, 256], sizes = [2, 128], strides = [1, 1]} : vector<2x384xf32> to vector<2x128xf32>
    %669 = arith.addf %668, %10 : vector<2x128xf32>
    %670 = arith.mulf %658, %669 : vector<2x128xf32>
    %671 = arith.addf %667, %670 : vector<2x128xf32>
    %672 = math.tanh %671 : vector<2x128xf32>
    %cst_267 = arith.constant 1.000000e+00 : f32
    %673 = vector.broadcast %cst_267 : f32 to vector<2x128xf32>
    %674 = arith.subf %673, %666 : vector<2x128xf32>
    %675 = arith.mulf %674, %672 : vector<2x128xf32>
    %676 = arith.mulf %666, %643 : vector<2x128xf32>
    %677 = arith.addf %675, %676 : vector<2x128xf32>
    %c8_i32_268 = arith.constant 8 : i32
    %678 = arith.muli %arg0, %c8_i32_268 : i32
    %679 = arith.addi %678, %c6_i32 : i32
    %c4_i32_269 = arith.constant 4 : i32
    %680 = arith.cmpi sge, %679, %c4_i32_269 : i32
    %681 = arith.select %680, %677, %643 : vector<2x128xf32>
    %c1_270 = arith.constant 1 : index
    %c0_271 = arith.constant 0 : index
    %c0_272 = arith.constant 0 : index
    %682 = vector.load %arg7[%c1_270, %c0_271, %c0_272] : memref<2x2x128xf32, #tpu.memory_space<vmem>>, vector<1x2x128xf32>
    %683 = vector.shape_cast %682 : vector<1x2x128xf32> to vector<2x128xf32>
    %684 = vector.shape_cast %681 : vector<2x128xf32> to vector<1x2x128xf32>
    tpu.vector_store %arg7[%c1_270, %c0_271, %c0_272], %684 {strides = array<i32>} : memref<2x2x128xf32, #tpu.memory_space<vmem>>, vector<1x2x128xf32>,
    %685 = arith.truncf %681 : vector<2x128xf32> to vector<2x128xbf16>
    %686 = arith.index_cast %641 : i32 to index
    %c0_273 = arith.constant 0 : index
    %c0_274 = arith.constant 0 : index
    %687 = vector.load %arg6[%686, %c0_273, %c0_274] : memref<8x2x128xbf16, #tpu.memory_space<vmem>>, vector<1x2x128xbf16>
    %688 = vector.shape_cast %687 : vector<1x2x128xbf16> to vector<2x128xbf16>
    %689 = vector.shape_cast %685 : vector<2x128xbf16> to vector<1x2x128xbf16>
    tpu.vector_store %arg6[%686, %c0_273, %c0_274], %689 {strides = array<i32>} : memref<8x2x128xbf16, #tpu.memory_space<vmem>>, vector<1x2x128xbf16>,
    %c7_i32_275 = arith.constant 7 : i32
    %c0_276 = arith.constant 0 : index
    %c0_277 = arith.constant 0 : index
    %c0_278 = arith.constant 0 : index
    %690 = vector.load %arg7[%c0_276, %c0_277, %c0_278] : memref<2x2x128xf32, #tpu.memory_space<vmem>>, vector<1x2x128xf32>
    %691 = vector.shape_cast %690 : vector<1x2x128xf32> to vector<2x128xf32>
    %692 = arith.index_cast %c7_i32_275 : i32 to index
    %c0_279 = arith.constant 0 : index
    %c0_280 = arith.constant 0 : index
    %693 = vector.load %arg1[%692, %c0_279, %c0_280] : memref<8x2x384xbf16, #tpu.memory_space<vmem>>, vector<1x2x384xbf16>
    %694 = vector.shape_cast %693 : vector<1x2x384xbf16> to vector<2x384xbf16>
    %695 = arith.extf %694 : vector<2x384xbf16> to vector<2x384xf32>
    %c0_281 = arith.constant 0 : index
    %c0_282 = arith.constant 0 : index
    %c0_283 = arith.constant 0 : index
    %696 = vector.load %arg3[%c0_281, %c0_282, %c0_283] : memref<2x128x384xf32, #tpu.memory_space<vmem>>, vector<1x128x384xf32>
    %697 = vector.shape_cast %696 : vector<1x128x384xf32> to vector<128x384xf32>
    %cst_284 = arith.constant dense<0.000000e+00> : vector<2x384xf32>
    %698 = tpu.matmul %691, %697, %cst_284 {dimension_numbers = #tpu.dot_dimension_numbers<[1], [0], [0], [1], [0, 0, 1, 1], [], []>} : vector<2x128xf32>, vector<128x384xf32>, vector<2x384xf32> -> vector<2x384xf32>
    %699 = vector.extract_strided_slice %695 {offsets = [0, 0], sizes = [2, 128], strides = [1, 1]} : vector<2x384xf32> to vector<2x128xf32>
    %700 = vector.extract_strided_slice %698 {offsets = [0, 0], sizes = [2, 128], strides = [1, 1]} : vector<2x384xf32> to vector<2x128xf32>
    %701 = arith.addf %699, %700 : vector<2x128xf32>
    %702 = arith.negf %701 : vector<2x128xf32>
    %703 = math.exp %702 : vector<2x128xf32>
    %cst_285 = arith.constant 1.000000e+00 : f32
    %704 = vector.broadcast %cst_285 : f32 to vector<2x128xf32>
    %705 = arith.addf %704, %703 : vector<2x128xf32>
    %706 = arith.divf %704, %705 : vector<2x128xf32>
    %707 = vector.extract_strided_slice %695 {offsets = [0, 128], sizes = [2, 128], strides = [1, 1]} : vector<2x384xf32> to vector<2x128xf32>
    %708 = vector.extract_strided_slice %698 {offsets = [0, 128], sizes = [2, 128], strides = [1, 1]} : vector<2x384xf32> to vector<2x128xf32>
    %709 = arith.addf %707, %708 : vector<2x128xf32>
    %710 = arith.negf %709 : vector<2x128xf32>
    %711 = math.exp %710 : vector<2x128xf32>
    %cst_286 = arith.constant 1.000000e+00 : f32
    %712 = vector.broadcast %cst_286 : f32 to vector<2x128xf32>
    %713 = arith.addf %712, %711 : vector<2x128xf32>
    %714 = arith.divf %712, %713 : vector<2x128xf32>
    %715 = vector.extract_strided_slice %695 {offsets = [0, 256], sizes = [2, 128], strides = [1, 1]} : vector<2x384xf32> to vector<2x128xf32>
    %716 = vector.extract_strided_slice %698 {offsets = [0, 256], sizes = [2, 128], strides = [1, 1]} : vector<2x384xf32> to vector<2x128xf32>
    %717 = arith.addf %716, %6 : vector<2x128xf32>
    %718 = arith.mulf %706, %717 : vector<2x128xf32>
    %719 = arith.addf %715, %718 : vector<2x128xf32>
    %720 = math.tanh %719 : vector<2x128xf32>
    %cst_287 = arith.constant 1.000000e+00 : f32
    %721 = vector.broadcast %cst_287 : f32 to vector<2x128xf32>
    %722 = arith.subf %721, %714 : vector<2x128xf32>
    %723 = arith.mulf %722, %720 : vector<2x128xf32>
    %724 = arith.mulf %714, %691 : vector<2x128xf32>
    %725 = arith.addf %723, %724 : vector<2x128xf32>
    %c8_i32_288 = arith.constant 8 : i32
    %726 = arith.muli %arg0, %c8_i32_288 : i32
    %727 = arith.addi %726, %c7_i32_275 : i32
    %c12_i32_289 = arith.constant 12 : i32
    %728 = arith.cmpi slt, %727, %c12_i32_289 : i32
    %729 = arith.select %728, %725, %691 : vector<2x128xf32>
    %c0_290 = arith.constant 0 : index
    %c0_291 = arith.constant 0 : index
    %c0_292 = arith.constant 0 : index
    %730 = vector.load %arg7[%c0_290, %c0_291, %c0_292] : memref<2x2x128xf32, #tpu.memory_space<vmem>>, vector<1x2x128xf32>
    %731 = vector.shape_cast %730 : vector<1x2x128xf32> to vector<2x128xf32>
    %732 = vector.shape_cast %729 : vector<2x128xf32> to vector<1x2x128xf32>
    tpu.vector_store %arg7[%c0_290, %c0_291, %c0_292], %732 {strides = array<i32>} : memref<2x2x128xf32, #tpu.memory_space<vmem>>, vector<1x2x128xf32>,
    %733 = arith.truncf %729 : vector<2x128xf32> to vector<2x128xbf16>
    %734 = arith.index_cast %c7_i32_275 : i32 to index
    %c0_293 = arith.constant 0 : index
    %c0_294 = arith.constant 0 : index
    %735 = vector.load %arg5[%734, %c0_293, %c0_294] : memref<8x2x128xbf16, #tpu.memory_space<vmem>>, vector<1x2x128xbf16>
    %736 = vector.shape_cast %735 : vector<1x2x128xbf16> to vector<2x128xbf16>
    %737 = vector.shape_cast %733 : vector<2x128xbf16> to vector<1x2x128xbf16>
    tpu.vector_store %arg5[%734, %c0_293, %c0_294], %737 {strides = array<i32>} : memref<8x2x128xbf16, #tpu.memory_space<vmem>>, vector<1x2x128xbf16>,
    %c7_i32_295 = arith.constant 7 : i32
    %738 = arith.subi %c7_i32_295, %c7_i32_275 : i32
    %c1_296 = arith.constant 1 : index
    %c0_297 = arith.constant 0 : index
    %c0_298 = arith.constant 0 : index
    %739 = vector.load %arg7[%c1_296, %c0_297, %c0_298] : memref<2x2x128xf32, #tpu.memory_space<vmem>>, vector<1x2x128xf32>
    %740 = vector.shape_cast %739 : vector<1x2x128xf32> to vector<2x128xf32>
    %741 = arith.index_cast %738 : i32 to index
    %c0_299 = arith.constant 0 : index
    %c0_300 = arith.constant 0 : index
    %742 = vector.load %arg2[%741, %c0_299, %c0_300] : memref<8x2x384xbf16, #tpu.memory_space<vmem>>, vector<1x2x384xbf16>
    %743 = vector.shape_cast %742 : vector<1x2x384xbf16> to vector<2x384xbf16>
    %744 = arith.extf %743 : vector<2x384xbf16> to vector<2x384xf32>
    %c1_301 = arith.constant 1 : index
    %c0_302 = arith.constant 0 : index
    %c0_303 = arith.constant 0 : index
    %745 = vector.load %arg3[%c1_301, %c0_302, %c0_303] : memref<2x128x384xf32, #tpu.memory_space<vmem>>, vector<1x128x384xf32>
    %746 = vector.shape_cast %745 : vector<1x128x384xf32> to vector<128x384xf32>
    %cst_304 = arith.constant dense<0.000000e+00> : vector<2x384xf32>
    %747 = tpu.matmul %740, %746, %cst_304 {dimension_numbers = #tpu.dot_dimension_numbers<[1], [0], [0], [1], [0, 0, 1, 1], [], []>} : vector<2x128xf32>, vector<128x384xf32>, vector<2x384xf32> -> vector<2x384xf32>
    %748 = vector.extract_strided_slice %744 {offsets = [0, 0], sizes = [2, 128], strides = [1, 1]} : vector<2x384xf32> to vector<2x128xf32>
    %749 = vector.extract_strided_slice %747 {offsets = [0, 0], sizes = [2, 128], strides = [1, 1]} : vector<2x384xf32> to vector<2x128xf32>
    %750 = arith.addf %748, %749 : vector<2x128xf32>
    %751 = arith.negf %750 : vector<2x128xf32>
    %752 = math.exp %751 : vector<2x128xf32>
    %cst_305 = arith.constant 1.000000e+00 : f32
    %753 = vector.broadcast %cst_305 : f32 to vector<2x128xf32>
    %754 = arith.addf %753, %752 : vector<2x128xf32>
    %755 = arith.divf %753, %754 : vector<2x128xf32>
    %756 = vector.extract_strided_slice %744 {offsets = [0, 128], sizes = [2, 128], strides = [1, 1]} : vector<2x384xf32> to vector<2x128xf32>
    %757 = vector.extract_strided_slice %747 {offsets = [0, 128], sizes = [2, 128], strides = [1, 1]} : vector<2x384xf32> to vector<2x128xf32>
    %758 = arith.addf %756, %757 : vector<2x128xf32>
    %759 = arith.negf %758 : vector<2x128xf32>
    %760 = math.exp %759 : vector<2x128xf32>
    %cst_306 = arith.constant 1.000000e+00 : f32
    %761 = vector.broadcast %cst_306 : f32 to vector<2x128xf32>
    %762 = arith.addf %761, %760 : vector<2x128xf32>
    %763 = arith.divf %761, %762 : vector<2x128xf32>
    %764 = vector.extract_strided_slice %744 {offsets = [0, 256], sizes = [2, 128], strides = [1, 1]} : vector<2x384xf32> to vector<2x128xf32>
    %765 = vector.extract_strided_slice %747 {offsets = [0, 256], sizes = [2, 128], strides = [1, 1]} : vector<2x384xf32> to vector<2x128xf32>
    %766 = arith.addf %765, %10 : vector<2x128xf32>
    %767 = arith.mulf %755, %766 : vector<2x128xf32>
    %768 = arith.addf %764, %767 : vector<2x128xf32>
    %769 = math.tanh %768 : vector<2x128xf32>
    %cst_307 = arith.constant 1.000000e+00 : f32
    %770 = vector.broadcast %cst_307 : f32 to vector<2x128xf32>
    %771 = arith.subf %770, %763 : vector<2x128xf32>
    %772 = arith.mulf %771, %769 : vector<2x128xf32>
    %773 = arith.mulf %763, %740 : vector<2x128xf32>
    %774 = arith.addf %772, %773 : vector<2x128xf32>
    %c8_i32_308 = arith.constant 8 : i32
    %775 = arith.muli %arg0, %c8_i32_308 : i32
    %776 = arith.addi %775, %c7_i32_275 : i32
    %c4_i32_309 = arith.constant 4 : i32
    %777 = arith.cmpi sge, %776, %c4_i32_309 : i32
    %778 = arith.select %777, %774, %740 : vector<2x128xf32>
    %c1_310 = arith.constant 1 : index
    %c0_311 = arith.constant 0 : index
    %c0_312 = arith.constant 0 : index
    %779 = vector.load %arg7[%c1_310, %c0_311, %c0_312] : memref<2x2x128xf32, #tpu.memory_space<vmem>>, vector<1x2x128xf32>
    %780 = vector.shape_cast %779 : vector<1x2x128xf32> to vector<2x128xf32>
    %781 = vector.shape_cast %778 : vector<2x128xf32> to vector<1x2x128xf32>
    tpu.vector_store %arg7[%c1_310, %c0_311, %c0_312], %781 {strides = array<i32>} : memref<2x2x128xf32, #tpu.memory_space<vmem>>, vector<1x2x128xf32>,
    %782 = arith.truncf %778 : vector<2x128xf32> to vector<2x128xbf16>
    %783 = arith.index_cast %738 : i32 to index
    %c0_313 = arith.constant 0 : index
    %c0_314 = arith.constant 0 : index
    %784 = vector.load %arg6[%783, %c0_313, %c0_314] : memref<8x2x128xbf16, #tpu.memory_space<vmem>>, vector<1x2x128xbf16>
    %785 = vector.shape_cast %784 : vector<1x2x128xbf16> to vector<2x128xbf16>
    %786 = vector.shape_cast %782 : vector<2x128xbf16> to vector<1x2x128xbf16>
    tpu.vector_store %arg6[%783, %c0_313, %c0_314], %786 {strides = array<i32>} : memref<8x2x128xbf16, #tpu.memory_space<vmem>>, vector<1x2x128xbf16>,
    %c8_i32_315 = arith.constant 8 : i32
    return
  }
  func.func @transform_0(%arg0: i32) -> (i32, i32, i32) {
    %c0_i32 = arith.constant 0 : i32
    %c0_i32_0 = arith.constant 0 : i32
    %c0_i32_1 = arith.constant 0 : i32
    return %arg0, %c0_i32, %c0_i32_0 : i32, i32, i32
  }
  func.func @transform_1(%arg0: i32) -> (i32, i32, i32) {
    %c1_i32 = arith.constant 1 : i32
    %0 = arith.subi %c1_i32, %arg0 : i32
    %c0_i32 = arith.constant 0 : i32
    %c0_i32_0 = arith.constant 0 : i32
    %c0_i32_1 = arith.constant 0 : i32
    return %0, %c0_i32, %c0_i32_0 : i32, i32, i32
  }
  func.func @transform_2(%arg0: i32) -> (i32, i32, i32) {
    %c0_i32 = arith.constant 0 : i32
    %c0_i32_0 = arith.constant 0 : i32
    %c0_i32_1 = arith.constant 0 : i32
    %c0_i32_2 = arith.constant 0 : i32
    return %c0_i32, %c0_i32_0, %c0_i32_1 : i32, i32, i32
  }
  func.func @transform_3(%arg0: i32) -> (i32, i32, i32) {
    %c0_i32 = arith.constant 0 : i32
    %c0_i32_0 = arith.constant 0 : i32
    %c0_i32_1 = arith.constant 0 : i32
    %c0_i32_2 = arith.constant 0 : i32
    return %c0_i32, %c0_i32_0, %c0_i32_1 : i32, i32, i32
  }
  func.func @transform_4(%arg0: i32) -> (i32, i32, i32) {
    %c0_i32 = arith.constant 0 : i32
    %c0_i32_0 = arith.constant 0 : i32
    %c0_i32_1 = arith.constant 0 : i32
    return %arg0, %c0_i32, %c0_i32_0 : i32, i32, i32
  }
  func.func @transform_5(%arg0: i32) -> (i32, i32, i32) {
    %c1_i32 = arith.constant 1 : i32
    %0 = arith.subi %c1_i32, %arg0 : i32
    %c0_i32 = arith.constant 0 : i32
    %c0_i32_0 = arith.constant 0 : i32
    %c0_i32_1 = arith.constant 0 : i32
    return %0, %c0_i32, %c0_i32_0 : i32, i32, i32
  }
}

module attributes {stable_mosaic.version = 11 : i64} {
  func.func @kernel(%arg0: i32, %arg1: memref<8x2x384xbf16, #tpu.memory_space<vmem>>, %arg2: memref<8x2x384xbf16, #tpu.memory_space<vmem>>, %arg3: memref<2x128x384xf32, #tpu.memory_space<vmem>>, %arg4: memref<2x1x128xf32, #tpu.memory_space<vmem>>, %arg5: memref<8x2x128xbf16, #tpu.memory_space<vmem>>, %arg6: memref<8x2x128xbf16, #tpu.memory_space<vmem>>, %arg7: memref<2x2x128xf32, #tpu.memory_space<vmem>>) attributes {dimension_semantics = [#tpu.dimension_semantics<arbitrary>], iteration_bounds = array<i64: 1>, scalar_prefetch = 0 : i64, scratch_operands = 1 : i64, tpu.core_type = #tpu.core_type<tc>, window_params = [{transform_indices = @transform_0, window_bounds = array<i64: 8, 2, 384>}, {transform_indices = @transform_1, window_bounds = array<i64: 8, 2, 384>}, {pipeline_mode = #tpu.pipeline_mode<synchronous>, transform_indices = @transform_2, window_bounds = array<i64: 2, 128, 384>}, {pipeline_mode = #tpu.pipeline_mode<synchronous>, transform_indices = @transform_3, window_bounds = array<i64: 2, 1, 128>}, {transform_indices = @transform_4, window_bounds = array<i64: 8, 2, 128>}, {transform_indices = @transform_5, window_bounds = array<i64: 8, 2, 128>}]} {
    %c0_i32 = arith.constant 0 : i32
    %0 = arith.cmpi eq, %arg0, %c0_i32 : i32
    %1 = arith.extui %0 : i1 to i32
    %c0_i32_0 = arith.constant 0 : i32
    %2 = arith.cmpi ne, %1, %c0_i32_0 : i32
    scf.if %2 {
      %cst_285 = arith.constant 0.000000e+00 : f32
      %723 = vector.broadcast %cst_285 : f32 to vector<2x2x128xf32>
      %c0_286 = arith.constant 0 : index
      %c0_287 = arith.constant 0 : index
      %c0_288 = arith.constant 0 : index
      %724 = vector.load %arg7[%c0_286, %c0_287, %c0_288] : memref<2x2x128xf32, #tpu.memory_space<vmem>>, vector<2x2x128xf32>
      tpu.vector_store %arg7[%c0_286, %c0_287, %c0_288], %723 {strides = array<i32>} : memref<2x2x128xf32, #tpu.memory_space<vmem>>, vector<2x2x128xf32>,
    } else {
    }
    %c0 = arith.constant 0 : index
    %c0_1 = arith.constant 0 : index
    %c0_2 = arith.constant 0 : index
    %3 = vector.load %arg4[%c0, %c0_1, %c0_2] : memref<2x1x128xf32, #tpu.memory_space<vmem>>, vector<1x1x128xf32>
    %4 = vector.shape_cast %3 : vector<1x1x128xf32> to vector<1x128xf32>
    %5 = vector.shape_cast %4 : vector<1x128xf32> to vector<1x128xf32>
    %6 = vector.broadcast %5 : vector<1x128xf32> to vector<2x128xf32>
    %c1 = arith.constant 1 : index
    %c0_3 = arith.constant 0 : index
    %c0_4 = arith.constant 0 : index
    %7 = vector.load %arg4[%c1, %c0_3, %c0_4] : memref<2x1x128xf32, #tpu.memory_space<vmem>>, vector<1x1x128xf32>
    %8 = vector.shape_cast %7 : vector<1x1x128xf32> to vector<1x128xf32>
    %9 = vector.shape_cast %8 : vector<1x128xf32> to vector<1x128xf32>
    %10 = vector.broadcast %9 : vector<1x128xf32> to vector<2x128xf32>
    %c0_i32_5 = arith.constant 0 : i32
    %c0_6 = arith.constant 0 : index
    %c0_7 = arith.constant 0 : index
    %c0_8 = arith.constant 0 : index
    %11 = vector.load %arg7[%c0_6, %c0_7, %c0_8] : memref<2x2x128xf32, #tpu.memory_space<vmem>>, vector<1x2x128xf32>
    %12 = vector.shape_cast %11 : vector<1x2x128xf32> to vector<2x128xf32>
    %13 = arith.index_cast %c0_i32_5 : i32 to index
    %c0_9 = arith.constant 0 : index
    %c0_10 = arith.constant 0 : index
    %14 = vector.load %arg1[%13, %c0_9, %c0_10] : memref<8x2x384xbf16, #tpu.memory_space<vmem>>, vector<1x2x384xbf16>
    %15 = vector.shape_cast %14 : vector<1x2x384xbf16> to vector<2x384xbf16>
    %16 = arith.extf %15 : vector<2x384xbf16> to vector<2x384xf32>
    %c0_11 = arith.constant 0 : index
    %c0_12 = arith.constant 0 : index
    %c0_13 = arith.constant 0 : index
    %17 = vector.load %arg3[%c0_11, %c0_12, %c0_13] : memref<2x128x384xf32, #tpu.memory_space<vmem>>, vector<1x128x384xf32>
    %18 = vector.shape_cast %17 : vector<1x128x384xf32> to vector<128x384xf32>
    %cst = arith.constant dense<0.000000e+00> : vector<2x384xf32>
    %19 = tpu.matmul %12, %18, %cst {dimension_numbers = #tpu.dot_dimension_numbers<[1], [0], [0], [1], [0, 0, 1, 1], [], []>} : vector<2x128xf32>, vector<128x384xf32>, vector<2x384xf32> -> vector<2x384xf32>
    %20 = vector.extract_strided_slice %16 {offsets = [0, 0], sizes = [2, 128], strides = [1, 1]} : vector<2x384xf32> to vector<2x128xf32>
    %21 = vector.extract_strided_slice %19 {offsets = [0, 0], sizes = [2, 128], strides = [1, 1]} : vector<2x384xf32> to vector<2x128xf32>
    %22 = arith.addf %20, %21 : vector<2x128xf32>
    %23 = arith.negf %22 : vector<2x128xf32>
    %24 = math.exp %23 : vector<2x128xf32>
    %cst_14 = arith.constant 1.000000e+00 : f32
    %25 = vector.broadcast %cst_14 : f32 to vector<2x128xf32>
    %26 = arith.addf %25, %24 : vector<2x128xf32>
    %27 = arith.divf %25, %26 : vector<2x128xf32>
    %28 = vector.extract_strided_slice %16 {offsets = [0, 128], sizes = [2, 128], strides = [1, 1]} : vector<2x384xf32> to vector<2x128xf32>
    %29 = vector.extract_strided_slice %19 {offsets = [0, 128], sizes = [2, 128], strides = [1, 1]} : vector<2x384xf32> to vector<2x128xf32>
    %30 = arith.addf %28, %29 : vector<2x128xf32>
    %31 = arith.negf %30 : vector<2x128xf32>
    %32 = math.exp %31 : vector<2x128xf32>
    %cst_15 = arith.constant 1.000000e+00 : f32
    %33 = vector.broadcast %cst_15 : f32 to vector<2x128xf32>
    %34 = arith.addf %33, %32 : vector<2x128xf32>
    %35 = arith.divf %33, %34 : vector<2x128xf32>
    %36 = vector.extract_strided_slice %16 {offsets = [0, 256], sizes = [2, 128], strides = [1, 1]} : vector<2x384xf32> to vector<2x128xf32>
    %37 = vector.extract_strided_slice %19 {offsets = [0, 256], sizes = [2, 128], strides = [1, 1]} : vector<2x384xf32> to vector<2x128xf32>
    %38 = arith.addf %37, %6 : vector<2x128xf32>
    %39 = arith.mulf %27, %38 : vector<2x128xf32>
    %40 = arith.addf %36, %39 : vector<2x128xf32>
    %41 = math.tanh %40 : vector<2x128xf32>
    %cst_16 = arith.constant 1.000000e+00 : f32
    %42 = vector.broadcast %cst_16 : f32 to vector<2x128xf32>
    %43 = arith.subf %42, %35 : vector<2x128xf32>
    %44 = arith.mulf %43, %41 : vector<2x128xf32>
    %45 = arith.mulf %35, %12 : vector<2x128xf32>
    %46 = arith.addf %44, %45 : vector<2x128xf32>
    %c0_17 = arith.constant 0 : index
    %c0_18 = arith.constant 0 : index
    %c0_19 = arith.constant 0 : index
    %47 = vector.load %arg7[%c0_17, %c0_18, %c0_19] : memref<2x2x128xf32, #tpu.memory_space<vmem>>, vector<1x2x128xf32>
    %48 = vector.shape_cast %47 : vector<1x2x128xf32> to vector<2x128xf32>
    %49 = vector.shape_cast %46 : vector<2x128xf32> to vector<1x2x128xf32>
    tpu.vector_store %arg7[%c0_17, %c0_18, %c0_19], %49 {strides = array<i32>} : memref<2x2x128xf32, #tpu.memory_space<vmem>>, vector<1x2x128xf32>,
    %50 = arith.truncf %46 : vector<2x128xf32> to vector<2x128xbf16>
    %51 = arith.index_cast %c0_i32_5 : i32 to index
    %c0_20 = arith.constant 0 : index
    %c0_21 = arith.constant 0 : index
    %52 = vector.load %arg5[%51, %c0_20, %c0_21] : memref<8x2x128xbf16, #tpu.memory_space<vmem>>, vector<1x2x128xbf16>
    %53 = vector.shape_cast %52 : vector<1x2x128xbf16> to vector<2x128xbf16>
    %54 = vector.shape_cast %50 : vector<2x128xbf16> to vector<1x2x128xbf16>
    tpu.vector_store %arg5[%51, %c0_20, %c0_21], %54 {strides = array<i32>} : memref<8x2x128xbf16, #tpu.memory_space<vmem>>, vector<1x2x128xbf16>,
    %c7_i32 = arith.constant 7 : i32
    %55 = arith.subi %c7_i32, %c0_i32_5 : i32
    %c1_22 = arith.constant 1 : index
    %c0_23 = arith.constant 0 : index
    %c0_24 = arith.constant 0 : index
    %56 = vector.load %arg7[%c1_22, %c0_23, %c0_24] : memref<2x2x128xf32, #tpu.memory_space<vmem>>, vector<1x2x128xf32>
    %57 = vector.shape_cast %56 : vector<1x2x128xf32> to vector<2x128xf32>
    %58 = arith.index_cast %55 : i32 to index
    %c0_25 = arith.constant 0 : index
    %c0_26 = arith.constant 0 : index
    %59 = vector.load %arg2[%58, %c0_25, %c0_26] : memref<8x2x384xbf16, #tpu.memory_space<vmem>>, vector<1x2x384xbf16>
    %60 = vector.shape_cast %59 : vector<1x2x384xbf16> to vector<2x384xbf16>
    %61 = arith.extf %60 : vector<2x384xbf16> to vector<2x384xf32>
    %c1_27 = arith.constant 1 : index
    %c0_28 = arith.constant 0 : index
    %c0_29 = arith.constant 0 : index
    %62 = vector.load %arg3[%c1_27, %c0_28, %c0_29] : memref<2x128x384xf32, #tpu.memory_space<vmem>>, vector<1x128x384xf32>
    %63 = vector.shape_cast %62 : vector<1x128x384xf32> to vector<128x384xf32>
    %cst_30 = arith.constant dense<0.000000e+00> : vector<2x384xf32>
    %64 = tpu.matmul %57, %63, %cst_30 {dimension_numbers = #tpu.dot_dimension_numbers<[1], [0], [0], [1], [0, 0, 1, 1], [], []>} : vector<2x128xf32>, vector<128x384xf32>, vector<2x384xf32> -> vector<2x384xf32>
    %65 = vector.extract_strided_slice %61 {offsets = [0, 0], sizes = [2, 128], strides = [1, 1]} : vector<2x384xf32> to vector<2x128xf32>
    %66 = vector.extract_strided_slice %64 {offsets = [0, 0], sizes = [2, 128], strides = [1, 1]} : vector<2x384xf32> to vector<2x128xf32>
    %67 = arith.addf %65, %66 : vector<2x128xf32>
    %68 = arith.negf %67 : vector<2x128xf32>
    %69 = math.exp %68 : vector<2x128xf32>
    %cst_31 = arith.constant 1.000000e+00 : f32
    %70 = vector.broadcast %cst_31 : f32 to vector<2x128xf32>
    %71 = arith.addf %70, %69 : vector<2x128xf32>
    %72 = arith.divf %70, %71 : vector<2x128xf32>
    %73 = vector.extract_strided_slice %61 {offsets = [0, 128], sizes = [2, 128], strides = [1, 1]} : vector<2x384xf32> to vector<2x128xf32>
    %74 = vector.extract_strided_slice %64 {offsets = [0, 128], sizes = [2, 128], strides = [1, 1]} : vector<2x384xf32> to vector<2x128xf32>
    %75 = arith.addf %73, %74 : vector<2x128xf32>
    %76 = arith.negf %75 : vector<2x128xf32>
    %77 = math.exp %76 : vector<2x128xf32>
    %cst_32 = arith.constant 1.000000e+00 : f32
    %78 = vector.broadcast %cst_32 : f32 to vector<2x128xf32>
    %79 = arith.addf %78, %77 : vector<2x128xf32>
    %80 = arith.divf %78, %79 : vector<2x128xf32>
    %81 = vector.extract_strided_slice %61 {offsets = [0, 256], sizes = [2, 128], strides = [1, 1]} : vector<2x384xf32> to vector<2x128xf32>
    %82 = vector.extract_strided_slice %64 {offsets = [0, 256], sizes = [2, 128], strides = [1, 1]} : vector<2x384xf32> to vector<2x128xf32>
    %83 = arith.addf %82, %10 : vector<2x128xf32>
    %84 = arith.mulf %72, %83 : vector<2x128xf32>
    %85 = arith.addf %81, %84 : vector<2x128xf32>
    %86 = math.tanh %85 : vector<2x128xf32>
    %cst_33 = arith.constant 1.000000e+00 : f32
    %87 = vector.broadcast %cst_33 : f32 to vector<2x128xf32>
    %88 = arith.subf %87, %80 : vector<2x128xf32>
    %89 = arith.mulf %88, %86 : vector<2x128xf32>
    %90 = arith.mulf %80, %57 : vector<2x128xf32>
    %91 = arith.addf %89, %90 : vector<2x128xf32>
    %c1_34 = arith.constant 1 : index
    %c0_35 = arith.constant 0 : index
    %c0_36 = arith.constant 0 : index
    %92 = vector.load %arg7[%c1_34, %c0_35, %c0_36] : memref<2x2x128xf32, #tpu.memory_space<vmem>>, vector<1x2x128xf32>
    %93 = vector.shape_cast %92 : vector<1x2x128xf32> to vector<2x128xf32>
    %94 = vector.shape_cast %91 : vector<2x128xf32> to vector<1x2x128xf32>
    tpu.vector_store %arg7[%c1_34, %c0_35, %c0_36], %94 {strides = array<i32>} : memref<2x2x128xf32, #tpu.memory_space<vmem>>, vector<1x2x128xf32>,
    %95 = arith.truncf %91 : vector<2x128xf32> to vector<2x128xbf16>
    %96 = arith.index_cast %55 : i32 to index
    %c0_37 = arith.constant 0 : index
    %c0_38 = arith.constant 0 : index
    %97 = vector.load %arg6[%96, %c0_37, %c0_38] : memref<8x2x128xbf16, #tpu.memory_space<vmem>>, vector<1x2x128xbf16>
    %98 = vector.shape_cast %97 : vector<1x2x128xbf16> to vector<2x128xbf16>
    %99 = vector.shape_cast %95 : vector<2x128xbf16> to vector<1x2x128xbf16>
    tpu.vector_store %arg6[%96, %c0_37, %c0_38], %99 {strides = array<i32>} : memref<8x2x128xbf16, #tpu.memory_space<vmem>>, vector<1x2x128xbf16>,
    %c1_i32 = arith.constant 1 : i32
    %c0_39 = arith.constant 0 : index
    %c0_40 = arith.constant 0 : index
    %c0_41 = arith.constant 0 : index
    %100 = vector.load %arg7[%c0_39, %c0_40, %c0_41] : memref<2x2x128xf32, #tpu.memory_space<vmem>>, vector<1x2x128xf32>
    %101 = vector.shape_cast %100 : vector<1x2x128xf32> to vector<2x128xf32>
    %102 = arith.index_cast %c1_i32 : i32 to index
    %c0_42 = arith.constant 0 : index
    %c0_43 = arith.constant 0 : index
    %103 = vector.load %arg1[%102, %c0_42, %c0_43] : memref<8x2x384xbf16, #tpu.memory_space<vmem>>, vector<1x2x384xbf16>
    %104 = vector.shape_cast %103 : vector<1x2x384xbf16> to vector<2x384xbf16>
    %105 = arith.extf %104 : vector<2x384xbf16> to vector<2x384xf32>
    %c0_44 = arith.constant 0 : index
    %c0_45 = arith.constant 0 : index
    %c0_46 = arith.constant 0 : index
    %106 = vector.load %arg3[%c0_44, %c0_45, %c0_46] : memref<2x128x384xf32, #tpu.memory_space<vmem>>, vector<1x128x384xf32>
    %107 = vector.shape_cast %106 : vector<1x128x384xf32> to vector<128x384xf32>
    %cst_47 = arith.constant dense<0.000000e+00> : vector<2x384xf32>
    %108 = tpu.matmul %101, %107, %cst_47 {dimension_numbers = #tpu.dot_dimension_numbers<[1], [0], [0], [1], [0, 0, 1, 1], [], []>} : vector<2x128xf32>, vector<128x384xf32>, vector<2x384xf32> -> vector<2x384xf32>
    %109 = vector.extract_strided_slice %105 {offsets = [0, 0], sizes = [2, 128], strides = [1, 1]} : vector<2x384xf32> to vector<2x128xf32>
    %110 = vector.extract_strided_slice %108 {offsets = [0, 0], sizes = [2, 128], strides = [1, 1]} : vector<2x384xf32> to vector<2x128xf32>
    %111 = arith.addf %109, %110 : vector<2x128xf32>
    %112 = arith.negf %111 : vector<2x128xf32>
    %113 = math.exp %112 : vector<2x128xf32>
    %cst_48 = arith.constant 1.000000e+00 : f32
    %114 = vector.broadcast %cst_48 : f32 to vector<2x128xf32>
    %115 = arith.addf %114, %113 : vector<2x128xf32>
    %116 = arith.divf %114, %115 : vector<2x128xf32>
    %117 = vector.extract_strided_slice %105 {offsets = [0, 128], sizes = [2, 128], strides = [1, 1]} : vector<2x384xf32> to vector<2x128xf32>
    %118 = vector.extract_strided_slice %108 {offsets = [0, 128], sizes = [2, 128], strides = [1, 1]} : vector<2x384xf32> to vector<2x128xf32>
    %119 = arith.addf %117, %118 : vector<2x128xf32>
    %120 = arith.negf %119 : vector<2x128xf32>
    %121 = math.exp %120 : vector<2x128xf32>
    %cst_49 = arith.constant 1.000000e+00 : f32
    %122 = vector.broadcast %cst_49 : f32 to vector<2x128xf32>
    %123 = arith.addf %122, %121 : vector<2x128xf32>
    %124 = arith.divf %122, %123 : vector<2x128xf32>
    %125 = vector.extract_strided_slice %105 {offsets = [0, 256], sizes = [2, 128], strides = [1, 1]} : vector<2x384xf32> to vector<2x128xf32>
    %126 = vector.extract_strided_slice %108 {offsets = [0, 256], sizes = [2, 128], strides = [1, 1]} : vector<2x384xf32> to vector<2x128xf32>
    %127 = arith.addf %126, %6 : vector<2x128xf32>
    %128 = arith.mulf %116, %127 : vector<2x128xf32>
    %129 = arith.addf %125, %128 : vector<2x128xf32>
    %130 = math.tanh %129 : vector<2x128xf32>
    %cst_50 = arith.constant 1.000000e+00 : f32
    %131 = vector.broadcast %cst_50 : f32 to vector<2x128xf32>
    %132 = arith.subf %131, %124 : vector<2x128xf32>
    %133 = arith.mulf %132, %130 : vector<2x128xf32>
    %134 = arith.mulf %124, %101 : vector<2x128xf32>
    %135 = arith.addf %133, %134 : vector<2x128xf32>
    %c0_51 = arith.constant 0 : index
    %c0_52 = arith.constant 0 : index
    %c0_53 = arith.constant 0 : index
    %136 = vector.load %arg7[%c0_51, %c0_52, %c0_53] : memref<2x2x128xf32, #tpu.memory_space<vmem>>, vector<1x2x128xf32>
    %137 = vector.shape_cast %136 : vector<1x2x128xf32> to vector<2x128xf32>
    %138 = vector.shape_cast %135 : vector<2x128xf32> to vector<1x2x128xf32>
    tpu.vector_store %arg7[%c0_51, %c0_52, %c0_53], %138 {strides = array<i32>} : memref<2x2x128xf32, #tpu.memory_space<vmem>>, vector<1x2x128xf32>,
    %139 = arith.truncf %135 : vector<2x128xf32> to vector<2x128xbf16>
    %140 = arith.index_cast %c1_i32 : i32 to index
    %c0_54 = arith.constant 0 : index
    %c0_55 = arith.constant 0 : index
    %141 = vector.load %arg5[%140, %c0_54, %c0_55] : memref<8x2x128xbf16, #tpu.memory_space<vmem>>, vector<1x2x128xbf16>
    %142 = vector.shape_cast %141 : vector<1x2x128xbf16> to vector<2x128xbf16>
    %143 = vector.shape_cast %139 : vector<2x128xbf16> to vector<1x2x128xbf16>
    tpu.vector_store %arg5[%140, %c0_54, %c0_55], %143 {strides = array<i32>} : memref<8x2x128xbf16, #tpu.memory_space<vmem>>, vector<1x2x128xbf16>,
    %c7_i32_56 = arith.constant 7 : i32
    %144 = arith.subi %c7_i32_56, %c1_i32 : i32
    %c1_57 = arith.constant 1 : index
    %c0_58 = arith.constant 0 : index
    %c0_59 = arith.constant 0 : index
    %145 = vector.load %arg7[%c1_57, %c0_58, %c0_59] : memref<2x2x128xf32, #tpu.memory_space<vmem>>, vector<1x2x128xf32>
    %146 = vector.shape_cast %145 : vector<1x2x128xf32> to vector<2x128xf32>
    %147 = arith.index_cast %144 : i32 to index
    %c0_60 = arith.constant 0 : index
    %c0_61 = arith.constant 0 : index
    %148 = vector.load %arg2[%147, %c0_60, %c0_61] : memref<8x2x384xbf16, #tpu.memory_space<vmem>>, vector<1x2x384xbf16>
    %149 = vector.shape_cast %148 : vector<1x2x384xbf16> to vector<2x384xbf16>
    %150 = arith.extf %149 : vector<2x384xbf16> to vector<2x384xf32>
    %c1_62 = arith.constant 1 : index
    %c0_63 = arith.constant 0 : index
    %c0_64 = arith.constant 0 : index
    %151 = vector.load %arg3[%c1_62, %c0_63, %c0_64] : memref<2x128x384xf32, #tpu.memory_space<vmem>>, vector<1x128x384xf32>
    %152 = vector.shape_cast %151 : vector<1x128x384xf32> to vector<128x384xf32>
    %cst_65 = arith.constant dense<0.000000e+00> : vector<2x384xf32>
    %153 = tpu.matmul %146, %152, %cst_65 {dimension_numbers = #tpu.dot_dimension_numbers<[1], [0], [0], [1], [0, 0, 1, 1], [], []>} : vector<2x128xf32>, vector<128x384xf32>, vector<2x384xf32> -> vector<2x384xf32>
    %154 = vector.extract_strided_slice %150 {offsets = [0, 0], sizes = [2, 128], strides = [1, 1]} : vector<2x384xf32> to vector<2x128xf32>
    %155 = vector.extract_strided_slice %153 {offsets = [0, 0], sizes = [2, 128], strides = [1, 1]} : vector<2x384xf32> to vector<2x128xf32>
    %156 = arith.addf %154, %155 : vector<2x128xf32>
    %157 = arith.negf %156 : vector<2x128xf32>
    %158 = math.exp %157 : vector<2x128xf32>
    %cst_66 = arith.constant 1.000000e+00 : f32
    %159 = vector.broadcast %cst_66 : f32 to vector<2x128xf32>
    %160 = arith.addf %159, %158 : vector<2x128xf32>
    %161 = arith.divf %159, %160 : vector<2x128xf32>
    %162 = vector.extract_strided_slice %150 {offsets = [0, 128], sizes = [2, 128], strides = [1, 1]} : vector<2x384xf32> to vector<2x128xf32>
    %163 = vector.extract_strided_slice %153 {offsets = [0, 128], sizes = [2, 128], strides = [1, 1]} : vector<2x384xf32> to vector<2x128xf32>
    %164 = arith.addf %162, %163 : vector<2x128xf32>
    %165 = arith.negf %164 : vector<2x128xf32>
    %166 = math.exp %165 : vector<2x128xf32>
    %cst_67 = arith.constant 1.000000e+00 : f32
    %167 = vector.broadcast %cst_67 : f32 to vector<2x128xf32>
    %168 = arith.addf %167, %166 : vector<2x128xf32>
    %169 = arith.divf %167, %168 : vector<2x128xf32>
    %170 = vector.extract_strided_slice %150 {offsets = [0, 256], sizes = [2, 128], strides = [1, 1]} : vector<2x384xf32> to vector<2x128xf32>
    %171 = vector.extract_strided_slice %153 {offsets = [0, 256], sizes = [2, 128], strides = [1, 1]} : vector<2x384xf32> to vector<2x128xf32>
    %172 = arith.addf %171, %10 : vector<2x128xf32>
    %173 = arith.mulf %161, %172 : vector<2x128xf32>
    %174 = arith.addf %170, %173 : vector<2x128xf32>
    %175 = math.tanh %174 : vector<2x128xf32>
    %cst_68 = arith.constant 1.000000e+00 : f32
    %176 = vector.broadcast %cst_68 : f32 to vector<2x128xf32>
    %177 = arith.subf %176, %169 : vector<2x128xf32>
    %178 = arith.mulf %177, %175 : vector<2x128xf32>
    %179 = arith.mulf %169, %146 : vector<2x128xf32>
    %180 = arith.addf %178, %179 : vector<2x128xf32>
    %c1_69 = arith.constant 1 : index
    %c0_70 = arith.constant 0 : index
    %c0_71 = arith.constant 0 : index
    %181 = vector.load %arg7[%c1_69, %c0_70, %c0_71] : memref<2x2x128xf32, #tpu.memory_space<vmem>>, vector<1x2x128xf32>
    %182 = vector.shape_cast %181 : vector<1x2x128xf32> to vector<2x128xf32>
    %183 = vector.shape_cast %180 : vector<2x128xf32> to vector<1x2x128xf32>
    tpu.vector_store %arg7[%c1_69, %c0_70, %c0_71], %183 {strides = array<i32>} : memref<2x2x128xf32, #tpu.memory_space<vmem>>, vector<1x2x128xf32>,
    %184 = arith.truncf %180 : vector<2x128xf32> to vector<2x128xbf16>
    %185 = arith.index_cast %144 : i32 to index
    %c0_72 = arith.constant 0 : index
    %c0_73 = arith.constant 0 : index
    %186 = vector.load %arg6[%185, %c0_72, %c0_73] : memref<8x2x128xbf16, #tpu.memory_space<vmem>>, vector<1x2x128xbf16>
    %187 = vector.shape_cast %186 : vector<1x2x128xbf16> to vector<2x128xbf16>
    %188 = vector.shape_cast %184 : vector<2x128xbf16> to vector<1x2x128xbf16>
    tpu.vector_store %arg6[%185, %c0_72, %c0_73], %188 {strides = array<i32>} : memref<8x2x128xbf16, #tpu.memory_space<vmem>>, vector<1x2x128xbf16>,
    %c2_i32 = arith.constant 2 : i32
    %c0_74 = arith.constant 0 : index
    %c0_75 = arith.constant 0 : index
    %c0_76 = arith.constant 0 : index
    %189 = vector.load %arg7[%c0_74, %c0_75, %c0_76] : memref<2x2x128xf32, #tpu.memory_space<vmem>>, vector<1x2x128xf32>
    %190 = vector.shape_cast %189 : vector<1x2x128xf32> to vector<2x128xf32>
    %191 = arith.index_cast %c2_i32 : i32 to index
    %c0_77 = arith.constant 0 : index
    %c0_78 = arith.constant 0 : index
    %192 = vector.load %arg1[%191, %c0_77, %c0_78] : memref<8x2x384xbf16, #tpu.memory_space<vmem>>, vector<1x2x384xbf16>
    %193 = vector.shape_cast %192 : vector<1x2x384xbf16> to vector<2x384xbf16>
    %194 = arith.extf %193 : vector<2x384xbf16> to vector<2x384xf32>
    %c0_79 = arith.constant 0 : index
    %c0_80 = arith.constant 0 : index
    %c0_81 = arith.constant 0 : index
    %195 = vector.load %arg3[%c0_79, %c0_80, %c0_81] : memref<2x128x384xf32, #tpu.memory_space<vmem>>, vector<1x128x384xf32>
    %196 = vector.shape_cast %195 : vector<1x128x384xf32> to vector<128x384xf32>
    %cst_82 = arith.constant dense<0.000000e+00> : vector<2x384xf32>
    %197 = tpu.matmul %190, %196, %cst_82 {dimension_numbers = #tpu.dot_dimension_numbers<[1], [0], [0], [1], [0, 0, 1, 1], [], []>} : vector<2x128xf32>, vector<128x384xf32>, vector<2x384xf32> -> vector<2x384xf32>
    %198 = vector.extract_strided_slice %194 {offsets = [0, 0], sizes = [2, 128], strides = [1, 1]} : vector<2x384xf32> to vector<2x128xf32>
    %199 = vector.extract_strided_slice %197 {offsets = [0, 0], sizes = [2, 128], strides = [1, 1]} : vector<2x384xf32> to vector<2x128xf32>
    %200 = arith.addf %198, %199 : vector<2x128xf32>
    %201 = arith.negf %200 : vector<2x128xf32>
    %202 = math.exp %201 : vector<2x128xf32>
    %cst_83 = arith.constant 1.000000e+00 : f32
    %203 = vector.broadcast %cst_83 : f32 to vector<2x128xf32>
    %204 = arith.addf %203, %202 : vector<2x128xf32>
    %205 = arith.divf %203, %204 : vector<2x128xf32>
    %206 = vector.extract_strided_slice %194 {offsets = [0, 128], sizes = [2, 128], strides = [1, 1]} : vector<2x384xf32> to vector<2x128xf32>
    %207 = vector.extract_strided_slice %197 {offsets = [0, 128], sizes = [2, 128], strides = [1, 1]} : vector<2x384xf32> to vector<2x128xf32>
    %208 = arith.addf %206, %207 : vector<2x128xf32>
    %209 = arith.negf %208 : vector<2x128xf32>
    %210 = math.exp %209 : vector<2x128xf32>
    %cst_84 = arith.constant 1.000000e+00 : f32
    %211 = vector.broadcast %cst_84 : f32 to vector<2x128xf32>
    %212 = arith.addf %211, %210 : vector<2x128xf32>
    %213 = arith.divf %211, %212 : vector<2x128xf32>
    %214 = vector.extract_strided_slice %194 {offsets = [0, 256], sizes = [2, 128], strides = [1, 1]} : vector<2x384xf32> to vector<2x128xf32>
    %215 = vector.extract_strided_slice %197 {offsets = [0, 256], sizes = [2, 128], strides = [1, 1]} : vector<2x384xf32> to vector<2x128xf32>
    %216 = arith.addf %215, %6 : vector<2x128xf32>
    %217 = arith.mulf %205, %216 : vector<2x128xf32>
    %218 = arith.addf %214, %217 : vector<2x128xf32>
    %219 = math.tanh %218 : vector<2x128xf32>
    %cst_85 = arith.constant 1.000000e+00 : f32
    %220 = vector.broadcast %cst_85 : f32 to vector<2x128xf32>
    %221 = arith.subf %220, %213 : vector<2x128xf32>
    %222 = arith.mulf %221, %219 : vector<2x128xf32>
    %223 = arith.mulf %213, %190 : vector<2x128xf32>
    %224 = arith.addf %222, %223 : vector<2x128xf32>
    %c0_86 = arith.constant 0 : index
    %c0_87 = arith.constant 0 : index
    %c0_88 = arith.constant 0 : index
    %225 = vector.load %arg7[%c0_86, %c0_87, %c0_88] : memref<2x2x128xf32, #tpu.memory_space<vmem>>, vector<1x2x128xf32>
    %226 = vector.shape_cast %225 : vector<1x2x128xf32> to vector<2x128xf32>
    %227 = vector.shape_cast %224 : vector<2x128xf32> to vector<1x2x128xf32>
    tpu.vector_store %arg7[%c0_86, %c0_87, %c0_88], %227 {strides = array<i32>} : memref<2x2x128xf32, #tpu.memory_space<vmem>>, vector<1x2x128xf32>,
    %228 = arith.truncf %224 : vector<2x128xf32> to vector<2x128xbf16>
    %229 = arith.index_cast %c2_i32 : i32 to index
    %c0_89 = arith.constant 0 : index
    %c0_90 = arith.constant 0 : index
    %230 = vector.load %arg5[%229, %c0_89, %c0_90] : memref<8x2x128xbf16, #tpu.memory_space<vmem>>, vector<1x2x128xbf16>
    %231 = vector.shape_cast %230 : vector<1x2x128xbf16> to vector<2x128xbf16>
    %232 = vector.shape_cast %228 : vector<2x128xbf16> to vector<1x2x128xbf16>
    tpu.vector_store %arg5[%229, %c0_89, %c0_90], %232 {strides = array<i32>} : memref<8x2x128xbf16, #tpu.memory_space<vmem>>, vector<1x2x128xbf16>,
    %c7_i32_91 = arith.constant 7 : i32
    %233 = arith.subi %c7_i32_91, %c2_i32 : i32
    %c1_92 = arith.constant 1 : index
    %c0_93 = arith.constant 0 : index
    %c0_94 = arith.constant 0 : index
    %234 = vector.load %arg7[%c1_92, %c0_93, %c0_94] : memref<2x2x128xf32, #tpu.memory_space<vmem>>, vector<1x2x128xf32>
    %235 = vector.shape_cast %234 : vector<1x2x128xf32> to vector<2x128xf32>
    %236 = arith.index_cast %233 : i32 to index
    %c0_95 = arith.constant 0 : index
    %c0_96 = arith.constant 0 : index
    %237 = vector.load %arg2[%236, %c0_95, %c0_96] : memref<8x2x384xbf16, #tpu.memory_space<vmem>>, vector<1x2x384xbf16>
    %238 = vector.shape_cast %237 : vector<1x2x384xbf16> to vector<2x384xbf16>
    %239 = arith.extf %238 : vector<2x384xbf16> to vector<2x384xf32>
    %c1_97 = arith.constant 1 : index
    %c0_98 = arith.constant 0 : index
    %c0_99 = arith.constant 0 : index
    %240 = vector.load %arg3[%c1_97, %c0_98, %c0_99] : memref<2x128x384xf32, #tpu.memory_space<vmem>>, vector<1x128x384xf32>
    %241 = vector.shape_cast %240 : vector<1x128x384xf32> to vector<128x384xf32>
    %cst_100 = arith.constant dense<0.000000e+00> : vector<2x384xf32>
    %242 = tpu.matmul %235, %241, %cst_100 {dimension_numbers = #tpu.dot_dimension_numbers<[1], [0], [0], [1], [0, 0, 1, 1], [], []>} : vector<2x128xf32>, vector<128x384xf32>, vector<2x384xf32> -> vector<2x384xf32>
    %243 = vector.extract_strided_slice %239 {offsets = [0, 0], sizes = [2, 128], strides = [1, 1]} : vector<2x384xf32> to vector<2x128xf32>
    %244 = vector.extract_strided_slice %242 {offsets = [0, 0], sizes = [2, 128], strides = [1, 1]} : vector<2x384xf32> to vector<2x128xf32>
    %245 = arith.addf %243, %244 : vector<2x128xf32>
    %246 = arith.negf %245 : vector<2x128xf32>
    %247 = math.exp %246 : vector<2x128xf32>
    %cst_101 = arith.constant 1.000000e+00 : f32
    %248 = vector.broadcast %cst_101 : f32 to vector<2x128xf32>
    %249 = arith.addf %248, %247 : vector<2x128xf32>
    %250 = arith.divf %248, %249 : vector<2x128xf32>
    %251 = vector.extract_strided_slice %239 {offsets = [0, 128], sizes = [2, 128], strides = [1, 1]} : vector<2x384xf32> to vector<2x128xf32>
    %252 = vector.extract_strided_slice %242 {offsets = [0, 128], sizes = [2, 128], strides = [1, 1]} : vector<2x384xf32> to vector<2x128xf32>
    %253 = arith.addf %251, %252 : vector<2x128xf32>
    %254 = arith.negf %253 : vector<2x128xf32>
    %255 = math.exp %254 : vector<2x128xf32>
    %cst_102 = arith.constant 1.000000e+00 : f32
    %256 = vector.broadcast %cst_102 : f32 to vector<2x128xf32>
    %257 = arith.addf %256, %255 : vector<2x128xf32>
    %258 = arith.divf %256, %257 : vector<2x128xf32>
    %259 = vector.extract_strided_slice %239 {offsets = [0, 256], sizes = [2, 128], strides = [1, 1]} : vector<2x384xf32> to vector<2x128xf32>
    %260 = vector.extract_strided_slice %242 {offsets = [0, 256], sizes = [2, 128], strides = [1, 1]} : vector<2x384xf32> to vector<2x128xf32>
    %261 = arith.addf %260, %10 : vector<2x128xf32>
    %262 = arith.mulf %250, %261 : vector<2x128xf32>
    %263 = arith.addf %259, %262 : vector<2x128xf32>
    %264 = math.tanh %263 : vector<2x128xf32>
    %cst_103 = arith.constant 1.000000e+00 : f32
    %265 = vector.broadcast %cst_103 : f32 to vector<2x128xf32>
    %266 = arith.subf %265, %258 : vector<2x128xf32>
    %267 = arith.mulf %266, %264 : vector<2x128xf32>
    %268 = arith.mulf %258, %235 : vector<2x128xf32>
    %269 = arith.addf %267, %268 : vector<2x128xf32>
    %c1_104 = arith.constant 1 : index
    %c0_105 = arith.constant 0 : index
    %c0_106 = arith.constant 0 : index
    %270 = vector.load %arg7[%c1_104, %c0_105, %c0_106] : memref<2x2x128xf32, #tpu.memory_space<vmem>>, vector<1x2x128xf32>
    %271 = vector.shape_cast %270 : vector<1x2x128xf32> to vector<2x128xf32>
    %272 = vector.shape_cast %269 : vector<2x128xf32> to vector<1x2x128xf32>
    tpu.vector_store %arg7[%c1_104, %c0_105, %c0_106], %272 {strides = array<i32>} : memref<2x2x128xf32, #tpu.memory_space<vmem>>, vector<1x2x128xf32>,
    %273 = arith.truncf %269 : vector<2x128xf32> to vector<2x128xbf16>
    %274 = arith.index_cast %233 : i32 to index
    %c0_107 = arith.constant 0 : index
    %c0_108 = arith.constant 0 : index
    %275 = vector.load %arg6[%274, %c0_107, %c0_108] : memref<8x2x128xbf16, #tpu.memory_space<vmem>>, vector<1x2x128xbf16>
    %276 = vector.shape_cast %275 : vector<1x2x128xbf16> to vector<2x128xbf16>
    %277 = vector.shape_cast %273 : vector<2x128xbf16> to vector<1x2x128xbf16>
    tpu.vector_store %arg6[%274, %c0_107, %c0_108], %277 {strides = array<i32>} : memref<8x2x128xbf16, #tpu.memory_space<vmem>>, vector<1x2x128xbf16>,
    %c3_i32 = arith.constant 3 : i32
    %c0_109 = arith.constant 0 : index
    %c0_110 = arith.constant 0 : index
    %c0_111 = arith.constant 0 : index
    %278 = vector.load %arg7[%c0_109, %c0_110, %c0_111] : memref<2x2x128xf32, #tpu.memory_space<vmem>>, vector<1x2x128xf32>
    %279 = vector.shape_cast %278 : vector<1x2x128xf32> to vector<2x128xf32>
    %280 = arith.index_cast %c3_i32 : i32 to index
    %c0_112 = arith.constant 0 : index
    %c0_113 = arith.constant 0 : index
    %281 = vector.load %arg1[%280, %c0_112, %c0_113] : memref<8x2x384xbf16, #tpu.memory_space<vmem>>, vector<1x2x384xbf16>
    %282 = vector.shape_cast %281 : vector<1x2x384xbf16> to vector<2x384xbf16>
    %283 = arith.extf %282 : vector<2x384xbf16> to vector<2x384xf32>
    %c0_114 = arith.constant 0 : index
    %c0_115 = arith.constant 0 : index
    %c0_116 = arith.constant 0 : index
    %284 = vector.load %arg3[%c0_114, %c0_115, %c0_116] : memref<2x128x384xf32, #tpu.memory_space<vmem>>, vector<1x128x384xf32>
    %285 = vector.shape_cast %284 : vector<1x128x384xf32> to vector<128x384xf32>
    %cst_117 = arith.constant dense<0.000000e+00> : vector<2x384xf32>
    %286 = tpu.matmul %279, %285, %cst_117 {dimension_numbers = #tpu.dot_dimension_numbers<[1], [0], [0], [1], [0, 0, 1, 1], [], []>} : vector<2x128xf32>, vector<128x384xf32>, vector<2x384xf32> -> vector<2x384xf32>
    %287 = vector.extract_strided_slice %283 {offsets = [0, 0], sizes = [2, 128], strides = [1, 1]} : vector<2x384xf32> to vector<2x128xf32>
    %288 = vector.extract_strided_slice %286 {offsets = [0, 0], sizes = [2, 128], strides = [1, 1]} : vector<2x384xf32> to vector<2x128xf32>
    %289 = arith.addf %287, %288 : vector<2x128xf32>
    %290 = arith.negf %289 : vector<2x128xf32>
    %291 = math.exp %290 : vector<2x128xf32>
    %cst_118 = arith.constant 1.000000e+00 : f32
    %292 = vector.broadcast %cst_118 : f32 to vector<2x128xf32>
    %293 = arith.addf %292, %291 : vector<2x128xf32>
    %294 = arith.divf %292, %293 : vector<2x128xf32>
    %295 = vector.extract_strided_slice %283 {offsets = [0, 128], sizes = [2, 128], strides = [1, 1]} : vector<2x384xf32> to vector<2x128xf32>
    %296 = vector.extract_strided_slice %286 {offsets = [0, 128], sizes = [2, 128], strides = [1, 1]} : vector<2x384xf32> to vector<2x128xf32>
    %297 = arith.addf %295, %296 : vector<2x128xf32>
    %298 = arith.negf %297 : vector<2x128xf32>
    %299 = math.exp %298 : vector<2x128xf32>
    %cst_119 = arith.constant 1.000000e+00 : f32
    %300 = vector.broadcast %cst_119 : f32 to vector<2x128xf32>
    %301 = arith.addf %300, %299 : vector<2x128xf32>
    %302 = arith.divf %300, %301 : vector<2x128xf32>
    %303 = vector.extract_strided_slice %283 {offsets = [0, 256], sizes = [2, 128], strides = [1, 1]} : vector<2x384xf32> to vector<2x128xf32>
    %304 = vector.extract_strided_slice %286 {offsets = [0, 256], sizes = [2, 128], strides = [1, 1]} : vector<2x384xf32> to vector<2x128xf32>
    %305 = arith.addf %304, %6 : vector<2x128xf32>
    %306 = arith.mulf %294, %305 : vector<2x128xf32>
    %307 = arith.addf %303, %306 : vector<2x128xf32>
    %308 = math.tanh %307 : vector<2x128xf32>
    %cst_120 = arith.constant 1.000000e+00 : f32
    %309 = vector.broadcast %cst_120 : f32 to vector<2x128xf32>
    %310 = arith.subf %309, %302 : vector<2x128xf32>
    %311 = arith.mulf %310, %308 : vector<2x128xf32>
    %312 = arith.mulf %302, %279 : vector<2x128xf32>
    %313 = arith.addf %311, %312 : vector<2x128xf32>
    %c0_121 = arith.constant 0 : index
    %c0_122 = arith.constant 0 : index
    %c0_123 = arith.constant 0 : index
    %314 = vector.load %arg7[%c0_121, %c0_122, %c0_123] : memref<2x2x128xf32, #tpu.memory_space<vmem>>, vector<1x2x128xf32>
    %315 = vector.shape_cast %314 : vector<1x2x128xf32> to vector<2x128xf32>
    %316 = vector.shape_cast %313 : vector<2x128xf32> to vector<1x2x128xf32>
    tpu.vector_store %arg7[%c0_121, %c0_122, %c0_123], %316 {strides = array<i32>} : memref<2x2x128xf32, #tpu.memory_space<vmem>>, vector<1x2x128xf32>,
    %317 = arith.truncf %313 : vector<2x128xf32> to vector<2x128xbf16>
    %318 = arith.index_cast %c3_i32 : i32 to index
    %c0_124 = arith.constant 0 : index
    %c0_125 = arith.constant 0 : index
    %319 = vector.load %arg5[%318, %c0_124, %c0_125] : memref<8x2x128xbf16, #tpu.memory_space<vmem>>, vector<1x2x128xbf16>
    %320 = vector.shape_cast %319 : vector<1x2x128xbf16> to vector<2x128xbf16>
    %321 = vector.shape_cast %317 : vector<2x128xbf16> to vector<1x2x128xbf16>
    tpu.vector_store %arg5[%318, %c0_124, %c0_125], %321 {strides = array<i32>} : memref<8x2x128xbf16, #tpu.memory_space<vmem>>, vector<1x2x128xbf16>,
    %c7_i32_126 = arith.constant 7 : i32
    %322 = arith.subi %c7_i32_126, %c3_i32 : i32
    %c1_127 = arith.constant 1 : index
    %c0_128 = arith.constant 0 : index
    %c0_129 = arith.constant 0 : index
    %323 = vector.load %arg7[%c1_127, %c0_128, %c0_129] : memref<2x2x128xf32, #tpu.memory_space<vmem>>, vector<1x2x128xf32>
    %324 = vector.shape_cast %323 : vector<1x2x128xf32> to vector<2x128xf32>
    %325 = arith.index_cast %322 : i32 to index
    %c0_130 = arith.constant 0 : index
    %c0_131 = arith.constant 0 : index
    %326 = vector.load %arg2[%325, %c0_130, %c0_131] : memref<8x2x384xbf16, #tpu.memory_space<vmem>>, vector<1x2x384xbf16>
    %327 = vector.shape_cast %326 : vector<1x2x384xbf16> to vector<2x384xbf16>
    %328 = arith.extf %327 : vector<2x384xbf16> to vector<2x384xf32>
    %c1_132 = arith.constant 1 : index
    %c0_133 = arith.constant 0 : index
    %c0_134 = arith.constant 0 : index
    %329 = vector.load %arg3[%c1_132, %c0_133, %c0_134] : memref<2x128x384xf32, #tpu.memory_space<vmem>>, vector<1x128x384xf32>
    %330 = vector.shape_cast %329 : vector<1x128x384xf32> to vector<128x384xf32>
    %cst_135 = arith.constant dense<0.000000e+00> : vector<2x384xf32>
    %331 = tpu.matmul %324, %330, %cst_135 {dimension_numbers = #tpu.dot_dimension_numbers<[1], [0], [0], [1], [0, 0, 1, 1], [], []>} : vector<2x128xf32>, vector<128x384xf32>, vector<2x384xf32> -> vector<2x384xf32>
    %332 = vector.extract_strided_slice %328 {offsets = [0, 0], sizes = [2, 128], strides = [1, 1]} : vector<2x384xf32> to vector<2x128xf32>
    %333 = vector.extract_strided_slice %331 {offsets = [0, 0], sizes = [2, 128], strides = [1, 1]} : vector<2x384xf32> to vector<2x128xf32>
    %334 = arith.addf %332, %333 : vector<2x128xf32>
    %335 = arith.negf %334 : vector<2x128xf32>
    %336 = math.exp %335 : vector<2x128xf32>
    %cst_136 = arith.constant 1.000000e+00 : f32
    %337 = vector.broadcast %cst_136 : f32 to vector<2x128xf32>
    %338 = arith.addf %337, %336 : vector<2x128xf32>
    %339 = arith.divf %337, %338 : vector<2x128xf32>
    %340 = vector.extract_strided_slice %328 {offsets = [0, 128], sizes = [2, 128], strides = [1, 1]} : vector<2x384xf32> to vector<2x128xf32>
    %341 = vector.extract_strided_slice %331 {offsets = [0, 128], sizes = [2, 128], strides = [1, 1]} : vector<2x384xf32> to vector<2x128xf32>
    %342 = arith.addf %340, %341 : vector<2x128xf32>
    %343 = arith.negf %342 : vector<2x128xf32>
    %344 = math.exp %343 : vector<2x128xf32>
    %cst_137 = arith.constant 1.000000e+00 : f32
    %345 = vector.broadcast %cst_137 : f32 to vector<2x128xf32>
    %346 = arith.addf %345, %344 : vector<2x128xf32>
    %347 = arith.divf %345, %346 : vector<2x128xf32>
    %348 = vector.extract_strided_slice %328 {offsets = [0, 256], sizes = [2, 128], strides = [1, 1]} : vector<2x384xf32> to vector<2x128xf32>
    %349 = vector.extract_strided_slice %331 {offsets = [0, 256], sizes = [2, 128], strides = [1, 1]} : vector<2x384xf32> to vector<2x128xf32>
    %350 = arith.addf %349, %10 : vector<2x128xf32>
    %351 = arith.mulf %339, %350 : vector<2x128xf32>
    %352 = arith.addf %348, %351 : vector<2x128xf32>
    %353 = math.tanh %352 : vector<2x128xf32>
    %cst_138 = arith.constant 1.000000e+00 : f32
    %354 = vector.broadcast %cst_138 : f32 to vector<2x128xf32>
    %355 = arith.subf %354, %347 : vector<2x128xf32>
    %356 = arith.mulf %355, %353 : vector<2x128xf32>
    %357 = arith.mulf %347, %324 : vector<2x128xf32>
    %358 = arith.addf %356, %357 : vector<2x128xf32>
    %c1_139 = arith.constant 1 : index
    %c0_140 = arith.constant 0 : index
    %c0_141 = arith.constant 0 : index
    %359 = vector.load %arg7[%c1_139, %c0_140, %c0_141] : memref<2x2x128xf32, #tpu.memory_space<vmem>>, vector<1x2x128xf32>
    %360 = vector.shape_cast %359 : vector<1x2x128xf32> to vector<2x128xf32>
    %361 = vector.shape_cast %358 : vector<2x128xf32> to vector<1x2x128xf32>
    tpu.vector_store %arg7[%c1_139, %c0_140, %c0_141], %361 {strides = array<i32>} : memref<2x2x128xf32, #tpu.memory_space<vmem>>, vector<1x2x128xf32>,
    %362 = arith.truncf %358 : vector<2x128xf32> to vector<2x128xbf16>
    %363 = arith.index_cast %322 : i32 to index
    %c0_142 = arith.constant 0 : index
    %c0_143 = arith.constant 0 : index
    %364 = vector.load %arg6[%363, %c0_142, %c0_143] : memref<8x2x128xbf16, #tpu.memory_space<vmem>>, vector<1x2x128xbf16>
    %365 = vector.shape_cast %364 : vector<1x2x128xbf16> to vector<2x128xbf16>
    %366 = vector.shape_cast %362 : vector<2x128xbf16> to vector<1x2x128xbf16>
    tpu.vector_store %arg6[%363, %c0_142, %c0_143], %366 {strides = array<i32>} : memref<8x2x128xbf16, #tpu.memory_space<vmem>>, vector<1x2x128xbf16>,
    %c4_i32 = arith.constant 4 : i32
    %c0_144 = arith.constant 0 : index
    %c0_145 = arith.constant 0 : index
    %c0_146 = arith.constant 0 : index
    %367 = vector.load %arg7[%c0_144, %c0_145, %c0_146] : memref<2x2x128xf32, #tpu.memory_space<vmem>>, vector<1x2x128xf32>
    %368 = vector.shape_cast %367 : vector<1x2x128xf32> to vector<2x128xf32>
    %369 = arith.index_cast %c4_i32 : i32 to index
    %c0_147 = arith.constant 0 : index
    %c0_148 = arith.constant 0 : index
    %370 = vector.load %arg1[%369, %c0_147, %c0_148] : memref<8x2x384xbf16, #tpu.memory_space<vmem>>, vector<1x2x384xbf16>
    %371 = vector.shape_cast %370 : vector<1x2x384xbf16> to vector<2x384xbf16>
    %372 = arith.extf %371 : vector<2x384xbf16> to vector<2x384xf32>
    %c0_149 = arith.constant 0 : index
    %c0_150 = arith.constant 0 : index
    %c0_151 = arith.constant 0 : index
    %373 = vector.load %arg3[%c0_149, %c0_150, %c0_151] : memref<2x128x384xf32, #tpu.memory_space<vmem>>, vector<1x128x384xf32>
    %374 = vector.shape_cast %373 : vector<1x128x384xf32> to vector<128x384xf32>
    %cst_152 = arith.constant dense<0.000000e+00> : vector<2x384xf32>
    %375 = tpu.matmul %368, %374, %cst_152 {dimension_numbers = #tpu.dot_dimension_numbers<[1], [0], [0], [1], [0, 0, 1, 1], [], []>} : vector<2x128xf32>, vector<128x384xf32>, vector<2x384xf32> -> vector<2x384xf32>
    %376 = vector.extract_strided_slice %372 {offsets = [0, 0], sizes = [2, 128], strides = [1, 1]} : vector<2x384xf32> to vector<2x128xf32>
    %377 = vector.extract_strided_slice %375 {offsets = [0, 0], sizes = [2, 128], strides = [1, 1]} : vector<2x384xf32> to vector<2x128xf32>
    %378 = arith.addf %376, %377 : vector<2x128xf32>
    %379 = arith.negf %378 : vector<2x128xf32>
    %380 = math.exp %379 : vector<2x128xf32>
    %cst_153 = arith.constant 1.000000e+00 : f32
    %381 = vector.broadcast %cst_153 : f32 to vector<2x128xf32>
    %382 = arith.addf %381, %380 : vector<2x128xf32>
    %383 = arith.divf %381, %382 : vector<2x128xf32>
    %384 = vector.extract_strided_slice %372 {offsets = [0, 128], sizes = [2, 128], strides = [1, 1]} : vector<2x384xf32> to vector<2x128xf32>
    %385 = vector.extract_strided_slice %375 {offsets = [0, 128], sizes = [2, 128], strides = [1, 1]} : vector<2x384xf32> to vector<2x128xf32>
    %386 = arith.addf %384, %385 : vector<2x128xf32>
    %387 = arith.negf %386 : vector<2x128xf32>
    %388 = math.exp %387 : vector<2x128xf32>
    %cst_154 = arith.constant 1.000000e+00 : f32
    %389 = vector.broadcast %cst_154 : f32 to vector<2x128xf32>
    %390 = arith.addf %389, %388 : vector<2x128xf32>
    %391 = arith.divf %389, %390 : vector<2x128xf32>
    %392 = vector.extract_strided_slice %372 {offsets = [0, 256], sizes = [2, 128], strides = [1, 1]} : vector<2x384xf32> to vector<2x128xf32>
    %393 = vector.extract_strided_slice %375 {offsets = [0, 256], sizes = [2, 128], strides = [1, 1]} : vector<2x384xf32> to vector<2x128xf32>
    %394 = arith.addf %393, %6 : vector<2x128xf32>
    %395 = arith.mulf %383, %394 : vector<2x128xf32>
    %396 = arith.addf %392, %395 : vector<2x128xf32>
    %397 = math.tanh %396 : vector<2x128xf32>
    %cst_155 = arith.constant 1.000000e+00 : f32
    %398 = vector.broadcast %cst_155 : f32 to vector<2x128xf32>
    %399 = arith.subf %398, %391 : vector<2x128xf32>
    %400 = arith.mulf %399, %397 : vector<2x128xf32>
    %401 = arith.mulf %391, %368 : vector<2x128xf32>
    %402 = arith.addf %400, %401 : vector<2x128xf32>
    %c0_156 = arith.constant 0 : index
    %c0_157 = arith.constant 0 : index
    %c0_158 = arith.constant 0 : index
    %403 = vector.load %arg7[%c0_156, %c0_157, %c0_158] : memref<2x2x128xf32, #tpu.memory_space<vmem>>, vector<1x2x128xf32>
    %404 = vector.shape_cast %403 : vector<1x2x128xf32> to vector<2x128xf32>
    %405 = vector.shape_cast %402 : vector<2x128xf32> to vector<1x2x128xf32>
    tpu.vector_store %arg7[%c0_156, %c0_157, %c0_158], %405 {strides = array<i32>} : memref<2x2x128xf32, #tpu.memory_space<vmem>>, vector<1x2x128xf32>,
    %406 = arith.truncf %402 : vector<2x128xf32> to vector<2x128xbf16>
    %407 = arith.index_cast %c4_i32 : i32 to index
    %c0_159 = arith.constant 0 : index
    %c0_160 = arith.constant 0 : index
    %408 = vector.load %arg5[%407, %c0_159, %c0_160] : memref<8x2x128xbf16, #tpu.memory_space<vmem>>, vector<1x2x128xbf16>
    %409 = vector.shape_cast %408 : vector<1x2x128xbf16> to vector<2x128xbf16>
    %410 = vector.shape_cast %406 : vector<2x128xbf16> to vector<1x2x128xbf16>
    tpu.vector_store %arg5[%407, %c0_159, %c0_160], %410 {strides = array<i32>} : memref<8x2x128xbf16, #tpu.memory_space<vmem>>, vector<1x2x128xbf16>,
    %c7_i32_161 = arith.constant 7 : i32
    %411 = arith.subi %c7_i32_161, %c4_i32 : i32
    %c1_162 = arith.constant 1 : index
    %c0_163 = arith.constant 0 : index
    %c0_164 = arith.constant 0 : index
    %412 = vector.load %arg7[%c1_162, %c0_163, %c0_164] : memref<2x2x128xf32, #tpu.memory_space<vmem>>, vector<1x2x128xf32>
    %413 = vector.shape_cast %412 : vector<1x2x128xf32> to vector<2x128xf32>
    %414 = arith.index_cast %411 : i32 to index
    %c0_165 = arith.constant 0 : index
    %c0_166 = arith.constant 0 : index
    %415 = vector.load %arg2[%414, %c0_165, %c0_166] : memref<8x2x384xbf16, #tpu.memory_space<vmem>>, vector<1x2x384xbf16>
    %416 = vector.shape_cast %415 : vector<1x2x384xbf16> to vector<2x384xbf16>
    %417 = arith.extf %416 : vector<2x384xbf16> to vector<2x384xf32>
    %c1_167 = arith.constant 1 : index
    %c0_168 = arith.constant 0 : index
    %c0_169 = arith.constant 0 : index
    %418 = vector.load %arg3[%c1_167, %c0_168, %c0_169] : memref<2x128x384xf32, #tpu.memory_space<vmem>>, vector<1x128x384xf32>
    %419 = vector.shape_cast %418 : vector<1x128x384xf32> to vector<128x384xf32>
    %cst_170 = arith.constant dense<0.000000e+00> : vector<2x384xf32>
    %420 = tpu.matmul %413, %419, %cst_170 {dimension_numbers = #tpu.dot_dimension_numbers<[1], [0], [0], [1], [0, 0, 1, 1], [], []>} : vector<2x128xf32>, vector<128x384xf32>, vector<2x384xf32> -> vector<2x384xf32>
    %421 = vector.extract_strided_slice %417 {offsets = [0, 0], sizes = [2, 128], strides = [1, 1]} : vector<2x384xf32> to vector<2x128xf32>
    %422 = vector.extract_strided_slice %420 {offsets = [0, 0], sizes = [2, 128], strides = [1, 1]} : vector<2x384xf32> to vector<2x128xf32>
    %423 = arith.addf %421, %422 : vector<2x128xf32>
    %424 = arith.negf %423 : vector<2x128xf32>
    %425 = math.exp %424 : vector<2x128xf32>
    %cst_171 = arith.constant 1.000000e+00 : f32
    %426 = vector.broadcast %cst_171 : f32 to vector<2x128xf32>
    %427 = arith.addf %426, %425 : vector<2x128xf32>
    %428 = arith.divf %426, %427 : vector<2x128xf32>
    %429 = vector.extract_strided_slice %417 {offsets = [0, 128], sizes = [2, 128], strides = [1, 1]} : vector<2x384xf32> to vector<2x128xf32>
    %430 = vector.extract_strided_slice %420 {offsets = [0, 128], sizes = [2, 128], strides = [1, 1]} : vector<2x384xf32> to vector<2x128xf32>
    %431 = arith.addf %429, %430 : vector<2x128xf32>
    %432 = arith.negf %431 : vector<2x128xf32>
    %433 = math.exp %432 : vector<2x128xf32>
    %cst_172 = arith.constant 1.000000e+00 : f32
    %434 = vector.broadcast %cst_172 : f32 to vector<2x128xf32>
    %435 = arith.addf %434, %433 : vector<2x128xf32>
    %436 = arith.divf %434, %435 : vector<2x128xf32>
    %437 = vector.extract_strided_slice %417 {offsets = [0, 256], sizes = [2, 128], strides = [1, 1]} : vector<2x384xf32> to vector<2x128xf32>
    %438 = vector.extract_strided_slice %420 {offsets = [0, 256], sizes = [2, 128], strides = [1, 1]} : vector<2x384xf32> to vector<2x128xf32>
    %439 = arith.addf %438, %10 : vector<2x128xf32>
    %440 = arith.mulf %428, %439 : vector<2x128xf32>
    %441 = arith.addf %437, %440 : vector<2x128xf32>
    %442 = math.tanh %441 : vector<2x128xf32>
    %cst_173 = arith.constant 1.000000e+00 : f32
    %443 = vector.broadcast %cst_173 : f32 to vector<2x128xf32>
    %444 = arith.subf %443, %436 : vector<2x128xf32>
    %445 = arith.mulf %444, %442 : vector<2x128xf32>
    %446 = arith.mulf %436, %413 : vector<2x128xf32>
    %447 = arith.addf %445, %446 : vector<2x128xf32>
    %c1_174 = arith.constant 1 : index
    %c0_175 = arith.constant 0 : index
    %c0_176 = arith.constant 0 : index
    %448 = vector.load %arg7[%c1_174, %c0_175, %c0_176] : memref<2x2x128xf32, #tpu.memory_space<vmem>>, vector<1x2x128xf32>
    %449 = vector.shape_cast %448 : vector<1x2x128xf32> to vector<2x128xf32>
    %450 = vector.shape_cast %447 : vector<2x128xf32> to vector<1x2x128xf32>
    tpu.vector_store %arg7[%c1_174, %c0_175, %c0_176], %450 {strides = array<i32>} : memref<2x2x128xf32, #tpu.memory_space<vmem>>, vector<1x2x128xf32>,
    %451 = arith.truncf %447 : vector<2x128xf32> to vector<2x128xbf16>
    %452 = arith.index_cast %411 : i32 to index
    %c0_177 = arith.constant 0 : index
    %c0_178 = arith.constant 0 : index
    %453 = vector.load %arg6[%452, %c0_177, %c0_178] : memref<8x2x128xbf16, #tpu.memory_space<vmem>>, vector<1x2x128xbf16>
    %454 = vector.shape_cast %453 : vector<1x2x128xbf16> to vector<2x128xbf16>
    %455 = vector.shape_cast %451 : vector<2x128xbf16> to vector<1x2x128xbf16>
    tpu.vector_store %arg6[%452, %c0_177, %c0_178], %455 {strides = array<i32>} : memref<8x2x128xbf16, #tpu.memory_space<vmem>>, vector<1x2x128xbf16>,
    %c5_i32 = arith.constant 5 : i32
    %c0_179 = arith.constant 0 : index
    %c0_180 = arith.constant 0 : index
    %c0_181 = arith.constant 0 : index
    %456 = vector.load %arg7[%c0_179, %c0_180, %c0_181] : memref<2x2x128xf32, #tpu.memory_space<vmem>>, vector<1x2x128xf32>
    %457 = vector.shape_cast %456 : vector<1x2x128xf32> to vector<2x128xf32>
    %458 = arith.index_cast %c5_i32 : i32 to index
    %c0_182 = arith.constant 0 : index
    %c0_183 = arith.constant 0 : index
    %459 = vector.load %arg1[%458, %c0_182, %c0_183] : memref<8x2x384xbf16, #tpu.memory_space<vmem>>, vector<1x2x384xbf16>
    %460 = vector.shape_cast %459 : vector<1x2x384xbf16> to vector<2x384xbf16>
    %461 = arith.extf %460 : vector<2x384xbf16> to vector<2x384xf32>
    %c0_184 = arith.constant 0 : index
    %c0_185 = arith.constant 0 : index
    %c0_186 = arith.constant 0 : index
    %462 = vector.load %arg3[%c0_184, %c0_185, %c0_186] : memref<2x128x384xf32, #tpu.memory_space<vmem>>, vector<1x128x384xf32>
    %463 = vector.shape_cast %462 : vector<1x128x384xf32> to vector<128x384xf32>
    %cst_187 = arith.constant dense<0.000000e+00> : vector<2x384xf32>
    %464 = tpu.matmul %457, %463, %cst_187 {dimension_numbers = #tpu.dot_dimension_numbers<[1], [0], [0], [1], [0, 0, 1, 1], [], []>} : vector<2x128xf32>, vector<128x384xf32>, vector<2x384xf32> -> vector<2x384xf32>
    %465 = vector.extract_strided_slice %461 {offsets = [0, 0], sizes = [2, 128], strides = [1, 1]} : vector<2x384xf32> to vector<2x128xf32>
    %466 = vector.extract_strided_slice %464 {offsets = [0, 0], sizes = [2, 128], strides = [1, 1]} : vector<2x384xf32> to vector<2x128xf32>
    %467 = arith.addf %465, %466 : vector<2x128xf32>
    %468 = arith.negf %467 : vector<2x128xf32>
    %469 = math.exp %468 : vector<2x128xf32>
    %cst_188 = arith.constant 1.000000e+00 : f32
    %470 = vector.broadcast %cst_188 : f32 to vector<2x128xf32>
    %471 = arith.addf %470, %469 : vector<2x128xf32>
    %472 = arith.divf %470, %471 : vector<2x128xf32>
    %473 = vector.extract_strided_slice %461 {offsets = [0, 128], sizes = [2, 128], strides = [1, 1]} : vector<2x384xf32> to vector<2x128xf32>
    %474 = vector.extract_strided_slice %464 {offsets = [0, 128], sizes = [2, 128], strides = [1, 1]} : vector<2x384xf32> to vector<2x128xf32>
    %475 = arith.addf %473, %474 : vector<2x128xf32>
    %476 = arith.negf %475 : vector<2x128xf32>
    %477 = math.exp %476 : vector<2x128xf32>
    %cst_189 = arith.constant 1.000000e+00 : f32
    %478 = vector.broadcast %cst_189 : f32 to vector<2x128xf32>
    %479 = arith.addf %478, %477 : vector<2x128xf32>
    %480 = arith.divf %478, %479 : vector<2x128xf32>
    %481 = vector.extract_strided_slice %461 {offsets = [0, 256], sizes = [2, 128], strides = [1, 1]} : vector<2x384xf32> to vector<2x128xf32>
    %482 = vector.extract_strided_slice %464 {offsets = [0, 256], sizes = [2, 128], strides = [1, 1]} : vector<2x384xf32> to vector<2x128xf32>
    %483 = arith.addf %482, %6 : vector<2x128xf32>
    %484 = arith.mulf %472, %483 : vector<2x128xf32>
    %485 = arith.addf %481, %484 : vector<2x128xf32>
    %486 = math.tanh %485 : vector<2x128xf32>
    %cst_190 = arith.constant 1.000000e+00 : f32
    %487 = vector.broadcast %cst_190 : f32 to vector<2x128xf32>
    %488 = arith.subf %487, %480 : vector<2x128xf32>
    %489 = arith.mulf %488, %486 : vector<2x128xf32>
    %490 = arith.mulf %480, %457 : vector<2x128xf32>
    %491 = arith.addf %489, %490 : vector<2x128xf32>
    %c0_191 = arith.constant 0 : index
    %c0_192 = arith.constant 0 : index
    %c0_193 = arith.constant 0 : index
    %492 = vector.load %arg7[%c0_191, %c0_192, %c0_193] : memref<2x2x128xf32, #tpu.memory_space<vmem>>, vector<1x2x128xf32>
    %493 = vector.shape_cast %492 : vector<1x2x128xf32> to vector<2x128xf32>
    %494 = vector.shape_cast %491 : vector<2x128xf32> to vector<1x2x128xf32>
    tpu.vector_store %arg7[%c0_191, %c0_192, %c0_193], %494 {strides = array<i32>} : memref<2x2x128xf32, #tpu.memory_space<vmem>>, vector<1x2x128xf32>,
    %495 = arith.truncf %491 : vector<2x128xf32> to vector<2x128xbf16>
    %496 = arith.index_cast %c5_i32 : i32 to index
    %c0_194 = arith.constant 0 : index
    %c0_195 = arith.constant 0 : index
    %497 = vector.load %arg5[%496, %c0_194, %c0_195] : memref<8x2x128xbf16, #tpu.memory_space<vmem>>, vector<1x2x128xbf16>
    %498 = vector.shape_cast %497 : vector<1x2x128xbf16> to vector<2x128xbf16>
    %499 = vector.shape_cast %495 : vector<2x128xbf16> to vector<1x2x128xbf16>
    tpu.vector_store %arg5[%496, %c0_194, %c0_195], %499 {strides = array<i32>} : memref<8x2x128xbf16, #tpu.memory_space<vmem>>, vector<1x2x128xbf16>,
    %c7_i32_196 = arith.constant 7 : i32
    %500 = arith.subi %c7_i32_196, %c5_i32 : i32
    %c1_197 = arith.constant 1 : index
    %c0_198 = arith.constant 0 : index
    %c0_199 = arith.constant 0 : index
    %501 = vector.load %arg7[%c1_197, %c0_198, %c0_199] : memref<2x2x128xf32, #tpu.memory_space<vmem>>, vector<1x2x128xf32>
    %502 = vector.shape_cast %501 : vector<1x2x128xf32> to vector<2x128xf32>
    %503 = arith.index_cast %500 : i32 to index
    %c0_200 = arith.constant 0 : index
    %c0_201 = arith.constant 0 : index
    %504 = vector.load %arg2[%503, %c0_200, %c0_201] : memref<8x2x384xbf16, #tpu.memory_space<vmem>>, vector<1x2x384xbf16>
    %505 = vector.shape_cast %504 : vector<1x2x384xbf16> to vector<2x384xbf16>
    %506 = arith.extf %505 : vector<2x384xbf16> to vector<2x384xf32>
    %c1_202 = arith.constant 1 : index
    %c0_203 = arith.constant 0 : index
    %c0_204 = arith.constant 0 : index
    %507 = vector.load %arg3[%c1_202, %c0_203, %c0_204] : memref<2x128x384xf32, #tpu.memory_space<vmem>>, vector<1x128x384xf32>
    %508 = vector.shape_cast %507 : vector<1x128x384xf32> to vector<128x384xf32>
    %cst_205 = arith.constant dense<0.000000e+00> : vector<2x384xf32>
    %509 = tpu.matmul %502, %508, %cst_205 {dimension_numbers = #tpu.dot_dimension_numbers<[1], [0], [0], [1], [0, 0, 1, 1], [], []>} : vector<2x128xf32>, vector<128x384xf32>, vector<2x384xf32> -> vector<2x384xf32>
    %510 = vector.extract_strided_slice %506 {offsets = [0, 0], sizes = [2, 128], strides = [1, 1]} : vector<2x384xf32> to vector<2x128xf32>
    %511 = vector.extract_strided_slice %509 {offsets = [0, 0], sizes = [2, 128], strides = [1, 1]} : vector<2x384xf32> to vector<2x128xf32>
    %512 = arith.addf %510, %511 : vector<2x128xf32>
    %513 = arith.negf %512 : vector<2x128xf32>
    %514 = math.exp %513 : vector<2x128xf32>
    %cst_206 = arith.constant 1.000000e+00 : f32
    %515 = vector.broadcast %cst_206 : f32 to vector<2x128xf32>
    %516 = arith.addf %515, %514 : vector<2x128xf32>
    %517 = arith.divf %515, %516 : vector<2x128xf32>
    %518 = vector.extract_strided_slice %506 {offsets = [0, 128], sizes = [2, 128], strides = [1, 1]} : vector<2x384xf32> to vector<2x128xf32>
    %519 = vector.extract_strided_slice %509 {offsets = [0, 128], sizes = [2, 128], strides = [1, 1]} : vector<2x384xf32> to vector<2x128xf32>
    %520 = arith.addf %518, %519 : vector<2x128xf32>
    %521 = arith.negf %520 : vector<2x128xf32>
    %522 = math.exp %521 : vector<2x128xf32>
    %cst_207 = arith.constant 1.000000e+00 : f32
    %523 = vector.broadcast %cst_207 : f32 to vector<2x128xf32>
    %524 = arith.addf %523, %522 : vector<2x128xf32>
    %525 = arith.divf %523, %524 : vector<2x128xf32>
    %526 = vector.extract_strided_slice %506 {offsets = [0, 256], sizes = [2, 128], strides = [1, 1]} : vector<2x384xf32> to vector<2x128xf32>
    %527 = vector.extract_strided_slice %509 {offsets = [0, 256], sizes = [2, 128], strides = [1, 1]} : vector<2x384xf32> to vector<2x128xf32>
    %528 = arith.addf %527, %10 : vector<2x128xf32>
    %529 = arith.mulf %517, %528 : vector<2x128xf32>
    %530 = arith.addf %526, %529 : vector<2x128xf32>
    %531 = math.tanh %530 : vector<2x128xf32>
    %cst_208 = arith.constant 1.000000e+00 : f32
    %532 = vector.broadcast %cst_208 : f32 to vector<2x128xf32>
    %533 = arith.subf %532, %525 : vector<2x128xf32>
    %534 = arith.mulf %533, %531 : vector<2x128xf32>
    %535 = arith.mulf %525, %502 : vector<2x128xf32>
    %536 = arith.addf %534, %535 : vector<2x128xf32>
    %c1_209 = arith.constant 1 : index
    %c0_210 = arith.constant 0 : index
    %c0_211 = arith.constant 0 : index
    %537 = vector.load %arg7[%c1_209, %c0_210, %c0_211] : memref<2x2x128xf32, #tpu.memory_space<vmem>>, vector<1x2x128xf32>
    %538 = vector.shape_cast %537 : vector<1x2x128xf32> to vector<2x128xf32>
    %539 = vector.shape_cast %536 : vector<2x128xf32> to vector<1x2x128xf32>
    tpu.vector_store %arg7[%c1_209, %c0_210, %c0_211], %539 {strides = array<i32>} : memref<2x2x128xf32, #tpu.memory_space<vmem>>, vector<1x2x128xf32>,
    %540 = arith.truncf %536 : vector<2x128xf32> to vector<2x128xbf16>
    %541 = arith.index_cast %500 : i32 to index
    %c0_212 = arith.constant 0 : index
    %c0_213 = arith.constant 0 : index
    %542 = vector.load %arg6[%541, %c0_212, %c0_213] : memref<8x2x128xbf16, #tpu.memory_space<vmem>>, vector<1x2x128xbf16>
    %543 = vector.shape_cast %542 : vector<1x2x128xbf16> to vector<2x128xbf16>
    %544 = vector.shape_cast %540 : vector<2x128xbf16> to vector<1x2x128xbf16>
    tpu.vector_store %arg6[%541, %c0_212, %c0_213], %544 {strides = array<i32>} : memref<8x2x128xbf16, #tpu.memory_space<vmem>>, vector<1x2x128xbf16>,
    %c6_i32 = arith.constant 6 : i32
    %c0_214 = arith.constant 0 : index
    %c0_215 = arith.constant 0 : index
    %c0_216 = arith.constant 0 : index
    %545 = vector.load %arg7[%c0_214, %c0_215, %c0_216] : memref<2x2x128xf32, #tpu.memory_space<vmem>>, vector<1x2x128xf32>
    %546 = vector.shape_cast %545 : vector<1x2x128xf32> to vector<2x128xf32>
    %547 = arith.index_cast %c6_i32 : i32 to index
    %c0_217 = arith.constant 0 : index
    %c0_218 = arith.constant 0 : index
    %548 = vector.load %arg1[%547, %c0_217, %c0_218] : memref<8x2x384xbf16, #tpu.memory_space<vmem>>, vector<1x2x384xbf16>
    %549 = vector.shape_cast %548 : vector<1x2x384xbf16> to vector<2x384xbf16>
    %550 = arith.extf %549 : vector<2x384xbf16> to vector<2x384xf32>
    %c0_219 = arith.constant 0 : index
    %c0_220 = arith.constant 0 : index
    %c0_221 = arith.constant 0 : index
    %551 = vector.load %arg3[%c0_219, %c0_220, %c0_221] : memref<2x128x384xf32, #tpu.memory_space<vmem>>, vector<1x128x384xf32>
    %552 = vector.shape_cast %551 : vector<1x128x384xf32> to vector<128x384xf32>
    %cst_222 = arith.constant dense<0.000000e+00> : vector<2x384xf32>
    %553 = tpu.matmul %546, %552, %cst_222 {dimension_numbers = #tpu.dot_dimension_numbers<[1], [0], [0], [1], [0, 0, 1, 1], [], []>} : vector<2x128xf32>, vector<128x384xf32>, vector<2x384xf32> -> vector<2x384xf32>
    %554 = vector.extract_strided_slice %550 {offsets = [0, 0], sizes = [2, 128], strides = [1, 1]} : vector<2x384xf32> to vector<2x128xf32>
    %555 = vector.extract_strided_slice %553 {offsets = [0, 0], sizes = [2, 128], strides = [1, 1]} : vector<2x384xf32> to vector<2x128xf32>
    %556 = arith.addf %554, %555 : vector<2x128xf32>
    %557 = arith.negf %556 : vector<2x128xf32>
    %558 = math.exp %557 : vector<2x128xf32>
    %cst_223 = arith.constant 1.000000e+00 : f32
    %559 = vector.broadcast %cst_223 : f32 to vector<2x128xf32>
    %560 = arith.addf %559, %558 : vector<2x128xf32>
    %561 = arith.divf %559, %560 : vector<2x128xf32>
    %562 = vector.extract_strided_slice %550 {offsets = [0, 128], sizes = [2, 128], strides = [1, 1]} : vector<2x384xf32> to vector<2x128xf32>
    %563 = vector.extract_strided_slice %553 {offsets = [0, 128], sizes = [2, 128], strides = [1, 1]} : vector<2x384xf32> to vector<2x128xf32>
    %564 = arith.addf %562, %563 : vector<2x128xf32>
    %565 = arith.negf %564 : vector<2x128xf32>
    %566 = math.exp %565 : vector<2x128xf32>
    %cst_224 = arith.constant 1.000000e+00 : f32
    %567 = vector.broadcast %cst_224 : f32 to vector<2x128xf32>
    %568 = arith.addf %567, %566 : vector<2x128xf32>
    %569 = arith.divf %567, %568 : vector<2x128xf32>
    %570 = vector.extract_strided_slice %550 {offsets = [0, 256], sizes = [2, 128], strides = [1, 1]} : vector<2x384xf32> to vector<2x128xf32>
    %571 = vector.extract_strided_slice %553 {offsets = [0, 256], sizes = [2, 128], strides = [1, 1]} : vector<2x384xf32> to vector<2x128xf32>
    %572 = arith.addf %571, %6 : vector<2x128xf32>
    %573 = arith.mulf %561, %572 : vector<2x128xf32>
    %574 = arith.addf %570, %573 : vector<2x128xf32>
    %575 = math.tanh %574 : vector<2x128xf32>
    %cst_225 = arith.constant 1.000000e+00 : f32
    %576 = vector.broadcast %cst_225 : f32 to vector<2x128xf32>
    %577 = arith.subf %576, %569 : vector<2x128xf32>
    %578 = arith.mulf %577, %575 : vector<2x128xf32>
    %579 = arith.mulf %569, %546 : vector<2x128xf32>
    %580 = arith.addf %578, %579 : vector<2x128xf32>
    %c0_226 = arith.constant 0 : index
    %c0_227 = arith.constant 0 : index
    %c0_228 = arith.constant 0 : index
    %581 = vector.load %arg7[%c0_226, %c0_227, %c0_228] : memref<2x2x128xf32, #tpu.memory_space<vmem>>, vector<1x2x128xf32>
    %582 = vector.shape_cast %581 : vector<1x2x128xf32> to vector<2x128xf32>
    %583 = vector.shape_cast %580 : vector<2x128xf32> to vector<1x2x128xf32>
    tpu.vector_store %arg7[%c0_226, %c0_227, %c0_228], %583 {strides = array<i32>} : memref<2x2x128xf32, #tpu.memory_space<vmem>>, vector<1x2x128xf32>,
    %584 = arith.truncf %580 : vector<2x128xf32> to vector<2x128xbf16>
    %585 = arith.index_cast %c6_i32 : i32 to index
    %c0_229 = arith.constant 0 : index
    %c0_230 = arith.constant 0 : index
    %586 = vector.load %arg5[%585, %c0_229, %c0_230] : memref<8x2x128xbf16, #tpu.memory_space<vmem>>, vector<1x2x128xbf16>
    %587 = vector.shape_cast %586 : vector<1x2x128xbf16> to vector<2x128xbf16>
    %588 = vector.shape_cast %584 : vector<2x128xbf16> to vector<1x2x128xbf16>
    tpu.vector_store %arg5[%585, %c0_229, %c0_230], %588 {strides = array<i32>} : memref<8x2x128xbf16, #tpu.memory_space<vmem>>, vector<1x2x128xbf16>,
    %c7_i32_231 = arith.constant 7 : i32
    %589 = arith.subi %c7_i32_231, %c6_i32 : i32
    %c1_232 = arith.constant 1 : index
    %c0_233 = arith.constant 0 : index
    %c0_234 = arith.constant 0 : index
    %590 = vector.load %arg7[%c1_232, %c0_233, %c0_234] : memref<2x2x128xf32, #tpu.memory_space<vmem>>, vector<1x2x128xf32>
    %591 = vector.shape_cast %590 : vector<1x2x128xf32> to vector<2x128xf32>
    %592 = arith.index_cast %589 : i32 to index
    %c0_235 = arith.constant 0 : index
    %c0_236 = arith.constant 0 : index
    %593 = vector.load %arg2[%592, %c0_235, %c0_236] : memref<8x2x384xbf16, #tpu.memory_space<vmem>>, vector<1x2x384xbf16>
    %594 = vector.shape_cast %593 : vector<1x2x384xbf16> to vector<2x384xbf16>
    %595 = arith.extf %594 : vector<2x384xbf16> to vector<2x384xf32>
    %c1_237 = arith.constant 1 : index
    %c0_238 = arith.constant 0 : index
    %c0_239 = arith.constant 0 : index
    %596 = vector.load %arg3[%c1_237, %c0_238, %c0_239] : memref<2x128x384xf32, #tpu.memory_space<vmem>>, vector<1x128x384xf32>
    %597 = vector.shape_cast %596 : vector<1x128x384xf32> to vector<128x384xf32>
    %cst_240 = arith.constant dense<0.000000e+00> : vector<2x384xf32>
    %598 = tpu.matmul %591, %597, %cst_240 {dimension_numbers = #tpu.dot_dimension_numbers<[1], [0], [0], [1], [0, 0, 1, 1], [], []>} : vector<2x128xf32>, vector<128x384xf32>, vector<2x384xf32> -> vector<2x384xf32>
    %599 = vector.extract_strided_slice %595 {offsets = [0, 0], sizes = [2, 128], strides = [1, 1]} : vector<2x384xf32> to vector<2x128xf32>
    %600 = vector.extract_strided_slice %598 {offsets = [0, 0], sizes = [2, 128], strides = [1, 1]} : vector<2x384xf32> to vector<2x128xf32>
    %601 = arith.addf %599, %600 : vector<2x128xf32>
    %602 = arith.negf %601 : vector<2x128xf32>
    %603 = math.exp %602 : vector<2x128xf32>
    %cst_241 = arith.constant 1.000000e+00 : f32
    %604 = vector.broadcast %cst_241 : f32 to vector<2x128xf32>
    %605 = arith.addf %604, %603 : vector<2x128xf32>
    %606 = arith.divf %604, %605 : vector<2x128xf32>
    %607 = vector.extract_strided_slice %595 {offsets = [0, 128], sizes = [2, 128], strides = [1, 1]} : vector<2x384xf32> to vector<2x128xf32>
    %608 = vector.extract_strided_slice %598 {offsets = [0, 128], sizes = [2, 128], strides = [1, 1]} : vector<2x384xf32> to vector<2x128xf32>
    %609 = arith.addf %607, %608 : vector<2x128xf32>
    %610 = arith.negf %609 : vector<2x128xf32>
    %611 = math.exp %610 : vector<2x128xf32>
    %cst_242 = arith.constant 1.000000e+00 : f32
    %612 = vector.broadcast %cst_242 : f32 to vector<2x128xf32>
    %613 = arith.addf %612, %611 : vector<2x128xf32>
    %614 = arith.divf %612, %613 : vector<2x128xf32>
    %615 = vector.extract_strided_slice %595 {offsets = [0, 256], sizes = [2, 128], strides = [1, 1]} : vector<2x384xf32> to vector<2x128xf32>
    %616 = vector.extract_strided_slice %598 {offsets = [0, 256], sizes = [2, 128], strides = [1, 1]} : vector<2x384xf32> to vector<2x128xf32>
    %617 = arith.addf %616, %10 : vector<2x128xf32>
    %618 = arith.mulf %606, %617 : vector<2x128xf32>
    %619 = arith.addf %615, %618 : vector<2x128xf32>
    %620 = math.tanh %619 : vector<2x128xf32>
    %cst_243 = arith.constant 1.000000e+00 : f32
    %621 = vector.broadcast %cst_243 : f32 to vector<2x128xf32>
    %622 = arith.subf %621, %614 : vector<2x128xf32>
    %623 = arith.mulf %622, %620 : vector<2x128xf32>
    %624 = arith.mulf %614, %591 : vector<2x128xf32>
    %625 = arith.addf %623, %624 : vector<2x128xf32>
    %c1_244 = arith.constant 1 : index
    %c0_245 = arith.constant 0 : index
    %c0_246 = arith.constant 0 : index
    %626 = vector.load %arg7[%c1_244, %c0_245, %c0_246] : memref<2x2x128xf32, #tpu.memory_space<vmem>>, vector<1x2x128xf32>
    %627 = vector.shape_cast %626 : vector<1x2x128xf32> to vector<2x128xf32>
    %628 = vector.shape_cast %625 : vector<2x128xf32> to vector<1x2x128xf32>
    tpu.vector_store %arg7[%c1_244, %c0_245, %c0_246], %628 {strides = array<i32>} : memref<2x2x128xf32, #tpu.memory_space<vmem>>, vector<1x2x128xf32>,
    %629 = arith.truncf %625 : vector<2x128xf32> to vector<2x128xbf16>
    %630 = arith.index_cast %589 : i32 to index
    %c0_247 = arith.constant 0 : index
    %c0_248 = arith.constant 0 : index
    %631 = vector.load %arg6[%630, %c0_247, %c0_248] : memref<8x2x128xbf16, #tpu.memory_space<vmem>>, vector<1x2x128xbf16>
    %632 = vector.shape_cast %631 : vector<1x2x128xbf16> to vector<2x128xbf16>
    %633 = vector.shape_cast %629 : vector<2x128xbf16> to vector<1x2x128xbf16>
    tpu.vector_store %arg6[%630, %c0_247, %c0_248], %633 {strides = array<i32>} : memref<8x2x128xbf16, #tpu.memory_space<vmem>>, vector<1x2x128xbf16>,
    %c7_i32_249 = arith.constant 7 : i32
    %c0_250 = arith.constant 0 : index
    %c0_251 = arith.constant 0 : index
    %c0_252 = arith.constant 0 : index
    %634 = vector.load %arg7[%c0_250, %c0_251, %c0_252] : memref<2x2x128xf32, #tpu.memory_space<vmem>>, vector<1x2x128xf32>
    %635 = vector.shape_cast %634 : vector<1x2x128xf32> to vector<2x128xf32>
    %636 = arith.index_cast %c7_i32_249 : i32 to index
    %c0_253 = arith.constant 0 : index
    %c0_254 = arith.constant 0 : index
    %637 = vector.load %arg1[%636, %c0_253, %c0_254] : memref<8x2x384xbf16, #tpu.memory_space<vmem>>, vector<1x2x384xbf16>
    %638 = vector.shape_cast %637 : vector<1x2x384xbf16> to vector<2x384xbf16>
    %639 = arith.extf %638 : vector<2x384xbf16> to vector<2x384xf32>
    %c0_255 = arith.constant 0 : index
    %c0_256 = arith.constant 0 : index
    %c0_257 = arith.constant 0 : index
    %640 = vector.load %arg3[%c0_255, %c0_256, %c0_257] : memref<2x128x384xf32, #tpu.memory_space<vmem>>, vector<1x128x384xf32>
    %641 = vector.shape_cast %640 : vector<1x128x384xf32> to vector<128x384xf32>
    %cst_258 = arith.constant dense<0.000000e+00> : vector<2x384xf32>
    %642 = tpu.matmul %635, %641, %cst_258 {dimension_numbers = #tpu.dot_dimension_numbers<[1], [0], [0], [1], [0, 0, 1, 1], [], []>} : vector<2x128xf32>, vector<128x384xf32>, vector<2x384xf32> -> vector<2x384xf32>
    %643 = vector.extract_strided_slice %639 {offsets = [0, 0], sizes = [2, 128], strides = [1, 1]} : vector<2x384xf32> to vector<2x128xf32>
    %644 = vector.extract_strided_slice %642 {offsets = [0, 0], sizes = [2, 128], strides = [1, 1]} : vector<2x384xf32> to vector<2x128xf32>
    %645 = arith.addf %643, %644 : vector<2x128xf32>
    %646 = arith.negf %645 : vector<2x128xf32>
    %647 = math.exp %646 : vector<2x128xf32>
    %cst_259 = arith.constant 1.000000e+00 : f32
    %648 = vector.broadcast %cst_259 : f32 to vector<2x128xf32>
    %649 = arith.addf %648, %647 : vector<2x128xf32>
    %650 = arith.divf %648, %649 : vector<2x128xf32>
    %651 = vector.extract_strided_slice %639 {offsets = [0, 128], sizes = [2, 128], strides = [1, 1]} : vector<2x384xf32> to vector<2x128xf32>
    %652 = vector.extract_strided_slice %642 {offsets = [0, 128], sizes = [2, 128], strides = [1, 1]} : vector<2x384xf32> to vector<2x128xf32>
    %653 = arith.addf %651, %652 : vector<2x128xf32>
    %654 = arith.negf %653 : vector<2x128xf32>
    %655 = math.exp %654 : vector<2x128xf32>
    %cst_260 = arith.constant 1.000000e+00 : f32
    %656 = vector.broadcast %cst_260 : f32 to vector<2x128xf32>
    %657 = arith.addf %656, %655 : vector<2x128xf32>
    %658 = arith.divf %656, %657 : vector<2x128xf32>
    %659 = vector.extract_strided_slice %639 {offsets = [0, 256], sizes = [2, 128], strides = [1, 1]} : vector<2x384xf32> to vector<2x128xf32>
    %660 = vector.extract_strided_slice %642 {offsets = [0, 256], sizes = [2, 128], strides = [1, 1]} : vector<2x384xf32> to vector<2x128xf32>
    %661 = arith.addf %660, %6 : vector<2x128xf32>
    %662 = arith.mulf %650, %661 : vector<2x128xf32>
    %663 = arith.addf %659, %662 : vector<2x128xf32>
    %664 = math.tanh %663 : vector<2x128xf32>
    %cst_261 = arith.constant 1.000000e+00 : f32
    %665 = vector.broadcast %cst_261 : f32 to vector<2x128xf32>
    %666 = arith.subf %665, %658 : vector<2x128xf32>
    %667 = arith.mulf %666, %664 : vector<2x128xf32>
    %668 = arith.mulf %658, %635 : vector<2x128xf32>
    %669 = arith.addf %667, %668 : vector<2x128xf32>
    %c0_262 = arith.constant 0 : index
    %c0_263 = arith.constant 0 : index
    %c0_264 = arith.constant 0 : index
    %670 = vector.load %arg7[%c0_262, %c0_263, %c0_264] : memref<2x2x128xf32, #tpu.memory_space<vmem>>, vector<1x2x128xf32>
    %671 = vector.shape_cast %670 : vector<1x2x128xf32> to vector<2x128xf32>
    %672 = vector.shape_cast %669 : vector<2x128xf32> to vector<1x2x128xf32>
    tpu.vector_store %arg7[%c0_262, %c0_263, %c0_264], %672 {strides = array<i32>} : memref<2x2x128xf32, #tpu.memory_space<vmem>>, vector<1x2x128xf32>,
    %673 = arith.truncf %669 : vector<2x128xf32> to vector<2x128xbf16>
    %674 = arith.index_cast %c7_i32_249 : i32 to index
    %c0_265 = arith.constant 0 : index
    %c0_266 = arith.constant 0 : index
    %675 = vector.load %arg5[%674, %c0_265, %c0_266] : memref<8x2x128xbf16, #tpu.memory_space<vmem>>, vector<1x2x128xbf16>
    %676 = vector.shape_cast %675 : vector<1x2x128xbf16> to vector<2x128xbf16>
    %677 = vector.shape_cast %673 : vector<2x128xbf16> to vector<1x2x128xbf16>
    tpu.vector_store %arg5[%674, %c0_265, %c0_266], %677 {strides = array<i32>} : memref<8x2x128xbf16, #tpu.memory_space<vmem>>, vector<1x2x128xbf16>,
    %c7_i32_267 = arith.constant 7 : i32
    %678 = arith.subi %c7_i32_267, %c7_i32_249 : i32
    %c1_268 = arith.constant 1 : index
    %c0_269 = arith.constant 0 : index
    %c0_270 = arith.constant 0 : index
    %679 = vector.load %arg7[%c1_268, %c0_269, %c0_270] : memref<2x2x128xf32, #tpu.memory_space<vmem>>, vector<1x2x128xf32>
    %680 = vector.shape_cast %679 : vector<1x2x128xf32> to vector<2x128xf32>
    %681 = arith.index_cast %678 : i32 to index
    %c0_271 = arith.constant 0 : index
    %c0_272 = arith.constant 0 : index
    %682 = vector.load %arg2[%681, %c0_271, %c0_272] : memref<8x2x384xbf16, #tpu.memory_space<vmem>>, vector<1x2x384xbf16>
    %683 = vector.shape_cast %682 : vector<1x2x384xbf16> to vector<2x384xbf16>
    %684 = arith.extf %683 : vector<2x384xbf16> to vector<2x384xf32>
    %c1_273 = arith.constant 1 : index
    %c0_274 = arith.constant 0 : index
    %c0_275 = arith.constant 0 : index
    %685 = vector.load %arg3[%c1_273, %c0_274, %c0_275] : memref<2x128x384xf32, #tpu.memory_space<vmem>>, vector<1x128x384xf32>
    %686 = vector.shape_cast %685 : vector<1x128x384xf32> to vector<128x384xf32>
    %cst_276 = arith.constant dense<0.000000e+00> : vector<2x384xf32>
    %687 = tpu.matmul %680, %686, %cst_276 {dimension_numbers = #tpu.dot_dimension_numbers<[1], [0], [0], [1], [0, 0, 1, 1], [], []>} : vector<2x128xf32>, vector<128x384xf32>, vector<2x384xf32> -> vector<2x384xf32>
    %688 = vector.extract_strided_slice %684 {offsets = [0, 0], sizes = [2, 128], strides = [1, 1]} : vector<2x384xf32> to vector<2x128xf32>
    %689 = vector.extract_strided_slice %687 {offsets = [0, 0], sizes = [2, 128], strides = [1, 1]} : vector<2x384xf32> to vector<2x128xf32>
    %690 = arith.addf %688, %689 : vector<2x128xf32>
    %691 = arith.negf %690 : vector<2x128xf32>
    %692 = math.exp %691 : vector<2x128xf32>
    %cst_277 = arith.constant 1.000000e+00 : f32
    %693 = vector.broadcast %cst_277 : f32 to vector<2x128xf32>
    %694 = arith.addf %693, %692 : vector<2x128xf32>
    %695 = arith.divf %693, %694 : vector<2x128xf32>
    %696 = vector.extract_strided_slice %684 {offsets = [0, 128], sizes = [2, 128], strides = [1, 1]} : vector<2x384xf32> to vector<2x128xf32>
    %697 = vector.extract_strided_slice %687 {offsets = [0, 128], sizes = [2, 128], strides = [1, 1]} : vector<2x384xf32> to vector<2x128xf32>
    %698 = arith.addf %696, %697 : vector<2x128xf32>
    %699 = arith.negf %698 : vector<2x128xf32>
    %700 = math.exp %699 : vector<2x128xf32>
    %cst_278 = arith.constant 1.000000e+00 : f32
    %701 = vector.broadcast %cst_278 : f32 to vector<2x128xf32>
    %702 = arith.addf %701, %700 : vector<2x128xf32>
    %703 = arith.divf %701, %702 : vector<2x128xf32>
    %704 = vector.extract_strided_slice %684 {offsets = [0, 256], sizes = [2, 128], strides = [1, 1]} : vector<2x384xf32> to vector<2x128xf32>
    %705 = vector.extract_strided_slice %687 {offsets = [0, 256], sizes = [2, 128], strides = [1, 1]} : vector<2x384xf32> to vector<2x128xf32>
    %706 = arith.addf %705, %10 : vector<2x128xf32>
    %707 = arith.mulf %695, %706 : vector<2x128xf32>
    %708 = arith.addf %704, %707 : vector<2x128xf32>
    %709 = math.tanh %708 : vector<2x128xf32>
    %cst_279 = arith.constant 1.000000e+00 : f32
    %710 = vector.broadcast %cst_279 : f32 to vector<2x128xf32>
    %711 = arith.subf %710, %703 : vector<2x128xf32>
    %712 = arith.mulf %711, %709 : vector<2x128xf32>
    %713 = arith.mulf %703, %680 : vector<2x128xf32>
    %714 = arith.addf %712, %713 : vector<2x128xf32>
    %c1_280 = arith.constant 1 : index
    %c0_281 = arith.constant 0 : index
    %c0_282 = arith.constant 0 : index
    %715 = vector.load %arg7[%c1_280, %c0_281, %c0_282] : memref<2x2x128xf32, #tpu.memory_space<vmem>>, vector<1x2x128xf32>
    %716 = vector.shape_cast %715 : vector<1x2x128xf32> to vector<2x128xf32>
    %717 = vector.shape_cast %714 : vector<2x128xf32> to vector<1x2x128xf32>
    tpu.vector_store %arg7[%c1_280, %c0_281, %c0_282], %717 {strides = array<i32>} : memref<2x2x128xf32, #tpu.memory_space<vmem>>, vector<1x2x128xf32>,
    %718 = arith.truncf %714 : vector<2x128xf32> to vector<2x128xbf16>
    %719 = arith.index_cast %678 : i32 to index
    %c0_283 = arith.constant 0 : index
    %c0_284 = arith.constant 0 : index
    %720 = vector.load %arg6[%719, %c0_283, %c0_284] : memref<8x2x128xbf16, #tpu.memory_space<vmem>>, vector<1x2x128xbf16>
    %721 = vector.shape_cast %720 : vector<1x2x128xbf16> to vector<2x128xbf16>
    %722 = vector.shape_cast %718 : vector<2x128xbf16> to vector<1x2x128xbf16>
    tpu.vector_store %arg6[%719, %c0_283, %c0_284], %722 {strides = array<i32>} : memref<8x2x128xbf16, #tpu.memory_space<vmem>>, vector<1x2x128xbf16>,
    %c8_i32 = arith.constant 8 : i32
    return
  }
  func.func @transform_0(%arg0: i32) -> (i32, i32, i32) {
    %c0_i32 = arith.constant 0 : i32
    %c0_i32_0 = arith.constant 0 : i32
    %c0_i32_1 = arith.constant 0 : i32
    return %arg0, %c0_i32, %c0_i32_0 : i32, i32, i32
  }
  func.func @transform_1(%arg0: i32) -> (i32, i32, i32) {
    %c0_i32 = arith.constant 0 : i32
    %0 = arith.subi %c0_i32, %arg0 : i32
    %c0_i32_0 = arith.constant 0 : i32
    %c0_i32_1 = arith.constant 0 : i32
    %c0_i32_2 = arith.constant 0 : i32
    return %0, %c0_i32_0, %c0_i32_1 : i32, i32, i32
  }
  func.func @transform_2(%arg0: i32) -> (i32, i32, i32) {
    %c0_i32 = arith.constant 0 : i32
    %c0_i32_0 = arith.constant 0 : i32
    %c0_i32_1 = arith.constant 0 : i32
    %c0_i32_2 = arith.constant 0 : i32
    return %c0_i32, %c0_i32_0, %c0_i32_1 : i32, i32, i32
  }
  func.func @transform_3(%arg0: i32) -> (i32, i32, i32) {
    %c0_i32 = arith.constant 0 : i32
    %c0_i32_0 = arith.constant 0 : i32
    %c0_i32_1 = arith.constant 0 : i32
    %c0_i32_2 = arith.constant 0 : i32
    return %c0_i32, %c0_i32_0, %c0_i32_1 : i32, i32, i32
  }
  func.func @transform_4(%arg0: i32) -> (i32, i32, i32) {
    %c0_i32 = arith.constant 0 : i32
    %c0_i32_0 = arith.constant 0 : i32
    %c0_i32_1 = arith.constant 0 : i32
    return %arg0, %c0_i32, %c0_i32_0 : i32, i32, i32
  }
  func.func @transform_5(%arg0: i32) -> (i32, i32, i32) {
    %c0_i32 = arith.constant 0 : i32
    %0 = arith.subi %c0_i32, %arg0 : i32
    %c0_i32_0 = arith.constant 0 : i32
    %c0_i32_1 = arith.constant 0 : i32
    %c0_i32_2 = arith.constant 0 : i32
    return %0, %c0_i32_0, %c0_i32_1 : i32, i32, i32
  }
}

</mosaic_0001>

<bundles_post_ra>
// kernel: a_call__.6
= control target key start
LH: loop header
LB: loop body
LE: loop exit
PB: predicated region body
PF: predicated region fallthrough
CT: control target
= control target key end

     0   :  { %s6464_s18 = smov 0   ;;  %s8833_s0 = inlined_call_operand.vmem [shape: bf16[16,2,384], index: 0, kind: input, shape index: {}]   ;;  %s8834_s1 = inlined_call_operand.vmem [shape: bf16[16,2,384], index: 1, kind: input, shape index: {}]   ;;  %s8835_s2 = inlined_call_operand.vmem [shape: f32[2,128,384], index: 2, kind: input, shape index: {}]   ;;  %s8836_s3 = inlined_call_operand.vmem [shape: f32[2,1,128], index: 3, kind: input, shape index: {}]   ;;  %s8837_s4 = inlined_call_operand.vmem [shape: bf16[16,2,128], index: 4, kind: output, shape index: {0}]   ;;  %s8838_s5 = inlined_call_operand.vmem [shape: bf16[16,2,128], index: 5, kind: output, shape index: {1}]  }
   0x1 LB: > { %s4056_s19 = sadd.s32 4294967295, %s6428_s18   ;;  %p4060_p0 = scmp.ge.s32.totalorder %s6428_s18, 1  ;;  %s6428_s18 = sphi %s6464_s18, %s16_s18  }
   0x2   : > { %p208_p1 = scmp.lt.s32.totalorder %s6428_s18, 3 }
   0x4   : > { %p209_p2 = pnand %p4060_p0, %p208_p1 }
   0x5   : > { %s6472_s20 = sshll.u32 (!%p209_p2), %s4056_s19, 3  ;;  %s252_s21 = ssub.s32 (!%p209_p2), 1, %s4056_s19 }
   0x6   : > { %212 = sbr.rel (%p209_p2) target bundleno = 2227 (0x8b3), region = 36  ;;  %p247_p3 = scmp.lt.s32.totalorder (!%p209_p2), %s6472_s20, 15 }
   0x7   : > { %s4062_s22 = sshll.u32 (!%p209_p2), %s252_s21, 3  ;;  %p4065_p5 = scmp.ne.s32.totalorder (!%p209_p2), %s4056_s19, 0 }
   0x8   : > { %p254_p4 = scmp.lt.s32.totalorder (!%p209_p2), %s4062_s22, 15 }
   0xd   : > { %s248_s23 = scalar_select %p247_p3, %s6472_s20, 15 }
   0xe   : > { %s8843_s22 = smov (!%p254_p4, %s4062_s22), 15  ;;  %275 = sbr.rel (%p4065_p5) target bundleno = 21 (0x15), region = 40 }
   0xf   : > { %s6244_s24 = smul.u32 3, %s248_s23  ;;  %s6479_s27 = scalar_lea.vmem %s8837_s4, %s248_s23  ;;  %v6430_v0 = vmov (!%p4065_p5), 0.0  }
  0x10   : > { %s6245_s28 = smul.u32 3, %s8843_s22  ;;  %s6484_s6 = scalar_lea.vmem %s8838_s5, %s8843_s22  ;;  %276 = vst [vmem:[#allocation2] sm:$0x3] (!%p4065_p5), %v6430_v0  ;;  %277 = vst [vmem:[#allocation2 + $0x2] sm:$0x3] (!%p4065_p5), %v6430_v0 }
  0x11   : > { %s6489_s9 = scalar_lea.vmem %s8833_s0, %s6244_s24 }
  0x12   : > { %s6494_s12 = scalar_lea.vmem %s8834_s1, %s6245_s28 }
  0x15 PF: > { %v297_v1 = vld [vmem:[%s8835_s2 + $0x8] sm:$0xff]  ;;  %v300_v2 = vld [vmem:[%s8835_s2 + $0x20] sm:$0xff]  ;;  %v299_v5 = vld [vmem:[%s8835_s2 + $0x18] sm:$0xff]  ;;  %v6431_v8 = vmov 0.0|0.0   ;;  %v6432_v9 = vmov 0.0   ;;  %vm6433_vm0 = vmmov 0  }
  0x16   : > { %v296_v3 = vld [vmem:[%s8835_s2] sm:$0xff]  ;;  %v6505_v4 = vpack.c.bf16 %v300_v2, %v297_v1  ;;  %v303_v6 = vld [vmem:[%s8835_s2 + $0x38] sm:$0xff]  ;;  %v306_v7 = vld [vmem:[%s8835_s2 + $0x50] sm:$0xff]  ;;  %5380 = vmatprep.subr.bf16.mxu1 %v6431_v8  ;;  %408 = vmatprep.mubr.f32.mxu0 %v6432_v9  ;;  %p513_p6 = scmp.lt.s32.totalorder %s6472_s20, 12  ;;  %p743_p7 = scmp.ge.s32.totalorder %s6472_s20, 4 }
  0x17   : > { %v6518_v10 = vpack.c.bf16 %v299_v5, %v296_v3  ;;  %v6520_v11 = vpack.c.bf16 %v306_v7, %v303_v6  ;;  %v302_v12 = vld [vmem:[%s8835_s2 + $0x30] sm:$0xff]  ;;  %v305_v13 = vld [vmem:[%s8835_s2 + $0x48] sm:$0xff]  ;;  %4820 = vmatprep.mubr.msk.f32.mxu1 %vm6433_vm0, %v6432_v9  ;;  %v312_v15 = vld [vmem:[%s8835_s2 + $0x80] sm:$0xff]  ;;  %s972_s21 = sadd.s32 1, %s6472_s20  ;;  %s1431_s8 = sadd.s32 2, %s6472_s20 }
  0x18   : > { %v309_v14 = vld [vmem:[%s8835_s2 + $0x68] sm:$0xff]  ;;  %5349 = vmatprep.subr.bf16.mxu0 %v6505_v4  ;;  %v6538_v16 = vpack.c.bf16 %v305_v13, %v302_v12  ;;  %v308_v18 = vld [vmem:[%s8835_s2 + $0x60] sm:$0xff]  ;;  %v311_v19 = vld [vmem:[%s8835_s2 + $0x78] sm:$0xff]  ;;  %s514_s17 = scalar_select %p513_p6, 1, 0 }
  0x19   : > { %5351 = vmatpush1.bf16.msra.mxu0 %v6518_v10  ;;  %v6541_v17 = vpack.c.bf16 %v312_v15, %v309_v14  ;;  %v315_v20 = vld [vmem:[%s8835_s2 + $0x98] sm:$0xff]  ;;  %v318_v21 = vld [vmem:[%s8835_s2 + $0xb0] sm:$0xff]  ;;  %v6556_v22 = vpack.c.bf16 %v311_v19, %v308_v18  ;;  %v317_v25 = vld [vmem:[%s8835_s2 + $0xa8] sm:$0xff]  ;;  %s744_s22 = scalar_select %p743_p7, 1, 0 }
  0x1a   : > { %5353 = vmatprep.subr.bf16.mxu0 %v6520_v11  ;;  %v314_v23 = vld [vmem:[%s8835_s2 + $0x90] sm:$0xff]  ;;  %v6562_v24 = vpack.c.bf16 %v318_v21, %v315_v20  ;;  %v301_v27 = vld [vmem:[%s8835_s2 + $0x28] sm:$0xff]  ;;  %v324_v29 = vld [vmem:[%s8835_s2 + $0xe0] sm:$0xff]  ;;  %p973_p8 = scmp.lt.s32.totalorder %s972_s21, 12  ;;  %p7401_p9 = scmp.ge.s32.totalorder %s972_s21, 4 }
  0x1b   : > { %v298_v26 = vld [vmem:[%s8835_s2 + $0x10] sm:$0xff]  ;;  %v321_v28 = vld [vmem:[%s8835_s2 + $0xc8] sm:$0xff]  ;;  %v304_v31 = vld [vmem:[%s8835_s2 + $0x40] sm:$0xff]  ;;  %v6588_v33 = vpack.c.bf16 %v317_v25, %v314_v23  ;;  %p1432_p10 = scmp.lt.s32.totalorder %s1431_s8, 12  ;;  %p1661_p11 = scmp.ge.s32.totalorder %s1431_s8, 4 }
  0x1c   : > { %v6579_v30 = vpack.c.bf16 %v301_v27, %v298_v26  ;;  %v307_v32 = vld [vmem:[%s8835_s2 + $0x58] sm:$0xff]  ;;  %v6594_v35 = vpack.c.bf16 %v324_v29, %v321_v28  ;;  %v320_v36 = vld [vmem:[%s8835_s2 + $0xc0] sm:$0xff]  ;;  %v310_v38 = vld [vmem:[%s8835_s2 + $0x70] sm:$0xff]  ;;  %s974_s19 = scalar_select %p973_p8, 1, 0 }
  0x1d   : > { %5355 = vmatpush1.bf16.msra.mxu0 %v6538_v16  ;;  %v6591_v34 = vpack.c.bf16 %v307_v32, %v304_v31  ;;  %v323_v37 = vld [vmem:[%s8835_s2 + $0xd8] sm:$0xff]  ;;  %v330_v40 = vld [vmem:[%s8835_s2 + $0x110] sm:$0xff]  ;;  %v313_v41 = vld [vmem:[%s8835_s2 + $0x88] sm:$0xff]  ;;  %s1203_s29 = scalar_select %p7401_p9, 1, 0 }
  0x1e   : > { %5357 = vmatprep.subr.bf16.mxu0 %v6541_v17  ;;  %5382 = vmatpush3.bf16.msra.mxu1 %v6579_v30  ;;  %v327_v39 = vld [vmem:[%s8835_s2 + $0xf8] sm:$0xff]  ;;  %v6616_v42 = vpack.c.bf16 %v323_v37, %v320_v36  ;;  %v326_v43 = vld [vmem:[%s8835_s2 + $0xf0] sm:$0xff]  ;;  %v6622_v44 = vpack.c.bf16 %v313_v41, %v310_v38  ;;  %v329_v46 = vld [vmem:[%s8835_s2 + $0x108] sm:$0xff]  ;;  %s1433_s10 = scalar_select %p1432_p10, 1, 0 }
  0x1f   : > { %5383 = vmatprep.subr.bf16.mxu1 %v6431_v8  ;;  %v6625_v45 = vpack.c.bf16 %v330_v40, %v327_v39  ;;  %v316_v47 = vld [vmem:[%s8835_s2 + $0xa0] sm:$0xff]  ;;  %v319_v48 = vld [vmem:[%s8835_s2 + $0xb8] sm:$0xff]  ;;  %v333_v49 = vld [vmem:[%s8835_s2 + $0x128] sm:$0xff]  ;;  %v6644_v51 = vpack.c.bf16 %v329_v46, %v326_v43  ;;  %s1662_s11 = scalar_select %p1661_p11, 1, 0 }
  0x20   : > { %v336_v50 = vld [vmem:[%s8835_s2 + $0x140] sm:$0xff]  ;;  %v6650_v53 = vpack.c.bf16 %v319_v48, %v316_v47  ;;  %v335_v55 = vld [vmem:[%s8835_s2 + $0x138] sm:$0xff]  ;;  %v322_v56 = vld [vmem:[%s8835_s2 + $0xd0] sm:$0xff]  ;;  %s2349_s28 = sadd.s32 4, %s6472_s20 }
  0x21   : > { %5359 = vmatpush1.bf16.msra.mxu0 %v6556_v22  ;;  %v332_v52 = vld [vmem:[%s8835_s2 + $0x120] sm:$0xff]  ;;  %v6653_v54 = vpack.c.bf16 %v336_v50, %v333_v49  ;;  %v325_v57 = vld [vmem:[%s8835_s2 + $0xe8] sm:$0xff]  ;;  %v339_v58 = vld [vmem:[%s8835_s2 + $0x158] sm:$0xff]  ;;  %p2350_p0 = scmp.lt.s32.totalorder %s2349_s28, 12  ;;  %p2579_p1 = scmp.ge.s32.totalorder %s2349_s28, 4 }
  0x22   : > { %5361 = vmatprep.subr.bf16.mxu0 %v6562_v24  ;;  %5385 = vmatpush3.bf16.msra.mxu1 %v6591_v34  ;;  %v342_v59 = vld [vmem:[%s8835_s2 + $0x170] sm:$0xff]  ;;  %v6672_v60 = vpack.c.bf16 %v335_v55, %v332_v52  ;;  %v6678_v62 = vpack.c.bf16 %v325_v57, %v322_v56  ;;  %v341_v0 = vld [vmem:[%s8835_s2 + $0x168] sm:$0xff]  ;;  %v328_v1 = vld [vmem:[%s8835_s2 + $0x100] sm:$0xff]  ;;  %s2808_s28 = sadd.s32 5, %s6472_s20 }
  0x23   : > { %5386 = vmatprep.subr.bf16.mxu1 %v6431_v8  ;;  %v338_v61 = vld [vmem:[%s8835_s2 + $0x150] sm:$0xff]  ;;  %v6681_v63 = vpack.c.bf16 %v342_v59, %v339_v58  ;;  %v331_v2 = vld [vmem:[%s8835_s2 + $0x118] sm:$0xff]  ;;  %v4074_v3 = vld [vmem:[%s8835_s2 + $0x188] sm:$0xff]  ;;  %s2580_s30 = scalar_select %p2579_p1, 1, 0 }
  0x24   : > { %v4077_v5 = vld [vmem:[%s8835_s2 + $0x1a0] sm:$0xff]  ;;  %v6700_v6 = vpack.c.bf16 %v341_v0, %v338_v61  ;;  %v6706_v12 = vpack.c.bf16 %v331_v2, %v328_v1  ;;  %v4076_v14 = vld [vmem:[%s8835_s2 + $0x198] sm:$0xff]  ;;  %v334_v15 = vld [vmem:[%s8835_s2 + $0x130] sm:$0xff]  ;;  %p2809_p2 = scmp.lt.s32.totalorder %s2808_s28, 12  ;;  %p8573_p3 = scmp.ge.s32.totalorder %s2808_s28, 4 }
  0x25   : > { %5363 = vmatpush1.bf16.msra.mxu0 %v6588_v33  ;;  %v4073_v7 = vld [vmem:[%s8835_s2 + $0x180] sm:$0xff]  ;;  %v6709_v13 = vpack.c.bf16 %v4077_v5, %v4074_v3  ;;  %v337_v18 = vld [vmem:[%s8835_s2 + $0x148] sm:$0xff]  ;;  %v4080_v19 = vld [vmem:[%s8835_s2 + $0x1b8] sm:$0xff] }
  0x26   : > { %5365 = vmatprep.subr.bf16.mxu0 %v6594_v35  ;;  %5388 = vmatpush3.bf16.msra.mxu1 %v6622_v44  ;;  %v4083_v20 = vld [vmem:[%s8835_s2 + $0x1d0] sm:$0xff]  ;;  %v6728_v21 = vld [vmem:[#allocation2] sm:$0x3]  ;;  %v6730_v23 = vpack.c.bf16 %v4076_v14, %v4073_v7  ;;  %v6736_v26 = vpack.c.bf16 %v337_v18, %v334_v15  ;;  %v4082_v28 = vld [vmem:[%s8835_s2 + $0x1c8] sm:$0xff]  ;;  %s3039_s14 = scalar_select %p8573_p3, 1, 0 }
  0x27   : > { %5389 = vmatprep.subr.bf16.mxu1 %v6431_v8  ;;  %v4079_v25 = vld [vmem:[%s8835_s2 + $0x1b0] sm:$0xff]  ;;  %v6739_v27 = vpack.c.bf16 %v4083_v20, %v4080_v19  ;;  %v340_v29 = vld [vmem:[%s8835_s2 + $0x160] sm:$0xff]  ;;  %v343_v31 = vld [vmem:[%s8835_s2 + $0x178] sm:$0xff] }
  0x28   : > { %v4086_v32 = vld [vmem:[%s8835_s2 + $0x1e8] sm:$0xff]  ;;  %v4089_v36 = vld [vmem:[%s8835_s2 + $0x200] sm:$0xff]  ;;  %v6759_v37 = vpack.c.bf16 %v4082_v28, %v4079_v25  ;;  %v6765_v39 = vpack.c.bf16 %v343_v31, %v340_v29  ;;  %v4088_v41 = vld [vmem:[%s8835_s2 + $0x1f8] sm:$0xff] }
  0x29   : > { %5367 = vmatpush1.bf16.msra.mxu0 %v6616_v42  ;;  %v4085_v38 = vld [vmem:[%s8835_s2 + $0x1e0] sm:$0xff]  ;;  %v6768_v40 = vpack.c.bf16 %v4089_v36, %v4086_v32  ;;  %v4075_v43 = vld [vmem:[%s8835_s2 + $0x190] sm:$0xff]  ;;  %v4078_v46 = vld [vmem:[%s8835_s2 + $0x1a8] sm:$0xff] }
  0x2a   : > { %5369 = vmatprep.subr.bf16.mxu0 %v6625_v45  ;;  %5391 = vmatpush3.bf16.msra.mxu1 %v6650_v53  ;;  %v4092_v47 = vld [vmem:[%s8835_s2 + $0x218] sm:$0xff]  ;;  %v4095_v48 = vld [vmem:[%s8835_s2 + $0x230] sm:$0xff]  ;;  %v6788_v49 = vpack.c.bf16 %v4088_v41, %v4085_v38  ;;  %v6794_v52 = vpack.c.bf16 %v4078_v46, %v4075_v43  ;;  %v4094_v56 = vld [vmem:[%s8835_s2 + $0x228] sm:$0xff] }
  0x2b   : > { %5392 = vmatprep.subr.bf16.mxu1 %v6431_v8  ;;  %v4091_v50 = vld [vmem:[%s8835_s2 + $0x210] sm:$0xff]  ;;  %v6797_v55 = vpack.c.bf16 %v4095_v48, %v4092_v47  ;;  %v4081_v57 = vld [vmem:[%s8835_s2 + $0x1c0] sm:$0xff]  ;;  %v4084_v58 = vld [vmem:[%s8835_s2 + $0x1d8] sm:$0xff] }
  0x2c   : > { %v4098_v59 = vld [vmem:[%s8835_s2 + $0x248] sm:$0xff]  ;;  %v4101_v61 = vld [vmem:[%s8835_s2 + $0x260] sm:$0xff]  ;;  %v6817_v0 = vpack.c.bf16 %v4094_v56, %v4091_v50  ;;  %v6823_v2 = vpack.c.bf16 %v4084_v58, %v4081_v57  ;;  %v4100_v5 = vld [vmem:[%s8835_s2 + $0x258] sm:$0xff] }
  0x2d   : > { %5371 = vmatpush1.bf16.msra.mxu0 %v6644_v51  ;;  %v4097_v1 = vld [vmem:[%s8835_s2 + $0x240] sm:$0xff]  ;;  %v6826_v3 = vpack.c.bf16 %v4101_v61, %v4098_v59  ;;  %v4087_v7 = vld [vmem:[%s8835_s2 + $0x1f0] sm:$0xff]  ;;  %v4090_v14 = vld [vmem:[%s8835_s2 + $0x208] sm:$0xff] }
  0x2e   : > { %5373 = vmatprep.subr.bf16.mxu0 %v6653_v54  ;;  %5394 = vmatpush3.bf16.msra.mxu1 %v6678_v62  ;;  %v4104_v15 = vld [vmem:[%s8835_s2 + $0x278] sm:$0xff]  ;;  %v4107_v18 = vld [vmem:[%s8835_s2 + $0x290] sm:$0xff]  ;;  %v6847_v19 = vpack.c.bf16 %v4100_v5, %v4097_v1  ;;  %v6853_v25 = vpack.c.bf16 %v4090_v14, %v4087_v7  ;;  %v4106_v29 = vld [vmem:[%s8835_s2 + $0x288] sm:$0xff] }
  0x2f   : > { %5395 = vmatprep.subr.bf16.mxu1 %v6431_v8  ;;  %v4103_v20 = vld [vmem:[%s8835_s2 + $0x270] sm:$0xff]  ;;  %v6856_v28 = vpack.c.bf16 %v4107_v18, %v4104_v15  ;;  %v4093_v31 = vld [vmem:[%s8835_s2 + $0x220] sm:$0xff]  ;;  %v4096_v32 = vld [vmem:[%s8835_s2 + $0x238] sm:$0xff] }
  0x30   : > { %v4110_v36 = vld [vmem:[%s8835_s2 + $0x2a8] sm:$0xff]  ;;  %v4113_v38 = vld [vmem:[%s8835_s2 + $0x2c0] sm:$0xff]  ;;  %v6875_v41 = vpack.c.bf16 %v4106_v29, %v4103_v20  ;;  %v6881_v46 = vpack.c.bf16 %v4096_v32, %v4093_v31  ;;  %v4112_v48 = vld [vmem:[%s8835_s2 + $0x2b8] sm:$0xff] }
  0x31   : > { %5375 = vmatpush1.bf16.msra.mxu0 %v6672_v60  ;;  %v4109_v43 = vld [vmem:[%s8835_s2 + $0x2a0] sm:$0xff]  ;;  %v6884_v47 = vpack.c.bf16 %v4113_v38, %v4110_v36  ;;  %v4099_v50 = vld [vmem:[%s8835_s2 + $0x250] sm:$0xff]  ;;  %v4102_v56 = vld [vmem:[%s8835_s2 + $0x268] sm:$0xff] }
  0x32   : > { %5377 = vmatprep.subr.bf16.mxu0 %v6681_v63  ;;  %5397 = vmatpush3.bf16.msra.mxu1 %v6706_v12  ;;  %v4116_v57 = vld [vmem:[%s8835_s2 + $0x2d8] sm:$0xff]  ;;  %v4119_v58 = vld [vmem:[%s8835_s2 + $0x2f0] sm:$0xff]  ;;  %v6903_v59 = vpack.c.bf16 %v4112_v48, %v4109_v43  ;;  %v6909_v1 = vpack.c.bf16 %v4102_v56, %v4099_v50  ;;  %v4118_v7 = vld [vmem:[%s8835_s2 + $0x2e8] sm:$0xff] }
  0x33   : > { %5398 = vmatprep.subr.bf16.mxu1 %v6431_v8  ;;  %v4115_v61 = vld [vmem:[%s8835_s2 + $0x2d0] sm:$0xff]  ;;  %v6912_v5 = vpack.c.bf16 %v4119_v58, %v4116_v57  ;;  %v4105_v14 = vld [vmem:[%s8835_s2 + $0x280] sm:$0xff]  ;;  %v4108_v15 = vld [vmem:[%s8835_s2 + $0x298] sm:$0xff] }
  0x34   : > { %v6925_v18 = vpack.c.bf16 %v4118_v7, %v4115_v61  ;;  %v6928_v20 = vpack.c.bf16 %v4108_v15, %v4105_v14  ;;  %v4111_v29 = vld [vmem:[%s8835_s2 + $0x2b0] sm:$0xff]  ;;  %v4114_v31 = vld [vmem:[%s8835_s2 + $0x2c8] sm:$0xff]  ;;  %v6939_v32 = vld [vmem:[#allocation2 + $0x2] sm:$0x3] }
  0x35   : > { %5379 = vmatpush1.bf16.msra.mxu0 %v6700_v6  ;;  %v6942_v36 = vpack.c.bf16 %v4114_v31, %v4111_v29  ;;  %v4117_v38 = vld [vmem:[%s8835_s2 + $0x2e0] sm:$0xff]  ;;  %v4120_v43 = vld [vmem:[%s8835_s2 + $0x2f8] sm:$0xff] }
  0x36   : > { %5405 = vmatprep.subr.bf16.mxu0 %v6709_v13  ;;  %5400 = vmatpush3.bf16.msra.mxu1 %v6736_v26  ;;  %v6954_v48 = vpack.c.bf16 %v4120_v43, %v4117_v38  ;;  %v515_v43 = vstv %s514_s17 }
  0x37   : > { %5401 = vmatprep.subr.bf16.mxu1 %v6431_v8  ;;  %vm516_vm1 = vcmp.eq.s32.totalorder %v515_v43, 1  ;;  %v1239_v43 = vld [vmem:[%s8835_s2 + $0xc0] sm:$0xff] }
  0x38   : > { %409 = vmatmul.mubr.f32.vlgmr.msra.gmra.mrb[0].mxu0 %v6728_v21 }
  0x39   : > { %5407 = vmatpush1.bf16.msra.mxu0 %v6730_v23  ;;  %639 = vmatprep.mubr.f32.mxu0 %v6432_v9 }
  0x3a   : > { %5409 = vmatprep.subr.bf16.mxu0 %v6739_v27  ;;  %5403 = vmatpush3.bf16.msra.mxu1 %v6765_v39 }
  0x3b   : > { %5436 = vmatprep.subr.bf16.mxu1 %v6431_v8 }
  0x3d   : > { %5411 = vmatpush1.bf16.msra.mxu0 %v6759_v37  ;;  %4821 = vmatmul.mubr.f32.vlgmr.msra.gmra.mrb[0].mxu1 %v6728_v21 }
  0x3e   : > { %5413 = vmatprep.subr.bf16.mxu0 %v6768_v40  ;;  %5438 = vmatpush3.bf16.msra.mxu1 %v6794_v52 }
  0x3f   : > { %5439 = vmatprep.subr.bf16.mxu1 %v6431_v8  ;;  %4855 = vmatprep.mubr.msk.f32.mxu1 %vm6433_vm0, %v6432_v9 }
  0x41   : > { %5415 = vmatpush1.bf16.msra.mxu0 %v6788_v49 }
  0x42   : > { %5417 = vmatprep.subr.bf16.mxu0 %v6797_v55  ;;  %5441 = vmatpush3.bf16.msra.mxu1 %v6823_v2 }
  0x43   : > { %5442 = vmatprep.subr.bf16.mxu1 %v6431_v8 }
  0x45   : > { %5419 = vmatpush1.bf16.msra.mxu0 %v6817_v0 }
  0x46   : > { %5421 = vmatprep.subr.bf16.mxu0 %v6826_v3  ;;  %5444 = vmatpush3.bf16.msra.mxu1 %v6853_v25 }
  0x47   : > { %5445 = vmatprep.subr.bf16.mxu1 %v6431_v8 }
  0x49   : > { %5423 = vmatpush1.bf16.msra.mxu0 %v6847_v19 }
  0x4a   : > { %5425 = vmatprep.subr.bf16.mxu0 %v6856_v28  ;;  %5447 = vmatpush3.bf16.msra.mxu1 %v6881_v46 }
  0x4b   : > { %5448 = vmatprep.subr.bf16.mxu1 %v6431_v8 }
  0x4d   : > { %5427 = vmatpush1.bf16.msra.mxu0 %v6875_v41 }
  0x4e   : > { %5429 = vmatprep.subr.bf16.mxu0 %v6884_v47  ;;  %5450 = vmatpush3.bf16.msra.mxu1 %v6909_v1 }
  0x4f   : > { %5451 = vmatprep.subr.bf16.mxu1 %v6431_v8 }
  0x51   : > { %5431 = vmatpush1.bf16.msra.mxu0 %v6903_v59 }
  0x52   : > { %5433 = vmatprep.subr.bf16.mxu0 %v6912_v5  ;;  %5453 = vmatpush3.bf16.msra.mxu1 %v6928_v20 }
  0x53   : > { %5454 = vmatprep.subr.bf16.mxu1 %v6431_v8 }
  0x55   : > { %5435 = vmatpush1.bf16.msra.mxu0 %v6925_v18 }
  0x56   : > { %5461 = vmatprep.subr.bf16.mxu0 %v6505_v4  ;;  %5456 = vmatpush3.bf16.msra.mxu1 %v6942_v36  ;;  %v294_v4 = vld [vmem:[%s6489_s9] sm:$0x7] }
  0x57   : > { %5457 = vmatprep.subr.bf16.mxu1 %v6431_v8 }
  0x58   : > { %640 = vmatmul.mubr.f32.vlgmr.msra.gmra.mrb[2].mxu0 %v6939_v32 }
  0x59   : > { %5463 = vmatpush1.bf16.msra.mxu0 %v6518_v10  ;;  %868 = vmatprep.mubr.f32.mxu0 %v6432_v9  ;;  %v295_v10 = vunpack.c.l.bf16 %v294_v4 }
  0x5a   : > { %5465 = vmatprep.subr.bf16.mxu0 %v6520_v11  ;;  %5459 = vmatpush3.bf16.msra.mxu1 %v6954_v48 }
  0x5b   : > { %5492 = vmatprep.subr.bf16.mxu1 %v6431_v8 }
  0x5d   : > { %5467 = vmatpush1.bf16.msra.mxu0 %v6538_v16  ;;  %4856 = vmatmul.mubr.f32.vlgmr.msra.gmra.mrb[2].mxu1 %v6939_v32  ;;  %v493_v16 = vrot.slane %v295_v10, 2 }
  0x5e   : > { %5469 = vmatprep.subr.bf16.mxu0 %v6541_v17  ;;  %5494 = vmatpush3.bf16.msra.mxu1 %v6579_v30 }
  0x5f   : > { %5495 = vmatprep.subr.bf16.mxu1 %v6431_v8  ;;  %4890 = vmatprep.mubr.msk.f32.mxu1 %vm6433_vm0, %v6432_v9 }
  0x61   : > { %5471 = vmatpush1.bf16.msra.mxu0 %v6556_v22 }
  0x62   : > { %5473 = vmatprep.subr.bf16.mxu0 %v6562_v24  ;;  %5497 = vmatpush3.bf16.msra.mxu1 %v6591_v34 }
  0x63   : > { %5498 = vmatprep.subr.bf16.mxu1 %v6431_v8 }
  0x65   : > { %5475 = vmatpush1.bf16.msra.mxu0 %v6588_v33 }
  0x66   : > { %5477 = vmatprep.subr.bf16.mxu0 %v6594_v35  ;;  %5500 = vmatpush3.bf16.msra.mxu1 %v6622_v44 }
  0x67   : > { %5501 = vmatprep.subr.bf16.mxu1 %v6431_v8 }
  0x69   : > { %5479 = vmatpush1.bf16.msra.mxu0 %v6616_v42 }
  0x6a   : > { %5481 = vmatprep.subr.bf16.mxu0 %v6625_v45  ;;  %5503 = vmatpush3.bf16.msra.mxu1 %v6650_v53 }
  0x6b   : > { %5504 = vmatprep.subr.bf16.mxu1 %v6431_v8 }
  0x6d   : > { %5483 = vmatpush1.bf16.msra.mxu0 %v6644_v51 }
  0x6e   : > { %5485 = vmatprep.subr.bf16.mxu0 %v6653_v54  ;;  %5506 = vmatpush3.bf16.msra.mxu1 %v6678_v62  ;;  %v6999_v54 = vld [vmem:[%s8836_s3] ss:$0 sm:$0xff] }
  0x6f   : > { %5507 = vmatprep.subr.bf16.mxu1 %v6431_v8 }
  0x71   : > { %5487 = vmatpush1.bf16.msra.mxu0 %v6672_v60 }
  0x72   : > { %5489 = vmatprep.subr.bf16.mxu0 %v6681_v63  ;;  %5509 = vmatpush3.bf16.msra.mxu1 %v6706_v12  ;;  %v4072_v63 = vld [vmem:[%s6494_s12 + $0x15] sm:$0x7] }
  0x73   : > { %5510 = vmatprep.subr.bf16.mxu1 %v6431_v8 }
  0x75   : > { %5491 = vmatpush1.bf16.msra.mxu0 %v6700_v6  ;;  %v504_v6 = vrot.slane %v295_v10, 4 }
  0x76   : > { %5517 = vmatprep.subr.bf16.mxu0 %v6709_v13  ;;  %5512 = vmatpush3.bf16.msra.mxu1 %v6736_v26  ;;  %v525_v13 = vunpack.c.l.bf16 %v4072_v63  ;;  %v1230_v63 = vld [vmem:[%s8835_s2 + $0x78] sm:$0xff] }
  0x77   : > { %5513 = vmatprep.subr.bf16.mxu1 %v6431_v8 }
  0x78   : > { %v724_v56 = vrot.slane %v525_v13, 2 }
  0x7a   : > { %5515 = vmatpush3.bf16.msra.mxu1 %v6765_v39 }
  0x7b   : > { %5548 = vmatprep.subr.bf16.mxu1 %v6431_v8 }
 0x10b   : > { %v410_v11 = vpop.f32.mrb[0].mxu0 }
 0x10c   : > { %v485_v17 = vadd.f32 %v410_v11, %v295_v10  ;;  %v412_v22 = vpop.f32.mrb[1].mxu0 }
 0x10d   : > { %v495_v33 = vadd.f32 %v493_v16, %v412_v22 }
 0x10e   : > { %v4069_v24 = vmul.f32 -1.442695, %v485_v17 }
 0x10f   : > { %v4070_v35 = vmul.f32 -1.442695, %v495_v33 }
 0x110   : > { %6258 = vpow2.f32 %v4069_v24  ;;  %v481_v42 = vpop.f32.mrb[0].mxu1 }
 0x111   : > { %v4822_v44 = vpop.f32.mrb[1].mxu1  ;;  %6260 = vpow2.f32 %v4070_v35  ;;  %v502_v62 = vadd.f32 %v6999_v54, %v481_v42  ;;  %v7010_v42 = vld [vmem:[%s8836_s3 + $0x1] ss:$0 sm:$0xff] }
 0x11a   : > { %v6259_v45 = vpop.eup %6258 }
 0x11b   : > { %v489_v51 = vadd.f32 1.0, %v6259_v45  ;;  %v6261_v53 = vpop.eup %6260 }
 0x11c   : > { %v499_v60 = vadd.f32 1.0, %v6261_v53 }
 0x11d   : > { %6262 = vrcp.f32 %v489_v51 }
 0x11e   : > { %6264 = vrcp.f32 %v499_v60 }
 0x127   : > { %v6263_v12 = vpop.eup %6262 }
 0x128   : > { %v503_v26 = vmul.f32 %v6263_v12, %v502_v62  ;;  %v6265_v14 = vpop.eup %6264  ;;  %v1227_v62 = vld [vmem:[%s8835_s2 + $0x60] sm:$0xff] }
 0x129   : > { %v508_v38 = vsub.f32 1.0, %v6265_v14  ;;  %v510_v10 = vmul.f32 %v6265_v14, %v6728_v21  ;;  %v7119_v12 = vpack.c.bf16 %v1230_v63, %v1227_v62  ;;  %v1238_v14 = vld [vmem:[%s8835_s2 + $0xb8] sm:$0xff]  ;;  %v4124_v63 = vld [vmem:[%s6489_s9 + $0x3] sm:$0x7] }
 0x12a   : > { %v506_v39 = vadd.f32 %v504_v6, %v503_v26  ;;  %v1229_v6 = vld [vmem:[%s8835_s2 + $0x70] sm:$0xff] }
 0x12b   : > { %v641_v50 = vpop.f32.mrb[2].mxu0 }
 0x12c   : > { %6266 = vtanh.f32 %v506_v39  ;;  %v716_v57 = vadd.f32 %v641_v50, %v525_v13  ;;  %v643_v58 = vpop.f32.mrb[3].mxu0  ;;  %v1234_v39 = vld [vmem:[%s8835_s2 + $0x98] sm:$0xff]  ;;  %v1237_v50 = vld [vmem:[%s8835_s2 + $0xb0] sm:$0xff] }
 0x12d   : > { %v726_v7 = vadd.f32 %v724_v56, %v643_v58  ;;  %v7135_v56 = vpack.c.bf16 %v1237_v50, %v1234_v39  ;;  %v1236_v58 = vld [vmem:[%s8835_s2 + $0xa8] sm:$0xff] }
 0x12e   : > { %v4121_v61 = vmul.f32 -1.442695, %v716_v57  ;;  %v1233_v57 = vld [vmem:[%s8835_s2 + $0x90] sm:$0xff] }
 0x12f   : > { %v4122_v15 = vmul.f32 -1.442695, %v726_v7  ;;  %v7147_v7 = vpack.c.bf16 %v1236_v58, %v1233_v57 }
 0x130   : > { %6268 = vpow2.f32 %v4121_v61  ;;  %v712_v29 = vpop.f32.mrb[2].mxu1  ;;  %v1235_v61 = vld [vmem:[%s8835_s2 + $0xa0] sm:$0xff] }
 0x131   : > { %v4857_v31 = vpop.f32.mrb[3].mxu1  ;;  %6270 = vpow2.f32 %v4122_v15  ;;  %v733_v51 = vadd.f32 %v7010_v42, %v712_v29  ;;  %v7153_v15 = vpack.c.bf16 %v1238_v14, %v1235_v61  ;;  %v1240_v29 = vld [vmem:[%s8835_s2 + $0xc8] sm:$0xff] }
 0x132   : > { %v1243_v31 = vld [vmem:[%s8835_s2 + $0xe0] sm:$0xff] }
 0x136   : > { %v6267_v4 = vpop.eup %6266 }
 0x137   : > { %v509_v11 = vmul.f32 %v6267_v4, %v508_v38  ;;  %v7163_v38 = vpack.c.bf16 %v1243_v31, %v1240_v29  ;;  %v1242_v4 = vld [vmem:[%s8835_s2 + $0xd8] sm:$0xff] }
 0x139   : > { %v511_v16 = vadd.f32 %v510_v10, %v509_v11  ;;  %v1241_v10 = vld [vmem:[%s8835_s2 + $0xd0] sm:$0xff]  ;;  %v7175_v11 = vpack.c.bf16 %v1242_v4, %v1239_v43 }
 0x13a   : > { %v6269_v17 = vpop.eup %6268 }
 0x13b   : > { %v517_v22 = vsel %vm516_vm1, %v511_v16, %v6728_v21  ;;  %v720_v24 = vadd.f32 1.0, %v6269_v17  ;;  %v6271_v35 = vpop.eup %6270  ;;  %v735_v21 = vrot.slane %v525_v13, 4  ;;  %v1232_v13 = vld [vmem:[%s8835_s2 + $0x88] sm:$0xff] }
 0x13c   : > { %518 = vst [vmem:[#allocation2] sm:$0x3] %v517_v22  ;;  %v519_v33 = vpack.c.bf16 %v517_v22, %v517_v22  ;;  %v730_v45 = vadd.f32 1.0, %v6271_v35  ;;  %v7125_v26 = vpack.c.bf16 %v1232_v13, %v1229_v6  ;;  %v1244_v16 = vld [vmem:[%s8835_s2 + $0xe8] sm:$0xff]  ;;  %v1246_v22 = vld [vmem:[%s8835_s2 + $0xf8] sm:$0xff]  ;;  %v1245_v35 = vld [vmem:[%s8835_s2 + $0xf0] sm:$0xff]  ;;  %v755_v6 = vunpack.c.l.bf16 %v4124_v63 }
 0x13d   : > { %6272 = vrcp.f32 %v720_v24  ;;  %v7181_v17 = vpack.c.bf16 %v1244_v16, %v1241_v10  ;;  %v1249_v24 = vld [vmem:[%s8835_s2 + $0x110] sm:$0xff] }
 0x13e   : > { %520 = vst [vmem:[%s6479_s27] sm:$0x1] %v519_v33  ;;  %6274 = vrcp.f32 %v730_v45  ;;  %v7191_v33 = vpack.c.bf16 %v1249_v24, %v1246_v22  ;;  %v1248_v45 = vld [vmem:[%s8835_s2 + $0x108] sm:$0xff]  ;;  %v953_v50 = vrot.slane %v755_v6, 2  ;;  %v4128_v22 = vld [vmem:[%s6494_s12 + $0x12] sm:$0x7] }
 0x143   : > { %v7012_v44 = vld [vmem:[#allocation2] sm:$0x3] }
 0x144   : > { %869 = vmatmul.mubr.f32.vlgmr.msra.gmra.mrb[4].mxu0 %v7012_v44  ;;  %4891 = vmatmul.mubr.f32.vlgmr.msra.gmra.mrb[4].mxu1 %v7012_v44 }
 0x145   : > { %5519 = vmatpush1.bf16.msra.mxu0 %v6730_v23  ;;  %5550 = vmatpush3.bf16.msra.mxu1 %v6794_v52 }
 0x146   : > { %5521 = vmatprep.subr.bf16.mxu0 %v6739_v27  ;;  %5551 = vmatprep.subr.bf16.mxu1 %v6431_v8 }
 0x147   : > { %v6273_v53 = vpop.eup %6272  ;;  %1098 = vmatprep.mubr.f32.mxu0 %v6432_v9  ;;  %4925 = vmatprep.mubr.msk.f32.mxu1 %vm6433_vm0, %v6432_v9 }
 0x148   : > { %v734_v60 = vmul.f32 %v6273_v53, %v733_v51  ;;  %v6275_v27 = vpop.eup %6274  ;;  %v1247_v51 = vld [vmem:[%s8835_s2 + $0x100] sm:$0xff]  ;;  %v1250_v53 = vld [vmem:[%s8835_s2 + $0x118] sm:$0xff] }
 0x149   : > { %5523 = vmatpush1.bf16.msra.mxu0 %v6759_v37  ;;  %5553 = vmatpush3.bf16.msra.mxu1 %v6823_v2  ;;  %v739_v37 = vsub.f32 1.0, %v6275_v27  ;;  %v741_v52 = vmul.f32 %v6275_v27, %v6939_v32  ;;  %v1255_v27 = vld [vmem:[%s8835_s2 + $0x140] sm:$0xff] }
 0x14a   : > { %v737_v23 = vadd.f32 %v735_v21, %v734_v60  ;;  %5525 = vmatprep.subr.bf16.mxu0 %v6768_v40  ;;  %5554 = vmatprep.subr.bf16.mxu1 %v6431_v8  ;;  %v745_v40 = vstv %s744_s22  ;;  %v7203_v21 = vpack.c.bf16 %v1248_v45, %v1245_v35  ;;  %v7209_v60 = vpack.c.bf16 %v1250_v53, %v1247_v51 }
 0x14b   : > { %vm746_vm2 = vcmp.eq.s32.totalorder %v745_v40, 1  ;;  %v1251_v40 = vld [vmem:[%s8835_s2 + $0x120] sm:$0xff]  ;;  %v964_v35 = vrot.slane %v755_v6, 4  ;;  %v7282_v51 = vunpack.c.l.bf16 %v4128_v22  ;;  %v4191_v22 = vld [vmem:[%s8835_s2 + $0x1b0] sm:$0xff] }
 0x14c   : > { %6276 = vtanh.f32 %v737_v23  ;;  %v1252_v23 = vld [vmem:[%s8835_s2 + $0x128] sm:$0xff] }
 0x14d   : > { %5527 = vmatpush1.bf16.msra.mxu0 %v6788_v49  ;;  %5556 = vmatpush3.bf16.msra.mxu1 %v6853_v25  ;;  %v1216_v25 = vld [vmem:[%s8835_s2 + $0x8] sm:$0xff] }
 0x14e   : > { %5529 = vmatprep.subr.bf16.mxu0 %v6797_v55  ;;  %5557 = vmatprep.subr.bf16.mxu1 %v6431_v8 }
 0x151   : > { %5531 = vmatpush1.bf16.msra.mxu0 %v6817_v0  ;;  %5559 = vmatpush3.bf16.msra.mxu1 %v6881_v46 }
 0x152   : > { %5533 = vmatprep.subr.bf16.mxu0 %v6826_v3  ;;  %5560 = vmatprep.subr.bf16.mxu1 %v6431_v8 }
 0x155   : > { %5535 = vmatpush1.bf16.msra.mxu0 %v6847_v19  ;;  %5562 = vmatpush3.bf16.msra.mxu1 %v6909_v1 }
 0x156   : > { %v6277_v49 = vpop.eup %6276  ;;  %5537 = vmatprep.subr.bf16.mxu0 %v6856_v28  ;;  %5563 = vmatprep.subr.bf16.mxu1 %v6431_v8  ;;  %v1219_v28 = vld [vmem:[%s8835_s2 + $0x20] sm:$0xff] }
 0x157   : > { %v740_v55 = vmul.f32 %v6277_v49, %v739_v37  ;;  %v7219_v37 = vpack.c.bf16 %v1255_v27, %v1252_v23  ;;  %v1254_v49 = vld [vmem:[%s8835_s2 + $0x138] sm:$0xff] }
 0x159   : > { %v742_v0 = vadd.f32 %v741_v52, %v740_v55  ;;  %5539 = vmatpush1.bf16.msra.mxu0 %v6875_v41  ;;  %5565 = vmatpush3.bf16.msra.mxu1 %v6928_v20  ;;  %v1215_v41 = vld [vmem:[%s8835_s2] sm:$0xff]  ;;  %v1253_v52 = vld [vmem:[%s8835_s2 + $0x130] sm:$0xff]  ;;  %v7231_v55 = vpack.c.bf16 %v1254_v49, %v1251_v40  ;;  %v1183_v49 = vrot.slane %v7282_v51, 2 }
 0x15a   : > { %5541 = vmatprep.subr.bf16.mxu0 %v6884_v47  ;;  %5566 = vmatprep.subr.bf16.mxu1 %v6431_v8  ;;  %v1222_v47 = vld [vmem:[%s8835_s2 + $0x38] sm:$0xff] }
 0x15b   : > { %v747_v2 = vsel %vm746_vm2, %v742_v0, %v6939_v32  ;;  %v1228_v32 = vld [vmem:[%s8835_s2 + $0x68] sm:$0xff] }
 0x15c   : > { %748 = vst [vmem:[#allocation2 + $0x2] sm:$0x3] %v747_v2  ;;  %v749_v3 = vpack.c.bf16 %v747_v2, %v747_v2  ;;  %v1256_v0 = vld [vmem:[%s8835_s2 + $0x148] sm:$0xff] }
 0x15d   : > { %5543 = vmatpush1.bf16.msra.mxu0 %v6903_v59  ;;  %5568 = vmatpush3.bf16.msra.mxu1 %v6942_v36  ;;  %v1225_v59 = vld [vmem:[%s8835_s2 + $0x50] sm:$0xff]  ;;  %v1231_v36 = vld [vmem:[%s8835_s2 + $0x80] sm:$0xff]  ;;  %v7237_v2 = vpack.c.bf16 %v1256_v0, %v1253_v52 }
 0x15e   : > { %4123 = vst [vmem:[%s6484_s6 + $0x7] sm:$0x1] %v749_v3  ;;  %5545 = vmatprep.subr.bf16.mxu0 %v6912_v5  ;;  %5569 = vmatprep.subr.bf16.mxu1 %v6431_v8  ;;  %v7090_v1 = vpack.c.bf16 %v1225_v59, %v1222_v47  ;;  %v1221_v5 = vld [vmem:[%s8835_s2 + $0x30] sm:$0xff]  ;;  %v1258_v3 = vld [vmem:[%s8835_s2 + $0x158] sm:$0xff]  ;;  %v1259_v47 = vld [vmem:[%s8835_s2 + $0x160] sm:$0xff] }
 0x161   : > { %5547 = vmatpush1.bf16.msra.mxu0 %v6925_v18  ;;  %5571 = vmatpush3.bf16.msra.mxu1 %v6954_v48  ;;  %v1224_v18 = vld [vmem:[%s8835_s2 + $0x48] sm:$0xff]  ;;  %v7108_v48 = vpack.c.bf16 %v1231_v36, %v1228_v32  ;;  %v4189_v36 = vld [vmem:[%s8835_s2 + $0x1a0] sm:$0xff] }
 0x162   : > { %5604 = vmatprep.subr.bf16.mxu1 %v6431_v8  ;;  %v7098_v20 = vpack.c.bf16 %v1224_v18, %v1221_v5  ;;  %v1262_v5 = vld [vmem:[%s8835_s2 + $0x178] sm:$0xff]  ;;  %v4186_v32 = vld [vmem:[%s8835_s2 + $0x188] sm:$0xff] }
 0x163   : > { %v7055_v19 = vld [vmem:[#allocation2 + $0x2] sm:$0x3]  ;;  %v7265_v18 = vpack.c.bf16 %v1262_v5, %v1259_v47  ;;  %v7275_v62 = vpack.c.bf16 %v4189_v36, %v4186_v32  ;;  %v975_v32 = vstv %s974_s19  ;;  %s3267_s19 = sadd.s32 6, %s6472_s20 }
 0x164   : > { %1099 = vmatmul.mubr.f32.vlgmr.msra.gmra.mrb[6].mxu0 %v7055_v19  ;;  %4926 = vmatmul.mubr.f32.vlgmr.msra.gmra.mrb[6].mxu1 %v7055_v19  ;;  %vm976_vm3 = vcmp.eq.s32.totalorder %v975_v32, 1  ;;  %v4199_v32 = vld [vmem:[%s8835_s2 + $0x1f0] sm:$0xff]  ;;  %p3268_p4 = scmp.lt.s32.totalorder %s3267_s19, 12  ;;  %p3497_p5 = scmp.ge.s32.totalorder %s3267_s19, 4 }
 0x165   : > { %5606 = vmatpush3.bf16.msra.mxu1 %v6579_v30  ;;  %1327 = vmatprep.mubr.f32.mxu0 %v6432_v9  ;;  %v7072_v30 = vpack.c.bf16 %v1219_v28, %v1216_v25  ;;  %v1261_v25 = vld [vmem:[%s8835_s2 + $0x170] sm:$0xff] }
 0x166   : > { %5607 = vmatprep.subr.bf16.mxu1 %v6431_v8  ;;  %4960 = vmatprep.mubr.msk.f32.mxu1 %vm6433_vm0, %v6432_v9  ;;  %v7247_v28 = vpack.c.bf16 %v1261_v25, %v1258_v3  ;;  %s3269_s22 = scalar_select %p3268_p4, 1, 0 }
 0x167   : > { %5573 = vmatprep.subr.bf16.mxu0 %v7072_v30  ;;  %s3498_s28 = scalar_select %p3497_p5, 1, 0 }
 0x169   : > { %5609 = vmatpush3.bf16.msra.mxu1 %v6591_v34  ;;  %v1218_v34 = vld [vmem:[%s8835_s2 + $0x18] sm:$0xff] }
 0x16a   : > { %5610 = vmatprep.subr.bf16.mxu1 %v6431_v8  ;;  %v7080_v46 = vpack.c.bf16 %v1218_v34, %v1215_v41  ;;  %v1257_v41 = vld [vmem:[%s8835_s2 + $0x150] sm:$0xff]  ;;  %v1260_v34 = vld [vmem:[%s8835_s2 + $0x168] sm:$0xff] }
 0x16b   : > { %v7259_v59 = vpack.c.bf16 %v1260_v34, %v1257_v41 }
 0x16c   : > { %5575 = vmatpush1.bf16.msra.mxu0 %v7080_v46 }
 0x16d   : > { %5577 = vmatprep.subr.bf16.mxu0 %v7090_v1  ;;  %5612 = vmatpush3.bf16.msra.mxu1 %v7125_v26 }
 0x16e   : > { %5613 = vmatprep.subr.bf16.mxu1 %v6431_v8 }
 0x170   : > { %5579 = vmatpush1.bf16.msra.mxu0 %v7098_v20 }
 0x171   : > { %5581 = vmatprep.subr.bf16.mxu0 %v7108_v48  ;;  %5615 = vmatpush3.bf16.msra.mxu1 %v7153_v15 }
 0x172   : > { %5616 = vmatprep.subr.bf16.mxu1 %v6431_v8 }
 0x174   : > { %5583 = vmatpush1.bf16.msra.mxu0 %v7119_v12 }
 0x175   : > { %5585 = vmatprep.subr.bf16.mxu0 %v7135_v56  ;;  %5618 = vmatpush3.bf16.msra.mxu1 %v7181_v17 }
 0x176   : > { %5619 = vmatprep.subr.bf16.mxu1 %v6431_v8 }
 0x178   : > { %5587 = vmatpush1.bf16.msra.mxu0 %v7147_v7 }
 0x179   : > { %5589 = vmatprep.subr.bf16.mxu0 %v7163_v38  ;;  %5621 = vmatpush3.bf16.msra.mxu1 %v7209_v60 }
 0x17a   : > { %5622 = vmatprep.subr.bf16.mxu1 %v6431_v8 }
 0x17c   : > { %5591 = vmatpush1.bf16.msra.mxu0 %v7175_v11 }
 0x17d   : > { %5593 = vmatprep.subr.bf16.mxu0 %v7191_v33  ;;  %5624 = vmatpush3.bf16.msra.mxu1 %v7237_v2 }
 0x17e   : > { %5625 = vmatprep.subr.bf16.mxu1 %v6431_v8 }
 0x180   : > { %5595 = vmatpush1.bf16.msra.mxu0 %v7203_v21 }
 0x181   : > { %5597 = vmatprep.subr.bf16.mxu0 %v7219_v37  ;;  %5627 = vmatpush3.bf16.msra.mxu1 %v7265_v18 }
 0x182   : > { %5660 = vmatprep.subr.bf16.mxu1 %v6431_v8 }
 0x184   : > { %5599 = vmatpush1.bf16.msra.mxu0 %v7231_v55 }
 0x185   : > { %5601 = vmatprep.subr.bf16.mxu0 %v7247_v28 }
 0x188   : > { %5603 = vmatpush1.bf16.msra.mxu0 %v7259_v59 }
 0x189   : > { %5629 = vmatprep.subr.bf16.mxu0 %v7275_v62 }
 0x217   : > { %v870_v13 = vpop.f32.mrb[4].mxu0  ;;  %v941_v39 = vpop.f32.mrb[4].mxu1 }
 0x218   : > { %v945_v57 = vadd.f32 %v870_v13, %v755_v6  ;;  %v872_v58 = vpop.f32.mrb[5].mxu0  ;;  %v4892_v61 = vpop.f32.mrb[5].mxu1  ;;  %v962_v24 = vadd.f32 %v6999_v54, %v941_v39 }
 0x219   : > { %v955_v29 = vadd.f32 %v953_v50, %v872_v58  ;;  %v4185_v61 = vld [vmem:[%s8835_s2 + $0x180] sm:$0xff] }
 0x21a   : > { %v4125_v14 = vmul.f32 -1.442695, %v945_v57 }
 0x21b   : > { %v4126_v31 = vmul.f32 -1.442695, %v955_v29  ;;  %v4187_v29 = vld [vmem:[%s8835_s2 + $0x190] sm:$0xff] }
 0x21c   : > { %6278 = vpow2.f32 %v4125_v14  ;;  %v4188_v14 = vld [vmem:[%s8835_s2 + $0x198] sm:$0xff] }
 0x21d   : > { %6280 = vpow2.f32 %v4126_v31  ;;  %v4192_v31 = vld [vmem:[%s8835_s2 + $0x1b8] sm:$0xff] }
 0x226   : > { %v6279_v43 = vpop.eup %6278 }
 0x227   : > { %v949_v4 = vadd.f32 1.0, %v6279_v43  ;;  %v6281_v10 = vpop.eup %6280  ;;  %v4195_v43 = vld [vmem:[%s8835_s2 + $0x1d0] sm:$0xff] }
 0x228   : > { %v959_v16 = vadd.f32 1.0, %v6281_v10  ;;  %v7310_v10 = vpack.c.bf16 %v4188_v14, %v4185_v61  ;;  %v4206_v61 = vld [vmem:[%s8835_s2 + $0x228] sm:$0xff]  ;;  %v4205_v14 = vld [vmem:[%s8835_s2 + $0x220] sm:$0xff] }
 0x229   : > { %6282 = vrcp.f32 %v949_v4 }
 0x22a   : > { %6284 = vrcp.f32 %v959_v16 }
 0x233   : > { %v6283_v45 = vpop.eup %6282 }
 0x234   : > { %v963_v53 = vmul.f32 %v6283_v45, %v962_v24  ;;  %v6285_v34 = vpop.eup %6284  ;;  %v7317_v24 = vpack.c.bf16 %v4195_v43, %v4192_v31  ;;  %v4193_v45 = vld [vmem:[%s8835_s2 + $0x1c0] sm:$0xff] }
 0x235   : > { %v968_v5 = vsub.f32 1.0, %v6285_v34  ;;  %v970_v6 = vmul.f32 %v6285_v34, %v7012_v44  ;;  %v1194_v34 = vrot.slane %v7282_v51, 4  ;;  %v4213_v31 = vld [vmem:[%s8835_s2 + $0x260] sm:$0xff] }
 0x236   : > { %v966_v23 = vadd.f32 %v964_v35, %v963_v53  ;;  %v4194_v35 = vld [vmem:[%s8835_s2 + $0x1c8] sm:$0xff]  ;;  %v4196_v53 = vld [vmem:[%s8835_s2 + $0x1d8] sm:$0xff] }
 0x237   : > { %v1100_v27 = vpop.f32.mrb[6].mxu0  ;;  %v1171_v40 = vpop.f32.mrb[6].mxu1 }
 0x238   : > { %6286 = vtanh.f32 %v966_v23  ;;  %v1175_v52 = vadd.f32 %v1100_v27, %v7282_v51  ;;  %v1102_v0 = vpop.f32.mrb[7].mxu0  ;;  %v4927_v3 = vpop.f32.mrb[7].mxu1  ;;  %v4198_v27 = vld [vmem:[%s8835_s2 + $0x1e8] sm:$0xff]  ;;  %v4204_v51 = vld [vmem:[%s8835_s2 + $0x218] sm:$0xff] }
 0x239   : > { %v1185_v41 = vadd.f32 %v1183_v49, %v1102_v0  ;;  %v4201_v49 = vld [vmem:[%s8835_s2 + $0x200] sm:$0xff]  ;;  %v7340_v0 = vpack.c.bf16 %v4194_v35, %v4191_v22  ;;  %v7342_v3 = vpack.c.bf16 %v4196_v53, %v4193_v45  ;;  %v4212_v45 = vld [vmem:[%s8835_s2 + $0x258] sm:$0xff]  ;;  %v4211_v53 = vld [vmem:[%s8835_s2 + $0x250] sm:$0xff] }
 0x23a   : > { %v4177_v25 = vmul.f32 -1.442695, %v1175_v52  ;;  %v4209_v22 = vld [vmem:[%s8835_s2 + $0x240] sm:$0xff] }
 0x23b   : > { %v4178_v47 = vmul.f32 -1.442695, %v1185_v41  ;;  %v1192_v41 = vadd.f32 %v7010_v42, %v1171_v40  ;;  %v4202_v40 = vld [vmem:[%s8835_s2 + $0x208] sm:$0xff] }
 0x23c   : > { %6288 = vpow2.f32 %v4177_v25  ;;  %v4197_v25 = vld [vmem:[%s8835_s2 + $0x1e0] sm:$0xff] }
 0x23d   : > { %6290 = vpow2.f32 %v4178_v47  ;;  %v7351_v47 = vpack.c.bf16 %v4201_v49, %v4198_v27  ;;  %v4214_v27 = vld [vmem:[%s8835_s2 + $0x268] sm:$0xff]  ;;  %v4216_v49 = vld [vmem:[%s8835_s2 + $0x278] sm:$0xff] }
 0x242   : > { %v6287_v36 = vpop.eup %6286 }
 0x243   : > { %v969_v63 = vmul.f32 %v6287_v36, %v968_v5  ;;  %v4200_v5 = vld [vmem:[%s8835_s2 + $0x1f8] sm:$0xff] }
 0x245   : > { %v971_v13 = vadd.f32 %v970_v6, %v969_v63  ;;  %v4207_v63 = vld [vmem:[%s8835_s2 + $0x230] sm:$0xff] }
 0x246   : > { %v6289_v39 = vpop.eup %6288 }
 0x247   : > { %v977_v50 = vsel %vm976_vm3, %v971_v13, %v7012_v44  ;;  %v1179_v57 = vadd.f32 1.0, %v6289_v39  ;;  %v4190_v44 = vld [vmem:[%s8835_s2 + $0x1a8] sm:$0xff]  ;;  %v6291_v4 = vpop.eup %6290  ;;  %v7373_v13 = vpack.c.bf16 %v4200_v5, %v4197_v25  ;;  %v7375_v39 = vpack.c.bf16 %v4202_v40, %v4199_v32 }
 0x248   : > { %978 = vst [vmem:[#allocation2] sm:$0x3] %v977_v50  ;;  %v979_v58 = vpack.c.bf16 %v977_v50, %v977_v50  ;;  %v7312_v16 = vpack.c.bf16 %v4190_v44, %v4187_v29  ;;  %v1189_v52 = vadd.f32 1.0, %v6291_v4  ;;  %v4203_v50 = vld [vmem:[%s8835_s2 + $0x210] sm:$0xff]  ;;  %v4208_v29 = vld [vmem:[%s8835_s2 + $0x238] sm:$0xff]  ;;  %v4210_v44 = vld [vmem:[%s8835_s2 + $0x248] sm:$0xff]  ;;  %v7437_v25 = vpack.c.bf16 %v4212_v45, %v4209_v22 }
 0x249   : > { %6292 = vrcp.f32 %v1179_v57  ;;  %v7407_v43 = vpack.c.bf16 %v4206_v61, %v4203_v50  ;;  %v7409_v4 = vpack.c.bf16 %v4208_v29, %v4205_v14  ;;  %v7416_v35 = vpack.c.bf16 %v4213_v31, %v4210_v44  ;;  %v4218_v40 = vld [vmem:[%s8835_s2 + $0x288] sm:$0xff]  ;;  %v4221_v29 = vld [vmem:[%s8835_s2 + $0x2a0] sm:$0xff]  ;;  %v4224_v22 = vld [vmem:[%s8835_s2 + $0x2b8] sm:$0xff] }
 0x24a   : > { %4127 = vst [vmem:[%s6479_s27 + $0x1] sm:$0x1] %v979_v58  ;;  %6294 = vrcp.f32 %v1189_v52  ;;  %v7382_v58 = vpack.c.bf16 %v4207_v63, %v4204_v51  ;;  %v4219_v52 = vld [vmem:[%s8835_s2 + $0x290] sm:$0xff]  ;;  %v4220_v51 = vld [vmem:[%s8835_s2 + $0x298] sm:$0xff]  ;;  %v4222_v63 = vld [vmem:[%s8835_s2 + $0x2a8] sm:$0xff] }
 0x24b   : > { %v7446_v32 = vpack.c.bf16 %v4219_v52, %v4216_v49  ;;  %v4223_v45 = vld [vmem:[%s8835_s2 + $0x2b0] sm:$0xff]  ;;  %v4228_v52 = vld [vmem:[%s8835_s2 + $0x2d8] sm:$0xff] }
 0x24f   : > { %v7328_v23 = vld [vmem:[#allocation2] sm:$0x3] }
 0x250   : > { %1328 = vmatmul.mubr.f32.vlgmr.msra.gmra.mrb[8].mxu0 %v7328_v23  ;;  %4961 = vmatmul.mubr.f32.vlgmr.msra.gmra.mrb[8].mxu1 %v7328_v23 }
 0x251   : > { %5631 = vmatpush1.bf16.msra.mxu0 %v7310_v10  ;;  %5662 = vmatpush3.bf16.msra.mxu1 %v7312_v16 }
 0x252   : > { %5633 = vmatprep.subr.bf16.mxu0 %v7317_v24  ;;  %5663 = vmatprep.subr.bf16.mxu1 %v6431_v8 }
 0x253   : > { %v6293_v36 = vpop.eup %6292  ;;  %1557 = vmatprep.mubr.f32.mxu0 %v6432_v9  ;;  %4995 = vmatprep.mubr.msk.f32.mxu1 %vm6433_vm0, %v6432_v9 }
 0x254   : > { %v1193_v6 = vmul.f32 %v6293_v36, %v1192_v41  ;;  %v7439_v41 = vpack.c.bf16 %v4214_v27, %v4211_v53  ;;  %v6295_v5 = vpop.eup %6294  ;;  %v4217_v36 = vld [vmem:[%s8835_s2 + $0x280] sm:$0xff]  ;;  %v4226_v53 = vld [vmem:[%s8835_s2 + $0x2c8] sm:$0xff] }
 0x255   : > { %5635 = vmatpush1.bf16.msra.mxu0 %v7340_v0  ;;  %5665 = vmatpush3.bf16.msra.mxu1 %v7342_v3  ;;  %v1198_v50 = vsub.f32 1.0, %v6295_v5  ;;  %v7467_v14 = vpack.c.bf16 %v4220_v51, %v4217_v36  ;;  %v1200_v49 = vmul.f32 %v6295_v5, %v7055_v19  ;;  %v7494_v36 = vpack.c.bf16 %v4224_v22, %v4221_v29  ;;  %v4227_v5 = vld [vmem:[%s8835_s2 + $0x2d0] sm:$0xff] }
 0x256   : > { %v1196_v57 = vadd.f32 %v1194_v34, %v1193_v6  ;;  %5637 = vmatprep.subr.bf16.mxu0 %v7351_v47  ;;  %5666 = vmatprep.subr.bf16.mxu1 %v6431_v8  ;;  %v4215_v34 = vld [vmem:[%s8835_s2 + $0x270] sm:$0xff]  ;;  %v4225_v6 = vld [vmem:[%s8835_s2 + $0x2c0] sm:$0xff]  ;;  %v7496_v51 = vpack.c.bf16 %v4226_v53, %v4223_v45 }
 0x257   : > { %v7465_v61 = vpack.c.bf16 %v4218_v40, %v4215_v34  ;;  %v7474_v31 = vpack.c.bf16 %v4225_v6, %v4222_v63  ;;  %v4231_v34 = vld [vmem:[%s8835_s2 + $0x2f0] sm:$0xff]  ;;  %v4230_v6 = vld [vmem:[%s8835_s2 + $0x2e8] sm:$0xff] }
 0x258   : > { %6296 = vtanh.f32 %v1196_v57  ;;  %v1204_v57 = vstv %s1203_s29  ;;  %v7503_v63 = vpack.c.bf16 %v4231_v34, %v4228_v52  ;;  %v7517_v22 = vpack.c.bf16 %v4230_v6, %v4227_v5  ;;  %s2351_s29 = scalar_select %p2350_p0, 1, 0 }
 0x259   : > { %5639 = vmatpush1.bf16.msra.mxu0 %v7373_v13  ;;  %5668 = vmatpush3.bf16.msra.mxu1 %v7375_v39  ;;  %vm1205_vm4 = vcmp.eq.s32.totalorder %v1204_v57, 1  ;;  %v4232_v57 = vld [vmem:[%s8835_s2 + $0x2f8] sm:$0xff] }
 0x25a   : > { %5641 = vmatprep.subr.bf16.mxu0 %v7382_v58  ;;  %5669 = vmatprep.subr.bf16.mxu1 %v6431_v8 }
 0x25d   : > { %5643 = vmatpush1.bf16.msra.mxu0 %v7407_v43  ;;  %5671 = vmatpush3.bf16.msra.mxu1 %v7409_v4 }
 0x25e   : > { %5645 = vmatprep.subr.bf16.mxu0 %v7416_v35  ;;  %5672 = vmatprep.subr.bf16.mxu1 %v6431_v8 }
 0x261   : > { %5647 = vmatpush1.bf16.msra.mxu0 %v7437_v25  ;;  %5674 = vmatpush3.bf16.msra.mxu1 %v7439_v41 }
 0x262   : > { %v6297_v44 = vpop.eup %6296  ;;  %5649 = vmatprep.subr.bf16.mxu0 %v7446_v32  ;;  %5675 = vmatprep.subr.bf16.mxu1 %v6431_v8 }
 0x263   : > { %v1199_v27 = vmul.f32 %v6297_v44, %v1198_v50  ;;  %v4229_v50 = vld [vmem:[%s8835_s2 + $0x2e0] sm:$0xff] }
 0x264   : > { %v7519_v45 = vpack.c.bf16 %v4232_v57, %v4229_v50 }
 0x265   : > { %v1201_v40 = vadd.f32 %v1200_v49, %v1199_v27  ;;  %5651 = vmatpush1.bf16.msra.mxu0 %v7465_v61  ;;  %5677 = vmatpush3.bf16.msra.mxu1 %v7467_v14 }
 0x266   : > { %5653 = vmatprep.subr.bf16.mxu0 %v7474_v31  ;;  %5678 = vmatprep.subr.bf16.mxu1 %v6431_v8 }
 0x267   : > { %v1206_v29 = vsel %vm1205_vm4, %v1201_v40, %v7055_v19 }
 0x268   : > { %1207 = vst [vmem:[#allocation2 + $0x2] sm:$0x3] %v1206_v29  ;;  %v1208_v44 = vpack.c.bf16 %v1206_v29, %v1206_v29 }
 0x269   : > { %5655 = vmatpush1.bf16.msra.mxu0 %v7494_v36  ;;  %5680 = vmatpush3.bf16.msra.mxu1 %v7496_v51 }
 0x26a   : > { %4179 = vst [vmem:[%s6484_s6 + $0x6] sm:$0x1] %v1208_v44  ;;  %5657 = vmatprep.subr.bf16.mxu0 %v7503_v63  ;;  %5681 = vmatprep.subr.bf16.mxu1 %v6431_v8 }
 0x26d   : > { %5659 = vmatpush1.bf16.msra.mxu0 %v7517_v22  ;;  %5683 = vmatpush3.bf16.msra.mxu1 %v7519_v45 }
 0x26e   : > { %5685 = vmatprep.subr.bf16.mxu0 %v7072_v30  ;;  %5716 = vmatprep.subr.bf16.mxu1 %v6431_v8  ;;  %v1676_v30 = vld [vmem:[%s8835_s2 + $0x10] sm:$0xff] }
 0x26f   : > { %v7528_v19 = vld [vmem:[#allocation2 + $0x2] sm:$0x3] }
 0x270   : > { %1558 = vmatmul.mubr.f32.vlgmr.msra.gmra.mrb[10].mxu0 %v7528_v19  ;;  %4996 = vmatmul.mubr.f32.vlgmr.msra.gmra.mrb[10].mxu1 %v7528_v19 }
 0x271   : > { %5687 = vmatpush1.bf16.msra.mxu0 %v7080_v46  ;;  %1786 = vmatprep.mubr.f32.mxu0 %v6432_v9  ;;  %v1679_v46 = vld [vmem:[%s8835_s2 + $0x28] sm:$0xff] }
 0x272   : > { %5689 = vmatprep.subr.bf16.mxu0 %v7090_v1  ;;  %5030 = vmatprep.mubr.msk.f32.mxu1 %vm6433_vm0, %v6432_v9  ;;  %v7557_v1 = vpack.c.bf16 %v1679_v46, %v1676_v30 }
 0x274   : > { %5718 = vmatpush3.bf16.msra.mxu1 %v7557_v1 }
 0x275   : > { %5691 = vmatpush1.bf16.msra.mxu0 %v7098_v20  ;;  %5719 = vmatprep.subr.bf16.mxu1 %v6431_v8  ;;  %v1682_v20 = vld [vmem:[%s8835_s2 + $0x40] sm:$0xff] }
 0x276   : > { %5693 = vmatprep.subr.bf16.mxu0 %v7108_v48  ;;  %v1685_v48 = vld [vmem:[%s8835_s2 + $0x58] sm:$0xff] }
 0x279   : > { %5695 = vmatpush1.bf16.msra.mxu0 %v7119_v12  ;;  %v7567_v12 = vpack.c.bf16 %v1685_v48, %v1682_v20  ;;  %v1434_v48 = vstv %s1433_s10 }
 0x27a   : > { %5697 = vmatprep.subr.bf16.mxu0 %v7135_v56  ;;  %vm1435_vm5 = vcmp.eq.s32.totalorder %v1434_v48, 1  ;;  %v2159_v48 = vld [vmem:[%s8835_s2 + $0xd0] sm:$0xff] }
 0x27b   : > { %5721 = vmatpush3.bf16.msra.mxu1 %v7567_v12 }
 0x27c   : > { %5722 = vmatprep.subr.bf16.mxu1 %v6431_v8 }
 0x27d   : > { %5699 = vmatpush1.bf16.msra.mxu0 %v7147_v7 }
 0x27e   : > { %5701 = vmatprep.subr.bf16.mxu0 %v7163_v38 }
 0x27f   : > { %5724 = vmatpush3.bf16.msra.mxu1 %v7125_v26  ;;  %v4180_v26 = vld [vmem:[%s6489_s9 + $0x6] sm:$0x7] }
 0x280   : > { %5725 = vmatprep.subr.bf16.mxu1 %v6431_v8  ;;  %v1214_v56 = vunpack.c.l.bf16 %v4180_v26 }
 0x281   : > { %5703 = vmatpush1.bf16.msra.mxu0 %v7175_v11 }
 0x282   : > { %5705 = vmatprep.subr.bf16.mxu0 %v7191_v33  ;;  %v1412_v38 = vrot.slane %v1214_v56, 2  ;;  %v1423_v53 = vrot.slane %v1214_v56, 4 }
 0x283   : > { %5727 = vmatpush3.bf16.msra.mxu1 %v7153_v15 }
 0x284   : > { %5728 = vmatprep.subr.bf16.mxu1 %v6431_v8 }
 0x285   : > { %5707 = vmatpush1.bf16.msra.mxu0 %v7203_v21 }
 0x286   : > { %5709 = vmatprep.subr.bf16.mxu0 %v7219_v37 }
 0x287   : > { %5730 = vmatpush3.bf16.msra.mxu1 %v7181_v17 }
 0x288   : > { %5731 = vmatprep.subr.bf16.mxu1 %v6431_v8 }
 0x289   : > { %5711 = vmatpush1.bf16.msra.mxu0 %v7231_v55 }
 0x28a   : > { %5713 = vmatprep.subr.bf16.mxu0 %v7247_v28 }
 0x28b   : > { %5733 = vmatpush3.bf16.msra.mxu1 %v7209_v60 }
 0x28c   : > { %5734 = vmatprep.subr.bf16.mxu1 %v6431_v8 }
 0x28d   : > { %5715 = vmatpush1.bf16.msra.mxu0 %v7259_v59 }
 0x28e   : > { %5741 = vmatprep.subr.bf16.mxu0 %v7275_v62 }
 0x28f   : > { %5736 = vmatpush3.bf16.msra.mxu1 %v7237_v2 }
 0x290   : > { %5737 = vmatprep.subr.bf16.mxu1 %v6431_v8 }
 0x293   : > { %5739 = vmatpush3.bf16.msra.mxu1 %v7265_v18  ;;  %v4184_v18 = vld [vmem:[%s6494_s12 + $0xf] sm:$0x7] }
 0x294   : > { %5772 = vmatprep.subr.bf16.mxu1 %v6431_v8  ;;  %v1444_v49 = vunpack.c.l.bf16 %v4184_v18  ;;  %v2147_v18 = vld [vmem:[%s8835_s2 + $0x70] sm:$0xff] }
 0x296   : > { %v1642_v6 = vrot.slane %v1444_v49, 2 }
 0x323   : > { %v1329_v7 = vpop.f32.mrb[8].mxu0  ;;  %v1400_v15 = vpop.f32.mrb[8].mxu1 }
 0x324   : > { %v1404_v11 = vadd.f32 %v1329_v7, %v1214_v56  ;;  %v1331_v17 = vpop.f32.mrb[9].mxu0  ;;  %v4962_v33 = vpop.f32.mrb[9].mxu1  ;;  %v1421_v62 = vadd.f32 %v6999_v54, %v1400_v15 }
 0x325   : > { %v1414_v60 = vadd.f32 %v1412_v38, %v1331_v17 }
 0x326   : > { %v4181_v21 = vmul.f32 -1.442695, %v1404_v11 }
 0x327   : > { %v4182_v37 = vmul.f32 -1.442695, %v1414_v60 }
 0x328   : > { %6298 = vpow2.f32 %v4181_v21 }
 0x329   : > { %6300 = vpow2.f32 %v4182_v37 }
 0x332   : > { %v6299_v55 = vpop.eup %6298 }
 0x333   : > { %v1408_v2 = vadd.f32 1.0, %v6299_v55  ;;  %v6301_v28 = vpop.eup %6300  ;;  %v1653_v55 = vrot.slane %v1444_v49, 4 }
 0x334   : > { %v1418_v59 = vadd.f32 1.0, %v6301_v28 }
 0x335   : > { %6302 = vrcp.f32 %v1408_v2 }
 0x336   : > { %6304 = vrcp.f32 %v1418_v59  ;;  %v2148_v59 = vld [vmem:[%s8835_s2 + $0x78] sm:$0xff] }
 0x33f   : > { %v6303_v27 = vpop.eup %6302 }
 0x340   : > { %v1422_v52 = vmul.f32 %v6303_v27, %v1421_v62  ;;  %v6305_v54 = vpop.eup %6304 }
 0x341   : > { %v1427_v20 = vsub.f32 1.0, %v6305_v54  ;;  %v1429_v7 = vmul.f32 %v6305_v54, %v7328_v23 }
 0x342   : > { %v1425_v34 = vadd.f32 %v1423_v53, %v1422_v52  ;;  %v2150_v53 = vld [vmem:[%s8835_s2 + $0x88] sm:$0xff]  ;;  %v2155_v52 = vld [vmem:[%s8835_s2 + $0xb0] sm:$0xff] }
 0x343   : > { %v1559_v40 = vpop.f32.mrb[10].mxu0  ;;  %v1630_v5 = vpop.f32.mrb[10].mxu1  ;;  %v7706_v27 = vpack.c.bf16 %v2150_v53, %v2147_v18 }
 0x344   : > { %6306 = vtanh.f32 %v1425_v34  ;;  %v1634_v50 = vadd.f32 %v1559_v40, %v1444_v49  ;;  %v1561_v57 = vpop.f32.mrb[11].mxu0  ;;  %v4997_v29 = vpop.f32.mrb[11].mxu1  ;;  %v2152_v49 = vld [vmem:[%s8835_s2 + $0x98] sm:$0xff]  ;;  %v2151_v40 = vld [vmem:[%s8835_s2 + $0x90] sm:$0xff] }
 0x345   : > { %v1644_v30 = vadd.f32 %v1642_v6, %v1561_v57  ;;  %v7716_v34 = vpack.c.bf16 %v2155_v52, %v2152_v49  ;;  %v2153_v6 = vld [vmem:[%s8835_s2 + $0xa0] sm:$0xff]  ;;  %v2156_v57 = vld [vmem:[%s8835_s2 + $0xb8] sm:$0xff] }
 0x346   : > { %v4233_v44 = vmul.f32 -1.442695, %v1634_v50  ;;  %v7734_v29 = vpack.c.bf16 %v2156_v57, %v2153_v6 }
 0x347   : > { %v4234_v46 = vmul.f32 -1.442695, %v1644_v30  ;;  %v2161_v30 = vld [vmem:[%s8835_s2 + $0xe0] sm:$0xff] }
 0x348   : > { %6308 = vpow2.f32 %v4233_v44  ;;  %v2158_v44 = vld [vmem:[%s8835_s2 + $0xc8] sm:$0xff] }
 0x349   : > { %6310 = vpow2.f32 %v4234_v46  ;;  %v7744_v54 = vpack.c.bf16 %v2161_v30, %v2158_v44  ;;  %v2157_v46 = vld [vmem:[%s8835_s2 + $0xc0] sm:$0xff] }
 0x34e   : > { %v6307_v26 = vpop.eup %6306 }
 0x34f   : > { %v1428_v56 = vmul.f32 %v6307_v26, %v1427_v20  ;;  %v2160_v20 = vld [vmem:[%s8835_s2 + $0xd8] sm:$0xff] }
 0x350   : > { %v7756_v26 = vpack.c.bf16 %v2160_v20, %v2157_v46 }
 0x351   : > { %v1430_v15 = vadd.f32 %v1429_v7, %v1428_v56  ;;  %v2162_v56 = vld [vmem:[%s8835_s2 + $0xe8] sm:$0xff] }
 0x352   : > { %v6309_v38 = vpop.eup %6308  ;;  %v7762_v7 = vpack.c.bf16 %v2162_v56, %v2159_v48  ;;  %v4240_v48 = vld [vmem:[%s6494_s12 + $0xc] sm:$0x7]  ;;  %v7865_v56 = vld [vmem:[%s8836_s3] ss:$0 sm:$0xff] }
 0x353   : > { %v1436_v11 = vsel %vm1435_vm5, %v1430_v15, %v7328_v23  ;;  %v1638_v17 = vadd.f32 1.0, %v6309_v38  ;;  %v6311_v21 = vpop.eup %6310  ;;  %v1651_v23 = vadd.f32 %v7010_v42, %v1630_v5  ;;  %v2154_v5 = vld [vmem:[%s8835_s2 + $0xa8] sm:$0xff]  ;;  %v2164_v15 = vld [vmem:[%s8835_s2 + $0xf8] sm:$0xff]  ;;  %v2167_v38 = vld [vmem:[%s8835_s2 + $0x110] sm:$0xff] }
 0x354   : > { %1437 = vst [vmem:[#allocation2] sm:$0x3] %v1436_v11  ;;  %v1438_v33 = vpack.c.bf16 %v1436_v11, %v1436_v11  ;;  %v1648_v37 = vadd.f32 1.0, %v6311_v21  ;;  %v7728_v50 = vpack.c.bf16 %v2154_v5, %v2151_v40  ;;  %v7772_v11 = vpack.c.bf16 %v2167_v38, %v2164_v15  ;;  %v2165_v21 = vld [vmem:[%s8835_s2 + $0x100] sm:$0xff] }
 0x355   : > { %6312 = vrcp.f32 %v1638_v17  ;;  %v2163_v17 = vld [vmem:[%s8835_s2 + $0xf0] sm:$0xff] }
 0x356   : > { %4183 = vst [vmem:[%s6479_s27 + $0x2] sm:$0x1] %v1438_v33  ;;  %6314 = vrcp.f32 %v1648_v37  ;;  %v2166_v33 = vld [vmem:[%s8835_s2 + $0x108] sm:$0xff] }
 0x357   : > { %v7784_v37 = vpack.c.bf16 %v2166_v33, %v2163_v17  ;;  %v7868_v33 = vunpack.c.l.bf16 %v4240_v48 }
 0x35b   : > { %v7592_v60 = vld [vmem:[#allocation2] sm:$0x3] }
 0x35c   : > { %1787 = vmatmul.mubr.f32.vlgmr.msra.gmra.mrb[12].mxu0 %v7592_v60  ;;  %5031 = vmatmul.mubr.f32.vlgmr.msra.gmra.mrb[12].mxu1 %v7592_v60 }
 0x35d   : > { %5743 = vmatpush1.bf16.msra.mxu0 %v7310_v10  ;;  %5774 = vmatpush3.bf16.msra.mxu1 %v7312_v16 }
 0x35e   : > { %5745 = vmatprep.subr.bf16.mxu0 %v7317_v24  ;;  %5775 = vmatprep.subr.bf16.mxu1 %v6431_v8  ;;  %v1663_v24 = vstv %s1662_s11  ;;  %s1890_s11 = sadd.s32 3, %s6472_s20 }
 0x35f   : > { %v6313_v2 = vpop.eup %6312  ;;  %2016 = vmatprep.mubr.f32.mxu0 %v6432_v9  ;;  %5065 = vmatprep.mubr.msk.f32.mxu1 %vm6433_vm0, %v6432_v9  ;;  %vm1664_vm6 = vcmp.eq.s32.totalorder %v1663_v24, 1  ;;  %v2171_v24 = vld [vmem:[%s8835_s2 + $0x130] sm:$0xff]  ;;  %p1891_p12 = scmp.lt.s32.totalorder %s1890_s11, 12  ;;  %p7992_p13 = scmp.ge.s32.totalorder %s1890_s11, 4 }
 0x360   : > { %v1652_v28 = vmul.f32 %v6313_v2, %v1651_v23  ;;  %v6315_v42 = vpop.eup %6314  ;;  %v2168_v23 = vld [vmem:[%s8835_s2 + $0x118] sm:$0xff]  ;;  %v2170_v2 = vld [vmem:[%s8835_s2 + $0x128] sm:$0xff] }
 0x361   : > { %5747 = vmatpush1.bf16.msra.mxu0 %v7340_v0  ;;  %5777 = vmatpush3.bf16.msra.mxu1 %v7342_v3  ;;  %v1657_v16 = vsub.f32 1.0, %v6315_v42  ;;  %s1892_s13 = scalar_select %p1891_p12, 1, 0 }
 0x362   : > { %v1655_v10 = vadd.f32 %v1653_v55, %v1652_v28  ;;  %5749 = vmatprep.subr.bf16.mxu0 %v7351_v47  ;;  %5778 = vmatprep.subr.bf16.mxu1 %v6431_v8  ;;  %v1659_v47 = vmul.f32 %v6315_v42, %v7528_v19  ;;  %v7790_v55 = vpack.c.bf16 %v2168_v23, %v2165_v21  ;;  %v2173_v28 = vld [vmem:[%s8835_s2 + $0x140] sm:$0xff]  ;;  %s2121_s24 = scalar_select %p7992_p13, 1, 0 }
 0x363   : > { %v2169_v42 = vld [vmem:[%s8835_s2 + $0x120] sm:$0xff] }
 0x364   : > { %6316 = vtanh.f32 %v1655_v10  ;;  %v7800_v10 = vpack.c.bf16 %v2173_v28, %v2170_v2 }
 0x365   : > { %5751 = vmatpush1.bf16.msra.mxu0 %v7373_v13  ;;  %5780 = vmatpush3.bf16.msra.mxu1 %v7375_v39 }
 0x366   : > { %5753 = vmatprep.subr.bf16.mxu0 %v7382_v58  ;;  %5781 = vmatprep.subr.bf16.mxu1 %v6431_v8 }
 0x369   : > { %5755 = vmatpush1.bf16.msra.mxu0 %v7407_v43  ;;  %5783 = vmatpush3.bf16.msra.mxu1 %v7409_v4  ;;  %v2134_v4 = vld [vmem:[%s8835_s2 + $0x8] sm:$0xff] }
 0x36a   : > { %5757 = vmatprep.subr.bf16.mxu0 %v7416_v35  ;;  %5784 = vmatprep.subr.bf16.mxu1 %v6431_v8  ;;  %v2137_v35 = vld [vmem:[%s8835_s2 + $0x20] sm:$0xff] }
 0x36d   : > { %5759 = vmatpush1.bf16.msra.mxu0 %v7437_v25  ;;  %5786 = vmatpush3.bf16.msra.mxu1 %v7439_v41  ;;  %v7653_v25 = vpack.c.bf16 %v2137_v35, %v2134_v4  ;;  %v2133_v41 = vld [vmem:[%s8835_s2] sm:$0xff]  ;;  %v2175_v4 = vld [vmem:[%s8835_s2 + $0x150] sm:$0xff]  ;;  %v2178_v35 = vld [vmem:[%s8835_s2 + $0x168] sm:$0xff] }
 0x36e   : > { %v6317_v0 = vpop.eup %6316  ;;  %5761 = vmatprep.subr.bf16.mxu0 %v7446_v32  ;;  %5787 = vmatprep.subr.bf16.mxu1 %v6431_v8  ;;  %v2136_v32 = vld [vmem:[%s8835_s2 + $0x18] sm:$0xff] }
 0x36f   : > { %v1658_v3 = vmul.f32 %v6317_v0, %v1657_v16  ;;  %v2172_v16 = vld [vmem:[%s8835_s2 + $0x138] sm:$0xff] }
 0x370   : > { %v7812_v0 = vpack.c.bf16 %v2172_v16, %v2169_v42  ;;  %v2101_v42 = vrot.slane %v7868_v33, 2 }
 0x371   : > { %v1660_v13 = vadd.f32 %v1659_v47, %v1658_v3  ;;  %5763 = vmatpush1.bf16.msra.mxu0 %v7465_v61  ;;  %5789 = vmatpush3.bf16.msra.mxu1 %v7467_v14  ;;  %v7661_v61 = vpack.c.bf16 %v2136_v32, %v2133_v41  ;;  %v2140_v14 = vld [vmem:[%s8835_s2 + $0x38] sm:$0xff]  ;;  %v2174_v3 = vld [vmem:[%s8835_s2 + $0x148] sm:$0xff]  ;;  %v2177_v41 = vld [vmem:[%s8835_s2 + $0x160] sm:$0xff]  ;;  %v7840_v32 = vpack.c.bf16 %v2178_v35, %v2175_v4 }
 0x372   : > { %5765 = vmatprep.subr.bf16.mxu0 %v7474_v31  ;;  %5790 = vmatprep.subr.bf16.mxu1 %v6431_v8  ;;  %v2143_v31 = vld [vmem:[%s8835_s2 + $0x50] sm:$0xff]  ;;  %v7818_v47 = vpack.c.bf16 %v2174_v3, %v2171_v24 }
 0x373   : > { %v1665_v39 = vsel %vm1664_vm6, %v1660_v13, %v7528_v19  ;;  %v2149_v19 = vld [vmem:[%s8835_s2 + $0x80] sm:$0xff]  ;;  %v2176_v13 = vld [vmem:[%s8835_s2 + $0x158] sm:$0xff] }
 0x374   : > { %1666 = vst [vmem:[#allocation2 + $0x2] sm:$0x3] %v1665_v39  ;;  %v1667_v58 = vpack.c.bf16 %v1665_v39, %v1665_v39  ;;  %v2179_v39 = vld [vmem:[%s8835_s2 + $0x170] sm:$0xff] }
 0x375   : > { %5767 = vmatpush1.bf16.msra.mxu0 %v7494_v36  ;;  %5792 = vmatpush3.bf16.msra.mxu1 %v7496_v51  ;;  %v7671_v36 = vpack.c.bf16 %v2143_v31, %v2140_v14  ;;  %v2139_v51 = vld [vmem:[%s8835_s2 + $0x30] sm:$0xff]  ;;  %v2180_v14 = vld [vmem:[%s8835_s2 + $0x178] sm:$0xff] }
 0x376   : > { %4235 = vst [vmem:[%s6484_s6 + $0x5] sm:$0x1] %v1667_v58  ;;  %5769 = vmatprep.subr.bf16.mxu0 %v7503_v63  ;;  %5793 = vmatprep.subr.bf16.mxu1 %v6431_v8  ;;  %v2142_v63 = vld [vmem:[%s8835_s2 + $0x48] sm:$0xff]  ;;  %v7828_v58 = vpack.c.bf16 %v2179_v39, %v2176_v13  ;;  %v7846_v31 = vpack.c.bf16 %v2180_v14, %v2177_v41  ;;  %v1893_v14 = vstv %s1892_s13 }
 0x377   : > { %vm1894_vm7 = vcmp.eq.s32.totalorder %v1893_v14, 1  ;;  %v4311_v14 = vld [vmem:[%s8835_s2 + $0x1f0] sm:$0xff] }
 0x379   : > { %5771 = vmatpush1.bf16.msra.mxu0 %v7517_v22  ;;  %5795 = vmatpush3.bf16.msra.mxu1 %v7519_v45  ;;  %v7679_v22 = vpack.c.bf16 %v2142_v63, %v2139_v51  ;;  %v2146_v45 = vld [vmem:[%s8835_s2 + $0x68] sm:$0xff]  ;;  %v4301_v63 = vld [vmem:[%s8835_s2 + $0x1a0] sm:$0xff] }
 0x37a   : > { %5828 = vmatprep.subr.bf16.mxu1 %v6431_v8  ;;  %5797 = vmatprep.subr.bf16.mxu0 %v7653_v25  ;;  %v4298_v51 = vld [vmem:[%s8835_s2 + $0x188] sm:$0xff] }
 0x37b   : > { %v7636_v43 = vld [vmem:[#allocation2 + $0x2] sm:$0x3] }
 0x37c   : > { %2017 = vmatmul.mubr.f32.vlgmr.msra.gmra.mrb[14].mxu0 %v7636_v43  ;;  %5066 = vmatmul.mubr.f32.vlgmr.msra.gmra.mrb[14].mxu1 %v7636_v43 }
 0x37d   : > { %5830 = vmatpush3.bf16.msra.mxu1 %v7557_v1  ;;  %2245 = vmatprep.mubr.f32.mxu0 %v6432_v9  ;;  %v7689_v1 = vpack.c.bf16 %v2149_v19, %v2146_v45  ;;  %v7856_v45 = vpack.c.bf16 %v4301_v63, %v4298_v51  ;;  %v4236_v19 = vld [vmem:[%s6489_s9 + $0x9] sm:$0x7] }
 0x37e   : > { %5831 = vmatprep.subr.bf16.mxu1 %v6431_v8  ;;  %5100 = vmatprep.mubr.msk.f32.mxu1 %vm6433_vm0, %v6432_v9 }
 0x37f   : > { %5799 = vmatpush1.bf16.msra.mxu0 %v7661_v61 }
 0x380   : > { %5801 = vmatprep.subr.bf16.mxu0 %v7671_v36 }
 0x381   : > { %5833 = vmatpush3.bf16.msra.mxu1 %v7567_v12  ;;  %v2145_v12 = vld [vmem:[%s8835_s2 + $0x60] sm:$0xff] }
 0x382   : > { %5834 = vmatprep.subr.bf16.mxu1 %v6431_v8  ;;  %v7700_v62 = vpack.c.bf16 %v2148_v59, %v2145_v12  ;;  %v1673_v12 = vunpack.c.l.bf16 %v4236_v19 }
 0x383   : > { %5803 = vmatpush1.bf16.msra.mxu0 %v7679_v22 }
 0x384   : > { %5805 = vmatprep.subr.bf16.mxu0 %v7689_v1  ;;  %v1871_v53 = vrot.slane %v1673_v12, 2  ;;  %v1882_v38 = vrot.slane %v1673_v12, 4 }
 0x385   : > { %5836 = vmatpush3.bf16.msra.mxu1 %v7706_v27 }
 0x386   : > { %5837 = vmatprep.subr.bf16.mxu1 %v6431_v8 }
 0x387   : > { %5807 = vmatpush1.bf16.msra.mxu0 %v7700_v62 }
 0x388   : > { %5809 = vmatprep.subr.bf16.mxu0 %v7716_v34 }
 0x389   : > { %5839 = vmatpush3.bf16.msra.mxu1 %v7734_v29 }
 0x38a   : > { %5840 = vmatprep.subr.bf16.mxu1 %v6431_v8 }
 0x38b   : > { %5811 = vmatpush1.bf16.msra.mxu0 %v7728_v50 }
 0x38c   : > { %5813 = vmatprep.subr.bf16.mxu0 %v7744_v54 }
 0x38d   : > { %5842 = vmatpush3.bf16.msra.mxu1 %v7762_v7 }
 0x38e   : > { %5843 = vmatprep.subr.bf16.mxu1 %v6431_v8 }
 0x38f   : > { %5815 = vmatpush1.bf16.msra.mxu0 %v7756_v26 }
 0x390   : > { %5817 = vmatprep.subr.bf16.mxu0 %v7772_v11 }
 0x391   : > { %5845 = vmatpush3.bf16.msra.mxu1 %v7790_v55 }
 0x392   : > { %5846 = vmatprep.subr.bf16.mxu1 %v6431_v8 }
 0x393   : > { %5819 = vmatpush1.bf16.msra.mxu0 %v7784_v37 }
 0x394   : > { %5821 = vmatprep.subr.bf16.mxu0 %v7800_v10 }
 0x395   : > { %5848 = vmatpush3.bf16.msra.mxu1 %v7818_v47 }
 0x396   : > { %5849 = vmatprep.subr.bf16.mxu1 %v6431_v8 }
 0x397   : > { %5823 = vmatpush1.bf16.msra.mxu0 %v7812_v0 }
 0x398   : > { %5825 = vmatprep.subr.bf16.mxu0 %v7828_v58 }
 0x399   : > { %5851 = vmatpush3.bf16.msra.mxu1 %v7846_v31 }
 0x39a   : > { %5884 = vmatprep.subr.bf16.mxu1 %v6431_v8 }
 0x39b   : > { %5827 = vmatpush1.bf16.msra.mxu0 %v7840_v32 }
 0x39c   : > { %5853 = vmatprep.subr.bf16.mxu0 %v7856_v45 }
 0x42f   : > { %v1788_v59 = vpop.f32.mrb[12].mxu0  ;;  %v1859_v18 = vpop.f32.mrb[12].mxu1 }
 0x430   : > { %v1863_v49 = vadd.f32 %v1788_v59, %v1673_v12  ;;  %v1790_v52 = vpop.f32.mrb[13].mxu0  ;;  %v5032_v40 = vpop.f32.mrb[13].mxu1  ;;  %v1880_v15 = vadd.f32 %v7865_v56, %v1859_v18 }
 0x431   : > { %v1873_v6 = vadd.f32 %v1871_v53, %v1790_v52  ;;  %v4297_v52 = vld [vmem:[%s8835_s2 + $0x180] sm:$0xff]  ;;  %v4300_v40 = vld [vmem:[%s8835_s2 + $0x198] sm:$0xff] }
 0x432   : > { %v4237_v5 = vmul.f32 -1.442695, %v1863_v49 }
 0x433   : > { %v4238_v57 = vmul.f32 -1.442695, %v1873_v6  ;;  %v4304_v6 = vld [vmem:[%s8835_s2 + $0x1b8] sm:$0xff] }
 0x434   : > { %6318 = vpow2.f32 %v4237_v5  ;;  %v4299_v5 = vld [vmem:[%s8835_s2 + $0x190] sm:$0xff] }
 0x435   : > { %6320 = vpow2.f32 %v4238_v57  ;;  %v4307_v57 = vld [vmem:[%s8835_s2 + $0x1d0] sm:$0xff] }
 0x436   : > { %v7903_v48 = vpack.c.bf16 %v4307_v57, %v4304_v6  ;;  %v4325_v6 = vld [vmem:[%s8835_s2 + $0x260] sm:$0xff] }
 0x43e   : > { %v6319_v44 = vpop.eup %6318 }
 0x43f   : > { %v1867_v30 = vadd.f32 1.0, %v6319_v44  ;;  %v6321_v46 = vpop.eup %6320 }
 0x440   : > { %v1877_v20 = vadd.f32 1.0, %v6321_v46 }
 0x441   : > { %6322 = vrcp.f32 %v1867_v30  ;;  %v7896_v30 = vpack.c.bf16 %v4300_v40, %v4297_v52  ;;  %v4318_v52 = vld [vmem:[%s8835_s2 + $0x228] sm:$0xff]  ;;  %v4317_v40 = vld [vmem:[%s8835_s2 + $0x220] sm:$0xff] }
 0x442   : > { %6324 = vrcp.f32 %v1877_v20  ;;  %v4303_v20 = vld [vmem:[%s8835_s2 + $0x1b0] sm:$0xff] }
 0x44b   : > { %v6323_v17 = vpop.eup %6322 }
 0x44c   : > { %v1881_v21 = vmul.f32 %v6323_v17, %v1880_v15  ;;  %v6325_v4 = vpop.eup %6324  ;;  %v4306_v15 = vld [vmem:[%s8835_s2 + $0x1c8] sm:$0xff]  ;;  %v4308_v17 = vld [vmem:[%s8835_s2 + $0x1d8] sm:$0xff] }
 0x44d   : > { %v1886_v41 = vsub.f32 1.0, %v6325_v4  ;;  %v1888_v19 = vmul.f32 %v6325_v4, %v7592_v60  ;;  %v2112_v4 = vrot.slane %v7868_v33, 4 }
 0x44e   : > { %v1884_v23 = vadd.f32 %v1882_v38, %v1881_v21  ;;  %v4305_v38 = vld [vmem:[%s8835_s2 + $0x1c0] sm:$0xff] }
 0x44f   : > { %v2018_v2 = vpop.f32.mrb[14].mxu0  ;;  %v2089_v28 = vpop.f32.mrb[14].mxu1 }
 0x450   : > { %6326 = vtanh.f32 %v1884_v23  ;;  %v2093_v16 = vadd.f32 %v2018_v2, %v7868_v33  ;;  %v2020_v24 = vpop.f32.mrb[15].mxu0  ;;  %v5067_v3 = vpop.f32.mrb[15].mxu1  ;;  %v4310_v23 = vld [vmem:[%s8835_s2 + $0x1e8] sm:$0xff]  ;;  %v4313_v2 = vld [vmem:[%s8835_s2 + $0x200] sm:$0xff]  ;;  %v4316_v33 = vld [vmem:[%s8835_s2 + $0x218] sm:$0xff] }
 0x451   : > { %v2103_v39 = vadd.f32 %v2101_v42, %v2020_v24  ;;  %v7928_v24 = vpack.c.bf16 %v4308_v17, %v4305_v38  ;;  %v4309_v3 = vld [vmem:[%s8835_s2 + $0x1e0] sm:$0xff]  ;;  %v4324_v38 = vld [vmem:[%s8835_s2 + $0x258] sm:$0xff]  ;;  %v4323_v17 = vld [vmem:[%s8835_s2 + $0x250] sm:$0xff] }
 0x452   : > { %v4289_v13 = vmul.f32 -1.442695, %v2093_v16  ;;  %v7926_v16 = vpack.c.bf16 %v4306_v15, %v4303_v20  ;;  %v4321_v20 = vld [vmem:[%s8835_s2 + $0x240] sm:$0xff] }
 0x453   : > { %v4290_v35 = vmul.f32 -1.442695, %v2103_v39 }
 0x454   : > { %6328 = vpow2.f32 %v4289_v13  ;;  %v7936_v13 = vld [vmem:[%s8836_s3 + $0x1] ss:$0 sm:$0xff] }
 0x455   : > { %6330 = vpow2.f32 %v4290_v35  ;;  %v2110_v39 = vadd.f32 %v7936_v13, %v2089_v28  ;;  %v7942_v35 = vpack.c.bf16 %v4313_v2, %v4310_v23  ;;  %v4314_v28 = vld [vmem:[%s8835_s2 + $0x208] sm:$0xff]  ;;  %v4328_v2 = vld [vmem:[%s8835_s2 + $0x278] sm:$0xff] }
 0x456   : > { %v4326_v23 = vld [vmem:[%s8835_s2 + $0x268] sm:$0xff] }
 0x45a   : > { %v6327_v51 = vpop.eup %6326 }
 0x45b   : > { %v1887_v63 = vmul.f32 %v6327_v51, %v1886_v41  ;;  %v4312_v41 = vld [vmem:[%s8835_s2 + $0x1f8] sm:$0xff] }
 0x45d   : > { %v1889_v12 = vadd.f32 %v1888_v19, %v1887_v63  ;;  %v4319_v63 = vld [vmem:[%s8835_s2 + $0x230] sm:$0xff] }
 0x45e   : > { %v6329_v59 = vpop.eup %6328 }
 0x45f   : > { %v1895_v18 = vsel %vm1894_vm7, %v1889_v12, %v7592_v60  ;;  %v2097_v53 = vadd.f32 1.0, %v6329_v59  ;;  %v4302_v60 = vld [vmem:[%s8835_s2 + $0x1a8] sm:$0xff]  ;;  %v6331_v44 = vpop.eup %6330  ;;  %v7964_v12 = vpack.c.bf16 %v4312_v41, %v4309_v3  ;;  %v7966_v59 = vpack.c.bf16 %v4314_v28, %v4311_v14 }
 0x460   : > { %1896 = vst [vmem:[#allocation2] sm:$0x3] %v1895_v18  ;;  %v1897_v49 = vpack.c.bf16 %v1895_v18, %v1895_v18  ;;  %v7898_v46 = vpack.c.bf16 %v4302_v60, %v4299_v5  ;;  %v2107_v42 = vadd.f32 1.0, %v6331_v44  ;;  %v4315_v18 = vld [vmem:[%s8835_s2 + $0x210] sm:$0xff]  ;;  %v4320_v5 = vld [vmem:[%s8835_s2 + $0x238] sm:$0xff]  ;;  %v4322_v60 = vld [vmem:[%s8835_s2 + $0x248] sm:$0xff]  ;;  %v8028_v3 = vpack.c.bf16 %v4324_v38, %v4321_v20 }
 0x461   : > { %6332 = vrcp.f32 %v2097_v53  ;;  %v7998_v57 = vpack.c.bf16 %v4318_v52, %v4315_v18  ;;  %v8000_v44 = vpack.c.bf16 %v4320_v5, %v4317_v40  ;;  %v8007_v15 = vpack.c.bf16 %v4325_v6, %v4322_v60  ;;  %v4330_v28 = vld [vmem:[%s8835_s2 + $0x288] sm:$0xff]  ;;  %v4333_v5 = vld [vmem:[%s8835_s2 + $0x2a0] sm:$0xff]  ;;  %v4336_v20 = vld [vmem:[%s8835_s2 + $0x2b8] sm:$0xff] }
 0x462   : > { %4239 = vst [vmem:[%s6479_s27 + $0x3] sm:$0x1] %v1897_v49  ;;  %6334 = vrcp.f32 %v2107_v42  ;;  %v7973_v49 = vpack.c.bf16 %v4319_v63, %v4316_v33  ;;  %v4331_v42 = vld [vmem:[%s8835_s2 + $0x290] sm:$0xff]  ;;  %v4332_v33 = vld [vmem:[%s8835_s2 + $0x298] sm:$0xff]  ;;  %v4334_v63 = vld [vmem:[%s8835_s2 + $0x2a8] sm:$0xff] }
 0x463   : > { %v8037_v14 = vpack.c.bf16 %v4331_v42, %v4328_v2  ;;  %v4335_v38 = vld [vmem:[%s8835_s2 + $0x2b0] sm:$0xff]  ;;  %v4340_v42 = vld [vmem:[%s8835_s2 + $0x2d8] sm:$0xff] }
 0x467   : > { %v7914_v21 = vld [vmem:[#allocation2] sm:$0x3] }
 0x468   : > { %2246 = vmatmul.mubr.f32.vlgmr.msra.gmra.mrb[16].mxu0 %v7914_v21  ;;  %5101 = vmatmul.mubr.f32.vlgmr.msra.gmra.mrb[16].mxu1 %v7914_v21 }
 0x469   : > { %5855 = vmatpush1.bf16.msra.mxu0 %v7896_v30  ;;  %5886 = vmatpush3.bf16.msra.mxu1 %v7898_v46 }
 0x46a   : > { %5857 = vmatprep.subr.bf16.mxu0 %v7903_v48  ;;  %5887 = vmatprep.subr.bf16.mxu1 %v6431_v8 }
 0x46b   : > { %v6333_v51 = vpop.eup %6332  ;;  %2475 = vmatprep.mubr.f32.mxu0 %v6432_v9  ;;  %5135 = vmatprep.mubr.msk.f32.mxu1 %vm6433_vm0, %v6432_v9 }
 0x46c   : > { %v2111_v19 = vmul.f32 %v6333_v51, %v2110_v39  ;;  %v8030_v39 = vpack.c.bf16 %v4326_v23, %v4323_v17  ;;  %v6335_v41 = vpop.eup %6334  ;;  %v4329_v51 = vld [vmem:[%s8835_s2 + $0x280] sm:$0xff]  ;;  %v4338_v17 = vld [vmem:[%s8835_s2 + $0x2c8] sm:$0xff] }
 0x46d   : > { %5859 = vmatpush1.bf16.msra.mxu0 %v7926_v16  ;;  %5889 = vmatpush3.bf16.msra.mxu1 %v7928_v24  ;;  %v2116_v18 = vsub.f32 1.0, %v6335_v41  ;;  %v8058_v40 = vpack.c.bf16 %v4332_v33, %v4329_v51  ;;  %v2118_v2 = vmul.f32 %v6335_v41, %v7636_v43  ;;  %v8085_v51 = vpack.c.bf16 %v4336_v20, %v4333_v5  ;;  %v4339_v41 = vld [vmem:[%s8835_s2 + $0x2d0] sm:$0xff] }
 0x46e   : > { %v2114_v53 = vadd.f32 %v2112_v4, %v2111_v19  ;;  %5861 = vmatprep.subr.bf16.mxu0 %v7942_v35  ;;  %5890 = vmatprep.subr.bf16.mxu1 %v6431_v8  ;;  %v4327_v4 = vld [vmem:[%s8835_s2 + $0x270] sm:$0xff]  ;;  %v4337_v19 = vld [vmem:[%s8835_s2 + $0x2c0] sm:$0xff]  ;;  %v8087_v33 = vpack.c.bf16 %v4338_v17, %v4335_v38 }
 0x46f   : > { %v8056_v52 = vpack.c.bf16 %v4330_v28, %v4327_v4  ;;  %v8065_v6 = vpack.c.bf16 %v4337_v19, %v4334_v63  ;;  %v4343_v4 = vld [vmem:[%s8835_s2 + $0x2f0] sm:$0xff]  ;;  %v4342_v19 = vld [vmem:[%s8835_s2 + $0x2e8] sm:$0xff] }
 0x470   : > { %6336 = vtanh.f32 %v2114_v53  ;;  %v2122_v53 = vstv %s2121_s24  ;;  %v8094_v63 = vpack.c.bf16 %v4343_v4, %v4340_v42  ;;  %v8108_v20 = vpack.c.bf16 %v4342_v19, %v4339_v41 }
 0x471   : > { %5863 = vmatpush1.bf16.msra.mxu0 %v7964_v12  ;;  %5892 = vmatpush3.bf16.msra.mxu1 %v7966_v59  ;;  %vm2123_vm8 = vcmp.eq.s32.totalorder %v2122_v53, 1  ;;  %v4344_v53 = vld [vmem:[%s8835_s2 + $0x2f8] sm:$0xff] }
 0x472   : > { %5865 = vmatprep.subr.bf16.mxu0 %v7973_v49  ;;  %5893 = vmatprep.subr.bf16.mxu1 %v6431_v8 }
 0x475   : > { %5867 = vmatpush1.bf16.msra.mxu0 %v7998_v57  ;;  %5895 = vmatpush3.bf16.msra.mxu1 %v8000_v44 }
 0x476   : > { %5869 = vmatprep.subr.bf16.mxu0 %v8007_v15  ;;  %5896 = vmatprep.subr.bf16.mxu1 %v6431_v8 }
 0x479   : > { %5871 = vmatpush1.bf16.msra.mxu0 %v8028_v3  ;;  %5898 = vmatpush3.bf16.msra.mxu1 %v8030_v39 }
 0x47a   : > { %v6337_v60 = vpop.eup %6336  ;;  %5873 = vmatprep.subr.bf16.mxu0 %v8037_v14  ;;  %5899 = vmatprep.subr.bf16.mxu1 %v6431_v8 }
 0x47b   : > { %v2117_v23 = vmul.f32 %v6337_v60, %v2116_v18  ;;  %v4341_v18 = vld [vmem:[%s8835_s2 + $0x2e0] sm:$0xff] }
 0x47c   : > { %v8110_v38 = vpack.c.bf16 %v4344_v53, %v4341_v18 }
 0x47d   : > { %v2119_v28 = vadd.f32 %v2118_v2, %v2117_v23  ;;  %5875 = vmatpush1.bf16.msra.mxu0 %v8056_v52  ;;  %5901 = vmatpush3.bf16.msra.mxu1 %v8058_v40 }
 0x47e   : > { %5877 = vmatprep.subr.bf16.mxu0 %v8065_v6  ;;  %5902 = vmatprep.subr.bf16.mxu1 %v6431_v8 }
 0x47f   : > { %v2124_v5 = vsel %vm2123_vm8, %v2119_v28, %v7636_v43 }
 0x480   : > { %2125 = vst [vmem:[#allocation2 + $0x2] sm:$0x3] %v2124_v5  ;;  %v2126_v60 = vpack.c.bf16 %v2124_v5, %v2124_v5 }
 0x481   : > { %5879 = vmatpush1.bf16.msra.mxu0 %v8085_v51  ;;  %5904 = vmatpush3.bf16.msra.mxu1 %v8087_v33 }
 0x482   : > { %4291 = vst [vmem:[%s6484_s6 + $0x4] sm:$0x1] %v2126_v60  ;;  %5881 = vmatprep.subr.bf16.mxu0 %v8094_v63  ;;  %5905 = vmatprep.subr.bf16.mxu1 %v6431_v8 }
 0x485   : > { %5883 = vmatpush1.bf16.msra.mxu0 %v8108_v20  ;;  %5907 = vmatpush3.bf16.msra.mxu1 %v8110_v38 }
 0x486   : > { %5909 = vmatprep.subr.bf16.mxu0 %v7653_v25  ;;  %5940 = vmatprep.subr.bf16.mxu1 %v6431_v8  ;;  %v2594_v25 = vld [vmem:[%s8835_s2 + $0x10] sm:$0xff] }
 0x487   : > { %v8119_v43 = vld [vmem:[#allocation2 + $0x2] sm:$0x3] }
 0x488   : > { %2476 = vmatmul.mubr.f32.vlgmr.msra.gmra.mrb[18].mxu0 %v8119_v43  ;;  %5136 = vmatmul.mubr.f32.vlgmr.msra.gmra.mrb[18].mxu1 %v8119_v43 }
 0x489   : > { %5911 = vmatpush1.bf16.msra.mxu0 %v7661_v61  ;;  %2704 = vmatprep.mubr.f32.mxu0 %v6432_v9  ;;  %v2597_v61 = vld [vmem:[%s8835_s2 + $0x28] sm:$0xff] }
 0x48a   : > { %5913 = vmatprep.subr.bf16.mxu0 %v7671_v36  ;;  %5170 = vmatprep.mubr.msk.f32.mxu1 %vm6433_vm0, %v6432_v9  ;;  %v8148_v36 = vpack.c.bf16 %v2597_v61, %v2594_v25 }
 0x48c   : > { %5942 = vmatpush3.bf16.msra.mxu1 %v8148_v36 }
 0x48d   : > { %5915 = vmatpush1.bf16.msra.mxu0 %v7679_v22  ;;  %5943 = vmatprep.subr.bf16.mxu1 %v6431_v8  ;;  %v2600_v22 = vld [vmem:[%s8835_s2 + $0x40] sm:$0xff] }
 0x48e   : > { %5917 = vmatprep.subr.bf16.mxu0 %v7689_v1  ;;  %v2603_v1 = vld [vmem:[%s8835_s2 + $0x58] sm:$0xff] }
 0x491   : > { %5919 = vmatpush1.bf16.msra.mxu0 %v7700_v62  ;;  %v8158_v62 = vpack.c.bf16 %v2603_v1, %v2600_v22 }
 0x492   : > { %5921 = vmatprep.subr.bf16.mxu0 %v7716_v34 }
 0x493   : > { %5945 = vmatpush3.bf16.msra.mxu1 %v8158_v62 }
 0x494   : > { %5946 = vmatprep.subr.bf16.mxu1 %v6431_v8 }
 0x495   : > { %5923 = vmatpush1.bf16.msra.mxu0 %v7728_v50 }
 0x496   : > { %5925 = vmatprep.subr.bf16.mxu0 %v7744_v54 }
 0x497   : > { %5948 = vmatpush3.bf16.msra.mxu1 %v7706_v27  ;;  %v4292_v27 = vld [vmem:[%s6489_s9 + $0xc] sm:$0x7] }
 0x498   : > { %5949 = vmatprep.subr.bf16.mxu1 %v6431_v8  ;;  %v2132_v34 = vunpack.c.l.bf16 %v4292_v27  ;;  %v2352_v27 = vstv %s2351_s29  ;;  %s2810_s29 = scalar_select %p2809_p2, 1, 0 }
 0x499   : > { %5927 = vmatpush1.bf16.msra.mxu0 %v7756_v26  ;;  %vm2353_vm9 = vcmp.eq.s32.totalorder %v2352_v27, 1  ;;  %v3075_v27 = vld [vmem:[%s8835_s2 + $0xc0] sm:$0xff] }
 0x49a   : > { %5929 = vmatprep.subr.bf16.mxu0 %v7772_v11  ;;  %v2330_v54 = vrot.slane %v2132_v34, 2  ;;  %v2341_v17 = vrot.slane %v2132_v34, 4 }
 0x49b   : > { %5951 = vmatpush3.bf16.msra.mxu1 %v7734_v29 }
 0x49c   : > { %5952 = vmatprep.subr.bf16.mxu1 %v6431_v8 }
 0x49d   : > { %5931 = vmatpush1.bf16.msra.mxu0 %v7784_v37 }
 0x49e   : > { %5933 = vmatprep.subr.bf16.mxu0 %v7800_v10 }
 0x49f   : > { %5954 = vmatpush3.bf16.msra.mxu1 %v7762_v7 }
 0x4a0   : > { %5955 = vmatprep.subr.bf16.mxu1 %v6431_v8 }
 0x4a1   : > { %5935 = vmatpush1.bf16.msra.mxu0 %v7812_v0 }
 0x4a2   : > { %5937 = vmatprep.subr.bf16.mxu0 %v7828_v58 }
 0x4a3   : > { %5957 = vmatpush3.bf16.msra.mxu1 %v7790_v55 }
 0x4a4   : > { %5958 = vmatprep.subr.bf16.mxu1 %v6431_v8 }
 0x4a5   : > { %5939 = vmatpush1.bf16.msra.mxu0 %v7840_v32 }
 0x4a6   : > { %5965 = vmatprep.subr.bf16.mxu0 %v7856_v45 }
 0x4a7   : > { %5960 = vmatpush3.bf16.msra.mxu1 %v7818_v47 }
 0x4a8   : > { %5961 = vmatprep.subr.bf16.mxu1 %v6431_v8 }
 0x4ab   : > { %5963 = vmatpush3.bf16.msra.mxu1 %v7846_v31  ;;  %v4296_v31 = vld [vmem:[%s6494_s12 + $0x9] sm:$0x7] }
 0x4ac   : > { %5996 = vmatprep.subr.bf16.mxu1 %v6431_v8  ;;  %v2362_v2 = vunpack.c.l.bf16 %v4296_v31  ;;  %v3063_v31 = vld [vmem:[%s8835_s2 + $0x60] sm:$0xff] }
 0x4ae   : > { %v2560_v19 = vrot.slane %v2362_v2, 2 }
 0x53b   : > { %v2247_v50 = vpop.f32.mrb[16].mxu0  ;;  %v2318_v29 = vpop.f32.mrb[16].mxu1 }
 0x53c   : > { %v2322_v26 = vadd.f32 %v2247_v50, %v2132_v34  ;;  %v2249_v7 = vpop.f32.mrb[17].mxu0  ;;  %v5102_v11 = vpop.f32.mrb[17].mxu1  ;;  %v2339_v45 = vadd.f32 %v7865_v56, %v2318_v29 }
 0x53d   : > { %v2332_v55 = vadd.f32 %v2330_v54, %v2249_v7 }
 0x53e   : > { %v4293_v37 = vmul.f32 -1.442695, %v2322_v26 }
 0x53f   : > { %v4294_v10 = vmul.f32 -1.442695, %v2332_v55 }
 0x540   : > { %6338 = vpow2.f32 %v4293_v37 }
 0x541   : > { %6340 = vpow2.f32 %v4294_v10 }
 0x54a   : > { %v6339_v0 = vpop.eup %6338 }
 0x54b   : > { %v2326_v47 = vadd.f32 1.0, %v6339_v0  ;;  %v6341_v58 = vpop.eup %6340 }
 0x54c   : > { %v2336_v32 = vadd.f32 1.0, %v6341_v58 }
 0x54d   : > { %6342 = vrcp.f32 %v2326_v47  ;;  %v2571_v47 = vrot.slane %v2362_v2, 4 }
 0x54e   : > { %6344 = vrcp.f32 %v2336_v32 }
 0x557   : > { %v6343_v23 = vpop.eup %6342 }
 0x558   : > { %v2340_v42 = vmul.f32 %v6343_v23, %v2339_v45  ;;  %v6345_v61 = vpop.eup %6344  ;;  %v3066_v45 = vld [vmem:[%s8835_s2 + $0x78] sm:$0xff] }
 0x559   : > { %v2345_v1 = vsub.f32 1.0, %v6345_v61  ;;  %v2347_v29 = vmul.f32 %v6345_v61, %v7914_v21  ;;  %v8291_v23 = vpack.c.bf16 %v3066_v45, %v3063_v31  ;;  %v3076_v61 = vld [vmem:[%s8835_s2 + $0xc8] sm:$0xff] }
 0x55a   : > { %v2343_v4 = vadd.f32 %v2341_v17, %v2340_v42  ;;  %v3065_v17 = vld [vmem:[%s8835_s2 + $0x70] sm:$0xff] }
 0x55b   : > { %v2477_v28 = vpop.f32.mrb[18].mxu0  ;;  %v2548_v41 = vpop.f32.mrb[18].mxu1  ;;  %v4348_v45 = vld [vmem:[%s6489_s9 + $0xf] sm:$0x7] }
 0x55c   : > { %6346 = vtanh.f32 %v2343_v4  ;;  %v2552_v18 = vadd.f32 %v2477_v28, %v2362_v2  ;;  %v2479_v53 = vpop.f32.mrb[19].mxu0  ;;  %v5137_v5 = vpop.f32.mrb[19].mxu1  ;;  %v3068_v2 = vld [vmem:[%s8835_s2 + $0x88] sm:$0xff]  ;;  %v3070_v4 = vld [vmem:[%s8835_s2 + $0x98] sm:$0xff]  ;;  %v3073_v28 = vld [vmem:[%s8835_s2 + $0xb0] sm:$0xff] }
 0x55d   : > { %v2562_v25 = vadd.f32 %v2560_v19, %v2479_v53  ;;  %v8297_v42 = vpack.c.bf16 %v3068_v2, %v3065_v17  ;;  %v3069_v19 = vld [vmem:[%s8835_s2 + $0x90] sm:$0xff]  ;;  %v3071_v53 = vld [vmem:[%s8835_s2 + $0xa0] sm:$0xff]  ;;  %v2591_v17 = vunpack.c.l.bf16 %v4348_v45 }
 0x55e   : > { %v4345_v60 = vmul.f32 -1.442695, %v2552_v18  ;;  %v3072_v18 = vld [vmem:[%s8835_s2 + $0xa8] sm:$0xff] }
 0x55f   : > { %v4346_v22 = vmul.f32 -1.442695, %v2562_v25  ;;  %v8319_v5 = vpack.c.bf16 %v3072_v18, %v3069_v19 }
 0x560   : > { %6348 = vpow2.f32 %v4345_v60  ;;  %v3074_v60 = vld [vmem:[%s8835_s2 + $0xb8] sm:$0xff] }
 0x561   : > { %6350 = vpow2.f32 %v4346_v22  ;;  %v8325_v25 = vpack.c.bf16 %v3074_v60, %v3071_v53  ;;  %v3079_v22 = vld [vmem:[%s8835_s2 + $0xe0] sm:$0xff] }
 0x566   : > { %v6347_v34 = vpop.eup %6346 }
 0x567   : > { %v2346_v50 = vmul.f32 %v6347_v34, %v2345_v1  ;;  %v8335_v1 = vpack.c.bf16 %v3079_v22, %v3076_v61  ;;  %v3078_v34 = vld [vmem:[%s8835_s2 + $0xd8] sm:$0xff] }
 0x569   : > { %v2348_v54 = vadd.f32 %v2347_v29, %v2346_v50  ;;  %v3077_v50 = vld [vmem:[%s8835_s2 + $0xd0] sm:$0xff]  ;;  %v8347_v29 = vpack.c.bf16 %v3078_v34, %v3075_v27 }
 0x56a   : > { %v6349_v26 = vpop.eup %6348 }
 0x56b   : > { %v2354_v7 = vsel %vm2353_vm9, %v2348_v54, %v7914_v21  ;;  %v2556_v11 = vadd.f32 1.0, %v6349_v26  ;;  %v6351_v55 = vpop.eup %6350  ;;  %v2569_v21 = vadd.f32 %v7936_v13, %v2548_v41  ;;  %v8307_v41 = vpack.c.bf16 %v3073_v28, %v3070_v4  ;;  %v3080_v54 = vld [vmem:[%s8835_s2 + $0xe8] sm:$0xff] }
 0x56c   : > { %2355 = vst [vmem:[#allocation2] sm:$0x3] %v2354_v7  ;;  %v2356_v37 = vpack.c.bf16 %v2354_v7, %v2354_v7  ;;  %v2566_v0 = vadd.f32 1.0, %v6351_v55  ;;  %v8353_v26 = vpack.c.bf16 %v3080_v54, %v3077_v50  ;;  %v3082_v7 = vld [vmem:[%s8835_s2 + $0xf8] sm:$0xff]  ;;  %v3081_v55 = vld [vmem:[%s8835_s2 + $0xf0] sm:$0xff]  ;;  %v2789_v28 = vrot.slane %v2591_v17, 2 }
 0x56d   : > { %6352 = vrcp.f32 %v2556_v11  ;;  %v3085_v11 = vld [vmem:[%s8835_s2 + $0x110] sm:$0xff] }
 0x56e   : > { %4295 = vst [vmem:[%s6479_s27 + $0x4] sm:$0x1] %v2356_v37  ;;  %6354 = vrcp.f32 %v2566_v0  ;;  %v8363_v37 = vpack.c.bf16 %v3085_v11, %v3082_v7  ;;  %v3084_v0 = vld [vmem:[%s8835_s2 + $0x108] sm:$0xff] }
 0x56f   : > { %v4352_v7 = vld [vmem:[%s6494_s12 + $0x6] sm:$0x7] }
 0x573   : > { %v8183_v10 = vld [vmem:[#allocation2] sm:$0x3] }
 0x574   : > { %2705 = vmatmul.mubr.f32.vlgmr.msra.gmra.mrb[20].mxu0 %v8183_v10  ;;  %5171 = vmatmul.mubr.f32.vlgmr.msra.gmra.mrb[20].mxu1 %v8183_v10 }
 0x575   : > { %5967 = vmatpush1.bf16.msra.mxu0 %v7896_v30  ;;  %5998 = vmatpush3.bf16.msra.mxu1 %v7898_v46 }
 0x576   : > { %5969 = vmatprep.subr.bf16.mxu0 %v7903_v48  ;;  %5999 = vmatprep.subr.bf16.mxu1 %v6431_v8 }
 0x577   : > { %v6353_v58 = vpop.eup %6352  ;;  %2934 = vmatprep.mubr.f32.mxu0 %v6432_v9  ;;  %5205 = vmatprep.mubr.msk.f32.mxu1 %vm6433_vm0, %v6432_v9 }
 0x578   : > { %v2570_v32 = vmul.f32 %v6353_v58, %v2569_v21  ;;  %v6355_v46 = vpop.eup %6354  ;;  %v3083_v21 = vld [vmem:[%s8835_s2 + $0x100] sm:$0xff]  ;;  %v3086_v58 = vld [vmem:[%s8835_s2 + $0x118] sm:$0xff] }
 0x579   : > { %5971 = vmatpush1.bf16.msra.mxu0 %v7926_v16  ;;  %6001 = vmatpush3.bf16.msra.mxu1 %v7928_v24  ;;  %v2575_v48 = vsub.f32 1.0, %v6355_v46  ;;  %v2581_v16 = vstv %s2580_s30 }
 0x57a   : > { %v2573_v30 = vadd.f32 %v2571_v47, %v2570_v32  ;;  %5973 = vmatprep.subr.bf16.mxu0 %v7942_v35  ;;  %6002 = vmatprep.subr.bf16.mxu1 %v6431_v8  ;;  %vm2582_vm10 = vcmp.eq.s32.totalorder %v2581_v16, 1  ;;  %v8375_v47 = vpack.c.bf16 %v3084_v0, %v3081_v55  ;;  %v8381_v32 = vpack.c.bf16 %v3086_v58, %v3083_v21  ;;  %v3087_v16 = vld [vmem:[%s8835_s2 + $0x120] sm:$0xff] }
 0x57b   : > { %v2800_v55 = vrot.slane %v2591_v17, 4  ;;  %v8454_v21 = vunpack.c.l.bf16 %v4352_v7 }
 0x57c   : > { %6356 = vtanh.f32 %v2573_v30  ;;  %v3088_v30 = vld [vmem:[%s8835_s2 + $0x128] sm:$0xff] }
 0x57d   : > { %5975 = vmatpush1.bf16.msra.mxu0 %v7964_v12  ;;  %6004 = vmatpush3.bf16.msra.mxu1 %v7966_v59  ;;  %v2577_v12 = vmul.f32 %v6355_v46, %v8119_v43  ;;  %v3091_v46 = vld [vmem:[%s8835_s2 + $0x140] sm:$0xff] }
 0x57e   : > { %5977 = vmatprep.subr.bf16.mxu0 %v7973_v49  ;;  %6005 = vmatprep.subr.bf16.mxu1 %v6431_v8 }
 0x581   : > { %5979 = vmatpush1.bf16.msra.mxu0 %v7998_v57  ;;  %6007 = vmatpush3.bf16.msra.mxu1 %v8000_v44 }
 0x582   : > { %5981 = vmatprep.subr.bf16.mxu0 %v8007_v15  ;;  %6008 = vmatprep.subr.bf16.mxu1 %v6431_v8  ;;  %v3052_v15 = vld [vmem:[%s8835_s2 + $0x8] sm:$0xff] }
 0x585   : > { %5983 = vmatpush1.bf16.msra.mxu0 %v8028_v3  ;;  %6010 = vmatpush3.bf16.msra.mxu1 %v8030_v39  ;;  %v3055_v3 = vld [vmem:[%s8835_s2 + $0x20] sm:$0xff] }
 0x586   : > { %v6357_v24 = vpop.eup %6356  ;;  %5985 = vmatprep.subr.bf16.mxu0 %v8037_v14  ;;  %6011 = vmatprep.subr.bf16.mxu1 %v6431_v8  ;;  %v8244_v39 = vpack.c.bf16 %v3055_v3, %v3052_v15  ;;  %v3051_v14 = vld [vmem:[%s8835_s2] sm:$0xff]  ;;  %v3097_v15 = vld [vmem:[%s8835_s2 + $0x170] sm:$0xff] }
 0x587   : > { %v2576_v35 = vmul.f32 %v6357_v24, %v2575_v48  ;;  %v8391_v48 = vpack.c.bf16 %v3091_v46, %v3088_v30  ;;  %v3090_v24 = vld [vmem:[%s8835_s2 + $0x138] sm:$0xff] }
 0x589   : > { %v2578_v59 = vadd.f32 %v2577_v12, %v2576_v35  ;;  %5987 = vmatpush1.bf16.msra.mxu0 %v8056_v52  ;;  %6013 = vmatpush3.bf16.msra.mxu1 %v8058_v40  ;;  %v3054_v52 = vld [vmem:[%s8835_s2 + $0x18] sm:$0xff]  ;;  %v3089_v35 = vld [vmem:[%s8835_s2 + $0x130] sm:$0xff]  ;;  %v8403_v12 = vpack.c.bf16 %v3090_v24, %v3087_v16  ;;  %v3019_v24 = vrot.slane %v8454_v21, 2 }
 0x58a   : > { %5989 = vmatprep.subr.bf16.mxu0 %v8065_v6  ;;  %6014 = vmatprep.subr.bf16.mxu1 %v6431_v8  ;;  %v8252_v40 = vpack.c.bf16 %v3054_v52, %v3051_v14  ;;  %v3058_v6 = vld [vmem:[%s8835_s2 + $0x38] sm:$0xff]  ;;  %v3093_v14 = vld [vmem:[%s8835_s2 + $0x150] sm:$0xff]  ;;  %v3096_v52 = vld [vmem:[%s8835_s2 + $0x168] sm:$0xff] }
 0x58b   : > { %v2583_v49 = vsel %vm2582_vm10, %v2578_v59, %v8119_v43  ;;  %v3064_v43 = vld [vmem:[%s8835_s2 + $0x68] sm:$0xff] }
 0x58c   : > { %2584 = vst [vmem:[#allocation2 + $0x2] sm:$0x3] %v2583_v49  ;;  %v2585_v57 = vpack.c.bf16 %v2583_v49, %v2583_v49  ;;  %v3092_v59 = vld [vmem:[%s8835_s2 + $0x148] sm:$0xff] }
 0x58d   : > { %5991 = vmatpush1.bf16.msra.mxu0 %v8085_v51  ;;  %6016 = vmatpush3.bf16.msra.mxu1 %v8087_v33  ;;  %v3061_v51 = vld [vmem:[%s8835_s2 + $0x50] sm:$0xff]  ;;  %v8409_v49 = vpack.c.bf16 %v3092_v59, %v3089_v35 }
 0x58e   : > { %4347 = vst [vmem:[%s6484_s6 + $0x3] sm:$0x1] %v2585_v57  ;;  %5993 = vmatprep.subr.bf16.mxu0 %v8094_v63  ;;  %6017 = vmatprep.subr.bf16.mxu1 %v6431_v8  ;;  %v8262_v33 = vpack.c.bf16 %v3061_v51, %v3058_v6  ;;  %v3057_v63 = vld [vmem:[%s8835_s2 + $0x30] sm:$0xff]  ;;  %v3094_v57 = vld [vmem:[%s8835_s2 + $0x158] sm:$0xff]  ;;  %v3095_v6 = vld [vmem:[%s8835_s2 + $0x160] sm:$0xff]  ;;  %v8431_v51 = vpack.c.bf16 %v3096_v52, %v3093_v14 }
 0x58f   : > { %v8419_v3 = vpack.c.bf16 %v3097_v15, %v3094_v57 }
 0x591   : > { %5995 = vmatpush1.bf16.msra.mxu0 %v8108_v20  ;;  %6019 = vmatpush3.bf16.msra.mxu1 %v8110_v38  ;;  %v3060_v20 = vld [vmem:[%s8835_s2 + $0x48] sm:$0xff] }
 0x592   : > { %6052 = vmatprep.subr.bf16.mxu1 %v6431_v8  ;;  %6021 = vmatprep.subr.bf16.mxu0 %v8244_v39  ;;  %v8270_v38 = vpack.c.bf16 %v3060_v20, %v3057_v63  ;;  %v3098_v63 = vld [vmem:[%s8835_s2 + $0x178] sm:$0xff] }
 0x593   : > { %v8227_v44 = vld [vmem:[#allocation2 + $0x2] sm:$0x3]  ;;  %v8437_v20 = vpack.c.bf16 %v3098_v63, %v3095_v6  ;;  %v2811_v63 = vstv %s2810_s29 }
 0x594   : > { %2935 = vmatmul.mubr.f32.vlgmr.msra.gmra.mrb[22].mxu0 %v8227_v44  ;;  %5206 = vmatmul.mubr.f32.vlgmr.msra.gmra.mrb[22].mxu1 %v8227_v44  ;;  %vm2812_vm11 = vcmp.eq.s32.totalorder %v2811_v63, 1  ;;  %v4431_v63 = vld [vmem:[%s8835_s2 + $0x230] sm:$0xff] }
 0x595   : > { %6054 = vmatpush3.bf16.msra.mxu1 %v8148_v36  ;;  %3163 = vmatprep.mubr.f32.mxu0 %v6432_v9  ;;  %v3067_v36 = vld [vmem:[%s8835_s2 + $0x80] sm:$0xff] }
 0x596   : > { %6055 = vmatprep.subr.bf16.mxu1 %v6431_v8  ;;  %5240 = vmatprep.mubr.msk.f32.mxu1 %vm6433_vm0, %v6432_v9 }
 0x597   : > { %6023 = vmatpush1.bf16.msra.mxu0 %v8252_v40 }
 0x598   : > { %6025 = vmatprep.subr.bf16.mxu0 %v8262_v33 }
 0x599   : > { %6057 = vmatpush3.bf16.msra.mxu1 %v8158_v62  ;;  %v8280_v62 = vpack.c.bf16 %v3067_v36, %v3064_v43  ;;  %v4410_v43 = vld [vmem:[%s8835_s2 + $0x188] sm:$0xff]  ;;  %v4413_v36 = vld [vmem:[%s8835_s2 + $0x1a0] sm:$0xff] }
 0x59a   : > { %6058 = vmatprep.subr.bf16.mxu1 %v6431_v8  ;;  %v8447_v31 = vpack.c.bf16 %v4413_v36, %v4410_v43 }
 0x59b   : > { %6027 = vmatpush1.bf16.msra.mxu0 %v8270_v38 }
 0x59c   : > { %6029 = vmatprep.subr.bf16.mxu0 %v8280_v62 }
 0x59d   : > { %6060 = vmatpush3.bf16.msra.mxu1 %v8297_v42 }
 0x59e   : > { %6061 = vmatprep.subr.bf16.mxu1 %v6431_v8 }
 0x59f   : > { %6031 = vmatpush1.bf16.msra.mxu0 %v8291_v23 }
 0x5a0   : > { %6033 = vmatprep.subr.bf16.mxu0 %v8307_v41 }
 0x5a1   : > { %6063 = vmatpush3.bf16.msra.mxu1 %v8325_v25 }
 0x5a2   : > { %6064 = vmatprep.subr.bf16.mxu1 %v6431_v8 }
 0x5a3   : > { %6035 = vmatpush1.bf16.msra.mxu0 %v8319_v5 }
 0x5a4   : > { %6037 = vmatprep.subr.bf16.mxu0 %v8335_v1 }
 0x5a5   : > { %6066 = vmatpush3.bf16.msra.mxu1 %v8353_v26 }
 0x5a6   : > { %6067 = vmatprep.subr.bf16.mxu1 %v6431_v8 }
 0x5a7   : > { %6039 = vmatpush1.bf16.msra.mxu0 %v8347_v29 }
 0x5a8   : > { %6041 = vmatprep.subr.bf16.mxu0 %v8363_v37 }
 0x5a9   : > { %6069 = vmatpush3.bf16.msra.mxu1 %v8381_v32 }
 0x5aa   : > { %6070 = vmatprep.subr.bf16.mxu1 %v6431_v8 }
 0x5ab   : > { %6043 = vmatpush1.bf16.msra.mxu0 %v8375_v47 }
 0x5ac   : > { %6045 = vmatprep.subr.bf16.mxu0 %v8391_v48 }
 0x5ad   : > { %6072 = vmatpush3.bf16.msra.mxu1 %v8409_v49 }
 0x5ae   : > { %6073 = vmatprep.subr.bf16.mxu1 %v6431_v8 }
 0x5af   : > { %6047 = vmatpush1.bf16.msra.mxu0 %v8403_v12 }
 0x5b0   : > { %6049 = vmatprep.subr.bf16.mxu0 %v8419_v3 }
 0x5b1   : > { %6075 = vmatpush3.bf16.msra.mxu1 %v8437_v20 }
 0x5b2   : > { %6108 = vmatprep.subr.bf16.mxu1 %v6431_v8 }
 0x5b3   : > { %6051 = vmatpush1.bf16.msra.mxu0 %v8431_v51 }
 0x5b4   : > { %6077 = vmatprep.subr.bf16.mxu0 %v8447_v31 }
 0x647   : > { %v2706_v2 = vpop.f32.mrb[20].mxu0  ;;  %v2777_v4 = vpop.f32.mrb[20].mxu1 }
 0x648   : > { %v2781_v19 = vadd.f32 %v2706_v2, %v2591_v17  ;;  %v2708_v18 = vpop.f32.mrb[21].mxu0  ;;  %v5172_v53 = vpop.f32.mrb[21].mxu1  ;;  %v2798_v11 = vadd.f32 %v7865_v56, %v2777_v4 }
 0x649   : > { %v2791_v61 = vadd.f32 %v2789_v28, %v2708_v18  ;;  %v4409_v18 = vld [vmem:[%s8835_s2 + $0x180] sm:$0xff]  ;;  %v4412_v53 = vld [vmem:[%s8835_s2 + $0x198] sm:$0xff] }
 0x64a   : > { %v4349_v60 = vmul.f32 -1.442695, %v2781_v19 }
 0x64b   : > { %v4350_v22 = vmul.f32 -1.442695, %v2791_v61  ;;  %v4416_v61 = vld [vmem:[%s8835_s2 + $0x1b8] sm:$0xff] }
 0x64c   : > { %6358 = vpow2.f32 %v4349_v60  ;;  %v4411_v60 = vld [vmem:[%s8835_s2 + $0x190] sm:$0xff] }
 0x64d   : > { %6360 = vpow2.f32 %v4350_v22  ;;  %v4419_v22 = vld [vmem:[%s8835_s2 + $0x1d0] sm:$0xff] }
 0x64e   : > { %v8489_v7 = vpack.c.bf16 %v4419_v22, %v4416_v61  ;;  %v4433_v22 = vld [vmem:[%s8835_s2 + $0x240] sm:$0xff] }
 0x656   : > { %v6359_v27 = vpop.eup %6358 }
 0x657   : > { %v2785_v34 = vadd.f32 1.0, %v6359_v27  ;;  %v6361_v50 = vpop.eup %6360 }
 0x658   : > { %v2795_v54 = vadd.f32 1.0, %v6361_v50 }
 0x659   : > { %6362 = vrcp.f32 %v2785_v34  ;;  %v8482_v34 = vpack.c.bf16 %v4412_v53, %v4409_v18  ;;  %v4432_v18 = vld [vmem:[%s8835_s2 + $0x238] sm:$0xff]  ;;  %v4434_v53 = vld [vmem:[%s8835_s2 + $0x248] sm:$0xff] }
 0x65a   : > { %6364 = vrcp.f32 %v2795_v54  ;;  %v4415_v54 = vld [vmem:[%s8835_s2 + $0x1b0] sm:$0xff] }
 0x663   : > { %v6363_v0 = vpop.eup %6362 }
 0x664   : > { %v2799_v58 = vmul.f32 %v6363_v0, %v2798_v11  ;;  %v6365_v14 = vpop.eup %6364  ;;  %v4418_v11 = vld [vmem:[%s8835_s2 + $0x1c8] sm:$0xff]  ;;  %v4420_v0 = vld [vmem:[%s8835_s2 + $0x1d8] sm:$0xff] }
 0x665   : > { %v2804_v6 = vsub.f32 1.0, %v6365_v14  ;;  %v2806_v45 = vmul.f32 %v6365_v14, %v8183_v10 }
 0x666   : > { %v2802_v30 = vadd.f32 %v2800_v55, %v2799_v58  ;;  %v4417_v55 = vld [vmem:[%s8835_s2 + $0x1c0] sm:$0xff] }
 0x667   : > { %v2936_v46 = vpop.f32.mrb[22].mxu0  ;;  %v3007_v16 = vpop.f32.mrb[22].mxu1 }
 0x668   : > { %6366 = vtanh.f32 %v2802_v30  ;;  %v3011_v35 = vadd.f32 %v2936_v46, %v8454_v21  ;;  %v2938_v59 = vpop.f32.mrb[23].mxu0  ;;  %v5207_v57 = vpop.f32.mrb[23].mxu1  ;;  %v4422_v30 = vld [vmem:[%s8835_s2 + $0x1e8] sm:$0xff]  ;;  %v4425_v46 = vld [vmem:[%s8835_s2 + $0x200] sm:$0xff] }
 0x669   : > { %v3021_v15 = vadd.f32 %v3019_v24, %v2938_v59  ;;  %v8514_v59 = vpack.c.bf16 %v4420_v0, %v4417_v55  ;;  %v4421_v57 = vld [vmem:[%s8835_s2 + $0x1e0] sm:$0xff]  ;;  %v8523_v14 = vpack.c.bf16 %v4425_v46, %v4422_v30  ;;  %v4438_v55 = vld [vmem:[%s8835_s2 + $0x268] sm:$0xff]  ;;  %v4440_v0 = vld [vmem:[%s8835_s2 + $0x278] sm:$0xff] }
 0x66a   : > { %v4401_v56 = vmul.f32 -1.442695, %v3011_v35  ;;  %v8512_v35 = vpack.c.bf16 %v4418_v11, %v4415_v54  ;;  %v4436_v54 = vld [vmem:[%s8835_s2 + $0x258] sm:$0xff]  ;;  %v4435_v11 = vld [vmem:[%s8835_s2 + $0x250] sm:$0xff] }
 0x66b   : > { %v4402_v52 = vmul.f32 -1.442695, %v3021_v15  ;;  %v3030_v15 = vrot.slane %v8454_v21, 4  ;;  %v4428_v21 = vld [vmem:[%s8835_s2 + $0x218] sm:$0xff]  ;;  %v4443_v30 = vld [vmem:[%s8835_s2 + $0x290] sm:$0xff]  ;;  %v8609_v46 = vpack.c.bf16 %v4436_v54, %v4433_v22  ;;  %v4450_v22 = vld [vmem:[%s8835_s2 + $0x2c8] sm:$0xff] }
 0x66c   : > { %6368 = vpow2.f32 %v4401_v56  ;;  %v3028_v56 = vadd.f32 %v7936_v13, %v3007_v16  ;;  %v4426_v13 = vld [vmem:[%s8835_s2 + $0x208] sm:$0xff] }
 0x66d   : > { %6370 = vpow2.f32 %v4402_v52  ;;  %v4424_v52 = vld [vmem:[%s8835_s2 + $0x1f8] sm:$0xff] }
 0x672   : > { %v6367_v43 = vpop.eup %6366 }
 0x673   : > { %v2805_v36 = vmul.f32 %v6367_v43, %v2804_v6  ;;  %v4423_v6 = vld [vmem:[%s8835_s2 + $0x1f0] sm:$0xff] }
 0x675   : > { %v2807_v17 = vadd.f32 %v2806_v45, %v2805_v36  ;;  %v8545_v36 = vpack.c.bf16 %v4424_v52, %v4421_v57  ;;  %v8547_v45 = vpack.c.bf16 %v4426_v13, %v4423_v6  ;;  %v4439_v57 = vld [vmem:[%s8835_s2 + $0x270] sm:$0xff]  ;;  %v4442_v52 = vld [vmem:[%s8835_s2 + $0x288] sm:$0xff]  ;;  %v4441_v6 = vld [vmem:[%s8835_s2 + $0x280] sm:$0xff] }
 0x676   : > { %v6369_v2 = vpop.eup %6368  ;;  %v4444_v13 = vld [vmem:[%s8835_s2 + $0x298] sm:$0xff] }
 0x677   : > { %v2813_v4 = vsel %vm2812_vm11, %v2807_v17, %v8183_v10  ;;  %v3015_v28 = vadd.f32 1.0, %v6369_v2  ;;  %v4414_v10 = vld [vmem:[%s8835_s2 + $0x1a8] sm:$0xff]  ;;  %v6371_v27 = vpop.eup %6370  ;;  %v4427_v17 = vld [vmem:[%s8835_s2 + $0x210] sm:$0xff] }
 0x678   : > { %2814 = vst [vmem:[#allocation2] sm:$0x3] %v2813_v4  ;;  %v2815_v19 = vpack.c.bf16 %v2813_v4, %v2813_v4  ;;  %v8484_v50 = vpack.c.bf16 %v4414_v10, %v4411_v60  ;;  %v3025_v24 = vadd.f32 1.0, %v6371_v27  ;;  %v8554_v4 = vpack.c.bf16 %v4431_v63, %v4428_v21  ;;  %v4437_v60 = vld [vmem:[%s8835_s2 + $0x260] sm:$0xff] }
 0x679   : > { %6372 = vrcp.f32 %v3015_v28  ;;  %v4430_v28 = vld [vmem:[%s8835_s2 + $0x228] sm:$0xff]  ;;  %v8588_v27 = vpack.c.bf16 %v4437_v60, %v4434_v53  ;;  %v4449_v21 = vld [vmem:[%s8835_s2 + $0x2c0] sm:$0xff]  ;;  %v4448_v53 = vld [vmem:[%s8835_s2 + $0x2b8] sm:$0xff] }
 0x67a   : > { %4351 = vst [vmem:[%s6479_s27 + $0x5] sm:$0x1] %v2815_v19  ;;  %6374 = vrcp.f32 %v3025_v24  ;;  %v4429_v19 = vld [vmem:[%s8835_s2 + $0x220] sm:$0xff]  ;;  %v8579_v10 = vpack.c.bf16 %v4430_v28, %v4427_v17  ;;  %v8611_v24 = vpack.c.bf16 %v4438_v55, %v4435_v11  ;;  %v8637_v17 = vpack.c.bf16 %v4442_v52, %v4439_v57  ;;  %v4447_v60 = vld [vmem:[%s8835_s2 + $0x2b0] sm:$0xff]  ;;  %v4452_v55 = vld [vmem:[%s8835_s2 + $0x2d8] sm:$0xff] }
 0x67b   : > { %v8581_v61 = vpack.c.bf16 %v4432_v18, %v4429_v19  ;;  %v4445_v28 = vld [vmem:[%s8835_s2 + $0x2a0] sm:$0xff]  ;;  %v8668_v52 = vpack.c.bf16 %v4450_v22, %v4447_v60 }
 0x67c   : > { %v8666_v57 = vpack.c.bf16 %v4448_v53, %v4445_v28 }
 0x67f   : > { %v8500_v58 = vld [vmem:[#allocation2] sm:$0x3] }
 0x680   : > { %3164 = vmatmul.mubr.f32.vlgmr.msra.gmra.mrb[24].mxu0 %v8500_v58  ;;  %5241 = vmatmul.mubr.f32.vlgmr.msra.gmra.mrb[24].mxu1 %v8500_v58 }
 0x681   : > { %6079 = vmatpush1.bf16.msra.mxu0 %v8482_v34  ;;  %6110 = vmatpush3.bf16.msra.mxu1 %v8484_v50 }
 0x682   : > { %6081 = vmatprep.subr.bf16.mxu0 %v8489_v7  ;;  %6111 = vmatprep.subr.bf16.mxu1 %v6431_v8 }
 0x683   : > { %v6373_v16 = vpop.eup %6372  ;;  %3393 = vmatprep.mubr.f32.mxu0 %v6432_v9  ;;  %5275 = vmatprep.mubr.msk.f32.mxu1 %vm6433_vm0, %v6432_v9 }
 0x684   : > { %v3029_v43 = vmul.f32 %v6373_v16, %v3028_v56  ;;  %v6375_v56 = vpop.eup %6374  ;;  %v4446_v16 = vld [vmem:[%s8835_s2 + $0x2a8] sm:$0xff] }
 0x685   : > { %6083 = vmatpush1.bf16.msra.mxu0 %v8512_v35  ;;  %6113 = vmatpush3.bf16.msra.mxu1 %v8514_v59  ;;  %v3034_v63 = vsub.f32 1.0, %v6375_v56  ;;  %v8646_v18 = vpack.c.bf16 %v4449_v21, %v4446_v16  ;;  %v3036_v11 = vmul.f32 %v6375_v56, %v8227_v44  ;;  %v4451_v56 = vld [vmem:[%s8835_s2 + $0x2d0] sm:$0xff]  ;;  %v4453_v16 = vld [vmem:[%s8835_s2 + $0x2e0] sm:$0xff]  ;;  %v4456_v21 = vld [vmem:[%s8835_s2 + $0x2f8] sm:$0xff] }
 0x686   : > { %v3032_v2 = vadd.f32 %v3030_v15, %v3029_v43  ;;  %6085 = vmatprep.subr.bf16.mxu0 %v8523_v14  ;;  %6114 = vmatprep.subr.bf16.mxu1 %v6431_v8  ;;  %v8618_v15 = vpack.c.bf16 %v4443_v30, %v4440_v0  ;;  %v3040_v43 = vstv %s3039_s14  ;;  %v4455_v0 = vld [vmem:[%s8835_s2 + $0x2f0] sm:$0xff] }
 0x687   : > { %vm3041_vm12 = vcmp.eq.s32.totalorder %v3040_v43, 1 }
 0x688   : > { %6376 = vtanh.f32 %v3032_v2  ;;  %v8639_v2 = vpack.c.bf16 %v4444_v13, %v4441_v6  ;;  %v8675_v6 = vpack.c.bf16 %v4455_v0, %v4452_v55  ;;  %v4454_v13 = vld [vmem:[%s8835_s2 + $0x2e8] sm:$0xff] }
 0x689   : > { %6087 = vmatpush1.bf16.msra.mxu0 %v8545_v36  ;;  %6116 = vmatpush3.bf16.msra.mxu1 %v8547_v45  ;;  %v8689_v28 = vpack.c.bf16 %v4454_v13, %v4451_v56 }
 0x68a   : > { %6089 = vmatprep.subr.bf16.mxu0 %v8554_v4  ;;  %6117 = vmatprep.subr.bf16.mxu1 %v6431_v8 }
 0x68d   : > { %6091 = vmatpush1.bf16.msra.mxu0 %v8579_v10  ;;  %6119 = vmatpush3.bf16.msra.mxu1 %v8581_v61 }
 0x68e   : > { %6093 = vmatprep.subr.bf16.mxu0 %v8588_v27  ;;  %6120 = vmatprep.subr.bf16.mxu1 %v6431_v8 }
 0x691   : > { %6095 = vmatpush1.bf16.msra.mxu0 %v8609_v46  ;;  %6122 = vmatpush3.bf16.msra.mxu1 %v8611_v24 }
 0x692   : > { %v6377_v19 = vpop.eup %6376  ;;  %6097 = vmatprep.subr.bf16.mxu0 %v8618_v15  ;;  %6123 = vmatprep.subr.bf16.mxu1 %v6431_v8 }
 0x693   : > { %v3035_v54 = vmul.f32 %v6377_v19, %v3034_v63  ;;  %v8691_v19 = vpack.c.bf16 %v4456_v21, %v4453_v16 }
 0x695   : > { %v3037_v30 = vadd.f32 %v3036_v11, %v3035_v54  ;;  %6099 = vmatpush1.bf16.msra.mxu0 %v8637_v17  ;;  %6125 = vmatpush3.bf16.msra.mxu1 %v8639_v2 }
 0x696   : > { %6101 = vmatprep.subr.bf16.mxu0 %v8646_v18  ;;  %6126 = vmatprep.subr.bf16.mxu1 %v6431_v8 }
 0x697   : > { %v3042_v63 = vsel %vm3041_vm12, %v3037_v30, %v8227_v44 }
 0x698   : > { %3043 = vst [vmem:[#allocation2 + $0x2] sm:$0x3] %v3042_v63  ;;  %v3044_v43 = vpack.c.bf16 %v3042_v63, %v3042_v63 }
 0x699   : > { %6103 = vmatpush1.bf16.msra.mxu0 %v8666_v57  ;;  %6128 = vmatpush3.bf16.msra.mxu1 %v8668_v52 }
 0x69a   : > { %4403 = vst [vmem:[%s6484_s6 + $0x2] sm:$0x1] %v3044_v43  ;;  %6105 = vmatprep.subr.bf16.mxu0 %v8675_v6  ;;  %6129 = vmatprep.subr.bf16.mxu1 %v6431_v8 }
 0x69d   : > { %6107 = vmatpush1.bf16.msra.mxu0 %v8689_v28  ;;  %6131 = vmatpush3.bf16.msra.mxu1 %v8691_v19 }
 0x69e   : > { %6133 = vmatprep.subr.bf16.mxu0 %v8244_v39  ;;  %6164 = vmatprep.subr.bf16.mxu1 %v6431_v8  ;;  %v3512_v39 = vld [vmem:[%s8835_s2 + $0x10] sm:$0xff] }
 0x69f   : > { %v8700_v44 = vld [vmem:[#allocation2 + $0x2] sm:$0x3] }
 0x6a0   : > { %3394 = vmatmul.mubr.f32.vlgmr.msra.gmra.mrb[26].mxu0 %v8700_v44  ;;  %5276 = vmatmul.mubr.f32.vlgmr.msra.gmra.mrb[26].mxu1 %v8700_v44 }
 0x6a1   : > { %6135 = vmatpush1.bf16.msra.mxu0 %v8252_v40  ;;  %3622 = vmatprep.mubr.f32.mxu0 %v6432_v9  ;;  %v3515_v40 = vld [vmem:[%s8835_s2 + $0x28] sm:$0xff] }
 0x6a2   : > { %6137 = vmatprep.subr.bf16.mxu0 %v8262_v33  ;;  %5310 = vmatprep.mubr.msk.f32.mxu1 %vm6433_vm0, %v6432_v9  ;;  %v6165_v33 = vpack.c.bf16 %v3515_v40, %v3512_v39 }
 0x6a4   : > { %6166 = vmatpush3.bf16.msra.mxu1 %v6165_v33 }
 0x6a5   : > { %6139 = vmatpush1.bf16.msra.mxu0 %v8270_v38  ;;  %6167 = vmatprep.subr.bf16.mxu1 %v6431_v8  ;;  %v3518_v38 = vld [vmem:[%s8835_s2 + $0x40] sm:$0xff] }
 0x6a6   : > { %6141 = vmatprep.subr.bf16.mxu0 %v8280_v62  ;;  %v3521_v62 = vld [vmem:[%s8835_s2 + $0x58] sm:$0xff] }
 0x6a9   : > { %6143 = vmatpush1.bf16.msra.mxu0 %v8291_v23  ;;  %v6168_v23 = vpack.c.bf16 %v3521_v62, %v3518_v38  ;;  %v3270_v38 = vstv %s3269_s22 }
 0x6aa   : > { %6145 = vmatprep.subr.bf16.mxu0 %v8307_v41  ;;  %vm3271_vm13 = vcmp.eq.s32.totalorder %v3270_v38, 1 }
 0x6ab   : > { %6169 = vmatpush3.bf16.msra.mxu1 %v6168_v23 }
 0x6ac   : > { %6170 = vmatprep.subr.bf16.mxu1 %v6431_v8 }
 0x6ad   : > { %6147 = vmatpush1.bf16.msra.mxu0 %v8319_v5 }
 0x6ae   : > { %6149 = vmatprep.subr.bf16.mxu0 %v8335_v1 }
 0x6af   : > { %6172 = vmatpush3.bf16.msra.mxu1 %v8297_v42  ;;  %v4404_v42 = vld [vmem:[%s6489_s9 + $0x12] sm:$0x7] }
 0x6b0   : > { %6173 = vmatprep.subr.bf16.mxu1 %v6431_v8  ;;  %v3050_v41 = vunpack.c.l.bf16 %v4404_v42 }
 0x6b1   : > { %6151 = vmatpush1.bf16.msra.mxu0 %v8347_v29 }
 0x6b2   : > { %6153 = vmatprep.subr.bf16.mxu0 %v8363_v37  ;;  %v3248_v1 = vrot.slane %v3050_v41, 2  ;;  %v3259_v60 = vrot.slane %v3050_v41, 4 }
 0x6b3   : > { %6175 = vmatpush3.bf16.msra.mxu1 %v8325_v25 }
 0x6b4   : > { %6176 = vmatprep.subr.bf16.mxu1 %v6431_v8 }
 0x6b5   : > { %6155 = vmatpush1.bf16.msra.mxu0 %v8375_v47 }
 0x6b6   : > { %6157 = vmatprep.subr.bf16.mxu0 %v8391_v48 }
 0x6b7   : > { %6178 = vmatpush3.bf16.msra.mxu1 %v8353_v26 }
 0x6b8   : > { %6179 = vmatprep.subr.bf16.mxu1 %v6431_v8 }
 0x6b9   : > { %6159 = vmatpush1.bf16.msra.mxu0 %v8403_v12 }
 0x6ba   : > { %6161 = vmatprep.subr.bf16.mxu0 %v8419_v3 }
 0x6bb   : > { %6181 = vmatpush3.bf16.msra.mxu1 %v8381_v32 }
 0x6bc   : > { %6182 = vmatprep.subr.bf16.mxu1 %v6431_v8 }
 0x6bd   : > { %6163 = vmatpush1.bf16.msra.mxu0 %v8431_v51 }
 0x6be   : > { %6189 = vmatprep.subr.bf16.mxu0 %v8447_v31  ;;  %v8754_v31 = vld [vmem:[%s8836_s3] ss:$0 sm:$0xff] }
 0x6bf   : > { %6184 = vmatpush3.bf16.msra.mxu1 %v8409_v49 }
 0x6c0   : > { %6185 = vmatprep.subr.bf16.mxu1 %v6431_v8 }
 0x6c3   : > { %6187 = vmatpush3.bf16.msra.mxu1 %v8437_v20  ;;  %v4408_v20 = vld [vmem:[%s6494_s12 + $0x3] sm:$0x7] }
 0x6c4   : > { %6220 = vmatprep.subr.bf16.mxu1 %v6431_v8  ;;  %v3280_v54 = vunpack.c.l.bf16 %v4408_v20 }
 0x6c6   : > { %v3478_v56 = vrot.slane %v3280_v54, 2 }
 0x753   : > { %v3165_v5 = vpop.f32.mrb[24].mxu0  ;;  %v3236_v25 = vpop.f32.mrb[24].mxu1 }
 0x754   : > { %v3240_v29 = vadd.f32 %v3165_v5, %v3050_v41  ;;  %v3167_v26 = vpop.f32.mrb[25].mxu0  ;;  %v5242_v37 = vpop.f32.mrb[25].mxu1  ;;  %v3257_v53 = vadd.f32 %v8754_v31, %v3236_v25 }
 0x755   : > { %v3250_v32 = vadd.f32 %v3248_v1, %v3167_v26 }
 0x756   : > { %v4405_v47 = vmul.f32 -1.442695, %v3240_v29 }
 0x757   : > { %v4406_v48 = vmul.f32 -1.442695, %v3250_v32 }
 0x758   : > { %6378 = vpow2.f32 %v4405_v47 }
 0x759   : > { %6380 = vpow2.f32 %v4406_v48  ;;  %v3489_v48 = vrot.slane %v3280_v54, 4 }
 0x762   : > { %v6379_v12 = vpop.eup %6378 }
 0x763   : > { %v3244_v49 = vadd.f32 1.0, %v6379_v12  ;;  %v6381_v3 = vpop.eup %6380 }
 0x764   : > { %v3254_v51 = vadd.f32 1.0, %v6381_v3  ;;  %v3737_v3 = vld [vmem:[%s6494_s12] sm:$0x7] }
 0x765   : > { %6382 = vrcp.f32 %v3244_v49 }
 0x766   : > { %6384 = vrcp.f32 %v3254_v51 }
 0x76f   : > { %v6383_v22 = vpop.eup %6382 }
 0x770   : > { %v3258_v11 = vmul.f32 %v6383_v22, %v3257_v53  ;;  %v6385_v39 = vpop.eup %6384 }
 0x771   : > { %v3263_v33 = vsub.f32 1.0, %v6385_v39  ;;  %v3265_v42 = vmul.f32 %v6385_v39, %v8500_v58 }
 0x772   : > { %v3261_v55 = vadd.f32 %v3259_v60, %v3258_v11  ;;  %v3738_v60 = vunpack.c.l.bf16 %v3737_v3 }
 0x773   : > { %v3395_v0 = vpop.f32.mrb[26].mxu0  ;;  %v3466_v30 = vpop.f32.mrb[26].mxu1 }
 0x774   : > { %6386 = vtanh.f32 %v3261_v55  ;;  %v3470_v13 = vadd.f32 %v3395_v0, %v3280_v54  ;;  %v3397_v16 = vpop.f32.mrb[27].mxu0  ;;  %v5277_v21 = vpop.f32.mrb[27].mxu1  ;;  %v3936_v0 = vrot.slane %v3738_v60, 2 }
 0x775   : > { %v3480_v43 = vadd.f32 %v3478_v56, %v3397_v16 }
 0x776   : > { %v4457_v63 = vmul.f32 -1.442695, %v3470_v13 }
 0x777   : > { %v4458_v40 = vmul.f32 -1.442695, %v3480_v43 }
 0x778   : > { %6388 = vpow2.f32 %v4457_v63 }
 0x779   : > { %6390 = vpow2.f32 %v4458_v40 }
 0x77e   : > { %v6387_v62 = vpop.eup %6386 }
 0x77f   : > { %v3264_v23 = vmul.f32 %v6387_v62, %v3263_v33 }
 0x781   : > { %v3266_v41 = vadd.f32 %v3265_v42, %v3264_v23 }
 0x782   : > { %v6389_v5 = vpop.eup %6388 }
 0x783   : > { %v3272_v25 = vsel %vm3271_vm13, %v3266_v41, %v8500_v58  ;;  %v3474_v1 = vadd.f32 1.0, %v6389_v5  ;;  %v6391_v26 = vpop.eup %6390  ;;  %v8772_v58 = vld [vmem:[%s8836_s3 + $0x1] ss:$0 sm:$0xff] }
 0x784   : > { %v3274_v29 = vpack.c.bf16 %v3272_v25, %v3272_v25  ;;  %3273 = vst [vmem:[#allocation2] sm:$0x3] %v3272_v25  ;;  %v3484_v47 = vadd.f32 1.0, %v6391_v26  ;;  %v3487_v32 = vadd.f32 %v8772_v58, %v3466_v30  ;;  %v3947_v26 = vrot.slane %v3738_v60, 4 }
 0x785   : > { %6392 = vrcp.f32 %v3474_v1 }
 0x786   : > { %4407 = vst [vmem:[%s6479_s27 + $0x6] sm:$0x1] %v3274_v29  ;;  %6394 = vrcp.f32 %v3484_v47 }
 0x78b   : > { %v8763_v37 = vld [vmem:[#allocation2] sm:$0x3] }
 0x78c   : > { %3623 = vmatmul.mubr.f32.vlgmr.msra.gmra.mrb[28].mxu0 %v8763_v37  ;;  %5311 = vmatmul.mubr.f32.vlgmr.msra.gmra.mrb[28].mxu1 %v8763_v37 }
 0x78d   : > { %6191 = vmatpush1.bf16.msra.mxu0 %v8482_v34  ;;  %6222 = vmatpush3.bf16.msra.mxu1 %v8484_v50 }
 0x78e   : > { %6193 = vmatprep.subr.bf16.mxu0 %v8489_v7  ;;  %6223 = vmatprep.subr.bf16.mxu1 %v6431_v8 }
 0x78f   : > { %v6393_v12 = vpop.eup %6392  ;;  %3851 = vmatprep.mubr.f32.mxu0 %v6432_v9  ;;  %5345 = vmatprep.mubr.msk.f32.mxu1 %vm6433_vm0, %v6432_v9 }
 0x790   : > { %v3488_v34 = vmul.f32 %v6393_v12, %v3487_v32  ;;  %v6395_v9 = vpop.eup %6394 }
 0x791   : > { %6195 = vmatpush1.bf16.msra.mxu0 %v8512_v35  ;;  %6225 = vmatpush3.bf16.msra.mxu1 %v8514_v59  ;;  %v3493_v7 = vsub.f32 1.0, %v6395_v9  ;;  %v3499_v35 = vstv %s3498_s28 }
 0x792   : > { %v3491_v50 = vadd.f32 %v3489_v48, %v3488_v34  ;;  %6197 = vmatprep.subr.bf16.mxu0 %v8523_v14  ;;  %6226 = vmatprep.subr.bf16.mxu1 %v6431_v8  ;;  %vm3500_vm14 = vcmp.eq.s32.totalorder %v3499_v35, 1 }
 0x794   : > { %6396 = vtanh.f32 %v3491_v50 }
 0x795   : > { %6199 = vmatpush1.bf16.msra.mxu0 %v8545_v36  ;;  %6228 = vmatpush3.bf16.msra.mxu1 %v8547_v45  ;;  %v3495_v36 = vmul.f32 %v6395_v9, %v8700_v44 }
 0x796   : > { %6201 = vmatprep.subr.bf16.mxu0 %v8554_v4  ;;  %6229 = vmatprep.subr.bf16.mxu1 %v6431_v8 }
 0x799   : > { %6203 = vmatpush1.bf16.msra.mxu0 %v8579_v10  ;;  %6231 = vmatpush3.bf16.msra.mxu1 %v8581_v61 }
 0x79a   : > { %6205 = vmatprep.subr.bf16.mxu0 %v8588_v27  ;;  %6232 = vmatprep.subr.bf16.mxu1 %v6431_v8  ;;  %v4460_v27 = vld [vmem:[%s6489_s9 + $0x15] sm:$0x7]  ;;  %s3726_s9 = sadd.s32 7, %s6472_s20 }
 0x79b   : > { %p3727_p6 = scmp.lt.s32.totalorder %s3726_s9, 12  ;;  %p3955_p7 = scmp.ge.s32.totalorder %s3726_s9, 4 }
 0x79d   : > { %6207 = vmatpush1.bf16.msra.mxu0 %v8609_v46  ;;  %6234 = vmatpush3.bf16.msra.mxu1 %v8611_v24  ;;  %v3509_v46 = vunpack.c.l.bf16 %v4460_v27  ;;  %s3728_s12 = scalar_select %p3727_p6, 1, 0 }
 0x79e   : > { %v6397_v59 = vpop.eup %6396  ;;  %6209 = vmatprep.subr.bf16.mxu0 %v8618_v15  ;;  %6235 = vmatprep.subr.bf16.mxu1 %v6431_v8  ;;  %s3956_s25 = scalar_select %p3955_p7, 1, 0 }
 0x79f   : > { %v3494_v14 = vmul.f32 %v6397_v59, %v3493_v7  ;;  %v3718_v20 = vrot.slane %v3509_v46, 4  ;;  %v3729_v39 = vstv %s3728_s12 }
 0x7a0   : > { %vm3730_vm15 = vcmp.eq.s32.totalorder %v3729_v39, 1  ;;  %v3957_v34 = vstv %s3956_s25 }
 0x7a1   : > { %v3496_v45 = vadd.f32 %v3495_v36, %v3494_v14  ;;  %6211 = vmatpush1.bf16.msra.mxu0 %v8637_v17  ;;  %6237 = vmatpush3.bf16.msra.mxu1 %v8639_v2  ;;  %v3707_v17 = vrot.slane %v3509_v46, 2  ;;  %vm3958_vm0 = vcmp.eq.s32.totalorder %v3957_v34, 1 }
 0x7a2   : > { %6213 = vmatprep.subr.bf16.mxu0 %v8646_v18  ;;  %6238 = vmatprep.subr.bf16.mxu1 %v6431_v8 }
 0x7a3   : > { %v3501_v4 = vsel %vm3500_vm14, %v3496_v45, %v8700_v44 }
 0x7a4   : > { %v3503_v10 = vpack.c.bf16 %v3501_v4, %v3501_v4  ;;  %3502 = vst [vmem:[#allocation2 + $0x2] sm:$0x3] %v3501_v4 }
 0x7a5   : > { %6215 = vmatpush1.bf16.msra.mxu0 %v8666_v57  ;;  %6240 = vmatpush3.bf16.msra.mxu1 %v8668_v52 }
 0x7a6   : > { %4459 = vst [vmem:[%s6484_s6 + $0x1] sm:$0x1] %v3503_v10  ;;  %6217 = vmatprep.subr.bf16.mxu0 %v8675_v6  ;;  %6241 = vmatprep.subr.bf16.mxu1 %v6431_v8 }
 0x7a9   : > { %6219 = vmatpush1.bf16.msra.mxu0 %v8689_v28  ;;  %6243 = vmatpush3.bf16.msra.mxu1 %v8691_v19 }
 0x7ab   : > { %v8811_v61 = vld [vmem:[#allocation2 + $0x2] sm:$0x3] }
 0x7ac   : > { %3852 = vmatmul.mubr.f32.vlgmr.msra.gmra.mrb[30].mxu0 %v8811_v61  ;;  %5346 = vmatmul.mubr.f32.vlgmr.msra.gmra.mrb[30].mxu1 %v8811_v61 }
 0x85f   : > { %v3624_v24 = vpop.f32.mrb[28].mxu0  ;;  %v3695_v15 = vpop.f32.mrb[28].mxu1 }
 0x860   : > { %v3699_v2 = vadd.f32 %v3624_v24, %v3509_v46  ;;  %v3626_v18 = vpop.f32.mrb[29].mxu0  ;;  %v5312_v57 = vpop.f32.mrb[29].mxu1  ;;  %v3716_v51 = vadd.f32 %v8754_v31, %v3695_v15 }
 0x861   : > { %v3709_v52 = vadd.f32 %v3707_v17, %v3626_v18 }
 0x862   : > { %v4461_v8 = vmul.f32 -1.442695, %v3699_v2 }
 0x863   : > { %v4462_v6 = vmul.f32 -1.442695, %v3709_v52 }
 0x864   : > { %6398 = vpow2.f32 %v4461_v8 }
 0x865   : > { %6400 = vpow2.f32 %v4462_v6 }
 0x86e   : > { %v6399_v28 = vpop.eup %6398 }
 0x86f   : > { %v3703_v19 = vadd.f32 1.0, %v6399_v28  ;;  %v6401_v44 = vpop.eup %6400 }
 0x870   : > { %v3713_v49 = vadd.f32 1.0, %v6401_v44 }
 0x871   : > { %6402 = vrcp.f32 %v3703_v19 }
 0x872   : > { %6404 = vrcp.f32 %v3713_v49 }
 0x87b   : > { %v6403_v53 = vpop.eup %6402 }
 0x87c   : > { %v3717_v22 = vmul.f32 %v6403_v53, %v3716_v51  ;;  %v6405_v31 = vpop.eup %6404 }
 0x87d   : > { %v3722_v43 = vsub.f32 1.0, %v6405_v31  ;;  %v3724_v38 = vmul.f32 %v6405_v31, %v8763_v37 }
 0x87e   : > { %v3720_v54 = vadd.f32 %v3718_v20, %v3717_v22 }
 0x87f   : > { %v3853_v11 = vpop.f32.mrb[30].mxu0  ;;  %v3924_v55 = vpop.f32.mrb[30].mxu1 }
 0x880   : > { %6406 = vtanh.f32 %v3720_v54  ;;  %v3928_v30 = vadd.f32 %v3853_v11, %v3738_v60  ;;  %v3855_v56 = vpop.f32.mrb[31].mxu0  ;;  %v5347_v13 = vpop.f32.mrb[31].mxu1  ;;  %v3945_v29 = vadd.f32 %v8772_v58, %v3924_v55 }
 0x881   : > { %v3938_v21 = vadd.f32 %v3936_v0, %v3855_v56 }
 0x882   : > { %v4512_v16 = vmul.f32 -1.442695, %v3928_v30 }
 0x883   : > { %v4513_v63 = vmul.f32 -1.442695, %v3938_v21 }
 0x884   : > { %6408 = vpow2.f32 %v4512_v16 }
 0x885   : > { %6410 = vpow2.f32 %v4513_v63 }
 0x88a   : > { %v6407_v40 = vpop.eup %6406 }
 0x88b   : > { %v3723_v33 = vmul.f32 %v6407_v40, %v3722_v43 }
 0x88d   : > { %v3725_v62 = vadd.f32 %v3724_v38, %v3723_v33 }
 0x88e   : > { %v6409_v23 = vpop.eup %6408 }
 0x88f   : > { %v3731_v42 = vsel %vm3730_vm15, %v3725_v62, %v8763_v37  ;;  %v3932_v41 = vadd.f32 1.0, %v6409_v23  ;;  %v6411_v25 = vpop.eup %6410 }
 0x890   : > { %3732 = vst [vmem:[#allocation2] sm:$0x3] %v3731_v42  ;;  %v3733_v5 = vpack.c.bf16 %v3731_v42, %v3731_v42  ;;  %v3942_v1 = vadd.f32 1.0, %v6411_v25 }
 0x891   : > { %6412 = vrcp.f32 %v3932_v41 }
 0x892   : > { %4463 = vst [vmem:[%s6479_s27 + $0x7] sm:$0x1] %v3733_v5  ;;  %6414 = vrcp.f32 %v3942_v1 }
 0x89b   : > { %v6413_v47 = vpop.eup %6412 }
 0x89c   : > { %v3946_v32 = vmul.f32 %v6413_v47, %v3945_v29  ;;  %v6415_v37 = vpop.eup %6414 }
 0x89d   : > { %v3951_v12 = vsub.f32 1.0, %v6415_v37  ;;  %v3953_v7 = vmul.f32 %v6415_v37, %v8811_v61 }
 0x89e   : > { %v3949_v48 = vadd.f32 %v3947_v26, %v3946_v32 }
 0x8a0   : > { %6416 = vtanh.f32 %v3949_v48 }
 0x8aa   : > { %v6417_v50 = vpop.eup %6416 }
 0x8ab   : > { %v3952_v9 = vmul.f32 %v6417_v50, %v3951_v12 }
 0x8ad   : > { %v3954_v35 = vadd.f32 %v3953_v7, %v3952_v9 }
 0x8af   : > { %v3959_v58 = vsel %vm3958_vm0, %v3954_v35, %v8811_v61 }
 0x8b0   : > { %3960 = vst [vmem:[#allocation2 + $0x2] sm:$0x3] %v3959_v58  ;;  %v3961_v59 = vpack.c.bf16 %v3959_v58, %v3959_v58 }
 0x8b2   : > { %3962 = vst [vmem:[%s6484_s6] sm:$0x1] %v3961_v59 }
 0x8b3 PF: > { %s16_s18 = sadd.s32 1, %s6428_s18  }
 0x8b4   : > { %p13_p8 = scmp.ge.s32.totalorder %s16_s18, 4  }
 0x8b6   :  { %15 = sbr.rel (!%p13_p8) target bundleno = 1 (0x1), region = 116 }

// kernel: a_call__.4
= control target key start
LH: loop header
LB: loop body
LE: loop exit
PB: predicated region body
PF: predicated region fallthrough
CT: control target
= control target key end

     0   :  { %v6028_v3 = vmov 0.0|0.0   ;;  %v6029_v4 = vmov 0.0   ;;  %vm6030_vm0 = vmmov 0   ;;  %s8366_s2 = inlined_call_operand.vmem [shape: f32[2,128,384], index: 2, kind: input, shape index: {}]   ;;  %s8367_s0 = inlined_call_operand.vmem [shape: bf16[8,2,384], index: 0, kind: input, shape index: {}]   ;;  %s8368_s3 = inlined_call_operand.vmem [shape: f32[2,1,128], index: 3, kind: input, shape index: {}]   ;;  %s8369_s1 = inlined_call_operand.vmem [shape: bf16[8,2,384], index: 1, kind: input, shape index: {}]   ;;  %s8370_s4 = inlined_call_operand.vmem [shape: bf16[8,2,128], index: 4, kind: output, shape index: {0}]   ;;  %s8371_s5 = inlined_call_operand.vmem [shape: bf16[8,2,128], index: 5, kind: output, shape index: {1}]  }
   0x1   :  { %v78_v0 = vld [vmem:[%s8366_s2 + $0x8] sm:$0xff]  ;;  %v81_v1 = vld [vmem:[%s8366_s2 + $0x20] sm:$0xff]  ;;  %4997 = vmatprep.subr.bf16.mxu1 %v6028_v3  ;;  %189 = vmatprep.mubr.f32.mxu0 %v6029_v4  ;;  %57 = vst [vmem:[#allocation2] sm:$0x3] %v6029_v4  ;;  %58 = vst [vmem:[#allocation2 + $0x2] sm:$0x3] %v6029_v4 }
   0x2   :  { %v77_v2 = vld [vmem:[%s8366_s2] sm:$0xff]  ;;  %v6074_v5 = vpack.c.bf16 %v81_v1, %v78_v0  ;;  %v80_v6 = vld [vmem:[%s8366_s2 + $0x18] sm:$0xff]  ;;  %v87_v8 = vld [vmem:[%s8366_s2 + $0x50] sm:$0xff]  ;;  %4437 = vmatprep.mubr.msk.f32.mxu1 %vm6030_vm0, %v6029_v4 }
   0x3   :  { %v84_v7 = vld [vmem:[%s8366_s2 + $0x38] sm:$0xff]  ;;  %v6087_v9 = vpack.c.bf16 %v80_v6, %v77_v2  ;;  %v83_v11 = vld [vmem:[%s8366_s2 + $0x30] sm:$0xff]  ;;  %v86_v12 = vld [vmem:[%s8366_s2 + $0x48] sm:$0xff] }
   0x4   :  { %v6089_v10 = vpack.c.bf16 %v87_v8, %v84_v7  ;;  %v90_v13 = vld [vmem:[%s8366_s2 + $0x68] sm:$0xff]  ;;  %4966 = vmatprep.subr.bf16.mxu0 %v6074_v5  ;;  %v93_v14 = vld [vmem:[%s8366_s2 + $0x80] sm:$0xff]  ;;  %v6105_v15 = vpack.c.bf16 %v86_v12, %v83_v11  ;;  %v92_v18 = vld [vmem:[%s8366_s2 + $0x78] sm:$0xff] }
   0x5   :  { %4968 = vmatpush1.bf16.msra.mxu0 %v6087_v9  ;;  %v6108_v16 = vpack.c.bf16 %v93_v14, %v90_v13  ;;  %v89_v17 = vld [vmem:[%s8366_s2 + $0x60] sm:$0xff]  ;;  %v96_v19 = vld [vmem:[%s8366_s2 + $0x98] sm:$0xff]  ;;  %v99_v20 = vld [vmem:[%s8366_s2 + $0xb0] sm:$0xff] }
   0x6   :  { %4970 = vmatprep.subr.bf16.mxu0 %v6089_v10  ;;  %v6123_v21 = vpack.c.bf16 %v92_v18, %v89_v17  ;;  %v95_v22 = vld [vmem:[%s8366_s2 + $0x90] sm:$0xff]  ;;  %v6129_v23 = vpack.c.bf16 %v99_v20, %v96_v19  ;;  %v98_v24 = vld [vmem:[%s8366_s2 + $0xa8] sm:$0xff]  ;;  %v105_v28 = vld [vmem:[%s8366_s2 + $0xe0] sm:$0xff] }
   0x7   :  { %v79_v25 = vld [vmem:[%s8366_s2 + $0x10] sm:$0xff]  ;;  %v82_v26 = vld [vmem:[%s8366_s2 + $0x28] sm:$0xff]  ;;  %v85_v30 = vld [vmem:[%s8366_s2 + $0x40] sm:$0xff]  ;;  %v6155_v32 = vpack.c.bf16 %v98_v24, %v95_v22 }
   0x8   :  { %v102_v27 = vld [vmem:[%s8366_s2 + $0xc8] sm:$0xff]  ;;  %v6146_v29 = vpack.c.bf16 %v82_v26, %v79_v25  ;;  %v88_v31 = vld [vmem:[%s8366_s2 + $0x58] sm:$0xff]  ;;  %v101_v35 = vld [vmem:[%s8366_s2 + $0xc0] sm:$0xff] }
   0x9   :  { %4972 = vmatpush1.bf16.msra.mxu0 %v6105_v15  ;;  %v6158_v33 = vpack.c.bf16 %v88_v31, %v85_v30  ;;  %v6161_v34 = vpack.c.bf16 %v105_v28, %v102_v27  ;;  %v104_v36 = vld [vmem:[%s8366_s2 + $0xd8] sm:$0xff]  ;;  %v91_v37 = vld [vmem:[%s8366_s2 + $0x70] sm:$0xff]  ;;  %v94_v40 = vld [vmem:[%s8366_s2 + $0x88] sm:$0xff] }
   0xa   :  { %4974 = vmatprep.subr.bf16.mxu0 %v6108_v16  ;;  %4999 = vmatpush3.bf16.msra.mxu1 %v6146_v29  ;;  %v108_v38 = vld [vmem:[%s8366_s2 + $0xf8] sm:$0xff]  ;;  %v111_v39 = vld [vmem:[%s8366_s2 + $0x110] sm:$0xff]  ;;  %v6183_v41 = vpack.c.bf16 %v104_v36, %v101_v35  ;;  %v6189_v43 = vpack.c.bf16 %v94_v40, %v91_v37  ;;  %v110_v45 = vld [vmem:[%s8366_s2 + $0x108] sm:$0xff] }
   0xb   :  { %5000 = vmatprep.subr.bf16.mxu1 %v6028_v3  ;;  %v107_v42 = vld [vmem:[%s8366_s2 + $0xf0] sm:$0xff]  ;;  %v6192_v44 = vpack.c.bf16 %v111_v39, %v108_v38  ;;  %v97_v46 = vld [vmem:[%s8366_s2 + $0xa0] sm:$0xff]  ;;  %v100_v47 = vld [vmem:[%s8366_s2 + $0xb8] sm:$0xff] }
   0xc   :  { %v114_v48 = vld [vmem:[%s8366_s2 + $0x128] sm:$0xff]  ;;  %v117_v49 = vld [vmem:[%s8366_s2 + $0x140] sm:$0xff]  ;;  %v6211_v50 = vpack.c.bf16 %v110_v45, %v107_v42  ;;  %v6217_v52 = vpack.c.bf16 %v100_v47, %v97_v46  ;;  %v116_v54 = vld [vmem:[%s8366_s2 + $0x138] sm:$0xff] }
   0xd   :  { %4976 = vmatpush1.bf16.msra.mxu0 %v6123_v21  ;;  %v113_v51 = vld [vmem:[%s8366_s2 + $0x120] sm:$0xff]  ;;  %v6220_v53 = vpack.c.bf16 %v117_v49, %v114_v48  ;;  %v103_v55 = vld [vmem:[%s8366_s2 + $0xd0] sm:$0xff]  ;;  %v106_v56 = vld [vmem:[%s8366_s2 + $0xe8] sm:$0xff] }
   0xe   :  { %4978 = vmatprep.subr.bf16.mxu0 %v6129_v23  ;;  %5002 = vmatpush3.bf16.msra.mxu1 %v6158_v33  ;;  %v120_v57 = vld [vmem:[%s8366_s2 + $0x158] sm:$0xff]  ;;  %v123_v58 = vld [vmem:[%s8366_s2 + $0x170] sm:$0xff]  ;;  %v6239_v59 = vpack.c.bf16 %v116_v54, %v113_v51  ;;  %v6245_v61 = vpack.c.bf16 %v106_v56, %v103_v55  ;;  %v122_v63 = vld [vmem:[%s8366_s2 + $0x168] sm:$0xff] }
   0xf   :  { %5003 = vmatprep.subr.bf16.mxu1 %v6028_v3  ;;  %v119_v60 = vld [vmem:[%s8366_s2 + $0x150] sm:$0xff]  ;;  %v6248_v62 = vpack.c.bf16 %v123_v58, %v120_v57  ;;  %v109_v0 = vld [vmem:[%s8366_s2 + $0x100] sm:$0xff]  ;;  %v112_v1 = vld [vmem:[%s8366_s2 + $0x118] sm:$0xff] }
  0x10   :  { %v3693_v2 = vld [vmem:[%s8366_s2 + $0x188] sm:$0xff]  ;;  %v3696_v6 = vld [vmem:[%s8366_s2 + $0x1a0] sm:$0xff]  ;;  %v6267_v7 = vpack.c.bf16 %v122_v63, %v119_v60  ;;  %v6273_v11 = vpack.c.bf16 %v112_v1, %v109_v0  ;;  %v3695_v13 = vld [vmem:[%s8366_s2 + $0x198] sm:$0xff] }
  0x11   :  { %4980 = vmatpush1.bf16.msra.mxu0 %v6155_v32  ;;  %v3692_v8 = vld [vmem:[%s8366_s2 + $0x180] sm:$0xff]  ;;  %v6276_v12 = vpack.c.bf16 %v3696_v6, %v3693_v2  ;;  %v115_v14 = vld [vmem:[%s8366_s2 + $0x130] sm:$0xff]  ;;  %v118_v17 = vld [vmem:[%s8366_s2 + $0x148] sm:$0xff] }
  0x12   :  { %4982 = vmatprep.subr.bf16.mxu0 %v6161_v34  ;;  %5005 = vmatpush3.bf16.msra.mxu1 %v6189_v43  ;;  %v3699_v18 = vld [vmem:[%s8366_s2 + $0x1b8] sm:$0xff]  ;;  %v3702_v19 = vld [vmem:[%s8366_s2 + $0x1d0] sm:$0xff]  ;;  %v6295_v20 = vld [vmem:[#allocation2] sm:$0x3]  ;;  %v6297_v22 = vpack.c.bf16 %v3695_v13, %v3692_v8  ;;  %v6303_v25 = vpack.c.bf16 %v118_v17, %v115_v14 }
  0x13   :  { %5006 = vmatprep.subr.bf16.mxu1 %v6028_v3  ;;  %v3698_v24 = vld [vmem:[%s8366_s2 + $0x1b0] sm:$0xff]  ;;  %v6306_v26 = vpack.c.bf16 %v3702_v19, %v3699_v18  ;;  %v3701_v27 = vld [vmem:[%s8366_s2 + $0x1c8] sm:$0xff]  ;;  %v121_v28 = vld [vmem:[%s8366_s2 + $0x160] sm:$0xff] }
  0x14   :  { %v124_v30 = vld [vmem:[%s8366_s2 + $0x178] sm:$0xff]  ;;  %v3705_v31 = vld [vmem:[%s8366_s2 + $0x1e8] sm:$0xff]  ;;  %v3708_v35 = vld [vmem:[%s8366_s2 + $0x200] sm:$0xff]  ;;  %v6326_v36 = vpack.c.bf16 %v3701_v27, %v3698_v24 }
  0x15   :  { %4984 = vmatpush1.bf16.msra.mxu0 %v6183_v41  ;;  %v3704_v37 = vld [vmem:[%s8366_s2 + $0x1e0] sm:$0xff]  ;;  %v6332_v38 = vpack.c.bf16 %v124_v30, %v121_v28  ;;  %v6335_v39 = vpack.c.bf16 %v3708_v35, %v3705_v31  ;;  %v3707_v40 = vld [vmem:[%s8366_s2 + $0x1f8] sm:$0xff]  ;;  %v3694_v42 = vld [vmem:[%s8366_s2 + $0x190] sm:$0xff] }
  0x16   :  { %4986 = vmatprep.subr.bf16.mxu0 %v6192_v44  ;;  %5008 = vmatpush3.bf16.msra.mxu1 %v6217_v52  ;;  %v3697_v45 = vld [vmem:[%s8366_s2 + $0x1a8] sm:$0xff]  ;;  %v3711_v46 = vld [vmem:[%s8366_s2 + $0x218] sm:$0xff]  ;;  %v3714_v47 = vld [vmem:[%s8366_s2 + $0x230] sm:$0xff]  ;;  %v6355_v48 = vpack.c.bf16 %v3707_v40, %v3704_v37 }
  0x17   :  { %5009 = vmatprep.subr.bf16.mxu1 %v6028_v3  ;;  %v3710_v49 = vld [vmem:[%s8366_s2 + $0x210] sm:$0xff]  ;;  %v6361_v51 = vpack.c.bf16 %v3697_v45, %v3694_v42  ;;  %v6364_v54 = vpack.c.bf16 %v3714_v47, %v3711_v46  ;;  %v3713_v55 = vld [vmem:[%s8366_s2 + $0x228] sm:$0xff]  ;;  %v3700_v56 = vld [vmem:[%s8366_s2 + $0x1c0] sm:$0xff] }
  0x18   :  { %v3703_v57 = vld [vmem:[%s8366_s2 + $0x1d8] sm:$0xff]  ;;  %v3717_v58 = vld [vmem:[%s8366_s2 + $0x248] sm:$0xff]  ;;  %v3720_v60 = vld [vmem:[%s8366_s2 + $0x260] sm:$0xff]  ;;  %v6384_v63 = vpack.c.bf16 %v3713_v55, %v3710_v49 }
  0x19   :  { %4988 = vmatpush1.bf16.msra.mxu0 %v6211_v50  ;;  %v3716_v0 = vld [vmem:[%s8366_s2 + $0x240] sm:$0xff]  ;;  %v6390_v1 = vpack.c.bf16 %v3703_v57, %v3700_v56  ;;  %v6393_v2 = vpack.c.bf16 %v3720_v60, %v3717_v58  ;;  %v3719_v6 = vld [vmem:[%s8366_s2 + $0x258] sm:$0xff]  ;;  %v3706_v8 = vld [vmem:[%s8366_s2 + $0x1f0] sm:$0xff] }
  0x1a   :  { %4990 = vmatprep.subr.bf16.mxu0 %v6220_v53  ;;  %5011 = vmatpush3.bf16.msra.mxu1 %v6245_v61  ;;  %v3709_v13 = vld [vmem:[%s8366_s2 + $0x208] sm:$0xff]  ;;  %v3723_v14 = vld [vmem:[%s8366_s2 + $0x278] sm:$0xff]  ;;  %v3726_v17 = vld [vmem:[%s8366_s2 + $0x290] sm:$0xff]  ;;  %v6414_v18 = vpack.c.bf16 %v3719_v6, %v3716_v0 }
  0x1b   :  { %5012 = vmatprep.subr.bf16.mxu1 %v6028_v3  ;;  %v3722_v19 = vld [vmem:[%s8366_s2 + $0x270] sm:$0xff]  ;;  %v6420_v24 = vpack.c.bf16 %v3709_v13, %v3706_v8  ;;  %v6423_v27 = vpack.c.bf16 %v3726_v17, %v3723_v14  ;;  %v3725_v28 = vld [vmem:[%s8366_s2 + $0x288] sm:$0xff]  ;;  %v3712_v30 = vld [vmem:[%s8366_s2 + $0x220] sm:$0xff] }
  0x1c   :  { %v3715_v31 = vld [vmem:[%s8366_s2 + $0x238] sm:$0xff]  ;;  %v3729_v35 = vld [vmem:[%s8366_s2 + $0x2a8] sm:$0xff]  ;;  %v3732_v37 = vld [vmem:[%s8366_s2 + $0x2c0] sm:$0xff]  ;;  %v6442_v40 = vpack.c.bf16 %v3725_v28, %v3722_v19 }
  0x1d   :  { %4992 = vmatpush1.bf16.msra.mxu0 %v6239_v59  ;;  %v3728_v42 = vld [vmem:[%s8366_s2 + $0x2a0] sm:$0xff]  ;;  %v6448_v45 = vpack.c.bf16 %v3715_v31, %v3712_v30  ;;  %v6451_v46 = vpack.c.bf16 %v3732_v37, %v3729_v35  ;;  %v3731_v47 = vld [vmem:[%s8366_s2 + $0x2b8] sm:$0xff]  ;;  %v3718_v49 = vld [vmem:[%s8366_s2 + $0x250] sm:$0xff] }
  0x1e   :  { %4994 = vmatprep.subr.bf16.mxu0 %v6248_v62  ;;  %5014 = vmatpush3.bf16.msra.mxu1 %v6273_v11  ;;  %v3721_v55 = vld [vmem:[%s8366_s2 + $0x268] sm:$0xff]  ;;  %v3735_v56 = vld [vmem:[%s8366_s2 + $0x2d8] sm:$0xff]  ;;  %v3738_v57 = vld [vmem:[%s8366_s2 + $0x2f0] sm:$0xff]  ;;  %v6470_v58 = vpack.c.bf16 %v3731_v47, %v3728_v42 }
  0x1f   :  { %5015 = vmatprep.subr.bf16.mxu1 %v6028_v3  ;;  %v3734_v60 = vld [vmem:[%s8366_s2 + $0x2d0] sm:$0xff]  ;;  %v6476_v0 = vpack.c.bf16 %v3721_v55, %v3718_v49  ;;  %v6479_v6 = vpack.c.bf16 %v3738_v57, %v3735_v56  ;;  %v3737_v8 = vld [vmem:[%s8366_s2 + $0x2e8] sm:$0xff]  ;;  %v3724_v13 = vld [vmem:[%s8366_s2 + $0x280] sm:$0xff] }
  0x20   :  { %v3727_v14 = vld [vmem:[%s8366_s2 + $0x298] sm:$0xff]  ;;  %v6492_v17 = vpack.c.bf16 %v3737_v8, %v3734_v60  ;;  %v3730_v28 = vld [vmem:[%s8366_s2 + $0x2b0] sm:$0xff]  ;;  %v3733_v30 = vld [vmem:[%s8366_s2 + $0x2c8] sm:$0xff] }
  0x21   :  { %4996 = vmatpush1.bf16.msra.mxu0 %v6267_v7  ;;  %v6495_v19 = vpack.c.bf16 %v3727_v14, %v3724_v13  ;;  %v6506_v31 = vld [vmem:[#allocation2 + $0x2] sm:$0x3]  ;;  %v6509_v35 = vpack.c.bf16 %v3733_v30, %v3730_v28  ;;  %v3739_v42 = vld [vmem:[%s8366_s2 + $0x2f8] sm:$0xff]  ;;  %v3691_v49 = vld [vmem:[%s8369_s1 + $0x15] sm:$0x7] }
  0x22   :  { %5022 = vmatprep.subr.bf16.mxu0 %v6276_v12  ;;  %5017 = vmatpush3.bf16.msra.mxu1 %v6303_v25  ;;  %v3736_v37 = vld [vmem:[%s8366_s2 + $0x2e0] sm:$0xff]  ;;  %v300_v57 = vunpack.c.l.bf16 %v3691_v49 }
  0x23   :  { %5018 = vmatprep.subr.bf16.mxu1 %v6028_v3  ;;  %v6521_v47 = vpack.c.bf16 %v3739_v42, %v3736_v37 }
  0x24   :  { %190 = vmatmul.mubr.f32.vlgmr.msra.gmra.mrb[0].mxu0 %v6295_v20  ;;  %v499_v14 = vrot.slane %v300_v57, 2  ;;  %v510_v49 = vrot.slane %v300_v57, 4 }
  0x25   :  { %5024 = vmatpush1.bf16.msra.mxu0 %v6297_v22  ;;  %414 = vmatprep.mubr.f32.mxu0 %v6029_v4 }
  0x26   :  { %5026 = vmatprep.subr.bf16.mxu0 %v6306_v26  ;;  %5020 = vmatpush3.bf16.msra.mxu1 %v6332_v38 }
  0x27   :  { %5053 = vmatprep.subr.bf16.mxu1 %v6028_v3 }
  0x29   :  { %5028 = vmatpush1.bf16.msra.mxu0 %v6326_v36  ;;  %4438 = vmatmul.mubr.f32.vlgmr.msra.gmra.mrb[0].mxu1 %v6295_v20 }
  0x2a   :  { %5030 = vmatprep.subr.bf16.mxu0 %v6335_v39  ;;  %5055 = vmatpush3.bf16.msra.mxu1 %v6361_v51 }
  0x2b   :  { %5056 = vmatprep.subr.bf16.mxu1 %v6028_v3  ;;  %4472 = vmatprep.mubr.msk.f32.mxu1 %vm6030_vm0, %v6029_v4 }
  0x2d   :  { %5032 = vmatpush1.bf16.msra.mxu0 %v6355_v48 }
  0x2e   :  { %5034 = vmatprep.subr.bf16.mxu0 %v6364_v54  ;;  %5058 = vmatpush3.bf16.msra.mxu1 %v6390_v1 }
  0x2f   :  { %5059 = vmatprep.subr.bf16.mxu1 %v6028_v3 }
  0x31   :  { %5036 = vmatpush1.bf16.msra.mxu0 %v6384_v63 }
  0x32   :  { %5038 = vmatprep.subr.bf16.mxu0 %v6393_v2  ;;  %5061 = vmatpush3.bf16.msra.mxu1 %v6420_v24 }
  0x33   :  { %5062 = vmatprep.subr.bf16.mxu1 %v6028_v3 }
  0x35   :  { %5040 = vmatpush1.bf16.msra.mxu0 %v6414_v18 }
  0x36   :  { %5042 = vmatprep.subr.bf16.mxu0 %v6423_v27  ;;  %5064 = vmatpush3.bf16.msra.mxu1 %v6448_v45 }
  0x37   :  { %5065 = vmatprep.subr.bf16.mxu1 %v6028_v3 }
  0x39   :  { %5044 = vmatpush1.bf16.msra.mxu0 %v6442_v40 }
  0x3a   :  { %5046 = vmatprep.subr.bf16.mxu0 %v6451_v46  ;;  %5067 = vmatpush3.bf16.msra.mxu1 %v6476_v0 }
  0x3b   :  { %5068 = vmatprep.subr.bf16.mxu1 %v6028_v3 }
  0x3d   :  { %5048 = vmatpush1.bf16.msra.mxu0 %v6470_v58 }
  0x3e   :  { %5050 = vmatprep.subr.bf16.mxu0 %v6479_v6  ;;  %5070 = vmatpush3.bf16.msra.mxu1 %v6495_v19 }
  0x3f   :  { %5071 = vmatprep.subr.bf16.mxu1 %v6028_v3 }
  0x41   :  { %5052 = vmatpush1.bf16.msra.mxu0 %v6492_v17 }
  0x42   :  { %5078 = vmatprep.subr.bf16.mxu0 %v6074_v5  ;;  %5073 = vmatpush3.bf16.msra.mxu1 %v6509_v35  ;;  %v75_v5 = vld [vmem:[%s8367_s0] sm:$0x7] }
  0x43   :  { %5074 = vmatprep.subr.bf16.mxu1 %v6028_v3 }
  0x44   :  { %415 = vmatmul.mubr.f32.vlgmr.msra.gmra.mrb[2].mxu0 %v6506_v31 }
  0x45   :  { %5080 = vmatpush1.bf16.msra.mxu0 %v6087_v9  ;;  %638 = vmatprep.mubr.f32.mxu0 %v6029_v4  ;;  %v76_v9 = vunpack.c.l.bf16 %v75_v5 }
  0x46   :  { %5082 = vmatprep.subr.bf16.mxu0 %v6089_v10  ;;  %5076 = vmatpush3.bf16.msra.mxu1 %v6521_v47 }
  0x47   :  { %5109 = vmatprep.subr.bf16.mxu1 %v6028_v3  ;;  %v285_v55 = vrot.slane %v76_v9, 4 }
  0x49   :  { %5084 = vmatpush1.bf16.msra.mxu0 %v6105_v15  ;;  %4473 = vmatmul.mubr.f32.vlgmr.msra.gmra.mrb[2].mxu1 %v6506_v31  ;;  %v274_v15 = vrot.slane %v76_v9, 2 }
  0x4a   :  { %5086 = vmatprep.subr.bf16.mxu0 %v6108_v16  ;;  %5111 = vmatpush3.bf16.msra.mxu1 %v6146_v29 }
  0x4b   :  { %5112 = vmatprep.subr.bf16.mxu1 %v6028_v3  ;;  %4507 = vmatprep.mubr.msk.f32.mxu1 %vm6030_vm0, %v6029_v4 }
  0x4d   :  { %5088 = vmatpush1.bf16.msra.mxu0 %v6123_v21 }
  0x4e   :  { %5090 = vmatprep.subr.bf16.mxu0 %v6129_v23  ;;  %5114 = vmatpush3.bf16.msra.mxu1 %v6158_v33 }
  0x4f   :  { %5115 = vmatprep.subr.bf16.mxu1 %v6028_v3 }
  0x51   :  { %5092 = vmatpush1.bf16.msra.mxu0 %v6155_v32 }
  0x52   :  { %5094 = vmatprep.subr.bf16.mxu0 %v6161_v34  ;;  %5117 = vmatpush3.bf16.msra.mxu1 %v6189_v43 }
  0x53   :  { %5118 = vmatprep.subr.bf16.mxu1 %v6028_v3 }
  0x55   :  { %5096 = vmatpush1.bf16.msra.mxu0 %v6183_v41 }
  0x56   :  { %5098 = vmatprep.subr.bf16.mxu0 %v6192_v44  ;;  %5120 = vmatpush3.bf16.msra.mxu1 %v6217_v52 }
  0x57   :  { %5121 = vmatprep.subr.bf16.mxu1 %v6028_v3 }
  0x59   :  { %5100 = vmatpush1.bf16.msra.mxu0 %v6211_v50 }
  0x5a   :  { %5102 = vmatprep.subr.bf16.mxu0 %v6220_v53  ;;  %5123 = vmatpush3.bf16.msra.mxu1 %v6245_v61 }
  0x5b   :  { %5124 = vmatprep.subr.bf16.mxu1 %v6028_v3 }
  0x5d   :  { %5104 = vmatpush1.bf16.msra.mxu0 %v6239_v59 }
  0x5e   :  { %5106 = vmatprep.subr.bf16.mxu0 %v6248_v62  ;;  %5126 = vmatpush3.bf16.msra.mxu1 %v6273_v11  ;;  %v6568_v62 = vld [vmem:[%s8368_s3] ss:$0 sm:$0xff] }
  0x5f   :  { %5127 = vmatprep.subr.bf16.mxu1 %v6028_v3 }
  0x61   :  { %5108 = vmatpush1.bf16.msra.mxu0 %v6267_v7 }
  0x62   :  { %5134 = vmatprep.subr.bf16.mxu0 %v6276_v12  ;;  %5129 = vmatpush3.bf16.msra.mxu1 %v6303_v25 }
  0x63   :  { %5130 = vmatprep.subr.bf16.mxu1 %v6028_v3 }
  0x66   :  { %5132 = vmatpush3.bf16.msra.mxu1 %v6332_v38 }
  0x67   :  { %5165 = vmatprep.subr.bf16.mxu1 %v6028_v3 }
  0xf7   :  { %v191_v10 = vpop.f32.mrb[0].mxu0 }
  0xf8   :  { %v266_v16 = vadd.f32 %v191_v10, %v76_v9  ;;  %v193_v21 = vpop.f32.mrb[1].mxu0 }
  0xf9   :  { %v276_v32 = vadd.f32 %v274_v15, %v193_v21 }
  0xfa   :  { %v3689_v23 = vmul.f32 -1.442695, %v266_v16 }
  0xfb   :  { %v3690_v34 = vmul.f32 -1.442695, %v276_v32 }
  0xfc   :  { %5864 = vpow2.f32 %v3689_v23  ;;  %v262_v41 = vpop.f32.mrb[0].mxu1 }
  0xfd   :  { %v4439_v44 = vpop.f32.mrb[1].mxu1  ;;  %5866 = vpow2.f32 %v3690_v34  ;;  %v283_v12 = vadd.f32 %v6568_v62, %v262_v41 }
 0x106   :  { %v5865_v50 = vpop.eup %5864 }
 0x107   :  { %v270_v53 = vadd.f32 1.0, %v5865_v50  ;;  %v5867_v59 = vpop.eup %5866 }
 0x108   :  { %v280_v7 = vadd.f32 1.0, %v5867_v59  ;;  %v6581_v59 = vld [vmem:[%s8368_s3 + $0x1] ss:$0 sm:$0xff] }
 0x109   :  { %5868 = vrcp.f32 %v270_v53 }
 0x10a   :  { %5870 = vrcp.f32 %v280_v7 }
 0x113   :  { %v5869_v56 = vpop.eup %5868 }
 0x114   :  { %v284_v60 = vmul.f32 %v5869_v56, %v283_v12  ;;  %v5871_v5 = vpop.eup %5870 }
 0x115   :  { %v289_v21 = vsub.f32 1.0, %v5871_v5  ;;  %v291_v9 = vmul.f32 %v5871_v5, %v6295_v20  ;;  %v1005_v5 = vld [vmem:[%s8366_s2 + $0xf8] sm:$0xff] }
 0x116   :  { %v287_v8 = vadd.f32 %v285_v55, %v284_v60  ;;  %v995_v60 = vld [vmem:[%s8366_s2 + $0xa8] sm:$0xff] }
 0x117   :  { %v416_v13 = vpop.f32.mrb[2].mxu0 }
 0x118   :  { %5872 = vtanh.f32 %v287_v8  ;;  %v491_v28 = vadd.f32 %v416_v13, %v300_v57  ;;  %v418_v30 = vpop.f32.mrb[3].mxu0  ;;  %v992_v57 = vld [vmem:[%s8366_s2 + $0x90] sm:$0xff]  ;;  %v999_v13 = vld [vmem:[%s8366_s2 + $0xc8] sm:$0xff] }
 0x119   :  { %v501_v42 = vadd.f32 %v499_v14, %v418_v30  ;;  %v6717_v8 = vpack.c.bf16 %v995_v60, %v992_v57  ;;  %v1002_v14 = vld [vmem:[%s8366_s2 + $0xe0] sm:$0xff] }
 0x11a   :  { %v3740_v37 = vmul.f32 -1.442695, %v491_v28  ;;  %v6727_v28 = vpack.c.bf16 %v1002_v14, %v999_v13  ;;  %v998_v30 = vld [vmem:[%s8366_s2 + $0xc0] sm:$0xff] }
 0x11b   :  { %v3741_v10 = vmul.f32 -1.442695, %v501_v42 }
 0x11c   :  { %5874 = vpow2.f32 %v3740_v37  ;;  %v487_v15 = vpop.f32.mrb[2].mxu1  ;;  %v1001_v37 = vld [vmem:[%s8366_s2 + $0xd8] sm:$0xff] }
 0x11d   :  { %v4474_v16 = vpop.f32.mrb[3].mxu1  ;;  %5876 = vpow2.f32 %v3741_v10  ;;  %v508_v12 = vadd.f32 %v6581_v59, %v487_v15  ;;  %v6735_v42 = vpack.c.bf16 %v1001_v37, %v998_v30  ;;  %v1008_v10 = vld [vmem:[%s8366_s2 + $0x110] sm:$0xff] }
 0x11e   :  { %v6745_v15 = vpack.c.bf16 %v1008_v10, %v1005_v5  ;;  %v1004_v16 = vld [vmem:[%s8366_s2 + $0xf0] sm:$0xff] }
 0x122   :  { %v5873_v23 = vpop.eup %5872 }
 0x123   :  { %v290_v32 = vmul.f32 %v5873_v23, %v289_v21  ;;  %v1007_v21 = vld [vmem:[%s8366_s2 + $0x108] sm:$0xff] }
 0x124   :  { %v6753_v23 = vpack.c.bf16 %v1007_v21, %v1004_v16 }
 0x125   :  { %v292_v34 = vadd.f32 %v291_v9, %v290_v32  ;;  %v1011_v9 = vld [vmem:[%s8366_s2 + $0x128] sm:$0xff]  ;;  %v1014_v32 = vld [vmem:[%s8366_s2 + $0x140] sm:$0xff] }
 0x126   :  { %v5875_v41 = vpop.eup %5874 }
 0x127   :  { %293 = vst [vmem:[#allocation2] sm:$0x3] %v292_v34  ;;  %v294_v44 = vpack.c.bf16 %v292_v34, %v292_v34  ;;  %v495_v50 = vadd.f32 1.0, %v5875_v41  ;;  %v5877_v53 = vpop.eup %5876  ;;  %v6763_v34 = vpack.c.bf16 %v1014_v32, %v1011_v9  ;;  %v1010_v41 = vld [vmem:[%s8366_s2 + $0x120] sm:$0xff] }
 0x128   :  { %v505_v20 = vadd.f32 1.0, %v5877_v53  ;;  %v1017_v53 = vld [vmem:[%s8366_s2 + $0x158] sm:$0xff] }
 0x129   :  { %295 = vst [vmem:[%s8370_s4] sm:$0x1] %v294_v44  ;;  %5878 = vrcp.f32 %v495_v50  ;;  %v1013_v44 = vld [vmem:[%s8366_s2 + $0x138] sm:$0xff] }
 0x12a   :  { %5880 = vrcp.f32 %v505_v20  ;;  %v6771_v50 = vpack.c.bf16 %v1013_v44, %v1010_v41  ;;  %v1020_v20 = vld [vmem:[%s8366_s2 + $0x170] sm:$0xff] }
 0x12e   :  { %v6583_v7 = vld [vmem:[#allocation2] sm:$0x3] }
 0x12f   :  { %639 = vmatmul.mubr.f32.vlgmr.msra.gmra.mrb[4].mxu0 %v6583_v7  ;;  %4508 = vmatmul.mubr.f32.vlgmr.msra.gmra.mrb[4].mxu1 %v6583_v7 }
 0x130   :  { %5136 = vmatpush1.bf16.msra.mxu0 %v6297_v22  ;;  %5167 = vmatpush3.bf16.msra.mxu1 %v6361_v51 }
 0x131   :  { %5138 = vmatprep.subr.bf16.mxu0 %v6306_v26  ;;  %5168 = vmatprep.subr.bf16.mxu1 %v6028_v3 }
 0x132   :  { %862 = vmatprep.mubr.f32.mxu0 %v6029_v4  ;;  %4542 = vmatprep.mubr.msk.f32.mxu1 %vm6030_vm0, %v6029_v4 }
 0x133   :  { %v5879_v55 = vpop.eup %5878 }
 0x134   :  { %v509_v56 = vmul.f32 %v5879_v55, %v508_v12  ;;  %5140 = vmatpush1.bf16.msra.mxu0 %v6326_v36  ;;  %5170 = vmatpush3.bf16.msra.mxu1 %v6390_v1  ;;  %v5881_v26 = vpop.eup %5880  ;;  %v6781_v12 = vpack.c.bf16 %v1020_v20, %v1017_v53  ;;  %v1019_v55 = vld [vmem:[%s8366_s2 + $0x168] sm:$0xff] }
 0x135   :  { %5142 = vmatprep.subr.bf16.mxu0 %v6335_v39  ;;  %5171 = vmatprep.subr.bf16.mxu1 %v6028_v3  ;;  %v514_v36 = vsub.f32 1.0, %v5881_v26 }
 0x136   :  { %v512_v22 = vadd.f32 %v510_v49, %v509_v56  ;;  %v1016_v49 = vld [vmem:[%s8366_s2 + $0x150] sm:$0xff] }
 0x137   :  { %v6789_v56 = vpack.c.bf16 %v1019_v55, %v1016_v49 }
 0x138   :  { %5882 = vtanh.f32 %v512_v22  ;;  %5144 = vmatpush1.bf16.msra.mxu0 %v6355_v48  ;;  %5173 = vmatpush3.bf16.msra.mxu1 %v6420_v24  ;;  %v516_v48 = vmul.f32 %v5881_v26, %v6506_v31  ;;  %v993_v31 = vld [vmem:[%s8366_s2 + $0x98] sm:$0xff]  ;;  %v3805_v22 = vld [vmem:[%s8366_s2 + $0x188] sm:$0xff]  ;;  %v3808_v26 = vld [vmem:[%s8366_s2 + $0x1a0] sm:$0xff] }
 0x139   :  { %5146 = vmatprep.subr.bf16.mxu0 %v6364_v54  ;;  %5174 = vmatprep.subr.bf16.mxu1 %v6028_v3 }
 0x13c   :  { %5148 = vmatpush1.bf16.msra.mxu0 %v6384_v63  ;;  %5176 = vmatpush3.bf16.msra.mxu1 %v6448_v45 }
 0x13d   :  { %5150 = vmatprep.subr.bf16.mxu0 %v6393_v2  ;;  %5177 = vmatprep.subr.bf16.mxu1 %v6028_v3 }
 0x140   :  { %5152 = vmatpush1.bf16.msra.mxu0 %v6414_v18  ;;  %5179 = vmatpush3.bf16.msra.mxu1 %v6476_v0 }
 0x141   :  { %5154 = vmatprep.subr.bf16.mxu0 %v6423_v27  ;;  %5180 = vmatprep.subr.bf16.mxu1 %v6028_v3  ;;  %v980_v27 = vld [vmem:[%s8366_s2 + $0x30] sm:$0xff] }
 0x142   :  { %v5883_v39 = vpop.eup %5882 }
 0x143   :  { %v515_v54 = vmul.f32 %v5883_v39, %v514_v36  ;;  %v6799_v36 = vpack.c.bf16 %v3808_v26, %v3805_v22  ;;  %v3743_v39 = vld [vmem:[%s8367_s0 + $0x3] sm:$0x7] }
 0x144   :  { %5156 = vmatpush1.bf16.msra.mxu0 %v6442_v40  ;;  %5182 = vmatpush3.bf16.msra.mxu1 %v6495_v19  ;;  %v983_v40 = vld [vmem:[%s8366_s2 + $0x48] sm:$0xff] }
 0x145   :  { %v517_v63 = vadd.f32 %v516_v48, %v515_v54  ;;  %5158 = vmatprep.subr.bf16.mxu0 %v6451_v46  ;;  %5183 = vmatprep.subr.bf16.mxu1 %v6028_v3  ;;  %v6681_v45 = vpack.c.bf16 %v983_v40, %v980_v27  ;;  %v987_v46 = vld [vmem:[%s8366_s2 + $0x68] sm:$0xff]  ;;  %v525_v48 = vunpack.c.l.bf16 %v3743_v39 }
 0x147   :  { %518 = vst [vmem:[#allocation2 + $0x2] sm:$0x3] %v517_v63  ;;  %v519_v2 = vpack.c.bf16 %v517_v63, %v517_v63 }
 0x148   :  { %5160 = vmatpush1.bf16.msra.mxu0 %v6470_v58  ;;  %5185 = vmatpush3.bf16.msra.mxu1 %v6509_v35  ;;  %v990_v58 = vld [vmem:[%s8366_s2 + $0x80] sm:$0xff]  ;;  %v996_v35 = vld [vmem:[%s8366_s2 + $0xb0] sm:$0xff] }
 0x149   :  { %3742 = vst [vmem:[%s8371_s5 + $0x7] sm:$0x1] %v519_v2  ;;  %5162 = vmatprep.subr.bf16.mxu0 %v6479_v6  ;;  %5186 = vmatprep.subr.bf16.mxu1 %v6028_v3  ;;  %v6691_v0 = vpack.c.bf16 %v990_v58, %v987_v46  ;;  %v986_v6 = vld [vmem:[%s8366_s2 + $0x60] sm:$0xff]  ;;  %v723_v2 = vrot.slane %v525_v48, 2 }
 0x14c   :  { %5164 = vmatpush1.bf16.msra.mxu0 %v6492_v17  ;;  %5188 = vmatpush3.bf16.msra.mxu1 %v6521_v47  ;;  %v989_v17 = vld [vmem:[%s8366_s2 + $0x78] sm:$0xff]  ;;  %v6709_v47 = vpack.c.bf16 %v996_v35, %v993_v31  ;;  %v734_v31 = vrot.slane %v525_v48, 4 }
 0x14d   :  { %5221 = vmatprep.subr.bf16.mxu1 %v6028_v3  ;;  %v6699_v19 = vpack.c.bf16 %v989_v17, %v986_v6  ;;  %v3747_v6 = vld [vmem:[%s8369_s1 + $0x12] sm:$0x7] }
 0x14e   :  { %v6626_v18 = vld [vmem:[#allocation2 + $0x2] sm:$0x3]  ;;  %v6809_v57 = vunpack.c.l.bf16 %v3747_v6 }
 0x14f   :  { %863 = vmatmul.mubr.f32.vlgmr.msra.gmra.mrb[6].mxu0 %v6626_v18  ;;  %4543 = vmatmul.mubr.f32.vlgmr.msra.gmra.mrb[6].mxu1 %v6626_v18 }
 0x150   :  { %5223 = vmatpush3.bf16.msra.mxu1 %v6146_v29  ;;  %1086 = vmatprep.mubr.f32.mxu0 %v6029_v4  ;;  %v975_v29 = vld [vmem:[%s8366_s2 + $0x8] sm:$0xff]  ;;  %v947_v37 = vrot.slane %v6809_v57, 2 }
 0x151   :  { %5224 = vmatprep.subr.bf16.mxu1 %v6028_v3  ;;  %4577 = vmatprep.mubr.msk.f32.mxu1 %vm6030_vm0, %v6029_v4 }
 0x154   :  { %5226 = vmatpush3.bf16.msra.mxu1 %v6158_v33  ;;  %v978_v33 = vld [vmem:[%s8366_s2 + $0x20] sm:$0xff] }
 0x155   :  { %5227 = vmatprep.subr.bf16.mxu1 %v6028_v3 }
 0x158   :  { %5229 = vmatpush3.bf16.msra.mxu1 %v6189_v43  ;;  %v6655_v43 = vpack.c.bf16 %v978_v33, %v975_v29 }
 0x159   :  { %5230 = vmatprep.subr.bf16.mxu1 %v6028_v3 }
 0x15a   :  { %5190 = vmatprep.subr.bf16.mxu0 %v6655_v43 }
 0x15c   :  { %5232 = vmatpush3.bf16.msra.mxu1 %v6217_v52  ;;  %v974_v52 = vld [vmem:[%s8366_s2] sm:$0xff] }
 0x15d   :  { %5233 = vmatprep.subr.bf16.mxu1 %v6028_v3 }
 0x160   :  { %5235 = vmatpush3.bf16.msra.mxu1 %v6245_v61  ;;  %v977_v61 = vld [vmem:[%s8366_s2 + $0x18] sm:$0xff] }
 0x161   :  { %5236 = vmatprep.subr.bf16.mxu1 %v6028_v3 }
 0x164   :  { %5238 = vmatpush3.bf16.msra.mxu1 %v6273_v11  ;;  %v6663_v11 = vpack.c.bf16 %v977_v61, %v974_v52 }
 0x165   :  { %5239 = vmatprep.subr.bf16.mxu1 %v6028_v3 }
 0x166   :  { %5192 = vmatpush1.bf16.msra.mxu0 %v6663_v11 }
 0x168   :  { %5241 = vmatpush3.bf16.msra.mxu1 %v6303_v25  ;;  %v981_v25 = vld [vmem:[%s8366_s2 + $0x38] sm:$0xff] }
 0x169   :  { %5242 = vmatprep.subr.bf16.mxu1 %v6028_v3 }
 0x16c   :  { %5244 = vmatpush3.bf16.msra.mxu1 %v6332_v38  ;;  %v984_v38 = vld [vmem:[%s8366_s2 + $0x50] sm:$0xff] }
 0x16d   :  { %5277 = vmatprep.subr.bf16.mxu1 %v6028_v3  ;;  %v6673_v24 = vpack.c.bf16 %v984_v38, %v981_v25 }
 0x16f   :  { %5194 = vmatprep.subr.bf16.mxu0 %v6673_v24 }
 0x170   :  { %5196 = vmatpush1.bf16.msra.mxu0 %v6681_v45 }
 0x171   :  { %5198 = vmatprep.subr.bf16.mxu0 %v6691_v0 }
 0x174   :  { %5200 = vmatpush1.bf16.msra.mxu0 %v6699_v19 }
 0x175   :  { %5202 = vmatprep.subr.bf16.mxu0 %v6709_v47 }
 0x178   :  { %5204 = vmatpush1.bf16.msra.mxu0 %v6717_v8 }
 0x179   :  { %5206 = vmatprep.subr.bf16.mxu0 %v6727_v28 }
 0x17c   :  { %5208 = vmatpush1.bf16.msra.mxu0 %v6735_v42 }
 0x17d   :  { %5210 = vmatprep.subr.bf16.mxu0 %v6745_v15 }
 0x180   :  { %5212 = vmatpush1.bf16.msra.mxu0 %v6753_v23 }
 0x181   :  { %5214 = vmatprep.subr.bf16.mxu0 %v6763_v34 }
 0x184   :  { %5216 = vmatpush1.bf16.msra.mxu0 %v6771_v50 }
 0x185   :  { %5218 = vmatprep.subr.bf16.mxu0 %v6781_v12 }
 0x188   :  { %5220 = vmatpush1.bf16.msra.mxu0 %v6789_v56 }
 0x189   :  { %5246 = vmatprep.subr.bf16.mxu0 %v6799_v36 }
 0x202   :  { %v640_v54 = vpop.f32.mrb[4].mxu0  ;;  %v711_v63 = vpop.f32.mrb[4].mxu1 }
 0x203   :  { %v715_v29 = vadd.f32 %v640_v54, %v525_v48  ;;  %v642_v33 = vpop.f32.mrb[5].mxu0  ;;  %v4509_v52 = vpop.f32.mrb[5].mxu1  ;;  %v732_v17 = vadd.f32 %v6568_v62, %v711_v63  ;;  %v3804_v48 = vld [vmem:[%s8366_s2 + $0x180] sm:$0xff]  ;;  %v3807_v54 = vld [vmem:[%s8366_s2 + $0x198] sm:$0xff]  ;;  %v3814_v63 = vld [vmem:[%s8366_s2 + $0x1d0] sm:$0xff] }
 0x204   :  { %v725_v25 = vadd.f32 %v723_v2, %v642_v33  ;;  %v6829_v2 = vpack.c.bf16 %v3807_v54, %v3804_v48  ;;  %v3810_v52 = vld [vmem:[%s8366_s2 + $0x1b0] sm:$0xff]  ;;  %v3835_v48 = vld [vmem:[%s8366_s2 + $0x278] sm:$0xff] }
 0x205   :  { %v3744_v61 = vmul.f32 -1.442695, %v715_v29  ;;  %v3838_v54 = vld [vmem:[%s8366_s2 + $0x290] sm:$0xff] }
 0x206   :  { %v3745_v38 = vmul.f32 -1.442695, %v725_v25 }
 0x207   :  { %5884 = vpow2.f32 %v3744_v61  ;;  %v3813_v61 = vld [vmem:[%s8366_s2 + $0x1c8] sm:$0xff] }
 0x208   :  { %5886 = vpow2.f32 %v3745_v38  ;;  %v3817_v38 = vld [vmem:[%s8366_s2 + $0x1e8] sm:$0xff] }
 0x211   :  { %v5885_v27 = vpop.eup %5884 }
 0x212   :  { %v719_v40 = vadd.f32 1.0, %v5885_v27  ;;  %v5887_v46 = vpop.eup %5886  ;;  %v3820_v27 = vld [vmem:[%s8366_s2 + $0x200] sm:$0xff] }
 0x213   :  { %v729_v58 = vadd.f32 1.0, %v5887_v46  ;;  %v6851_v46 = vpack.c.bf16 %v3813_v61, %v3810_v52  ;;  %v6858_v6 = vpack.c.bf16 %v3820_v27, %v3817_v38  ;;  %v6947_v52 = vpack.c.bf16 %v3838_v54, %v3835_v48  ;;  %v3837_v61 = vld [vmem:[%s8366_s2 + $0x288] sm:$0xff]  ;;  %v3836_v38 = vld [vmem:[%s8366_s2 + $0x280] sm:$0xff]  ;;  %v3839_v27 = vld [vmem:[%s8366_s2 + $0x298] sm:$0xff] }
 0x214   :  { %5888 = vrcp.f32 %v719_v40  ;;  %v3851_v48 = vld [vmem:[%s8366_s2 + $0x2f8] sm:$0xff] }
 0x215   :  { %5890 = vrcp.f32 %v729_v58  ;;  %v3816_v58 = vld [vmem:[%s8366_s2 + $0x1e0] sm:$0xff] }
 0x21e   :  { %v5889_v35 = vpop.eup %5888 }
 0x21f   :  { %v733_v60 = vmul.f32 %v5889_v35, %v732_v17  ;;  %v5891_v32 = vpop.eup %5890  ;;  %v3819_v17 = vld [vmem:[%s8366_s2 + $0x1f8] sm:$0xff] }
 0x220   :  { %v738_v44 = vsub.f32 1.0, %v5891_v32  ;;  %v740_v49 = vmul.f32 %v5891_v32, %v6583_v7  ;;  %v3811_v7 = vld [vmem:[%s8366_s2 + $0x1b8] sm:$0xff] }
 0x221   :  { %v736_v13 = vadd.f32 %v734_v31, %v733_v60  ;;  %v6831_v33 = vpack.c.bf16 %v3814_v63, %v3811_v7  ;;  %v3821_v31 = vld [vmem:[%s8366_s2 + $0x208] sm:$0xff]  ;;  %v958_v60 = vrot.slane %v6809_v57, 4 }
 0x222   :  { %v864_v14 = vpop.f32.mrb[6].mxu0  ;;  %v935_v30 = vpop.f32.mrb[6].mxu1 }
 0x223   :  { %5892 = vtanh.f32 %v736_v13  ;;  %v939_v5 = vadd.f32 %v864_v14, %v6809_v57  ;;  %v866_v10 = vpop.f32.mrb[7].mxu0  ;;  %v4544_v16 = vpop.f32.mrb[7].mxu1  ;;  %v956_v35 = vadd.f32 %v6581_v59, %v935_v30  ;;  %v3823_v13 = vld [vmem:[%s8366_s2 + $0x218] sm:$0xff]  ;;  %v3826_v14 = vld [vmem:[%s8366_s2 + $0x230] sm:$0xff]  ;;  %v6882_v57 = vpack.c.bf16 %v3819_v17, %v3816_v58  ;;  %v3841_v58 = vld [vmem:[%s8366_s2 + $0x2a8] sm:$0xff] }
 0x224   :  { %v949_v9 = vadd.f32 %v947_v37, %v866_v10  ;;  %v3822_v10 = vld [vmem:[%s8366_s2 + $0x210] sm:$0xff]  ;;  %v6891_v16 = vpack.c.bf16 %v3826_v14, %v3823_v13  ;;  %v3844_v17 = vld [vmem:[%s8366_s2 + $0x2c0] sm:$0xff]  ;;  %v3843_v14 = vld [vmem:[%s8366_s2 + $0x2b8] sm:$0xff] }
 0x225   :  { %v3796_v21 = vmul.f32 -1.442695, %v939_v5  ;;  %v6975_v13 = vpack.c.bf16 %v3844_v17, %v3841_v58  ;;  %v1463_v58 = vld [vmem:[%s8366_s2 + $0x148] sm:$0xff] }
 0x226   :  { %v3797_v41 = vmul.f32 -1.442695, %v949_v9  ;;  %v3827_v9 = vld [vmem:[%s8366_s2 + $0x238] sm:$0xff] }
 0x227   :  { %5894 = vpow2.f32 %v3796_v21  ;;  %v3825_v21 = vld [vmem:[%s8366_s2 + $0x228] sm:$0xff] }
 0x228   :  { %5896 = vpow2.f32 %v3797_v41  ;;  %v3829_v41 = vld [vmem:[%s8366_s2 + $0x248] sm:$0xff] }
 0x22d   :  { %v5893_v53 = vpop.eup %5892 }
 0x22e   :  { %v739_v20 = vmul.f32 %v5893_v53, %v738_v44  ;;  %v3832_v44 = vld [vmem:[%s8366_s2 + $0x260] sm:$0xff]  ;;  %v6910_v53 = vpack.c.bf16 %v3825_v21, %v3822_v10  ;;  %v3847_v21 = vld [vmem:[%s8366_s2 + $0x2d8] sm:$0xff] }
 0x230   :  { %v741_v55 = vadd.f32 %v740_v49, %v739_v20  ;;  %v3828_v49 = vld [vmem:[%s8366_s2 + $0x240] sm:$0xff] }
 0x231   :  { %v5895_v22 = vpop.eup %5894 }
 0x232   :  { %742 = vst [vmem:[#allocation2] sm:$0x3] %v741_v55  ;;  %v743_v26 = vpack.c.bf16 %v741_v55, %v741_v55  ;;  %v943_v39 = vadd.f32 1.0, %v5895_v22  ;;  %v5897_v29 = vpop.eup %5896  ;;  %v6919_v55 = vpack.c.bf16 %v3832_v44, %v3829_v41  ;;  %v3831_v22 = vld [vmem:[%s8366_s2 + $0x258] sm:$0xff] }
 0x233   :  { %v953_v40 = vadd.f32 1.0, %v5897_v29  ;;  %v6938_v7 = vpack.c.bf16 %v3831_v22, %v3828_v49  ;;  %v3834_v29 = vld [vmem:[%s8366_s2 + $0x270] sm:$0xff] }
 0x234   :  { %3746 = vst [vmem:[%s8370_s4 + $0x1] sm:$0x1] %v743_v26  ;;  %5898 = vrcp.f32 %v943_v39  ;;  %v3830_v26 = vld [vmem:[%s8366_s2 + $0x250] sm:$0xff]  ;;  %v3833_v39 = vld [vmem:[%s8366_s2 + $0x268] sm:$0xff] }
 0x235   :  { %5900 = vrcp.f32 %v953_v40  ;;  %v6940_v63 = vpack.c.bf16 %v3833_v39, %v3830_v26  ;;  %v3846_v49 = vld [vmem:[%s8366_s2 + $0x2d0] sm:$0xff]  ;;  %v3848_v39 = vld [vmem:[%s8366_s2 + $0x2e0] sm:$0xff] }
 0x239   :  { %v6839_v25 = vld [vmem:[#allocation2] sm:$0x3] }
 0x23a   :  { %1087 = vmatmul.mubr.f32.vlgmr.msra.gmra.mrb[8].mxu0 %v6839_v25  ;;  %4578 = vmatmul.mubr.f32.vlgmr.msra.gmra.mrb[8].mxu1 %v6839_v25 }
 0x23b   :  { %5248 = vmatpush1.bf16.msra.mxu0 %v6829_v2  ;;  %5279 = vmatpush3.bf16.msra.mxu1 %v6361_v51  ;;  %v3818_v51 = vld [vmem:[%s8366_s2 + $0x1f0] sm:$0xff] }
 0x23c   :  { %5250 = vmatprep.subr.bf16.mxu0 %v6831_v33  ;;  %5280 = vmatprep.subr.bf16.mxu1 %v6028_v3  ;;  %v6884_v30 = vpack.c.bf16 %v3821_v31, %v3818_v51  ;;  %v6966_v51 = vpack.c.bf16 %v3837_v61, %v3834_v29  ;;  %v6968_v31 = vpack.c.bf16 %v3839_v27, %v3836_v38 }
 0x23d   :  { %1310 = vmatprep.mubr.f32.mxu0 %v6029_v4  ;;  %4612 = vmatprep.mubr.msk.f32.mxu1 %vm6030_vm0, %v6029_v4  ;;  %v7019_v61 = vpack.c.bf16 %v3851_v48, %v3848_v39 }
 0x23e   :  { %v5899_v37 = vpop.eup %5898 }
 0x23f   :  { %v957_v5 = vmul.f32 %v5899_v37, %v956_v35  ;;  %5252 = vmatpush1.bf16.msra.mxu0 %v6851_v46  ;;  %5282 = vmatpush3.bf16.msra.mxu1 %v6390_v1  ;;  %v3824_v1 = vld [vmem:[%s8366_s2 + $0x220] sm:$0xff]  ;;  %v5901_v40 = vpop.eup %5900  ;;  %v3842_v37 = vld [vmem:[%s8366_s2 + $0x2b0] sm:$0xff] }
 0x240   :  { %5254 = vmatprep.subr.bf16.mxu0 %v6858_v6  ;;  %5283 = vmatprep.subr.bf16.mxu1 %v6028_v3  ;;  %v6912_v20 = vpack.c.bf16 %v3827_v9, %v3824_v1  ;;  %v3840_v35 = vld [vmem:[%s8366_s2 + $0x2a0] sm:$0xff]  ;;  %v3850_v1 = vld [vmem:[%s8366_s2 + $0x2f0] sm:$0xff] }
 0x241   :  { %v960_v32 = vadd.f32 %v958_v60, %v957_v5  ;;  %v962_v60 = vsub.f32 1.0, %v5901_v40  ;;  %v3845_v5 = vld [vmem:[%s8366_s2 + $0x2c8] sm:$0xff]  ;;  %v6995_v41 = vpack.c.bf16 %v3843_v14, %v3840_v35  ;;  %v7004_v26 = vpack.c.bf16 %v3850_v1, %v3847_v21  ;;  %v1466_v35 = vld [vmem:[%s8366_s2 + $0x160] sm:$0xff] }
 0x242   :  { %v6997_v44 = vpack.c.bf16 %v3845_v5, %v3842_v37  ;;  %v3799_v37 = vld [vmem:[%s8367_s0 + $0x6] sm:$0x7] }
 0x243   :  { %5902 = vtanh.f32 %v960_v32  ;;  %5256 = vmatpush1.bf16.msra.mxu0 %v6882_v57  ;;  %5285 = vmatpush3.bf16.msra.mxu1 %v6884_v30  ;;  %v964_v32 = vmul.f32 %v5901_v40, %v6626_v18  ;;  %v3849_v18 = vld [vmem:[%s8366_s2 + $0x2e8] sm:$0xff]  ;;  %v1460_v40 = vld [vmem:[%s8366_s2 + $0x130] sm:$0xff]  ;;  %v973_v5 = vunpack.c.l.bf16 %v3799_v37 }
 0x244   :  { %5258 = vmatprep.subr.bf16.mxu0 %v6891_v16  ;;  %5286 = vmatprep.subr.bf16.mxu1 %v6028_v3  ;;  %v7017_v29 = vpack.c.bf16 %v3849_v18, %v3846_v49  ;;  %v7119_v17 = vpack.c.bf16 %v1463_v58, %v1460_v40 }
 0x245   :  { %v1171_v1 = vrot.slane %v973_v5, 2 }
 0x247   :  { %5260 = vmatpush1.bf16.msra.mxu0 %v6910_v53  ;;  %5288 = vmatpush3.bf16.msra.mxu1 %v6912_v20 }
 0x248   :  { %5262 = vmatprep.subr.bf16.mxu0 %v6919_v55  ;;  %5289 = vmatprep.subr.bf16.mxu1 %v6028_v3 }
 0x24b   :  { %5264 = vmatpush1.bf16.msra.mxu0 %v6938_v7  ;;  %5291 = vmatpush3.bf16.msra.mxu1 %v6940_v63 }
 0x24c   :  { %5266 = vmatprep.subr.bf16.mxu0 %v6947_v52  ;;  %5292 = vmatprep.subr.bf16.mxu1 %v6028_v3 }
 0x24d   :  { %v5903_v10 = vpop.eup %5902 }
 0x24e   :  { %v963_v9 = vmul.f32 %v5903_v10, %v962_v60  ;;  %v1469_v60 = vld [vmem:[%s8366_s2 + $0x178] sm:$0xff] }
 0x24f   :  { %5268 = vmatpush1.bf16.msra.mxu0 %v6966_v51  ;;  %5294 = vmatpush3.bf16.msra.mxu1 %v6968_v31  ;;  %v7129_v14 = vpack.c.bf16 %v1469_v60, %v1466_v35 }
 0x250   :  { %v965_v22 = vadd.f32 %v964_v32, %v963_v9  ;;  %5270 = vmatprep.subr.bf16.mxu0 %v6975_v13  ;;  %5295 = vmatprep.subr.bf16.mxu1 %v6028_v3 }
 0x252   :  { %966 = vst [vmem:[#allocation2 + $0x2] sm:$0x3] %v965_v22  ;;  %v967_v54 = vpack.c.bf16 %v965_v22, %v965_v22 }
 0x253   :  { %5272 = vmatpush1.bf16.msra.mxu0 %v6995_v41  ;;  %5297 = vmatpush3.bf16.msra.mxu1 %v6997_v44 }
 0x254   :  { %3798 = vst [vmem:[%s8371_s5 + $0x6] sm:$0x1] %v967_v54  ;;  %5274 = vmatprep.subr.bf16.mxu0 %v7004_v26  ;;  %5298 = vmatprep.subr.bf16.mxu1 %v6028_v3 }
 0x257   :  { %5276 = vmatpush1.bf16.msra.mxu0 %v7017_v29  ;;  %5300 = vmatpush3.bf16.msra.mxu1 %v7019_v61 }
 0x258   :  { %5302 = vmatprep.subr.bf16.mxu0 %v6655_v43  ;;  %5333 = vmatprep.subr.bf16.mxu1 %v6028_v3  ;;  %v1424_v43 = vld [vmem:[%s8366_s2 + $0x10] sm:$0xff] }
 0x259   :  { %v7030_v38 = vld [vmem:[#allocation2 + $0x2] sm:$0x3] }
 0x25a   :  { %1311 = vmatmul.mubr.f32.vlgmr.msra.gmra.mrb[10].mxu0 %v7030_v38  ;;  %4613 = vmatmul.mubr.f32.vlgmr.msra.gmra.mrb[10].mxu1 %v7030_v38 }
 0x25b   :  { %5304 = vmatpush1.bf16.msra.mxu0 %v6663_v11  ;;  %1534 = vmatprep.mubr.f32.mxu0 %v6029_v4  ;;  %v1427_v11 = vld [vmem:[%s8366_s2 + $0x28] sm:$0xff] }
 0x25c   :  { %5306 = vmatprep.subr.bf16.mxu0 %v6673_v24  ;;  %4647 = vmatprep.mubr.msk.f32.mxu1 %vm6030_vm0, %v6029_v4  ;;  %v7059_v24 = vpack.c.bf16 %v1427_v11, %v1424_v43 }
 0x25e   :  { %5335 = vmatpush3.bf16.msra.mxu1 %v7059_v24 }
 0x25f   :  { %5308 = vmatpush1.bf16.msra.mxu0 %v6681_v45  ;;  %5336 = vmatprep.subr.bf16.mxu1 %v6028_v3  ;;  %v1430_v45 = vld [vmem:[%s8366_s2 + $0x40] sm:$0xff] }
 0x260   :  { %5310 = vmatprep.subr.bf16.mxu0 %v6691_v0  ;;  %v1433_v0 = vld [vmem:[%s8366_s2 + $0x58] sm:$0xff] }
 0x263   :  { %5312 = vmatpush1.bf16.msra.mxu0 %v6699_v19  ;;  %v7069_v19 = vpack.c.bf16 %v1433_v0, %v1430_v45  ;;  %v3803_v45 = vld [vmem:[%s8369_s1 + $0xf] sm:$0x7] }
 0x264   :  { %5314 = vmatprep.subr.bf16.mxu0 %v6709_v47  ;;  %v1436_v47 = vld [vmem:[%s8366_s2 + $0x70] sm:$0xff] }
 0x265   :  { %5338 = vmatpush3.bf16.msra.mxu1 %v7069_v19 }
 0x266   :  { %5339 = vmatprep.subr.bf16.mxu1 %v6028_v3 }
 0x267   :  { %5316 = vmatpush1.bf16.msra.mxu0 %v6717_v8  ;;  %v1439_v8 = vld [vmem:[%s8366_s2 + $0x88] sm:$0xff] }
 0x268   :  { %5318 = vmatprep.subr.bf16.mxu0 %v6727_v28  ;;  %v7079_v28 = vpack.c.bf16 %v1439_v8, %v1436_v47  ;;  %v1182_v47 = vrot.slane %v973_v5, 4 }
 0x26a   :  { %5341 = vmatpush3.bf16.msra.mxu1 %v7079_v28 }
 0x26b   :  { %5320 = vmatpush1.bf16.msra.mxu0 %v6735_v42  ;;  %5342 = vmatprep.subr.bf16.mxu1 %v6028_v3  ;;  %v1442_v42 = vld [vmem:[%s8366_s2 + $0xa0] sm:$0xff] }
 0x26c   :  { %5322 = vmatprep.subr.bf16.mxu0 %v6745_v15  ;;  %v1445_v15 = vld [vmem:[%s8366_s2 + $0xb8] sm:$0xff] }
 0x26f   :  { %5324 = vmatpush1.bf16.msra.mxu0 %v6753_v23  ;;  %v7089_v23 = vpack.c.bf16 %v1445_v15, %v1442_v42  ;;  %v1197_v42 = vunpack.c.l.bf16 %v3803_v45 }
 0x270   :  { %5326 = vmatprep.subr.bf16.mxu0 %v6763_v34  ;;  %v1448_v34 = vld [vmem:[%s8366_s2 + $0xd0] sm:$0xff] }
 0x271   :  { %5344 = vmatpush3.bf16.msra.mxu1 %v7089_v23 }
 0x272   :  { %5345 = vmatprep.subr.bf16.mxu1 %v6028_v3 }
 0x273   :  { %5328 = vmatpush1.bf16.msra.mxu0 %v6771_v50  ;;  %v1451_v50 = vld [vmem:[%s8366_s2 + $0xe8] sm:$0xff] }
 0x274   :  { %5330 = vmatprep.subr.bf16.mxu0 %v6781_v12  ;;  %v7099_v12 = vpack.c.bf16 %v1451_v50, %v1448_v34 }
 0x276   :  { %5347 = vmatpush3.bf16.msra.mxu1 %v7099_v12 }
 0x277   :  { %5332 = vmatpush1.bf16.msra.mxu0 %v6789_v56  ;;  %5348 = vmatprep.subr.bf16.mxu1 %v6028_v3  ;;  %v1454_v56 = vld [vmem:[%s8366_s2 + $0x100] sm:$0xff] }
 0x278   :  { %5358 = vmatprep.subr.bf16.mxu0 %v6799_v36  ;;  %v1457_v36 = vld [vmem:[%s8366_s2 + $0x118] sm:$0xff] }
 0x279   :  { %v7109_v27 = vpack.c.bf16 %v1457_v36, %v1454_v56  ;;  %v1395_v36 = vrot.slane %v1197_v42, 2 }
 0x27b   :  { %5350 = vmatpush3.bf16.msra.mxu1 %v7109_v27 }
 0x27c   :  { %5351 = vmatprep.subr.bf16.mxu1 %v6028_v3 }
 0x27f   :  { %5353 = vmatpush3.bf16.msra.mxu1 %v7119_v17 }
 0x280   :  { %5354 = vmatprep.subr.bf16.mxu1 %v6028_v3 }
 0x283   :  { %5356 = vmatpush3.bf16.msra.mxu1 %v7129_v14 }
 0x284   :  { %5389 = vmatprep.subr.bf16.mxu1 %v6028_v3 }
 0x30d   :  { %v1088_v10 = vpop.f32.mrb[8].mxu0  ;;  %v1159_v21 = vpop.f32.mrb[8].mxu1 }
 0x30e   :  { %v1163_v9 = vadd.f32 %v1088_v10, %v973_v5  ;;  %v1090_v32 = vpop.f32.mrb[9].mxu0  ;;  %v4579_v49 = vpop.f32.mrb[9].mxu1  ;;  %v1180_v0 = vadd.f32 %v6568_v62, %v1159_v21 }
 0x30f   :  { %v1173_v18 = vadd.f32 %v1171_v1, %v1090_v32 }
 0x310   :  { %v3800_v22 = vmul.f32 -1.442695, %v1163_v9 }
 0x311   :  { %v3801_v39 = vmul.f32 -1.442695, %v1173_v18 }
 0x312   :  { %5904 = vpow2.f32 %v3800_v22 }
 0x313   :  { %5906 = vpow2.f32 %v3801_v39  ;;  %v3862_v39 = vld [vmem:[%s8366_s2 + $0x190] sm:$0xff] }
 0x31c   :  { %v5905_v48 = vpop.eup %5904 }
 0x31d   :  { %v1167_v54 = vadd.f32 1.0, %v5905_v48  ;;  %v5907_v43 = vpop.eup %5906  ;;  %v3865_v48 = vld [vmem:[%s8366_s2 + $0x1a8] sm:$0xff] }
 0x31e   :  { %v1177_v11 = vadd.f32 1.0, %v5907_v43  ;;  %v3868_v43 = vld [vmem:[%s8366_s2 + $0x1c0] sm:$0xff] }
 0x31f   :  { %5908 = vrcp.f32 %v1167_v54 }
 0x320   :  { %5910 = vrcp.f32 %v1177_v11  ;;  %v3871_v11 = vld [vmem:[%s8366_s2 + $0x1d8] sm:$0xff] }
 0x329   :  { %v5909_v8 = vpop.eup %5908 }
 0x32a   :  { %v1181_v15 = vmul.f32 %v5909_v8, %v1180_v0  ;;  %v5911_v10 = vpop.eup %5910 }
 0x32b   :  { %v1186_v9 = vsub.f32 1.0, %v5911_v10  ;;  %v1188_v21 = vmul.f32 %v5911_v10, %v6839_v25  ;;  %v7150_v25 = vpack.c.bf16 %v3865_v48, %v3862_v39  ;;  %v1901_v10 = vld [vmem:[%s8366_s2 + $0xf8] sm:$0xff] }
 0x32c   :  { %v1184_v34 = vadd.f32 %v1182_v47, %v1181_v15  ;;  %v7164_v47 = vpack.c.bf16 %v3871_v11, %v3868_v43  ;;  %v1406_v15 = vrot.slane %v1197_v42, 4  ;;  %v1909_v39 = vld [vmem:[%s8366_s2 + $0x138] sm:$0xff]  ;;  %v1916_v43 = vld [vmem:[%s8366_s2 + $0x170] sm:$0xff] }
 0x32d   :  { %v1312_v50 = vpop.f32.mrb[10].mxu0  ;;  %v1383_v56 = vpop.f32.mrb[10].mxu1 }
 0x32e   :  { %5912 = vtanh.f32 %v1184_v34  ;;  %v1387_v40 = vadd.f32 %v1312_v50, %v1197_v42  ;;  %v1314_v58 = vpop.f32.mrb[11].mxu0  ;;  %v4614_v35 = vpop.f32.mrb[11].mxu1  ;;  %v1404_v8 = vadd.f32 %v6581_v59, %v1383_v56  ;;  %v1891_v42 = vld [vmem:[%s8366_s2 + $0xa8] sm:$0xff] }
 0x32f   :  { %v1397_v37 = vadd.f32 %v1395_v36, %v1314_v58  ;;  %v1895_v36 = vld [vmem:[%s8366_s2 + $0xc8] sm:$0xff]  ;;  %v1894_v35 = vld [vmem:[%s8366_s2 + $0xc0] sm:$0xff] }
 0x330   :  { %v3852_v60 = vmul.f32 -1.442695, %v1387_v40  ;;  %v1898_v40 = vld [vmem:[%s8366_s2 + $0xe0] sm:$0xff] }
 0x331   :  { %v3853_v1 = vmul.f32 -1.442695, %v1397_v37  ;;  %v7304_v58 = vpack.c.bf16 %v1898_v40, %v1895_v36 }
 0x332   :  { %5914 = vpow2.f32 %v3852_v60  ;;  %v1897_v60 = vld [vmem:[%s8366_s2 + $0xd8] sm:$0xff] }
 0x333   :  { %5916 = vpow2.f32 %v3853_v1  ;;  %v7312_v37 = vpack.c.bf16 %v1897_v60, %v1894_v35  ;;  %v1904_v1 = vld [vmem:[%s8366_s2 + $0x110] sm:$0xff] }
 0x338   :  { %v5913_v62 = vpop.eup %5912 }
 0x339   :  { %v1187_v5 = vmul.f32 %v5913_v62, %v1186_v9  ;;  %v7322_v9 = vpack.c.bf16 %v1904_v1, %v1901_v10  ;;  %v1900_v62 = vld [vmem:[%s8366_s2 + $0xf0] sm:$0xff] }
 0x33b   :  { %v1189_v32 = vadd.f32 %v1188_v21, %v1187_v5  ;;  %v1903_v5 = vld [vmem:[%s8366_s2 + $0x108] sm:$0xff] }
 0x33c   :  { %v5915_v49 = vpop.eup %5914  ;;  %v7330_v21 = vpack.c.bf16 %v1903_v5, %v1900_v62 }
 0x33d   :  { %1190 = vst [vmem:[#allocation2] sm:$0x3] %v1189_v32  ;;  %v1191_v22 = vpack.c.bf16 %v1189_v32, %v1189_v32  ;;  %v1391_v18 = vadd.f32 1.0, %v5915_v49  ;;  %v5917_v54 = vpop.eup %5916  ;;  %v1907_v32 = vld [vmem:[%s8366_s2 + $0x128] sm:$0xff]  ;;  %v1910_v49 = vld [vmem:[%s8366_s2 + $0x140] sm:$0xff] }
 0x33e   :  { %v1401_v0 = vadd.f32 1.0, %v5917_v54  ;;  %v1913_v54 = vld [vmem:[%s8366_s2 + $0x158] sm:$0xff] }
 0x33f   :  { %3802 = vst [vmem:[%s8370_s4 + $0x2] sm:$0x1] %v1191_v22  ;;  %5918 = vrcp.f32 %v1391_v18  ;;  %v7340_v22 = vpack.c.bf16 %v1910_v49, %v1907_v32  ;;  %v1906_v18 = vld [vmem:[%s8366_s2 + $0x120] sm:$0xff]  ;;  %v7358_v11 = vpack.c.bf16 %v1916_v43, %v1913_v54 }
 0x340   :  { %5920 = vrcp.f32 %v1401_v0  ;;  %v7348_v48 = vpack.c.bf16 %v1909_v39, %v1906_v18  ;;  %v1912_v0 = vld [vmem:[%s8366_s2 + $0x150] sm:$0xff] }
 0x344   :  { %v7158_v45 = vld [vmem:[#allocation2] sm:$0x3] }
 0x345   :  { %1535 = vmatmul.mubr.f32.vlgmr.msra.gmra.mrb[12].mxu0 %v7158_v45  ;;  %4648 = vmatmul.mubr.f32.vlgmr.msra.gmra.mrb[12].mxu1 %v7158_v45 }
 0x346   :  { %5360 = vmatpush1.bf16.msra.mxu0 %v6829_v2  ;;  %5391 = vmatpush3.bf16.msra.mxu1 %v7150_v25 }
 0x347   :  { %5362 = vmatprep.subr.bf16.mxu0 %v6831_v33  ;;  %5392 = vmatprep.subr.bf16.mxu1 %v6028_v3 }
 0x348   :  { %1758 = vmatprep.mubr.f32.mxu0 %v6029_v4  ;;  %4682 = vmatprep.mubr.msk.f32.mxu1 %vm6030_vm0, %v6029_v4 }
 0x349   :  { %v5919_v34 = vpop.eup %5918 }
 0x34a   :  { %v1405_v50 = vmul.f32 %v5919_v34, %v1404_v8  ;;  %5364 = vmatpush1.bf16.msra.mxu0 %v6851_v46  ;;  %5394 = vmatpush3.bf16.msra.mxu1 %v7164_v47  ;;  %v5921_v59 = vpop.eup %5920  ;;  %v1915_v8 = vld [vmem:[%s8366_s2 + $0x168] sm:$0xff] }
 0x34b   :  { %5366 = vmatprep.subr.bf16.mxu0 %v6858_v6  ;;  %5395 = vmatprep.subr.bf16.mxu1 %v6028_v3  ;;  %v1410_v33 = vsub.f32 1.0, %v5921_v59  ;;  %v3917_v34 = vld [vmem:[%s8366_s2 + $0x188] sm:$0xff] }
 0x34c   :  { %v1408_v2 = vadd.f32 %v1406_v15, %v1405_v50  ;;  %v7366_v15 = vpack.c.bf16 %v1915_v8, %v1912_v0  ;;  %v3920_v50 = vld [vmem:[%s8366_s2 + $0x1a0] sm:$0xff] }
 0x34e   :  { %5922 = vtanh.f32 %v1408_v2  ;;  %5368 = vmatpush1.bf16.msra.mxu0 %v6882_v57  ;;  %5397 = vmatpush3.bf16.msra.mxu1 %v6884_v30  ;;  %v1412_v57 = vmul.f32 %v5921_v59, %v7030_v38  ;;  %v1886_v38 = vld [vmem:[%s8366_s2 + $0x80] sm:$0xff]  ;;  %v7376_v2 = vpack.c.bf16 %v3920_v50, %v3917_v34  ;;  %v3855_v59 = vld [vmem:[%s8367_s0 + $0x9] sm:$0x7] }
 0x34f   :  { %5370 = vmatprep.subr.bf16.mxu0 %v6891_v16  ;;  %5398 = vmatprep.subr.bf16.mxu1 %v6028_v3 }
 0x352   :  { %5372 = vmatpush1.bf16.msra.mxu0 %v6910_v53  ;;  %5400 = vmatpush3.bf16.msra.mxu1 %v6912_v20  ;;  %v1871_v20 = vld [vmem:[%s8366_s2 + $0x8] sm:$0xff] }
 0x353   :  { %5374 = vmatprep.subr.bf16.mxu0 %v6919_v55  ;;  %5401 = vmatprep.subr.bf16.mxu1 %v6028_v3  ;;  %v1874_v55 = vld [vmem:[%s8366_s2 + $0x20] sm:$0xff] }
 0x356   :  { %5376 = vmatpush1.bf16.msra.mxu0 %v6938_v7  ;;  %5403 = vmatpush3.bf16.msra.mxu1 %v6940_v63  ;;  %v7232_v7 = vpack.c.bf16 %v1874_v55, %v1871_v20  ;;  %v1870_v63 = vld [vmem:[%s8366_s2] sm:$0xff] }
 0x357   :  { %5378 = vmatprep.subr.bf16.mxu0 %v6947_v52  ;;  %5404 = vmatprep.subr.bf16.mxu1 %v6028_v3  ;;  %v1873_v52 = vld [vmem:[%s8366_s2 + $0x18] sm:$0xff] }
 0x358   :  { %v5923_v46 = vpop.eup %5922 }
 0x359   :  { %v1411_v6 = vmul.f32 %v5923_v46, %v1410_v33  ;;  %v1421_v33 = vunpack.c.l.bf16 %v3855_v59  ;;  %v3916_v59 = vld [vmem:[%s8366_s2 + $0x180] sm:$0xff] }
 0x35a   :  { %5380 = vmatpush1.bf16.msra.mxu0 %v6966_v51  ;;  %5406 = vmatpush3.bf16.msra.mxu1 %v6968_v31  ;;  %v7240_v51 = vpack.c.bf16 %v1873_v52, %v1870_v63  ;;  %v1877_v31 = vld [vmem:[%s8366_s2 + $0x38] sm:$0xff] }
 0x35b   :  { %v1413_v30 = vadd.f32 %v1412_v57, %v1411_v6  ;;  %5382 = vmatprep.subr.bf16.mxu0 %v6975_v13  ;;  %5407 = vmatprep.subr.bf16.mxu1 %v6028_v3  ;;  %v1880_v13 = vld [vmem:[%s8366_s2 + $0x50] sm:$0xff]  ;;  %v1619_v57 = vrot.slane %v1421_v33, 2 }
 0x35d   :  { %1414 = vst [vmem:[#allocation2 + $0x2] sm:$0x3] %v1413_v30  ;;  %v1415_v16 = vpack.c.bf16 %v1413_v30, %v1413_v30 }
 0x35e   :  { %5384 = vmatpush1.bf16.msra.mxu0 %v6995_v41  ;;  %5409 = vmatpush3.bf16.msra.mxu1 %v6997_v44  ;;  %v7250_v41 = vpack.c.bf16 %v1880_v13, %v1877_v31  ;;  %v1876_v44 = vld [vmem:[%s8366_s2 + $0x30] sm:$0xff] }
 0x35f   :  { %3854 = vst [vmem:[%s8371_s5 + $0x5] sm:$0x1] %v1415_v16  ;;  %5386 = vmatprep.subr.bf16.mxu0 %v7004_v26  ;;  %5410 = vmatprep.subr.bf16.mxu1 %v6028_v3  ;;  %v1879_v26 = vld [vmem:[%s8366_s2 + $0x48] sm:$0xff] }
 0x362   :  { %5388 = vmatpush1.bf16.msra.mxu0 %v7017_v29  ;;  %5412 = vmatpush3.bf16.msra.mxu1 %v7019_v61  ;;  %v7258_v29 = vpack.c.bf16 %v1879_v26, %v1876_v44  ;;  %v1883_v61 = vld [vmem:[%s8366_s2 + $0x68] sm:$0xff] }
 0x363   :  { %5445 = vmatprep.subr.bf16.mxu1 %v6028_v3  ;;  %5414 = vmatprep.subr.bf16.mxu0 %v7232_v7 }
 0x364   :  { %v7203_v53 = vld [vmem:[#allocation2 + $0x2] sm:$0x3] }
 0x365   :  { %1759 = vmatmul.mubr.f32.vlgmr.msra.gmra.mrb[14].mxu0 %v7203_v53  ;;  %4683 = vmatmul.mubr.f32.vlgmr.msra.gmra.mrb[14].mxu1 %v7203_v53 }
 0x366   :  { %5447 = vmatpush3.bf16.msra.mxu1 %v7059_v24  ;;  %1982 = vmatprep.mubr.f32.mxu0 %v6029_v4  ;;  %v7268_v24 = vpack.c.bf16 %v1886_v38, %v1883_v61  ;;  %v3859_v61 = vld [vmem:[%s8369_s1 + $0xc] sm:$0x7]  ;;  %v7388_v38 = vld [vmem:[%s8368_s3] ss:$0 sm:$0xff] }
 0x367   :  { %5448 = vmatprep.subr.bf16.mxu1 %v6028_v3  ;;  %4717 = vmatprep.mubr.msk.f32.mxu1 %vm6030_vm0, %v6029_v4 }
 0x368   :  { %5416 = vmatpush1.bf16.msra.mxu0 %v7240_v51 }
 0x369   :  { %5418 = vmatprep.subr.bf16.mxu0 %v7250_v41 }
 0x36a   :  { %5450 = vmatpush3.bf16.msra.mxu1 %v7069_v19  ;;  %v1882_v19 = vld [vmem:[%s8366_s2 + $0x60] sm:$0xff] }
 0x36b   :  { %5451 = vmatprep.subr.bf16.mxu1 %v6028_v3 }
 0x36c   :  { %5420 = vmatpush1.bf16.msra.mxu0 %v7258_v29 }
 0x36d   :  { %5422 = vmatprep.subr.bf16.mxu0 %v7268_v24 }
 0x36e   :  { %5453 = vmatpush3.bf16.msra.mxu1 %v7079_v28  ;;  %v1885_v28 = vld [vmem:[%s8366_s2 + $0x78] sm:$0xff] }
 0x36f   :  { %5454 = vmatprep.subr.bf16.mxu1 %v6028_v3 }
 0x372   :  { %5456 = vmatpush3.bf16.msra.mxu1 %v7089_v23  ;;  %v7276_v23 = vpack.c.bf16 %v1885_v28, %v1882_v19  ;;  %v1630_v28 = vrot.slane %v1421_v33, 4 }
 0x373   :  { %5457 = vmatprep.subr.bf16.mxu1 %v6028_v3 }
 0x374   :  { %5424 = vmatpush1.bf16.msra.mxu0 %v7276_v23 }
 0x376   :  { %5459 = vmatpush3.bf16.msra.mxu1 %v7099_v12  ;;  %v1889_v12 = vld [vmem:[%s8366_s2 + $0x98] sm:$0xff] }
 0x377   :  { %5460 = vmatprep.subr.bf16.mxu1 %v6028_v3 }
 0x37a   :  { %5462 = vmatpush3.bf16.msra.mxu1 %v7109_v27  ;;  %v1892_v27 = vld [vmem:[%s8366_s2 + $0xb0] sm:$0xff] }
 0x37b   :  { %5463 = vmatprep.subr.bf16.mxu1 %v6028_v3 }
 0x37e   :  { %5465 = vmatpush3.bf16.msra.mxu1 %v7119_v17  ;;  %v7286_v17 = vpack.c.bf16 %v1892_v27, %v1889_v12  ;;  %v7391_v27 = vunpack.c.l.bf16 %v3859_v61  ;;  %v3931_v61 = vld [vmem:[%s8366_s2 + $0x1f8] sm:$0xff] }
 0x37f   :  { %5466 = vmatprep.subr.bf16.mxu1 %v6028_v3 }
 0x380   :  { %5426 = vmatprep.subr.bf16.mxu0 %v7286_v17  ;;  %v1843_v35 = vrot.slane %v7391_v27, 2 }
 0x382   :  { %5468 = vmatpush3.bf16.msra.mxu1 %v7129_v14  ;;  %v1888_v14 = vld [vmem:[%s8366_s2 + $0x90] sm:$0xff] }
 0x383   :  { %5501 = vmatprep.subr.bf16.mxu1 %v6028_v3  ;;  %v7294_v56 = vpack.c.bf16 %v1891_v42, %v1888_v14 }
 0x385   :  { %5428 = vmatpush1.bf16.msra.mxu0 %v7294_v56 }
 0x386   :  { %5430 = vmatprep.subr.bf16.mxu0 %v7304_v58 }
 0x389   :  { %5432 = vmatpush1.bf16.msra.mxu0 %v7312_v37 }
 0x38a   :  { %5434 = vmatprep.subr.bf16.mxu0 %v7322_v9 }
 0x38d   :  { %5436 = vmatpush1.bf16.msra.mxu0 %v7330_v21 }
 0x38e   :  { %5438 = vmatprep.subr.bf16.mxu0 %v7340_v22 }
 0x391   :  { %5440 = vmatpush1.bf16.msra.mxu0 %v7348_v48 }
 0x392   :  { %5442 = vmatprep.subr.bf16.mxu0 %v7358_v11 }
 0x395   :  { %5444 = vmatpush1.bf16.msra.mxu0 %v7366_v15 }
 0x396   :  { %5470 = vmatprep.subr.bf16.mxu0 %v7376_v2 }
 0x418   :  { %v1536_v46 = vpop.f32.mrb[12].mxu0  ;;  %v1607_v6 = vpop.f32.mrb[12].mxu1 }
 0x419   :  { %v1611_v30 = vadd.f32 %v1536_v46, %v1421_v33  ;;  %v1538_v16 = vpop.f32.mrb[13].mxu0  ;;  %v4649_v20 = vpop.f32.mrb[13].mxu1  ;;  %v1628_v19 = vadd.f32 %v7388_v38, %v1607_v6  ;;  %v3919_v33 = vld [vmem:[%s8366_s2 + $0x198] sm:$0xff]  ;;  %v3926_v46 = vld [vmem:[%s8366_s2 + $0x1d0] sm:$0xff] }
 0x41a   :  { %v1621_v63 = vadd.f32 %v1619_v57, %v1538_v16  ;;  %v7411_v6 = vpack.c.bf16 %v3919_v33, %v3916_v59  ;;  %v3922_v16 = vld [vmem:[%s8366_s2 + $0x1b0] sm:$0xff]  ;;  %v3925_v20 = vld [vmem:[%s8366_s2 + $0x1c8] sm:$0xff]  ;;  %v3947_v59 = vld [vmem:[%s8366_s2 + $0x278] sm:$0xff] }
 0x41b   :  { %v3856_v55 = vmul.f32 -1.442695, %v1611_v30  ;;  %v3950_v33 = vld [vmem:[%s8366_s2 + $0x290] sm:$0xff] }
 0x41c   :  { %v3857_v52 = vmul.f32 -1.442695, %v1621_v63  ;;  %v3929_v63 = vld [vmem:[%s8366_s2 + $0x1e8] sm:$0xff] }
 0x41d   :  { %5924 = vpow2.f32 %v3856_v55 }
 0x41e   :  { %5926 = vpow2.f32 %v3857_v52  ;;  %v3932_v52 = vld [vmem:[%s8366_s2 + $0x200] sm:$0xff] }
 0x427   :  { %v5925_v31 = vpop.eup %5924 }
 0x428   :  { %v1615_v13 = vadd.f32 1.0, %v5925_v31  ;;  %v5927_v44 = vpop.eup %5926 }
 0x429   :  { %v1625_v26 = vadd.f32 1.0, %v5927_v44  ;;  %v3928_v44 = vld [vmem:[%s8366_s2 + $0x1e0] sm:$0xff] }
 0x42a   :  { %5928 = vrcp.f32 %v1615_v13  ;;  %v7433_v13 = vpack.c.bf16 %v3925_v20, %v3922_v16  ;;  %v7534_v16 = vpack.c.bf16 %v3950_v33, %v3947_v59  ;;  %v3949_v20 = vld [vmem:[%s8366_s2 + $0x288] sm:$0xff]  ;;  %v3963_v59 = vld [vmem:[%s8366_s2 + $0x2f8] sm:$0xff] }
 0x42b   :  { %5930 = vrcp.f32 %v1625_v26  ;;  %v7440_v26 = vpack.c.bf16 %v3932_v52, %v3929_v63  ;;  %v3948_v63 = vld [vmem:[%s8366_s2 + $0x280] sm:$0xff]  ;;  %v3951_v52 = vld [vmem:[%s8366_s2 + $0x298] sm:$0xff] }
 0x434   :  { %v5929_v12 = vpop.eup %5928 }
 0x435   :  { %v1629_v14 = vmul.f32 %v5929_v12, %v1628_v19  ;;  %v5931_v32 = vpop.eup %5930  ;;  %v3933_v19 = vld [vmem:[%s8366_s2 + $0x208] sm:$0xff] }
 0x436   :  { %v1634_v18 = vsub.f32 1.0, %v5931_v32  ;;  %v1636_v43 = vmul.f32 %v5931_v32, %v7158_v45  ;;  %v3923_v45 = vld [vmem:[%s8366_s2 + $0x1b8] sm:$0xff] }
 0x437   :  { %v1632_v42 = vadd.f32 %v1630_v28, %v1629_v14  ;;  %v7413_v30 = vpack.c.bf16 %v3926_v46, %v3923_v45  ;;  %v7454_v28 = vld [vmem:[%s8368_s3 + $0x1] ss:$0 sm:$0xff]  ;;  %v1854_v14 = vrot.slane %v7391_v27, 4 }
 0x438   :  { %v1760_v36 = vpop.f32.mrb[14].mxu0  ;;  %v1831_v40 = vpop.f32.mrb[14].mxu1 }
 0x439   :  { %5932 = vtanh.f32 %v1632_v42  ;;  %v1835_v60 = vadd.f32 %v1760_v36, %v7391_v27  ;;  %v1762_v10 = vpop.f32.mrb[15].mxu0  ;;  %v4684_v1 = vpop.f32.mrb[15].mxu1  ;;  %v1852_v12 = vadd.f32 %v7454_v28, %v1831_v40  ;;  %v3935_v42 = vld [vmem:[%s8366_s2 + $0x218] sm:$0xff]  ;;  %v3938_v36 = vld [vmem:[%s8366_s2 + $0x230] sm:$0xff]  ;;  %v7469_v27 = vpack.c.bf16 %v3931_v61, %v3928_v44  ;;  %v3953_v44 = vld [vmem:[%s8366_s2 + $0x2a8] sm:$0xff] }
 0x43a   :  { %v1845_v5 = vadd.f32 %v1843_v35, %v1762_v10  ;;  %v3934_v10 = vld [vmem:[%s8366_s2 + $0x210] sm:$0xff]  ;;  %v7478_v1 = vpack.c.bf16 %v3938_v36, %v3935_v42  ;;  %v3956_v61 = vld [vmem:[%s8366_s2 + $0x2c0] sm:$0xff]  ;;  %v3955_v36 = vld [vmem:[%s8366_s2 + $0x2b8] sm:$0xff] }
 0x43b   :  { %v3908_v62 = vmul.f32 -1.442695, %v1835_v60  ;;  %v7562_v42 = vpack.c.bf16 %v3956_v61, %v3953_v44  ;;  %v2359_v44 = vld [vmem:[%s8366_s2 + $0x148] sm:$0xff] }
 0x43c   :  { %v3909_v49 = vmul.f32 -1.442695, %v1845_v5  ;;  %v3939_v5 = vld [vmem:[%s8366_s2 + $0x238] sm:$0xff] }
 0x43d   :  { %5934 = vpow2.f32 %v3908_v62  ;;  %v3937_v62 = vld [vmem:[%s8366_s2 + $0x228] sm:$0xff] }
 0x43e   :  { %5936 = vpow2.f32 %v3909_v49  ;;  %v3941_v49 = vld [vmem:[%s8366_s2 + $0x248] sm:$0xff] }
 0x443   :  { %v5933_v39 = vpop.eup %5932 }
 0x444   :  { %v1635_v54 = vmul.f32 %v5933_v39, %v1634_v18  ;;  %v3944_v18 = vld [vmem:[%s8366_s2 + $0x260] sm:$0xff]  ;;  %v7497_v39 = vpack.c.bf16 %v3937_v62, %v3934_v10  ;;  %v3959_v62 = vld [vmem:[%s8366_s2 + $0x2d8] sm:$0xff] }
 0x446   :  { %v1637_v0 = vadd.f32 %v1636_v43, %v1635_v54  ;;  %v3940_v43 = vld [vmem:[%s8366_s2 + $0x240] sm:$0xff] }
 0x447   :  { %v5935_v8 = vpop.eup %5934 }
 0x448   :  { %1638 = vst [vmem:[#allocation2] sm:$0x3] %v1637_v0  ;;  %v1639_v34 = vpack.c.bf16 %v1637_v0, %v1637_v0  ;;  %v1839_v50 = vadd.f32 1.0, %v5935_v8  ;;  %v5937_v57 = vpop.eup %5936  ;;  %v7506_v0 = vpack.c.bf16 %v3944_v18, %v3941_v49  ;;  %v3943_v8 = vld [vmem:[%s8366_s2 + $0x258] sm:$0xff] }
 0x449   :  { %v1849_v31 = vadd.f32 1.0, %v5937_v57  ;;  %v7525_v45 = vpack.c.bf16 %v3943_v8, %v3940_v43  ;;  %v3946_v57 = vld [vmem:[%s8366_s2 + $0x270] sm:$0xff] }
 0x44a   :  { %3858 = vst [vmem:[%s8370_s4 + $0x3] sm:$0x1] %v1639_v34  ;;  %5938 = vrcp.f32 %v1839_v50  ;;  %v3942_v34 = vld [vmem:[%s8366_s2 + $0x250] sm:$0xff]  ;;  %v3945_v50 = vld [vmem:[%s8366_s2 + $0x268] sm:$0xff] }
 0x44b   :  { %5940 = vrcp.f32 %v1849_v31  ;;  %v7527_v46 = vpack.c.bf16 %v3945_v50, %v3942_v34  ;;  %v3958_v43 = vld [vmem:[%s8366_s2 + $0x2d0] sm:$0xff]  ;;  %v3960_v50 = vld [vmem:[%s8366_s2 + $0x2e0] sm:$0xff] }
 0x44f   :  { %v7421_v55 = vld [vmem:[#allocation2] sm:$0x3] }
 0x450   :  { %1983 = vmatmul.mubr.f32.vlgmr.msra.gmra.mrb[16].mxu0 %v7421_v55  ;;  %4718 = vmatmul.mubr.f32.vlgmr.msra.gmra.mrb[16].mxu1 %v7421_v55 }
 0x451   :  { %5472 = vmatpush1.bf16.msra.mxu0 %v7411_v6  ;;  %5503 = vmatpush3.bf16.msra.mxu1 %v7150_v25  ;;  %v3930_v25 = vld [vmem:[%s8366_s2 + $0x1f0] sm:$0xff] }
 0x452   :  { %5474 = vmatprep.subr.bf16.mxu0 %v7413_v30  ;;  %5504 = vmatprep.subr.bf16.mxu1 %v6028_v3  ;;  %v7471_v40 = vpack.c.bf16 %v3933_v19, %v3930_v25  ;;  %v7553_v25 = vpack.c.bf16 %v3949_v20, %v3946_v57  ;;  %v7555_v19 = vpack.c.bf16 %v3951_v52, %v3948_v63 }
 0x453   :  { %2206 = vmatprep.mubr.f32.mxu0 %v6029_v4  ;;  %4752 = vmatprep.mubr.msk.f32.mxu1 %vm6030_vm0, %v6029_v4  ;;  %v7606_v20 = vpack.c.bf16 %v3963_v59, %v3960_v50 }
 0x454   :  { %v5939_v35 = vpop.eup %5938 }
 0x455   :  { %v1853_v60 = vmul.f32 %v5939_v35, %v1852_v12  ;;  %5476 = vmatpush1.bf16.msra.mxu0 %v7433_v13  ;;  %5506 = vmatpush3.bf16.msra.mxu1 %v7164_v47  ;;  %v3936_v47 = vld [vmem:[%s8366_s2 + $0x220] sm:$0xff]  ;;  %v5941_v31 = vpop.eup %5940  ;;  %v3954_v35 = vld [vmem:[%s8366_s2 + $0x2b0] sm:$0xff] }
 0x456   :  { %5478 = vmatprep.subr.bf16.mxu0 %v7440_v26  ;;  %5507 = vmatprep.subr.bf16.mxu1 %v6028_v3  ;;  %v7499_v54 = vpack.c.bf16 %v3939_v5, %v3936_v47  ;;  %v3952_v12 = vld [vmem:[%s8366_s2 + $0x2a0] sm:$0xff]  ;;  %v3962_v47 = vld [vmem:[%s8366_s2 + $0x2f0] sm:$0xff] }
 0x457   :  { %v1856_v32 = vadd.f32 %v1854_v14, %v1853_v60  ;;  %v1858_v14 = vsub.f32 1.0, %v5941_v31  ;;  %v3957_v60 = vld [vmem:[%s8366_s2 + $0x2c8] sm:$0xff]  ;;  %v7582_v49 = vpack.c.bf16 %v3955_v36, %v3952_v12  ;;  %v7591_v34 = vpack.c.bf16 %v3962_v47, %v3959_v62  ;;  %v2362_v12 = vld [vmem:[%s8366_s2 + $0x160] sm:$0xff] }
 0x458   :  { %v7584_v18 = vpack.c.bf16 %v3957_v60, %v3954_v35  ;;  %v3911_v35 = vld [vmem:[%s8367_s0 + $0xc] sm:$0x7] }
 0x459   :  { %5942 = vtanh.f32 %v1856_v32  ;;  %5480 = vmatpush1.bf16.msra.mxu0 %v7469_v27  ;;  %5509 = vmatpush3.bf16.msra.mxu1 %v7471_v40  ;;  %v1860_v32 = vmul.f32 %v5941_v31, %v7203_v53  ;;  %v3961_v53 = vld [vmem:[%s8366_s2 + $0x2e8] sm:$0xff]  ;;  %v2356_v31 = vld [vmem:[%s8366_s2 + $0x130] sm:$0xff]  ;;  %v1869_v60 = vunpack.c.l.bf16 %v3911_v35 }
 0x45a   :  { %5482 = vmatprep.subr.bf16.mxu0 %v7478_v1  ;;  %5510 = vmatprep.subr.bf16.mxu1 %v6028_v3  ;;  %v7604_v57 = vpack.c.bf16 %v3961_v53, %v3958_v43  ;;  %v7706_v61 = vpack.c.bf16 %v2359_v44, %v2356_v31 }
 0x45b   :  { %v2067_v47 = vrot.slane %v1869_v60, 2 }
 0x45d   :  { %5484 = vmatpush1.bf16.msra.mxu0 %v7497_v39  ;;  %5512 = vmatpush3.bf16.msra.mxu1 %v7499_v54 }
 0x45e   :  { %5486 = vmatprep.subr.bf16.mxu0 %v7506_v0  ;;  %5513 = vmatprep.subr.bf16.mxu1 %v6028_v3 }
 0x461   :  { %5488 = vmatpush1.bf16.msra.mxu0 %v7525_v45  ;;  %5515 = vmatpush3.bf16.msra.mxu1 %v7527_v46 }
 0x462   :  { %5490 = vmatprep.subr.bf16.mxu0 %v7534_v16  ;;  %5516 = vmatprep.subr.bf16.mxu1 %v6028_v3 }
 0x463   :  { %v5943_v10 = vpop.eup %5942 }
 0x464   :  { %v1859_v5 = vmul.f32 %v5943_v10, %v1858_v14  ;;  %v2365_v14 = vld [vmem:[%s8366_s2 + $0x178] sm:$0xff] }
 0x465   :  { %5492 = vmatpush1.bf16.msra.mxu0 %v7553_v25  ;;  %5518 = vmatpush3.bf16.msra.mxu1 %v7555_v19  ;;  %v7716_v36 = vpack.c.bf16 %v2365_v14, %v2362_v12 }
 0x466   :  { %v1861_v8 = vadd.f32 %v1860_v32, %v1859_v5  ;;  %5494 = vmatprep.subr.bf16.mxu0 %v7562_v42  ;;  %5519 = vmatprep.subr.bf16.mxu1 %v6028_v3 }
 0x468   :  { %1862 = vst [vmem:[#allocation2 + $0x2] sm:$0x3] %v1861_v8  ;;  %v1863_v33 = vpack.c.bf16 %v1861_v8, %v1861_v8 }
 0x469   :  { %5496 = vmatpush1.bf16.msra.mxu0 %v7582_v49  ;;  %5521 = vmatpush3.bf16.msra.mxu1 %v7584_v18 }
 0x46a   :  { %3910 = vst [vmem:[%s8371_s5 + $0x4] sm:$0x1] %v1863_v33  ;;  %5498 = vmatprep.subr.bf16.mxu0 %v7591_v34  ;;  %5522 = vmatprep.subr.bf16.mxu1 %v6028_v3 }
 0x46d   :  { %5500 = vmatpush1.bf16.msra.mxu0 %v7604_v57  ;;  %5524 = vmatpush3.bf16.msra.mxu1 %v7606_v20 }
 0x46e   :  { %5526 = vmatprep.subr.bf16.mxu0 %v7232_v7  ;;  %5557 = vmatprep.subr.bf16.mxu1 %v6028_v3  ;;  %v2320_v7 = vld [vmem:[%s8366_s2 + $0x10] sm:$0xff] }
 0x46f   :  { %v7617_v63 = vld [vmem:[#allocation2 + $0x2] sm:$0x3] }
 0x470   :  { %2207 = vmatmul.mubr.f32.vlgmr.msra.gmra.mrb[18].mxu0 %v7617_v63  ;;  %4753 = vmatmul.mubr.f32.vlgmr.msra.gmra.mrb[18].mxu1 %v7617_v63 }
 0x471   :  { %5528 = vmatpush1.bf16.msra.mxu0 %v7240_v51  ;;  %2430 = vmatprep.mubr.f32.mxu0 %v6029_v4  ;;  %v2323_v51 = vld [vmem:[%s8366_s2 + $0x28] sm:$0xff] }
 0x472   :  { %5530 = vmatprep.subr.bf16.mxu0 %v7250_v41  ;;  %4787 = vmatprep.mubr.msk.f32.mxu1 %vm6030_vm0, %v6029_v4  ;;  %v7646_v41 = vpack.c.bf16 %v2323_v51, %v2320_v7 }
 0x474   :  { %5559 = vmatpush3.bf16.msra.mxu1 %v7646_v41 }
 0x475   :  { %5532 = vmatpush1.bf16.msra.mxu0 %v7258_v29  ;;  %5560 = vmatprep.subr.bf16.mxu1 %v6028_v3  ;;  %v2326_v29 = vld [vmem:[%s8366_s2 + $0x40] sm:$0xff] }
 0x476   :  { %5534 = vmatprep.subr.bf16.mxu0 %v7268_v24  ;;  %v2329_v24 = vld [vmem:[%s8366_s2 + $0x58] sm:$0xff] }
 0x479   :  { %5536 = vmatpush1.bf16.msra.mxu0 %v7276_v23  ;;  %v7656_v23 = vpack.c.bf16 %v2329_v24, %v2326_v29  ;;  %v3915_v29 = vld [vmem:[%s8369_s1 + $0x9] sm:$0x7] }
 0x47a   :  { %5538 = vmatprep.subr.bf16.mxu0 %v7286_v17  ;;  %v2332_v17 = vld [vmem:[%s8366_s2 + $0x70] sm:$0xff] }
 0x47b   :  { %5562 = vmatpush3.bf16.msra.mxu1 %v7656_v23 }
 0x47c   :  { %5563 = vmatprep.subr.bf16.mxu1 %v6028_v3 }
 0x47d   :  { %5540 = vmatpush1.bf16.msra.mxu0 %v7294_v56  ;;  %v2335_v56 = vld [vmem:[%s8366_s2 + $0x88] sm:$0xff] }
 0x47e   :  { %5542 = vmatprep.subr.bf16.mxu0 %v7304_v58  ;;  %v7666_v58 = vpack.c.bf16 %v2335_v56, %v2332_v17  ;;  %v2078_v17 = vrot.slane %v1869_v60, 4 }
 0x480   :  { %5565 = vmatpush3.bf16.msra.mxu1 %v7666_v58 }
 0x481   :  { %5544 = vmatpush1.bf16.msra.mxu0 %v7312_v37  ;;  %5566 = vmatprep.subr.bf16.mxu1 %v6028_v3  ;;  %v2338_v37 = vld [vmem:[%s8366_s2 + $0xa0] sm:$0xff] }
 0x482   :  { %5546 = vmatprep.subr.bf16.mxu0 %v7322_v9  ;;  %v2341_v9 = vld [vmem:[%s8366_s2 + $0xb8] sm:$0xff] }
 0x485   :  { %5548 = vmatpush1.bf16.msra.mxu0 %v7330_v21  ;;  %v7676_v21 = vpack.c.bf16 %v2341_v9, %v2338_v37  ;;  %v2093_v37 = vunpack.c.l.bf16 %v3915_v29  ;;  %v3983_v29 = vld [vmem:[%s8366_s2 + $0x1d8] sm:$0xff] }
 0x486   :  { %5550 = vmatprep.subr.bf16.mxu0 %v7340_v22  ;;  %v2344_v22 = vld [vmem:[%s8366_s2 + $0xd0] sm:$0xff] }
 0x487   :  { %5568 = vmatpush3.bf16.msra.mxu1 %v7676_v21 }
 0x488   :  { %5569 = vmatprep.subr.bf16.mxu1 %v6028_v3 }
 0x489   :  { %5552 = vmatpush1.bf16.msra.mxu0 %v7348_v48  ;;  %v2347_v48 = vld [vmem:[%s8366_s2 + $0xe8] sm:$0xff] }
 0x48a   :  { %5554 = vmatprep.subr.bf16.mxu0 %v7358_v11  ;;  %v7686_v11 = vpack.c.bf16 %v2347_v48, %v2344_v22 }
 0x48c   :  { %5571 = vmatpush3.bf16.msra.mxu1 %v7686_v11 }
 0x48d   :  { %5556 = vmatpush1.bf16.msra.mxu0 %v7366_v15  ;;  %5572 = vmatprep.subr.bf16.mxu1 %v6028_v3  ;;  %v2350_v15 = vld [vmem:[%s8366_s2 + $0x100] sm:$0xff] }
 0x48e   :  { %5582 = vmatprep.subr.bf16.mxu0 %v7376_v2  ;;  %v2353_v2 = vld [vmem:[%s8366_s2 + $0x118] sm:$0xff] }
 0x48f   :  { %v7696_v52 = vpack.c.bf16 %v2353_v2, %v2350_v15  ;;  %v2291_v2 = vrot.slane %v2093_v37, 2 }
 0x491   :  { %5574 = vmatpush3.bf16.msra.mxu1 %v7696_v52 }
 0x492   :  { %5575 = vmatprep.subr.bf16.mxu1 %v6028_v3 }
 0x495   :  { %5577 = vmatpush3.bf16.msra.mxu1 %v7706_v61 }
 0x496   :  { %5578 = vmatprep.subr.bf16.mxu1 %v6028_v3 }
 0x499   :  { %5580 = vmatpush3.bf16.msra.mxu1 %v7716_v36 }
 0x49a   :  { %5613 = vmatprep.subr.bf16.mxu1 %v6028_v3 }
 0x523   :  { %v1984_v10 = vpop.f32.mrb[16].mxu0  ;;  %v2055_v62 = vpop.f32.mrb[16].mxu1 }
 0x524   :  { %v2059_v5 = vadd.f32 %v1984_v10, %v1869_v60  ;;  %v1986_v32 = vpop.f32.mrb[17].mxu0  ;;  %v4719_v43 = vpop.f32.mrb[17].mxu1  ;;  %v2076_v24 = vadd.f32 %v7388_v38, %v2055_v62 }
 0x525   :  { %v2069_v53 = vadd.f32 %v2067_v47, %v1986_v32 }
 0x526   :  { %v3912_v8 = vmul.f32 -1.442695, %v2059_v5 }
 0x527   :  { %v3913_v50 = vmul.f32 -1.442695, %v2069_v53 }
 0x528   :  { %5944 = vpow2.f32 %v3912_v8 }
 0x529   :  { %5946 = vpow2.f32 %v3913_v50 }
 0x532   :  { %v5945_v59 = vpop.eup %5944 }
 0x533   :  { %v2063_v33 = vadd.f32 1.0, %v5945_v59  ;;  %v5947_v7 = vpop.eup %5946  ;;  %v3974_v59 = vld [vmem:[%s8366_s2 + $0x190] sm:$0xff] }
 0x534   :  { %v2073_v51 = vadd.f32 1.0, %v5947_v7 }
 0x535   :  { %5948 = vrcp.f32 %v2063_v33  ;;  %v3977_v33 = vld [vmem:[%s8366_s2 + $0x1a8] sm:$0xff] }
 0x536   :  { %5950 = vrcp.f32 %v2073_v51  ;;  %v3980_v51 = vld [vmem:[%s8366_s2 + $0x1c0] sm:$0xff] }
 0x53f   :  { %v5949_v56 = vpop.eup %5948 }
 0x540   :  { %v2077_v9 = vmul.f32 %v5949_v56, %v2076_v24  ;;  %v5951_v10 = vpop.eup %5950  ;;  %v7751_v56 = vpack.c.bf16 %v3983_v29, %v3980_v51  ;;  %v2809_v29 = vld [vmem:[%s8366_s2 + $0x158] sm:$0xff] }
 0x541   :  { %v2082_v5 = vsub.f32 1.0, %v5951_v10  ;;  %v2084_v32 = vmul.f32 %v5951_v10, %v7421_v55  ;;  %v7737_v55 = vpack.c.bf16 %v3977_v33, %v3974_v59  ;;  %v2793_v10 = vld [vmem:[%s8366_s2 + $0xd8] sm:$0xff]  ;;  %v2802_v33 = vld [vmem:[%s8366_s2 + $0x120] sm:$0xff] }
 0x542   :  { %v2080_v22 = vadd.f32 %v2078_v17, %v2077_v9 }
 0x543   :  { %v2208_v48 = vpop.f32.mrb[18].mxu0  ;;  %v2279_v15 = vpop.f32.mrb[18].mxu1 }
 0x544   :  { %5952 = vtanh.f32 %v2080_v22  ;;  %v2283_v31 = vadd.f32 %v2208_v48, %v2093_v37  ;;  %v2210_v44 = vpop.f32.mrb[19].mxu0  ;;  %v4754_v12 = vpop.f32.mrb[19].mxu1  ;;  %v2300_v9 = vadd.f32 %v7454_v28, %v2279_v15  ;;  %v2302_v22 = vrot.slane %v2093_v37, 4  ;;  %v2784_v37 = vld [vmem:[%s8366_s2 + $0x90] sm:$0xff]  ;;  %v2787_v15 = vld [vmem:[%s8366_s2 + $0xa8] sm:$0xff] }
 0x545   :  { %v2293_v35 = vadd.f32 %v2291_v2, %v2210_v44  ;;  %v2791_v44 = vld [vmem:[%s8366_s2 + $0xc8] sm:$0xff]  ;;  %v2794_v12 = vld [vmem:[%s8366_s2 + $0xe0] sm:$0xff] }
 0x546   :  { %v3964_v14 = vmul.f32 -1.442695, %v2283_v31  ;;  %v7881_v31 = vpack.c.bf16 %v2787_v15, %v2784_v37 }
 0x547   :  { %v3965_v47 = vmul.f32 -1.442695, %v2293_v35  ;;  %v2790_v35 = vld [vmem:[%s8366_s2 + $0xc0] sm:$0xff] }
 0x548   :  { %5954 = vpow2.f32 %v3964_v14  ;;  %v7891_v14 = vpack.c.bf16 %v2794_v12, %v2791_v44 }
 0x549   :  { %5956 = vpow2.f32 %v3965_v47  ;;  %v7899_v47 = vpack.c.bf16 %v2793_v10, %v2790_v35 }
 0x54e   :  { %v5953_v62 = vpop.eup %5952 }
 0x54f   :  { %v2083_v60 = vmul.f32 %v5953_v62, %v2082_v5  ;;  %v2797_v5 = vld [vmem:[%s8366_s2 + $0xf8] sm:$0xff]  ;;  %v2800_v62 = vld [vmem:[%s8366_s2 + $0x110] sm:$0xff] }
 0x551   :  { %v2085_v43 = vadd.f32 %v2084_v32, %v2083_v60  ;;  %v7909_v60 = vpack.c.bf16 %v2800_v62, %v2797_v5  ;;  %v2796_v32 = vld [vmem:[%s8366_s2 + $0xf0] sm:$0xff] }
 0x552   :  { %v5955_v8 = vpop.eup %5954 }
 0x553   :  { %v2087_v53 = vpack.c.bf16 %v2085_v43, %v2085_v43  ;;  %2086 = vst [vmem:[#allocation2] sm:$0x3] %v2085_v43  ;;  %v2287_v50 = vadd.f32 1.0, %v5955_v8  ;;  %v5957_v7 = vpop.eup %5956  ;;  %v2799_v43 = vld [vmem:[%s8366_s2 + $0x108] sm:$0xff] }
 0x554   :  { %v2297_v17 = vadd.f32 1.0, %v5957_v7  ;;  %v7917_v8 = vpack.c.bf16 %v2799_v43, %v2796_v32  ;;  %v2805_v7 = vld [vmem:[%s8366_s2 + $0x138] sm:$0xff] }
 0x555   :  { %3914 = vst [vmem:[%s8370_s4 + $0x4] sm:$0x1] %v2087_v53  ;;  %5958 = vrcp.f32 %v2287_v50  ;;  %v2803_v53 = vld [vmem:[%s8366_s2 + $0x128] sm:$0xff]  ;;  %v2806_v50 = vld [vmem:[%s8366_s2 + $0x140] sm:$0xff]  ;;  %v7935_v51 = vpack.c.bf16 %v2805_v7, %v2802_v33 }
 0x556   :  { %5960 = vrcp.f32 %v2297_v17  ;;  %v7927_v59 = vpack.c.bf16 %v2806_v50, %v2803_v53  ;;  %v2812_v17 = vld [vmem:[%s8366_s2 + $0x170] sm:$0xff] }
 0x55a   :  { %v7745_v24 = vld [vmem:[#allocation2] sm:$0x3] }
 0x55b   :  { %2431 = vmatmul.mubr.f32.vlgmr.msra.gmra.mrb[20].mxu0 %v7745_v24  ;;  %4788 = vmatmul.mubr.f32.vlgmr.msra.gmra.mrb[20].mxu1 %v7745_v24 }
 0x55c   :  { %5584 = vmatpush1.bf16.msra.mxu0 %v7411_v6  ;;  %5615 = vmatpush3.bf16.msra.mxu1 %v7737_v55 }
 0x55d   :  { %5586 = vmatprep.subr.bf16.mxu0 %v7413_v30  ;;  %5616 = vmatprep.subr.bf16.mxu1 %v6028_v3 }
 0x55e   :  { %2654 = vmatprep.mubr.f32.mxu0 %v6029_v4  ;;  %4822 = vmatprep.mubr.msk.f32.mxu1 %vm6030_vm0, %v6029_v4 }
 0x55f   :  { %v5959_v48 = vpop.eup %5958 }
 0x560   :  { %v2301_v2 = vmul.f32 %v5959_v48, %v2300_v9  ;;  %5588 = vmatpush1.bf16.msra.mxu0 %v7433_v13  ;;  %5618 = vmatpush3.bf16.msra.mxu1 %v7751_v56  ;;  %v5961_v30 = vpop.eup %5960  ;;  %v7945_v9 = vpack.c.bf16 %v2812_v17, %v2809_v29  ;;  %v2811_v48 = vld [vmem:[%s8366_s2 + $0x168] sm:$0xff] }
 0x561   :  { %5590 = vmatprep.subr.bf16.mxu0 %v7440_v26  ;;  %5619 = vmatprep.subr.bf16.mxu1 %v6028_v3  ;;  %v2306_v13 = vsub.f32 1.0, %v5961_v30 }
 0x562   :  { %v2304_v6 = vadd.f32 %v2302_v22, %v2301_v2  ;;  %v2808_v22 = vld [vmem:[%s8366_s2 + $0x150] sm:$0xff] }
 0x563   :  { %v7953_v2 = vpack.c.bf16 %v2811_v48, %v2808_v22 }
 0x564   :  { %5962 = vtanh.f32 %v2304_v6  ;;  %5592 = vmatpush1.bf16.msra.mxu0 %v7469_v27  ;;  %5621 = vmatpush3.bf16.msra.mxu1 %v7471_v40  ;;  %v2308_v40 = vmul.f32 %v5961_v30, %v7617_v63  ;;  %v2779_v63 = vld [vmem:[%s8366_s2 + $0x68] sm:$0xff]  ;;  %v4032_v30 = vld [vmem:[%s8366_s2 + $0x1a0] sm:$0xff] }
 0x565   :  { %5594 = vmatprep.subr.bf16.mxu0 %v7478_v1  ;;  %5622 = vmatprep.subr.bf16.mxu1 %v6028_v3  ;;  %v4029_v6 = vld [vmem:[%s8366_s2 + $0x188] sm:$0xff] }
 0x568   :  { %5596 = vmatpush1.bf16.msra.mxu0 %v7497_v39  ;;  %5624 = vmatpush3.bf16.msra.mxu1 %v7499_v54 }
 0x569   :  { %5598 = vmatprep.subr.bf16.mxu0 %v7506_v0  ;;  %5625 = vmatprep.subr.bf16.mxu1 %v6028_v3  ;;  %v2767_v0 = vld [vmem:[%s8366_s2 + $0x8] sm:$0xff] }
 0x56c   :  { %5600 = vmatpush1.bf16.msra.mxu0 %v7525_v45  ;;  %5627 = vmatpush3.bf16.msra.mxu1 %v7527_v46  ;;  %v2770_v45 = vld [vmem:[%s8366_s2 + $0x20] sm:$0xff] }
 0x56d   :  { %5602 = vmatprep.subr.bf16.mxu0 %v7534_v16  ;;  %5628 = vmatprep.subr.bf16.mxu1 %v6028_v3  ;;  %v7819_v46 = vpack.c.bf16 %v2770_v45, %v2767_v0  ;;  %v2766_v16 = vld [vmem:[%s8366_s2] sm:$0xff] }
 0x56e   :  { %v5963_v26 = vpop.eup %5962 }
 0x56f   :  { %v2307_v27 = vmul.f32 %v5963_v26, %v2306_v13  ;;  %v7963_v13 = vpack.c.bf16 %v4032_v30, %v4029_v6  ;;  %v3967_v26 = vld [vmem:[%s8367_s0 + $0xf] sm:$0x7] }
 0x570   :  { %5604 = vmatpush1.bf16.msra.mxu0 %v7553_v25  ;;  %5630 = vmatpush3.bf16.msra.mxu1 %v7555_v19  ;;  %v2769_v25 = vld [vmem:[%s8366_s2 + $0x18] sm:$0xff] }
 0x571   :  { %v2309_v1 = vadd.f32 %v2308_v40, %v2307_v27  ;;  %5606 = vmatprep.subr.bf16.mxu0 %v7562_v42  ;;  %5631 = vmatprep.subr.bf16.mxu1 %v6028_v3  ;;  %v7827_v19 = vpack.c.bf16 %v2769_v25, %v2766_v16  ;;  %v2773_v42 = vld [vmem:[%s8366_s2 + $0x38] sm:$0xff]  ;;  %v2317_v27 = vunpack.c.l.bf16 %v3967_v26  ;;  %v4028_v26 = vld [vmem:[%s8366_s2 + $0x180] sm:$0xff] }
 0x573   :  { %v2311_v39 = vpack.c.bf16 %v2309_v1, %v2309_v1  ;;  %2310 = vst [vmem:[#allocation2 + $0x2] sm:$0x3] %v2309_v1 }
 0x574   :  { %5608 = vmatpush1.bf16.msra.mxu0 %v7582_v49  ;;  %5633 = vmatpush3.bf16.msra.mxu1 %v7584_v18  ;;  %v2776_v49 = vld [vmem:[%s8366_s2 + $0x50] sm:$0xff] }
 0x575   :  { %3966 = vst [vmem:[%s8371_s5 + $0x3] sm:$0x1] %v2311_v39  ;;  %5610 = vmatprep.subr.bf16.mxu0 %v7591_v34  ;;  %5634 = vmatprep.subr.bf16.mxu1 %v6028_v3  ;;  %v7837_v18 = vpack.c.bf16 %v2776_v49, %v2773_v42  ;;  %v2772_v34 = vld [vmem:[%s8366_s2 + $0x30] sm:$0xff]  ;;  %v2515_v39 = vrot.slane %v2317_v27, 2 }
 0x578   :  { %5612 = vmatpush1.bf16.msra.mxu0 %v7604_v57  ;;  %5636 = vmatpush3.bf16.msra.mxu1 %v7606_v20  ;;  %v2775_v57 = vld [vmem:[%s8366_s2 + $0x48] sm:$0xff] }
 0x579   :  { %5669 = vmatprep.subr.bf16.mxu1 %v6028_v3  ;;  %5638 = vmatprep.subr.bf16.mxu0 %v7819_v46  ;;  %v7845_v20 = vpack.c.bf16 %v2775_v57, %v2772_v34 }
 0x57a   :  { %v7790_v54 = vld [vmem:[#allocation2 + $0x2] sm:$0x3] }
 0x57b   :  { %2655 = vmatmul.mubr.f32.vlgmr.msra.gmra.mrb[22].mxu0 %v7790_v54  ;;  %4823 = vmatmul.mubr.f32.vlgmr.msra.gmra.mrb[22].mxu1 %v7790_v54 }
 0x57c   :  { %5671 = vmatpush3.bf16.msra.mxu1 %v7646_v41  ;;  %2878 = vmatprep.mubr.f32.mxu0 %v6029_v4  ;;  %v2782_v41 = vld [vmem:[%s8366_s2 + $0x80] sm:$0xff] }
 0x57d   :  { %5672 = vmatprep.subr.bf16.mxu1 %v6028_v3  ;;  %4857 = vmatprep.mubr.msk.f32.mxu1 %vm6030_vm0, %v6029_v4 }
 0x57e   :  { %5640 = vmatpush1.bf16.msra.mxu0 %v7827_v19 }
 0x57f   :  { %5642 = vmatprep.subr.bf16.mxu0 %v7837_v18 }
 0x580   :  { %5674 = vmatpush3.bf16.msra.mxu1 %v7656_v23  ;;  %v7855_v23 = vpack.c.bf16 %v2782_v41, %v2779_v63 }
 0x581   :  { %5675 = vmatprep.subr.bf16.mxu1 %v6028_v3 }
 0x582   :  { %5644 = vmatpush1.bf16.msra.mxu0 %v7845_v20 }
 0x583   :  { %5646 = vmatprep.subr.bf16.mxu0 %v7855_v23 }
 0x584   :  { %5677 = vmatpush3.bf16.msra.mxu1 %v7666_v58  ;;  %v2778_v58 = vld [vmem:[%s8366_s2 + $0x60] sm:$0xff] }
 0x585   :  { %5678 = vmatprep.subr.bf16.mxu1 %v6028_v3 }
 0x588   :  { %5680 = vmatpush3.bf16.msra.mxu1 %v7676_v21  ;;  %v2781_v21 = vld [vmem:[%s8366_s2 + $0x78] sm:$0xff] }
 0x589   :  { %5681 = vmatprep.subr.bf16.mxu1 %v6028_v3 }
 0x58c   :  { %5683 = vmatpush3.bf16.msra.mxu1 %v7686_v11  ;;  %v7863_v11 = vpack.c.bf16 %v2781_v21, %v2778_v58  ;;  %v3971_v58 = vld [vmem:[%s8369_s1 + $0x6] sm:$0x7] }
 0x58d   :  { %5684 = vmatprep.subr.bf16.mxu1 %v6028_v3  ;;  %v7973_v37 = vunpack.c.l.bf16 %v3971_v58  ;;  %v4043_v58 = vld [vmem:[%s8366_s2 + $0x1f8] sm:$0xff] }
 0x58e   :  { %5648 = vmatpush1.bf16.msra.mxu0 %v7863_v11 }
 0x58f   :  { %v2739_v10 = vrot.slane %v7973_v37, 2 }
 0x590   :  { %5686 = vmatpush3.bf16.msra.mxu1 %v7696_v52  ;;  %v2785_v52 = vld [vmem:[%s8366_s2 + $0x98] sm:$0xff] }
 0x591   :  { %5687 = vmatprep.subr.bf16.mxu1 %v6028_v3 }
 0x594   :  { %5689 = vmatpush3.bf16.msra.mxu1 %v7706_v61  ;;  %v2788_v61 = vld [vmem:[%s8366_s2 + $0xb0] sm:$0xff] }
 0x595   :  { %5690 = vmatprep.subr.bf16.mxu1 %v6028_v3 }
 0x598   :  { %5692 = vmatpush3.bf16.msra.mxu1 %v7716_v36  ;;  %v7873_v36 = vpack.c.bf16 %v2788_v61, %v2785_v52  ;;  %v2526_v52 = vrot.slane %v2317_v27, 4 }
 0x599   :  { %5725 = vmatprep.subr.bf16.mxu1 %v6028_v3 }
 0x59a   :  { %5650 = vmatprep.subr.bf16.mxu0 %v7873_v36 }
 0x59b   :  { %5652 = vmatpush1.bf16.msra.mxu0 %v7881_v31 }
 0x59c   :  { %5654 = vmatprep.subr.bf16.mxu0 %v7891_v14 }
 0x59f   :  { %5656 = vmatpush1.bf16.msra.mxu0 %v7899_v47 }
 0x5a0   :  { %5658 = vmatprep.subr.bf16.mxu0 %v7909_v60 }
 0x5a3   :  { %5660 = vmatpush1.bf16.msra.mxu0 %v7917_v8 }
 0x5a4   :  { %5662 = vmatprep.subr.bf16.mxu0 %v7927_v59 }
 0x5a7   :  { %5664 = vmatpush1.bf16.msra.mxu0 %v7935_v51 }
 0x5a8   :  { %5666 = vmatprep.subr.bf16.mxu0 %v7945_v9 }
 0x5ab   :  { %5668 = vmatpush1.bf16.msra.mxu0 %v7953_v2 }
 0x5ac   :  { %5694 = vmatprep.subr.bf16.mxu0 %v7963_v13 }
 0x62e   :  { %v2432_v40 = vpop.f32.mrb[20].mxu0  ;;  %v2503_v1 = vpop.f32.mrb[20].mxu1 }
 0x62f   :  { %v2507_v0 = vadd.f32 %v2432_v40, %v2317_v27  ;;  %v2434_v45 = vpop.f32.mrb[21].mxu0  ;;  %v4789_v16 = vpop.f32.mrb[21].mxu1  ;;  %v2524_v21 = vadd.f32 %v7388_v38, %v2503_v1  ;;  %v4031_v27 = vld [vmem:[%s8366_s2 + $0x198] sm:$0xff]  ;;  %v4038_v40 = vld [vmem:[%s8366_s2 + $0x1d0] sm:$0xff] }
 0x630   :  { %v2517_v42 = vadd.f32 %v2515_v39, %v2434_v45  ;;  %v7993_v1 = vpack.c.bf16 %v4031_v27, %v4028_v26  ;;  %v4034_v45 = vld [vmem:[%s8366_s2 + $0x1b0] sm:$0xff]  ;;  %v4037_v16 = vld [vmem:[%s8366_s2 + $0x1c8] sm:$0xff] }
 0x631   :  { %v3968_v25 = vmul.f32 -1.442695, %v2507_v0 }
 0x632   :  { %v3969_v49 = vmul.f32 -1.442695, %v2517_v42  ;;  %v4041_v42 = vld [vmem:[%s8366_s2 + $0x1e8] sm:$0xff] }
 0x633   :  { %5964 = vpow2.f32 %v3968_v25 }
 0x634   :  { %5966 = vpow2.f32 %v3969_v49  ;;  %v4044_v49 = vld [vmem:[%s8366_s2 + $0x200] sm:$0xff] }
 0x63d   :  { %v5965_v34 = vpop.eup %5964 }
 0x63e   :  { %v2511_v57 = vadd.f32 1.0, %v5965_v34  ;;  %v5967_v63 = vpop.eup %5966 }
 0x63f   :  { %v2521_v41 = vadd.f32 1.0, %v5967_v63  ;;  %v4040_v63 = vld [vmem:[%s8366_s2 + $0x1e0] sm:$0xff] }
 0x640   :  { %5968 = vrcp.f32 %v2511_v57  ;;  %v8015_v57 = vpack.c.bf16 %v4037_v16, %v4034_v45  ;;  %v4060_v45 = vld [vmem:[%s8366_s2 + $0x280] sm:$0xff]  ;;  %v4063_v16 = vld [vmem:[%s8366_s2 + $0x298] sm:$0xff] }
 0x641   :  { %5970 = vrcp.f32 %v2521_v41  ;;  %v8022_v41 = vpack.c.bf16 %v4044_v49, %v4041_v42  ;;  %v4065_v49 = vld [vmem:[%s8366_s2 + $0x2a8] sm:$0xff] }
 0x64a   :  { %v5969_v61 = vpop.eup %5968 }
 0x64b   :  { %v2525_v15 = vmul.f32 %v5969_v61, %v2524_v21  ;;  %v5971_v38 = vpop.eup %5970  ;;  %v4045_v21 = vld [vmem:[%s8366_s2 + $0x208] sm:$0xff]  ;;  %v2750_v61 = vrot.slane %v7973_v37, 4 }
 0x64c   :  { %v2530_v33 = vsub.f32 1.0, %v5971_v38  ;;  %v2532_v17 = vmul.f32 %v5971_v38, %v7745_v24  ;;  %v4035_v24 = vld [vmem:[%s8366_s2 + $0x1b8] sm:$0xff]  ;;  %v4056_v38 = vld [vmem:[%s8366_s2 + $0x260] sm:$0xff] }
 0x64d   :  { %v2528_v44 = vadd.f32 %v2526_v52, %v2525_v15  ;;  %v7995_v0 = vpack.c.bf16 %v4038_v40, %v4035_v24  ;;  %v4047_v15 = vld [vmem:[%s8366_s2 + $0x218] sm:$0xff]  ;;  %v4058_v24 = vld [vmem:[%s8366_s2 + $0x270] sm:$0xff] }
 0x64e   :  { %v2656_v12 = vpop.f32.mrb[22].mxu0  ;;  %v2727_v35 = vpop.f32.mrb[22].mxu1 }
 0x64f   :  { %5972 = vtanh.f32 %v2528_v44  ;;  %v2731_v5 = vadd.f32 %v2656_v12, %v7973_v37  ;;  %v2658_v62 = vpop.f32.mrb[23].mxu0  ;;  %v4824_v32 = vpop.f32.mrb[23].mxu1  ;;  %v2748_v52 = vadd.f32 %v7454_v28, %v2727_v35  ;;  %v4050_v44 = vld [vmem:[%s8366_s2 + $0x230] sm:$0xff]  ;;  %v8046_v28 = vpack.c.bf16 %v4043_v58, %v4040_v63 }
 0x650   :  { %v2741_v53 = vadd.f32 %v2739_v10, %v2658_v62  ;;  %v4046_v35 = vld [vmem:[%s8366_s2 + $0x210] sm:$0xff]  ;;  %v4049_v62 = vld [vmem:[%s8366_s2 + $0x228] sm:$0xff]  ;;  %v4051_v32 = vld [vmem:[%s8366_s2 + $0x238] sm:$0xff]  ;;  %v8132_v58 = vpack.c.bf16 %v4063_v16, %v4060_v45 }
 0x651   :  { %v4020_v43 = vmul.f32 -1.442695, %v2731_v5  ;;  %v8055_v5 = vpack.c.bf16 %v4050_v44, %v4047_v15  ;;  %v4066_v15 = vld [vmem:[%s8366_s2 + $0x2b0] sm:$0xff]  ;;  %v4069_v44 = vld [vmem:[%s8366_s2 + $0x2c8] sm:$0xff] }
 0x652   :  { %v4021_v50 = vmul.f32 -1.442695, %v2741_v53  ;;  %v4053_v53 = vld [vmem:[%s8366_s2 + $0x248] sm:$0xff]  ;;  %v3252_v45 = vld [vmem:[%s8366_s2 + $0x130] sm:$0xff] }
 0x653   :  { %5974 = vpow2.f32 %v4020_v43  ;;  %v3255_v16 = vld [vmem:[%s8366_s2 + $0x148] sm:$0xff] }
 0x654   :  { %5976 = vpow2.f32 %v4021_v50  ;;  %v8074_v50 = vpack.c.bf16 %v4049_v62, %v4046_v35  ;;  %v4074_v35 = vld [vmem:[%s8366_s2 + $0x2f0] sm:$0xff] }
 0x659   :  { %v5973_v7 = vpop.eup %5972 }
 0x65a   :  { %v2531_v29 = vmul.f32 %v5973_v7, %v2530_v33  ;;  %v4052_v7 = vld [vmem:[%s8366_s2 + $0x240] sm:$0xff] }
 0x65c   :  { %v2533_v22 = vadd.f32 %v2532_v17, %v2531_v29  ;;  %v8083_v29 = vpack.c.bf16 %v4056_v38, %v4053_v53  ;;  %v4055_v17 = vld [vmem:[%s8366_s2 + $0x258] sm:$0xff]  ;;  %v4070_v53 = vld [vmem:[%s8366_s2 + $0x2d0] sm:$0xff] }
 0x65d   :  { %v5975_v48 = vpop.eup %5974  ;;  %v8102_v26 = vpack.c.bf16 %v4055_v17, %v4052_v7  ;;  %v4072_v17 = vld [vmem:[%s8366_s2 + $0x2e0] sm:$0xff] }
 0x65e   :  { %v2535_v6 = vpack.c.bf16 %v2533_v22, %v2533_v22  ;;  %2534 = vst [vmem:[#allocation2] sm:$0x3] %v2533_v22  ;;  %v2735_v30 = vadd.f32 1.0, %v5975_v48  ;;  %v5977_v39 = vpop.eup %5976  ;;  %v4054_v22 = vld [vmem:[%s8366_s2 + $0x250] sm:$0xff]  ;;  %v4057_v48 = vld [vmem:[%s8366_s2 + $0x268] sm:$0xff] }
 0x65f   :  { %v2745_v34 = vadd.f32 1.0, %v5977_v39  ;;  %v8104_v27 = vpack.c.bf16 %v4057_v48, %v4054_v22  ;;  %v4061_v39 = vld [vmem:[%s8366_s2 + $0x288] sm:$0xff]  ;;  %v4075_v22 = vld [vmem:[%s8366_s2 + $0x2f8] sm:$0xff] }
 0x660   :  { %3970 = vst [vmem:[%s8370_s4 + $0x5] sm:$0x1] %v2535_v6  ;;  %5978 = vrcp.f32 %v2735_v30  ;;  %v4059_v6 = vld [vmem:[%s8366_s2 + $0x278] sm:$0xff]  ;;  %v4062_v30 = vld [vmem:[%s8366_s2 + $0x290] sm:$0xff]  ;;  %v8130_v63 = vpack.c.bf16 %v4061_v39, %v4058_v24 }
 0x661   :  { %5980 = vrcp.f32 %v2745_v34  ;;  %v8111_v40 = vpack.c.bf16 %v4062_v30, %v4059_v6  ;;  %v4068_v34 = vld [vmem:[%s8366_s2 + $0x2c0] sm:$0xff]  ;;  %v8183_v30 = vpack.c.bf16 %v4075_v22, %v4072_v17 }
 0x665   :  { %v8003_v25 = vld [vmem:[#allocation2] sm:$0x3] }
 0x666   :  { %2879 = vmatmul.mubr.f32.vlgmr.msra.gmra.mrb[24].mxu0 %v8003_v25  ;;  %4858 = vmatmul.mubr.f32.vlgmr.msra.gmra.mrb[24].mxu1 %v8003_v25 }
 0x667   :  { %5696 = vmatpush1.bf16.msra.mxu0 %v7993_v1  ;;  %5727 = vmatpush3.bf16.msra.mxu1 %v7737_v55  ;;  %v4042_v55 = vld [vmem:[%s8366_s2 + $0x1f0] sm:$0xff] }
 0x668   :  { %5698 = vmatprep.subr.bf16.mxu0 %v7995_v0  ;;  %5728 = vmatprep.subr.bf16.mxu1 %v6028_v3  ;;  %v8048_v37 = vpack.c.bf16 %v4045_v21, %v4042_v55  ;;  %v4064_v55 = vld [vmem:[%s8366_s2 + $0x2a0] sm:$0xff] }
 0x669   :  { %3102 = vmatprep.mubr.f32.mxu0 %v6029_v4  ;;  %4892 = vmatprep.mubr.msk.f32.mxu1 %vm6030_vm0, %v6029_v4 }
 0x66a   :  { %v5979_v12 = vpop.eup %5978 }
 0x66b   :  { %v2749_v10 = vmul.f32 %v5979_v12, %v2748_v52  ;;  %5700 = vmatpush1.bf16.msra.mxu0 %v8015_v57  ;;  %5730 = vmatpush3.bf16.msra.mxu1 %v7751_v56  ;;  %v4048_v56 = vld [vmem:[%s8366_s2 + $0x220] sm:$0xff]  ;;  %v5981_v42 = vpop.eup %5980  ;;  %v8139_v52 = vpack.c.bf16 %v4068_v34, %v4065_v49  ;;  %v3261_v34 = vld [vmem:[%s8366_s2 + $0x178] sm:$0xff] }
 0x66c   :  { %5702 = vmatprep.subr.bf16.mxu0 %v8022_v41  ;;  %5731 = vmatprep.subr.bf16.mxu1 %v6028_v3  ;;  %v8076_v33 = vpack.c.bf16 %v4051_v32, %v4048_v56  ;;  %v2754_v21 = vsub.f32 1.0, %v5981_v42  ;;  %v2756_v56 = vmul.f32 %v5981_v42, %v7790_v54  ;;  %v4073_v54 = vld [vmem:[%s8366_s2 + $0x2e8] sm:$0xff]  ;;  %v5800_v42 = vpack.c.bf16 %v3255_v16, %v3252_v45  ;;  %v3258_v49 = vld [vmem:[%s8366_s2 + $0x160] sm:$0xff] }
 0x66d   :  { %v2752_v43 = vadd.f32 %v2750_v61, %v2749_v10  ;;  %v4067_v61 = vld [vmem:[%s8366_s2 + $0x2b8] sm:$0xff]  ;;  %v8181_v6 = vpack.c.bf16 %v4073_v54, %v4070_v53 }
 0x66e   :  { %v4071_v10 = vld [vmem:[%s8366_s2 + $0x2d8] sm:$0xff]  ;;  %v8159_v32 = vpack.c.bf16 %v4067_v61, %v4064_v55  ;;  %v5803_v55 = vpack.c.bf16 %v3261_v34, %v3258_v49 }
 0x66f   :  { %5982 = vtanh.f32 %v2752_v43  ;;  %5704 = vmatpush1.bf16.msra.mxu0 %v8046_v28  ;;  %5733 = vmatpush3.bf16.msra.mxu1 %v8048_v37  ;;  %v8161_v43 = vpack.c.bf16 %v4069_v44, %v4066_v15  ;;  %v8168_v7 = vpack.c.bf16 %v4074_v35, %v4071_v10 }
 0x670   :  { %5706 = vmatprep.subr.bf16.mxu0 %v8055_v5  ;;  %5734 = vmatprep.subr.bf16.mxu1 %v6028_v3 }
 0x673   :  { %5708 = vmatpush1.bf16.msra.mxu0 %v8074_v50  ;;  %5736 = vmatpush3.bf16.msra.mxu1 %v8076_v33 }
 0x674   :  { %5710 = vmatprep.subr.bf16.mxu0 %v8083_v29  ;;  %5737 = vmatprep.subr.bf16.mxu1 %v6028_v3 }
 0x677   :  { %5712 = vmatpush1.bf16.msra.mxu0 %v8102_v26  ;;  %5739 = vmatpush3.bf16.msra.mxu1 %v8104_v27 }
 0x678   :  { %5714 = vmatprep.subr.bf16.mxu0 %v8111_v40  ;;  %5740 = vmatprep.subr.bf16.mxu1 %v6028_v3 }
 0x679   :  { %v5983_v12 = vpop.eup %5982 }
 0x67a   :  { %v2755_v62 = vmul.f32 %v5983_v12, %v2754_v21  ;;  %v4023_v21 = vld [vmem:[%s8367_s0 + $0x12] sm:$0x7] }
 0x67b   :  { %5716 = vmatpush1.bf16.msra.mxu0 %v8130_v63  ;;  %5742 = vmatpush3.bf16.msra.mxu1 %v8132_v58  ;;  %v2765_v61 = vunpack.c.l.bf16 %v4023_v21 }
 0x67c   :  { %v2757_v38 = vadd.f32 %v2756_v56, %v2755_v62  ;;  %5718 = vmatprep.subr.bf16.mxu0 %v8139_v52  ;;  %5743 = vmatprep.subr.bf16.mxu1 %v6028_v3 }
 0x67d   :  { %v2963_v12 = vrot.slane %v2765_v61, 2 }
 0x67e   :  { %v2759_v48 = vpack.c.bf16 %v2757_v38, %v2757_v38  ;;  %2758 = vst [vmem:[#allocation2 + $0x2] sm:$0x3] %v2757_v38 }
 0x67f   :  { %5720 = vmatpush1.bf16.msra.mxu0 %v8159_v32  ;;  %5745 = vmatpush3.bf16.msra.mxu1 %v8161_v43 }
 0x680   :  { %4022 = vst [vmem:[%s8371_s5 + $0x2] sm:$0x1] %v2759_v48  ;;  %5722 = vmatprep.subr.bf16.mxu0 %v8168_v7  ;;  %5746 = vmatprep.subr.bf16.mxu1 %v6028_v3 }
 0x683   :  { %5724 = vmatpush1.bf16.msra.mxu0 %v8181_v6  ;;  %5748 = vmatpush3.bf16.msra.mxu1 %v8183_v30 }
 0x684   :  { %5750 = vmatprep.subr.bf16.mxu0 %v7819_v46  ;;  %5781 = vmatprep.subr.bf16.mxu1 %v6028_v3  ;;  %v3216_v46 = vld [vmem:[%s8366_s2 + $0x10] sm:$0xff] }
 0x685   :  { %v8194_v24 = vld [vmem:[#allocation2 + $0x2] sm:$0x3] }
 0x686   :  { %3103 = vmatmul.mubr.f32.vlgmr.msra.gmra.mrb[26].mxu0 %v8194_v24  ;;  %4893 = vmatmul.mubr.f32.vlgmr.msra.gmra.mrb[26].mxu1 %v8194_v24 }
 0x687   :  { %5752 = vmatpush1.bf16.msra.mxu0 %v7827_v19  ;;  %3326 = vmatprep.mubr.f32.mxu0 %v6029_v4  ;;  %v3219_v19 = vld [vmem:[%s8366_s2 + $0x28] sm:$0xff] }
 0x688   :  { %5754 = vmatprep.subr.bf16.mxu0 %v7837_v18  ;;  %4927 = vmatprep.mubr.msk.f32.mxu1 %vm6030_vm0, %v6029_v4  ;;  %v5782_v18 = vpack.c.bf16 %v3219_v19, %v3216_v46  ;;  %v4027_v46 = vld [vmem:[%s8369_s1 + $0x3] sm:$0x7]  ;;  %v8282_v19 = vld [vmem:[%s8368_s3] ss:$0 sm:$0xff] }
 0x68a   :  { %5783 = vmatpush3.bf16.msra.mxu1 %v5782_v18 }
 0x68b   :  { %5756 = vmatpush1.bf16.msra.mxu0 %v7845_v20  ;;  %5784 = vmatprep.subr.bf16.mxu1 %v6028_v3  ;;  %v3222_v20 = vld [vmem:[%s8366_s2 + $0x40] sm:$0xff] }
 0x68c   :  { %5758 = vmatprep.subr.bf16.mxu0 %v7855_v23  ;;  %v3225_v23 = vld [vmem:[%s8366_s2 + $0x58] sm:$0xff] }
 0x68f   :  { %5760 = vmatpush1.bf16.msra.mxu0 %v7863_v11  ;;  %v5785_v11 = vpack.c.bf16 %v3225_v23, %v3222_v20  ;;  %v2974_v20 = vrot.slane %v2765_v61, 4 }
 0x690   :  { %5762 = vmatprep.subr.bf16.mxu0 %v7873_v36  ;;  %v3228_v36 = vld [vmem:[%s8366_s2 + $0x70] sm:$0xff] }
 0x691   :  { %5786 = vmatpush3.bf16.msra.mxu1 %v5785_v11  ;;  %v2989_v11 = vunpack.c.l.bf16 %v4027_v46  ;;  %v3435_v46 = vld [vmem:[%s8369_s1] sm:$0x7] }
 0x692   :  { %5787 = vmatprep.subr.bf16.mxu1 %v6028_v3 }
 0x693   :  { %5764 = vmatpush1.bf16.msra.mxu0 %v7881_v31  ;;  %v3231_v31 = vld [vmem:[%s8366_s2 + $0x88] sm:$0xff] }
 0x694   :  { %5766 = vmatprep.subr.bf16.mxu0 %v7891_v14  ;;  %v5788_v14 = vpack.c.bf16 %v3231_v31, %v3228_v36 }
 0x696   :  { %5789 = vmatpush3.bf16.msra.mxu1 %v5788_v14 }
 0x697   :  { %5768 = vmatpush1.bf16.msra.mxu0 %v7899_v47  ;;  %5790 = vmatprep.subr.bf16.mxu1 %v6028_v3  ;;  %v3234_v47 = vld [vmem:[%s8366_s2 + $0xa0] sm:$0xff] }
 0x698   :  { %5770 = vmatprep.subr.bf16.mxu0 %v7909_v60  ;;  %v3237_v60 = vld [vmem:[%s8366_s2 + $0xb8] sm:$0xff] }
 0x69b   :  { %5772 = vmatpush1.bf16.msra.mxu0 %v7917_v8  ;;  %v5791_v8 = vpack.c.bf16 %v3237_v60, %v3234_v47  ;;  %v3187_v60 = vrot.slane %v2989_v11, 2 }
 0x69c   :  { %5774 = vmatprep.subr.bf16.mxu0 %v7927_v59  ;;  %v3240_v59 = vld [vmem:[%s8366_s2 + $0xd0] sm:$0xff] }
 0x69d   :  { %5792 = vmatpush3.bf16.msra.mxu1 %v5791_v8 }
 0x69e   :  { %5793 = vmatprep.subr.bf16.mxu1 %v6028_v3 }
 0x69f   :  { %5776 = vmatpush1.bf16.msra.mxu0 %v7935_v51  ;;  %v3243_v51 = vld [vmem:[%s8366_s2 + $0xe8] sm:$0xff] }
 0x6a0   :  { %5778 = vmatprep.subr.bf16.mxu0 %v7945_v9  ;;  %v5794_v9 = vpack.c.bf16 %v3243_v51, %v3240_v59 }
 0x6a2   :  { %5795 = vmatpush3.bf16.msra.mxu1 %v5794_v9 }
 0x6a3   :  { %5780 = vmatpush1.bf16.msra.mxu0 %v7953_v2  ;;  %5796 = vmatprep.subr.bf16.mxu1 %v6028_v3  ;;  %v3246_v2 = vld [vmem:[%s8366_s2 + $0x100] sm:$0xff] }
 0x6a4   :  { %5806 = vmatprep.subr.bf16.mxu0 %v7963_v13  ;;  %v3249_v13 = vld [vmem:[%s8366_s2 + $0x118] sm:$0xff] }
 0x6a5   :  { %v5797_v39 = vpack.c.bf16 %v3249_v13, %v3246_v2 }
 0x6a7   :  { %5798 = vmatpush3.bf16.msra.mxu1 %v5797_v39 }
 0x6a8   :  { %5799 = vmatprep.subr.bf16.mxu1 %v6028_v3 }
 0x6ab   :  { %5801 = vmatpush3.bf16.msra.mxu1 %v5800_v42 }
 0x6ac   :  { %5802 = vmatprep.subr.bf16.mxu1 %v6028_v3 }
 0x6af   :  { %5804 = vmatpush3.bf16.msra.mxu1 %v5803_v55 }
 0x6b0   :  { %5837 = vmatprep.subr.bf16.mxu1 %v6028_v3 }
 0x739   :  { %v2880_v15 = vpop.f32.mrb[24].mxu0  ;;  %v2951_v44 = vpop.f32.mrb[24].mxu1 }
 0x73a   :  { %v2955_v10 = vadd.f32 %v2880_v15, %v2765_v61  ;;  %v2882_v35 = vpop.f32.mrb[25].mxu0  ;;  %v4859_v62 = vpop.f32.mrb[25].mxu1  ;;  %v2972_v18 = vadd.f32 %v8282_v19, %v2951_v44  ;;  %v4085_v15 = vld [vmem:[%s8366_s2 + $0x190] sm:$0xff]  ;;  %v4088_v44 = vld [vmem:[%s8366_s2 + $0x1a8] sm:$0xff] }
 0x73b   :  { %v2965_v53 = vadd.f32 %v2963_v12, %v2882_v35  ;;  %v4094_v35 = vld [vmem:[%s8366_s2 + $0x1d8] sm:$0xff] }
 0x73c   :  { %v4024_v56 = vmul.f32 -1.442695, %v2955_v10  ;;  %v4091_v10 = vld [vmem:[%s8366_s2 + $0x1c0] sm:$0xff] }
 0x73d   :  { %v4025_v38 = vmul.f32 -1.442695, %v2965_v53  ;;  %v5841_v53 = vpack.c.bf16 %v4094_v35, %v4091_v10 }
 0x73e   :  { %5984 = vpow2.f32 %v4024_v56 }
 0x73f   :  { %5986 = vpow2.f32 %v4025_v38  ;;  %v8311_v38 = vld [vmem:[%s8368_s3 + $0x1] ss:$0 sm:$0xff] }
 0x748   :  { %v5985_v54 = vpop.eup %5984 }
 0x749   :  { %v2959_v17 = vadd.f32 1.0, %v5985_v54  ;;  %v5987_v22 = vpop.eup %5986 }
 0x74a   :  { %v2969_v48 = vadd.f32 1.0, %v5987_v22 }
 0x74b   :  { %5988 = vrcp.f32 %v2959_v17  ;;  %v3198_v17 = vrot.slane %v2989_v11, 4 }
 0x74c   :  { %5990 = vrcp.f32 %v2969_v48 }
 0x755   :  { %v5989_v23 = vpop.eup %5988 }
 0x756   :  { %v2973_v36 = vmul.f32 %v5989_v23, %v2972_v18  ;;  %v5991_v13 = vpop.eup %5990 }
 0x757   :  { %v2978_v45 = vsub.f32 1.0, %v5991_v13  ;;  %v2980_v49 = vmul.f32 %v5991_v13, %v8003_v25  ;;  %v5838_v25 = vpack.c.bf16 %v4088_v44, %v4085_v15 }
 0x758   :  { %v2976_v31 = vadd.f32 %v2974_v20, %v2973_v36 }
 0x759   :  { %v3104_v14 = vpop.f32.mrb[26].mxu0  ;;  %v3175_v47 = vpop.f32.mrb[26].mxu1 }
 0x75a   :  { %5992 = vtanh.f32 %v2976_v31  ;;  %v3179_v8 = vadd.f32 %v3104_v14, %v2989_v11  ;;  %v3106_v59 = vpop.f32.mrb[27].mxu0  ;;  %v4894_v51 = vpop.f32.mrb[27].mxu1  ;;  %v3196_v54 = vadd.f32 %v8311_v38, %v3175_v47  ;;  %v3436_v11 = vunpack.c.l.bf16 %v3435_v46 }
 0x75b   :  { %v3189_v2 = vadd.f32 %v3187_v60, %v3106_v59 }
 0x75c   :  { %v4076_v9 = vmul.f32 -1.442695, %v3179_v8  ;;  %v3634_v60 = vrot.slane %v3436_v11, 2 }
 0x75d   :  { %v4077_v39 = vmul.f32 -1.442695, %v3189_v2 }
 0x75e   :  { %5994 = vpow2.f32 %v4076_v9 }
 0x75f   :  { %5996 = vpow2.f32 %v4077_v39 }
 0x764   :  { %v5993_v16 = vpop.eup %5992 }
 0x765   :  { %v2979_v42 = vmul.f32 %v5993_v16, %v2978_v45 }
 0x767   :  { %v2981_v34 = vadd.f32 %v2980_v49, %v2979_v42 }
 0x768   :  { %v5995_v55 = vpop.eup %5994 }
 0x769   :  { %v2983_v21 = vpack.c.bf16 %v2981_v34, %v2981_v34  ;;  %2982 = vst [vmem:[#allocation2] sm:$0x3] %v2981_v34  ;;  %v3183_v61 = vadd.f32 1.0, %v5995_v55  ;;  %v5997_v12 = vpop.eup %5996 }
 0x76a   :  { %v3193_v56 = vadd.f32 1.0, %v5997_v12 }
 0x76b   :  { %4026 = vst [vmem:[%s8370_s4 + $0x6] sm:$0x1] %v2983_v21  ;;  %5998 = vrcp.f32 %v3183_v61 }
 0x76c   :  { %6000 = vrcp.f32 %v3193_v56 }
 0x770   :  { %v8301_v62 = vld [vmem:[#allocation2] sm:$0x3] }
 0x771   :  { %3327 = vmatmul.mubr.f32.vlgmr.msra.gmra.mrb[28].mxu0 %v8301_v62  ;;  %4928 = vmatmul.mubr.f32.vlgmr.msra.gmra.mrb[28].mxu1 %v8301_v62 }
 0x772   :  { %5808 = vmatpush1.bf16.msra.mxu0 %v7993_v1  ;;  %5839 = vmatpush3.bf16.msra.mxu1 %v5838_v25  ;;  %v3645_v25 = vrot.slane %v3436_v11, 4 }
 0x773   :  { %5810 = vmatprep.subr.bf16.mxu0 %v7995_v0  ;;  %5840 = vmatprep.subr.bf16.mxu1 %v6028_v3 }
 0x774   :  { %3549 = vmatprep.mubr.f32.mxu0 %v6029_v4  ;;  %4962 = vmatprep.mubr.msk.f32.mxu1 %vm6030_vm0, %v6029_v4 }
 0x775   :  { %v5999_v1 = vpop.eup %5998 }
 0x776   :  { %v3197_v22 = vmul.f32 %v5999_v1, %v3196_v54  ;;  %5812 = vmatpush1.bf16.msra.mxu0 %v8015_v57  ;;  %5842 = vmatpush3.bf16.msra.mxu1 %v5841_v53  ;;  %v6001_v4 = vpop.eup %6000 }
 0x777   :  { %5814 = vmatprep.subr.bf16.mxu0 %v8022_v41  ;;  %5843 = vmatprep.subr.bf16.mxu1 %v6028_v3  ;;  %v3202_v57 = vsub.f32 1.0, %v6001_v4 }
 0x778   :  { %v3200_v0 = vadd.f32 %v3198_v17, %v3197_v22 }
 0x77a   :  { %6002 = vtanh.f32 %v3200_v0  ;;  %5816 = vmatpush1.bf16.msra.mxu0 %v8046_v28  ;;  %5845 = vmatpush3.bf16.msra.mxu1 %v8048_v37  ;;  %v3204_v37 = vmul.f32 %v6001_v4, %v8194_v24 }
 0x77b   :  { %5818 = vmatprep.subr.bf16.mxu0 %v8055_v5  ;;  %5846 = vmatprep.subr.bf16.mxu1 %v6028_v3 }
 0x77e   :  { %5820 = vmatpush1.bf16.msra.mxu0 %v8074_v50  ;;  %5848 = vmatpush3.bf16.msra.mxu1 %v8076_v33 }
 0x77f   :  { %5822 = vmatprep.subr.bf16.mxu0 %v8083_v29  ;;  %5849 = vmatprep.subr.bf16.mxu1 %v6028_v3  ;;  %v4079_v29 = vld [vmem:[%s8367_s0 + $0x15] sm:$0x7] }
 0x782   :  { %5824 = vmatpush1.bf16.msra.mxu0 %v8102_v26  ;;  %5851 = vmatpush3.bf16.msra.mxu1 %v8104_v27  ;;  %v3213_v26 = vunpack.c.l.bf16 %v4079_v29 }
 0x783   :  { %5826 = vmatprep.subr.bf16.mxu0 %v8111_v40  ;;  %5852 = vmatprep.subr.bf16.mxu1 %v6028_v3 }
 0x784   :  { %v6003_v41 = vpop.eup %6002  ;;  %v3422_v20 = vrot.slane %v3213_v26, 4 }
 0x785   :  { %v3203_v28 = vmul.f32 %v6003_v41, %v3202_v57 }
 0x786   :  { %5828 = vmatpush1.bf16.msra.mxu0 %v8130_v63  ;;  %5854 = vmatpush3.bf16.msra.mxu1 %v8132_v58  ;;  %v3411_v63 = vrot.slane %v3213_v26, 2 }
 0x787   :  { %v3205_v5 = vadd.f32 %v3204_v37, %v3203_v28  ;;  %5830 = vmatprep.subr.bf16.mxu0 %v8139_v52  ;;  %5855 = vmatprep.subr.bf16.mxu1 %v6028_v3 }
 0x789   :  { %v3207_v50 = vpack.c.bf16 %v3205_v5, %v3205_v5  ;;  %3206 = vst [vmem:[#allocation2 + $0x2] sm:$0x3] %v3205_v5 }
 0x78a   :  { %5832 = vmatpush1.bf16.msra.mxu0 %v8159_v32  ;;  %5857 = vmatpush3.bf16.msra.mxu1 %v8161_v43 }
 0x78b   :  { %4078 = vst [vmem:[%s8371_s5 + $0x1] sm:$0x1] %v3207_v50  ;;  %5834 = vmatprep.subr.bf16.mxu0 %v8168_v7  ;;  %5858 = vmatprep.subr.bf16.mxu1 %v6028_v3 }
 0x78e   :  { %5836 = vmatpush1.bf16.msra.mxu0 %v8181_v6  ;;  %5860 = vmatpush3.bf16.msra.mxu1 %v8183_v30 }
 0x790   :  { %v8346_v33 = vld [vmem:[#allocation2 + $0x2] sm:$0x3] }
 0x791   :  { %3550 = vmatmul.mubr.f32.vlgmr.msra.gmra.mrb[30].mxu0 %v8346_v33  ;;  %4963 = vmatmul.mubr.f32.vlgmr.msra.gmra.mrb[30].mxu1 %v8346_v33 }
 0x844   :  { %v3328_v27 = vpop.f32.mrb[28].mxu0  ;;  %v3399_v40 = vpop.f32.mrb[28].mxu1 }
 0x845   :  { %v3403_v58 = vadd.f32 %v3328_v27, %v3213_v26  ;;  %v3330_v3 = vpop.f32.mrb[29].mxu0  ;;  %v4929_v52 = vpop.f32.mrb[29].mxu1  ;;  %v3420_v18 = vadd.f32 %v8282_v19, %v3399_v40 }
 0x846   :  { %v3413_v43 = vadd.f32 %v3411_v63, %v3330_v3 }
 0x847   :  { %v4080_v32 = vmul.f32 -1.442695, %v3403_v58 }
 0x848   :  { %v4081_v7 = vmul.f32 -1.442695, %v3413_v43 }
 0x849   :  { %6004 = vpow2.f32 %v4080_v32 }
 0x84a   :  { %6006 = vpow2.f32 %v4081_v7 }
 0x853   :  { %v6005_v6 = vpop.eup %6004 }
 0x854   :  { %v3407_v30 = vadd.f32 1.0, %v6005_v6  ;;  %v6007_v24 = vpop.eup %6006 }
 0x855   :  { %v3417_v48 = vadd.f32 1.0, %v6007_v24 }
 0x856   :  { %6008 = vrcp.f32 %v3407_v30 }
 0x857   :  { %6010 = vrcp.f32 %v3417_v48 }
 0x860   :  { %v6009_v23 = vpop.eup %6008 }
 0x861   :  { %v3421_v36 = vmul.f32 %v6009_v23, %v3420_v18  ;;  %v6011_v13 = vpop.eup %6010 }
 0x862   :  { %v3426_v45 = vsub.f32 1.0, %v6011_v13  ;;  %v3428_v42 = vmul.f32 %v6011_v13, %v8301_v62 }
 0x863   :  { %v3424_v31 = vadd.f32 %v3422_v20, %v3421_v36 }
 0x864   :  { %v3551_v14 = vpop.f32.mrb[30].mxu0  ;;  %v3622_v47 = vpop.f32.mrb[30].mxu1 }
 0x865   :  { %6012 = vtanh.f32 %v3424_v31  ;;  %v3626_v8 = vadd.f32 %v3551_v14, %v3436_v11  ;;  %v3553_v59 = vpop.f32.mrb[31].mxu0  ;;  %v4964_v51 = vpop.f32.mrb[31].mxu1  ;;  %v3643_v44 = vadd.f32 %v8311_v38, %v3622_v47 }
 0x866   :  { %v3636_v2 = vadd.f32 %v3634_v60, %v3553_v59 }
 0x867   :  { %v4131_v9 = vmul.f32 -1.442695, %v3626_v8 }
 0x868   :  { %v4132_v39 = vmul.f32 -1.442695, %v3636_v2 }
 0x869   :  { %6014 = vpow2.f32 %v4131_v9 }
 0x86a   :  { %6016 = vpow2.f32 %v4132_v39 }
 0x86f   :  { %v6013_v19 = vpop.eup %6012 }
 0x870   :  { %v3427_v16 = vmul.f32 %v6013_v19, %v3426_v45 }
 0x872   :  { %v3429_v49 = vadd.f32 %v3428_v42, %v3427_v16 }
 0x873   :  { %v6015_v34 = vpop.eup %6014 }
 0x874   :  { %3430 = vst [vmem:[#allocation2] sm:$0x3] %v3429_v49  ;;  %v3431_v55 = vpack.c.bf16 %v3429_v49, %v3429_v49  ;;  %v3630_v21 = vadd.f32 1.0, %v6015_v34  ;;  %v6017_v61 = vpop.eup %6016 }
 0x875   :  { %v3640_v15 = vadd.f32 1.0, %v6017_v61 }
 0x876   :  { %4082 = vst [vmem:[%s8370_s4 + $0x7] sm:$0x1] %v3431_v55  ;;  %6018 = vrcp.f32 %v3630_v21 }
 0x877   :  { %6020 = vrcp.f32 %v3640_v15 }
 0x880   :  { %v6019_v12 = vpop.eup %6018 }
 0x881   :  { %v3644_v10 = vmul.f32 %v6019_v12, %v3643_v44  ;;  %v6021_v62 = vpop.eup %6020 }
 0x882   :  { %v3649_v56 = vsub.f32 1.0, %v6021_v62  ;;  %v3651_v17 = vmul.f32 %v6021_v62, %v8346_v33 }
 0x883   :  { %v3647_v35 = vadd.f32 %v3645_v25, %v3644_v10 }
 0x885   :  { %6022 = vtanh.f32 %v3647_v35 }
 0x88f   :  { %v6023_v53 = vpop.eup %6022 }
 0x890   :  { %v3650_v54 = vmul.f32 %v6023_v53, %v3649_v56 }
 0x892   :  { %v3652_v1 = vadd.f32 %v3651_v17, %v3650_v54 }
 0x894   :  { %3653 = vst [vmem:[#allocation2 + $0x2] sm:$0x3] %v3652_v1  ;;  %v3654_v22 = vpack.c.bf16 %v3652_v1, %v3652_v1 }
 0x896   :  { %3655 = vst [vmem:[%s8371_s5] sm:$0x1] %v3654_v22 }

</bundles_post_ra>
